<compile_context>
chip_gen: v7x
topology: tpu7x:2x2x1
jax: 0.10.0
libtpu: 0.0.40
codegen_flags: <defaults>
</compile_context>

<pallas_src>
import math
from functools import partial

import numpy as np
import jax
import jax.numpy as jnp
from jax.experimental import pallas as pl
from jax.experimental.pallas import tpu as pltpu


BLOCK_FIELDS = ("ln1w", "ln1b", "wqkv", "bqkv", "wproj", "bproj",
                "ln2w", "ln2b", "wfc1", "bfc1", "wfc2", "bfc2")

_VMEM_LIMIT = None


def _vmem_limit():
    """Generation-aware scoped-VMEM budget (3/4 of physical, capped at 96 MiB)."""
    global _VMEM_LIMIT
    if _VMEM_LIMIT is None:
        try:
            cap = int(pltpu.get_tpu_info().vmem_capacity_bytes)
        except Exception:
            cap = 64 * 1024 * 1024          # conservative (v7x-sized) fallback
        _VMEM_LIMIT = int(max(32 * 1024 * 1024, min((cap * 3) // 4, 96 * 1024 * 1024)))
    return _VMEM_LIMIT


# ------------------------------------------------------------------
# sincos positional embedding (init-time, numpy) — matches MAE's helper
# ------------------------------------------------------------------
def _get_1d_sincos(embed_dim, pos):
    assert embed_dim % 2 == 0
    omega = np.arange(embed_dim // 2, dtype=np.float64) / (embed_dim / 2.0)
    omega = 1.0 / 10000 ** omega
    pos = pos.reshape(-1)
    out = np.einsum("m,d->md", pos, omega)
    return np.concatenate([np.sin(out), np.cos(out)], axis=1)


def get_2d_sincos_pos_embed(embed_dim, grid_size):
    grid_h = np.arange(grid_size, dtype=np.float32)
    grid_w = np.arange(grid_size, dtype=np.float32)
    grid = np.meshgrid(grid_w, grid_h)          # w goes first (MAE convention)
    grid = np.stack(grid, axis=0).reshape([2, 1, grid_size, grid_size])
    emb_h = _get_1d_sincos(embed_dim // 2, grid[0])
    emb_w = _get_1d_sincos(embed_dim // 2, grid[1])
    return np.concatenate([emb_h, emb_w], axis=1).astype(np.float32)   # (grid**2, D)


# ------------------------------------------------------------------
# BlockSpec helpers
# ------------------------------------------------------------------
def _const_spec(a):
    """Whole-array block whose index is constant across the grid (weights / resident inputs)."""
    nd = a.ndim
    return pl.BlockSpec(a.shape, lambda *_, _nd=nd: (0,) * _nd)


def _depth_spec(a):
    """Leading-dim (depth) indexed block for stacked per-block weights, grid=(depth,)."""
    rest = a.ndim - 1
    return pl.BlockSpec((1,) + a.shape[1:], lambda d, _r=rest: (d,) + (0,) * _r)


# ------------------------------------------------------------------
# In-kernel math helpers
# ------------------------------------------------------------------
def _ln(x, w, b, eps=1e-5):
    # PyTorch nn.LayerNorm (eps=1e-5), biased variance; f32 math.
    mu = jnp.mean(x, axis=-1, keepdims=True)
    var = jnp.mean((x - mu) ** 2, axis=-1, keepdims=True)
    return (x - mu) * jax.lax.rsqrt(var + eps) * w + b


def _block_math(xf, ln1w, ln1b, wqkv, bqkv, wproj, bproj,
                ln2w, ln2b, wfc1, bfc1, wfc2, bfc2, *, bt, seq, num_heads):
    """Pre-norm transformer block on a flattened (Bt*L, D) f32 tile.

    * one fused (M, D)x(D, 3D) bf16 QKV matmul (lane-dense, full MXU columns)
    * per-head score/context via batched 3-D einsums on static lane slices
    * one (M, D)x(D, D) projection on the head-concatenated context
    """
    M, D = xf.shape
    H = num_heads
    hd = D // H
    scale = 1.0 / math.sqrt(hd)

    # ---- fused QKV ----
    h = _ln(xf, ln1w, ln1b)
    qkv = jnp.dot(h.astype(jnp.bfloat16), wqkv,
                  preferred_element_type=jnp.float32) + bqkv            # (M, 3D)
    qkv = qkv.reshape(bt, seq, 3 * D)                                   # tile-aligned split

    # ---- per-head attention (batched over samples) ----
    # TODO(synk): for WSI-scale L switch to a key-tiled online-softmax (flash)
    # pattern; the full (bt, L, L) score tensor is fine at small L only.
    ctx_parts = []
    for hh in range(H):
        q = qkv[:, :, hh * hd:(hh + 1) * hd]
        k = qkv[:, :, D + hh * hd:D + (hh + 1) * hd]
        v = qkv[:, :, 2 * D + hh * hd:2 * D + (hh + 1) * hd]
        s = jnp.einsum("bqe,bke->bqk", q.astype(jnp.bfloat16), k.astype(jnp.bfloat16),
                       preferred_element_type=jnp.float32) * scale
        s = s - jnp.max(s, axis=-1, keepdims=True)
        p = jnp.exp(s)
        p = p * pl.reciprocal(jnp.sum(p, axis=-1, keepdims=True), approx=True)
        ctx_parts.append(jnp.einsum("bqk,bke->bqe", p.astype(jnp.bfloat16),
                                    v.astype(jnp.bfloat16),
                                    preferred_element_type=jnp.float32))
    ctx = jnp.concatenate(ctx_parts, axis=-1).reshape(M, D)             # (M, D) lane dense

    attn = jnp.dot(ctx.astype(jnp.bfloat16), wproj,
                   preferred_element_type=jnp.float32) + bproj
    x = xf + attn

    # ---- MLP ----
    h2 = _ln(x, ln2w, ln2b)
    h2 = jnp.dot(h2.astype(jnp.bfloat16), wfc1, preferred_element_type=jnp.float32) + bfc1
    # TODO(synk): PyTorch nn.GELU is exact (erf); tanh approximation kept for robust Mosaic lowering.
    h2 = jax.nn.gelu(h2, approximate=True)
    h2 = jnp.dot(h2.astype(jnp.bfloat16), wfc2, preferred_element_type=jnp.float32) + bfc2
    return x + h2


# ------------------------------------------------------------------
# K1: fused encoder (patch embed + pos + block + backbone LN + decoder_embed)
# ------------------------------------------------------------------
def _encoder_kernel(*refs, num_heads, bt, seq):
    x_ref, pos_ref, pw_ref, pb_ref = refs[0:4]
    blk = refs[4:16]
    nw_ref, nb_ref, dw_ref, db_ref = refs[16:20]
    o_ref = refs[20]

    din = x_ref.shape[-1]
    d = pos_ref.shape[-1]
    x = (jnp.dot(x_ref[...].reshape(bt * seq, din).astype(jnp.bfloat16), pw_ref[...],
                 preferred_element_type=jnp.float32)
         + pb_ref[...]
         + pos_ref[...].reshape(bt * seq, d))
    x = _block_math(x, *[r[...] for r in blk], bt=bt, seq=seq, num_heads=num_heads)
    x = _ln(x, nw_ref[...], nb_ref[...])
    y = jnp.dot(x.astype(jnp.bfloat16), dw_ref[...],
                preferred_element_type=jnp.float32) + db_ref[...]
    o_ref[...] = y.reshape(bt, seq, y.shape[-1]).astype(o_ref.dtype)


def encoder_forward(x_rem, pos_tok, p, num_heads, bt=None):
    B, Lk, Din = x_rem.shape
    D = pos_tok.shape[-1]
    Dd = p["dec_embed_w"].shape[1]
    bt = B if bt is None else bt
    assert B % bt == 0 and Lk % 8 == 0
    blk = p["bb_block"]
    weights = ([p["bb_proj_w"], p["bb_proj_b"]]
               + [blk[k] for k in BLOCK_FIELDS]
               + [p["bb_norm_w"], p["bb_norm_b"], p["dec_embed_w"], p["dec_embed_b"]])
    return pl.pallas_call(
        partial(_encoder_kernel, num_heads=num_heads, bt=bt, seq=Lk),
        grid=(B // bt,),
        in_specs=[pl.BlockSpec((bt, Lk, Din), lambda b: (b, 0, 0)),
                  pl.BlockSpec((bt, Lk, D), lambda b: (b, 0, 0))]
                 + [_const_spec(w) for w in weights],
        out_specs=pl.BlockSpec((bt, Lk, Dd), lambda b: (b, 0, 0)),
        out_shape=jax.ShapeDtypeStruct((B, Lk, Dd), jnp.bfloat16),   # bf16 intermediate
        compiler_params=pltpu.CompilerParams(
            dimension_semantics=("parallel",),
            vmem_limit_bytes=_vmem_limit()),
    )(x_rem, pos_tok, *weights)


# ------------------------------------------------------------------
# K2: fused decoder stack — grid=(depth,), whole batch per depth step.
#     Per-depth weights are fetched exactly once; the carried activation lives
#     in a VMEM scratch so only the final activation is written back (bf16).
# ------------------------------------------------------------------
def _decoder_kernel(x_ref, pos_ref, *rest, num_heads, bt, seq):
    blk = rest[:12]
    o_ref = rest[12]
    state = rest[13]            # (bt*seq, Dd) f32 activation carried across depth

    d = pl.program_id(0)
    dd = x_ref.shape[-1]

    @pl.when(d == 0)
    def _():
        state[...] = (x_ref[...].astype(jnp.float32) + pos_ref[...]).reshape(bt * seq, dd)

    y = _block_math(state[...], *[r[0] for r in blk],
                    bt=bt, seq=seq, num_heads=num_heads)
    state[...] = y

    @pl.when(d == pl.num_programs(0) - 1)
    def _():
        o_ref[...] = y.reshape(bt, seq, dd).astype(o_ref.dtype)


def decoder_forward(x, pos_tok, stacked, num_heads):
    B, N, Dd = x.shape
    assert N % 8 == 0
    depth = stacked["ln1w"].shape[0]
    weights = [stacked[k] for k in BLOCK_FIELDS]
    return pl.pallas_call(
        partial(_decoder_kernel, num_heads=num_heads, bt=B, seq=N),
        grid=(depth,),
        in_specs=[_const_spec(x), _const_spec(pos_tok)]
                 + [_depth_spec(w) for w in weights],
        out_specs=pl.BlockSpec((B, N, Dd), lambda d: (0, 0, 0)),
        out_shape=jax.ShapeDtypeStruct((B, N, Dd), jnp.bfloat16),    # bf16 intermediate
        scratch_shapes=[pltpu.VMEM((B * N, Dd), jnp.float32)],
        compiler_params=pltpu.CompilerParams(
            dimension_semantics=("arbitrary",),      # sequential: state carries across depth
            vmem_limit_bytes=_vmem_limit()),
    )(x, pos_tok, *weights)


# ------------------------------------------------------------------
# K3: fused decoder_norm + decoder_pred + per-token squared error.
#     No serial accumulators -> batch axis is "parallel"; the masked mean is
#     two tiny jnp reductions outside the kernel.
# ------------------------------------------------------------------
def _head_loss_kernel(x_ref, lnw_ref, lnb_ref, pw_ref, pb_ref, tgt_ref,
                      pred_ref, err_ref, *, bt, seq, norm_pix_loss):
    dd = x_ref.shape[-1]
    xf = x_ref[...].astype(jnp.float32).reshape(bt * seq, dd)
    h = _ln(xf, lnw_ref[...], lnb_ref[...])
    pred = jnp.dot(h.astype(jnp.bfloat16), pw_ref[...],
                   preferred_element_type=jnp.float32) + pb_ref[...]
    c = pred.shape[-1]
    pred3 = pred.reshape(bt, seq, c)
    pred_ref[...] = pred3

    tgt = tgt_ref[...]
    if norm_pix_loss:
        mean = jnp.mean(tgt, axis=-1, keepdims=True)
        var = jnp.sum((tgt - mean) ** 2, axis=-1, keepdims=True) / (c - 1)  # torch.var (unbiased)
        tgt = (tgt - mean) / jnp.sqrt(var + 1e-6)
    diff = pred3 - tgt
    # per-token MSE; trailing-1 layout is negligible at these sizes
    # (at WSI scale emit a lane-dense (B, N) block or reduce fully in-kernel).
    err_ref[...] = jnp.mean(diff * diff, axis=-1, keepdims=True)


def head_loss_forward(x, target, lnw, lnb, pw, pb, norm_pix_loss, bt=None):
    B, N, Dd = x.shape
    C = pw.shape[1]
    bt = B if bt is None else bt
    assert B % bt == 0
    pred, tok_err = pl.pallas_call(
        partial(_head_loss_kernel, bt=bt, seq=N, norm_pix_loss=norm_pix_loss),
        grid=(B // bt,),
        in_specs=[pl.BlockSpec((bt, N, Dd), lambda b: (b, 0, 0)),
                  _const_spec(lnw), _const_spec(lnb), _const_spec(pw), _const_spec(pb),
                  pl.BlockSpec((bt, N, C), lambda b: (b, 0, 0))],
        out_specs=(pl.BlockSpec((bt, N, C), lambda b: (b, 0, 0)),
                   pl.BlockSpec((bt, N, 1), lambda b: (b, 0, 0))),
        out_shape=(jax.ShapeDtypeStruct((B, N, C), jnp.float32),
                   jax.ShapeDtypeStruct((B, N, 1), jnp.float32)),
        compiler_params=pltpu.CompilerParams(
            dimension_semantics=("parallel",),
            vmem_limit_bytes=_vmem_limit()),
    )(x, lnw, lnb, pw, pb, target)
    return pred, tok_err[..., 0]


# ------------------------------------------------------------------
# Parameter init (deterministic, in-script) — PyTorch Linear layout (fused QKV)
# ------------------------------------------------------------------
def xavier_uniform(key, fan_in, fan_out):
    limit = math.sqrt(6.0 / (fan_in + fan_out))
    return jax.random.uniform(key, (fan_in, fan_out), jnp.float32, -limit, limit)


def init_block_params(key, dim, mlp_ratio=4.0):
    hidden = int(dim * mlp_ratio)
    ks = jax.random.split(key, 4)
    return dict(
        ln1w=jnp.ones((1, dim), jnp.float32), ln1b=jnp.zeros((1, dim), jnp.float32),
        wqkv=xavier_uniform(ks[0], dim, 3 * dim).astype(jnp.bfloat16),
        bqkv=jnp.zeros((1, 3 * dim), jnp.float32),
        wproj=xavier_uniform(ks[1], dim, dim).astype(jnp.bfloat16),
        bproj=jnp.zeros((1, dim), jnp.float32),
        ln2w=jnp.ones((1, dim), jnp.float32), ln2b=jnp.zeros((1, dim), jnp.float32),
        wfc1=xavier_uniform(ks[2], dim, hidden).astype(jnp.bfloat16),
        bfc1=jnp.zeros((1, hidden), jnp.float32),
        wfc2=xavier_uniform(ks[3], hidden, dim).astype(jnp.bfloat16),
        bfc2=jnp.zeros((1, dim), jnp.float32),
    )


# ------------------------------------------------------------------
# Model
# ------------------------------------------------------------------
class SlideMaskedAutoencoderPallas:
    def __init__(self, key, ROI_feature_dim=128, embed_dim=256, decoder_embed_dim=128,
                 decoder_depth=2, decoder_num_heads=4, encoder_num_heads=4,
                 mlp_ratio=4.0, slide_ngrids=8, norm_pix_loss=False):
        self.slide_ngrids = slide_ngrids
        self.decoder_num_heads = decoder_num_heads
        self.encoder_num_heads = encoder_num_heads
        self.norm_pix_loss = norm_pix_loss

        ks = jax.random.split(key, 5 + decoder_depth)
        p = {}
        # --- synthetic slide-ViT backbone (the PyTorch module takes it as a ctor arg) ---
        p["bb_proj_w"] = xavier_uniform(ks[0], ROI_feature_dim, embed_dim).astype(jnp.bfloat16)
        p["bb_proj_b"] = jnp.zeros((1, embed_dim), jnp.float32)
        p["bb_pos_embed"] = jnp.asarray(get_2d_sincos_pos_embed(embed_dim, slide_ngrids))
        p["bb_block"] = init_block_params(ks[1], embed_dim, mlp_ratio)
        p["bb_norm_w"] = jnp.ones((1, embed_dim), jnp.float32)
        p["bb_norm_b"] = jnp.zeros((1, embed_dim), jnp.float32)
        # --- MAE decoder path (embed_dim != decoder_embed_dim -> Linear decoder_embed) ---
        p["dec_embed_w"] = xavier_uniform(ks[2], embed_dim, decoder_embed_dim).astype(jnp.bfloat16)
        p["dec_embed_b"] = jnp.zeros((1, decoder_embed_dim), jnp.float32)
        p["mask_token"] = 0.02 * jax.random.normal(ks[3], (1, 1, decoder_embed_dim), jnp.float32)
        p["dec_pos_embed"] = jnp.asarray(get_2d_sincos_pos_embed(decoder_embed_dim, slide_ngrids))
        blocks = [init_block_params(ks[4 + i], decoder_embed_dim, mlp_ratio)
                  for i in range(decoder_depth)]
        p["dec_blocks"] = {k: jnp.stack([b[k] for b in blocks], axis=0) for k in BLOCK_FIELDS}
        p["dec_norm_w"] = jnp.ones((1, decoder_embed_dim), jnp.float32)
        p["dec_norm_b"] = jnp.zeros((1, decoder_embed_dim), jnp.float32)
        p["dec_pred_w"] = xavier_uniform(ks[4 + decoder_depth], decoder_embed_dim,
                                         ROI_feature_dim).astype(jnp.bfloat16)
        p["dec_pred_b"] = jnp.zeros((1, ROI_feature_dim), jnp.float32)
        self.p = p

    # --- plain-JAX glue ---
    def coords_to_pos(self, coords):
        c = jnp.floor(coords / 256.0)
        return (c[..., 0] * self.slide_ngrids + c[..., 1]).astype(jnp.int32)

    def random_masking(self, key, x, coords, mask_ratio):
        # TODO(synk): per-sample argsort shuffle + gather has no clean Pallas TPU
        # equivalent; kept in plain JAX glue.
        B, N, D = x.shape
        len_keep = int(N * (1 - mask_ratio))
        noise = jax.random.uniform(key, (B, N))
        ids_shuffle = jnp.argsort(noise, axis=1)
        ids_restore = jnp.argsort(ids_shuffle, axis=1)
        ids_keep = ids_shuffle[:, :len_keep]
        x_remained = jnp.take_along_axis(x, ids_keep[..., None], axis=1)
        coords_remained = jnp.take_along_axis(coords, ids_keep[..., None], axis=1)
        mask = jnp.ones((B, N), jnp.float32).at[:, :len_keep].set(0.0)
        mask = jnp.take_along_axis(mask, ids_restore, axis=1)
        return x_remained, coords_remained, mask, ids_restore

    # --- full forward: (loss, pred, mask) ---
    def forward(self, mask_key, image_features, coords, mask_ratio=0.75):
        p = self.p
        x_rem, coords_rem, mask, ids_restore = self.random_masking(
            mask_key, image_features, coords, mask_ratio)

        # pre-gather positional tokens (tiny tables; plain JAX)
        bb_pos = p["bb_pos_embed"][self.coords_to_pos(coords_rem)]     # (B, Lk, D)
        dec_pos = p["dec_pos_embed"][self.coords_to_pos(coords)]       # (B, N, Dd)

        # K1: patch embed + pos + encoder block + backbone LN + decoder_embed (fused, bf16 out)
        x = encoder_forward(x_rem, bb_pos, p, self.encoder_num_heads)  # (B, Lk, Dd) bf16

        # token restore with mask tokens (plain JAX glue, bf16 traffic)
        # TODO(synk): could be folded into K2 via PrefetchScalarGridSpec + pl.Element row gather.
        B, Lk, Dd = x.shape
        N = ids_restore.shape[1]
        mask_tokens = jnp.broadcast_to(p["mask_token"].astype(x.dtype), (B, N - Lk, Dd))
        x_ = jnp.concatenate([x, mask_tokens], axis=1)
        x_ = jnp.take_along_axis(x_, ids_restore[..., None], axis=1)

        # K2: decoder pos add + all decoder blocks, one pallas_call (depth on the grid)
        x = decoder_forward(x_, dec_pos, p["dec_blocks"], self.decoder_num_heads)

        # K3: decoder_norm + decoder_pred + per-token MSE (fused); masked mean outside
        pred, tok_err = head_loss_forward(
            x, image_features,
            p["dec_norm_w"], p["dec_norm_b"], p["dec_pred_w"], p["dec_pred_b"],
            self.norm_pix_loss)
        loss = jnp.sum(tok_err * mask) / jnp.sum(mask)
        return loss, pred, mask


# ------------------------------------------------------------------
if __name__ == "__main__":
    key = jax.random.PRNGKey(0)
    k_param, k_data, k_mask = jax.random.split(key, 3)

    # small but sublane/lane-aligned dims:
    #   N=32, mask_ratio=0.75 -> Lk=8 (sublane aligned); feature dims multiples of 128
    B, N, ROI = 2, 32, 128
    model = SlideMaskedAutoencoderPallas(
        k_param, ROI_feature_dim=ROI, embed_dim=256, decoder_embed_dim=128,
        decoder_depth=2, decoder_num_heads=4, encoder_num_heads=4,
        mlp_ratio=4.0, slide_ngrids=8, norm_pix_loss=False)

    image_features = jax.random.normal(k_data, (B, N, ROI), jnp.float32)
    # grid-aligned slide coordinates (pixels), rows/cols within [0, slide_ngrids)
    rows = (jnp.arange(N) // 8)[None, :] + jnp.arange(B)[:, None]
    cols = jnp.broadcast_to((jnp.arange(N) % 8)[None, :], (B, N))
    coords = jnp.stack([rows, cols], axis=-1).astype(jnp.float32) * 256.0 + 17.0  # [B, N, 2]

    fwd = jax.jit(partial(model.forward, mask_ratio=0.75))
    loss, pred, mask = fwd(k_mask, image_features, coords)
    jax.block_until_ready((loss, pred, mask))

    assert pred.shape == (B, N, ROI)
    assert mask.shape == (B, N)
    assert bool(jnp.isfinite(loss))
    assert bool(jnp.all(jnp.isfinite(pred)))
    print("KERNEL_OK")
</pallas_src>

<mosaic_0001>
module attributes {stable_mosaic.version = 11 : i64} {
  func.func @_encoder_kernel(%arg0: i32, %arg1: memref<2x8x128xf32, #tpu.memory_space<vmem>>, %arg2: memref<2x8x256xf32, #tpu.memory_space<vmem>>, %arg3: memref<128x256xbf16, #tpu.memory_space<vmem>>, %arg4: memref<1x256xf32, #tpu.memory_space<vmem>>, %arg5: memref<1x256xf32, #tpu.memory_space<vmem>>, %arg6: memref<1x256xf32, #tpu.memory_space<vmem>>, %arg7: memref<256x768xbf16, #tpu.memory_space<vmem>>, %arg8: memref<1x768xf32, #tpu.memory_space<vmem>>, %arg9: memref<256x256xbf16, #tpu.memory_space<vmem>>, %arg10: memref<1x256xf32, #tpu.memory_space<vmem>>, %arg11: memref<1x256xf32, #tpu.memory_space<vmem>>, %arg12: memref<1x256xf32, #tpu.memory_space<vmem>>, %arg13: memref<256x1024xbf16, #tpu.memory_space<vmem>>, %arg14: memref<1x1024xf32, #tpu.memory_space<vmem>>, %arg15: memref<1024x256xbf16, #tpu.memory_space<vmem>>, %arg16: memref<1x256xf32, #tpu.memory_space<vmem>>, %arg17: memref<1x256xf32, #tpu.memory_space<vmem>>, %arg18: memref<1x256xf32, #tpu.memory_space<vmem>>, %arg19: memref<256x128xbf16, #tpu.memory_space<vmem>>, %arg20: memref<1x128xf32, #tpu.memory_space<vmem>>, %arg21: memref<2x8x128xbf16, #tpu.memory_space<vmem>>) attributes {dimension_semantics = [#tpu.dimension_semantics<parallel>], iteration_bounds = array<i64: 1>, scalar_prefetch = 0 : i64, scratch_operands = 0 : i64, tpu.core_type = #tpu.core_type<tc>, window_params = [{transform_indices = @transform_0, window_bounds = array<i64: 2, 8, 128>}, {transform_indices = @transform_1, window_bounds = array<i64: 2, 8, 256>}, {pipeline_mode = #tpu.pipeline_mode<synchronous>, transform_indices = @transform_2, window_bounds = array<i64: 128, 256>}, {pipeline_mode = #tpu.pipeline_mode<synchronous>, transform_indices = @transform_3, window_bounds = array<i64: 1, 256>}, {pipeline_mode = #tpu.pipeline_mode<synchronous>, transform_indices = @transform_4, window_bounds = array<i64: 1, 256>}, {pipeline_mode = #tpu.pipeline_mode<synchronous>, transform_indices = @transform_5, window_bounds = array<i64: 1, 256>}, {pipeline_mode = #tpu.pipeline_mode<synchronous>, transform_indices = @transform_6, window_bounds = array<i64: 256, 768>}, {pipeline_mode = #tpu.pipeline_mode<synchronous>, transform_indices = @transform_7, window_bounds = array<i64: 1, 768>}, {pipeline_mode = #tpu.pipeline_mode<synchronous>, transform_indices = @transform_8, window_bounds = array<i64: 256, 256>}, {pipeline_mode = #tpu.pipeline_mode<synchronous>, transform_indices = @transform_9, window_bounds = array<i64: 1, 256>}, {pipeline_mode = #tpu.pipeline_mode<synchronous>, transform_indices = @transform_10, window_bounds = array<i64: 1, 256>}, {pipeline_mode = #tpu.pipeline_mode<synchronous>, transform_indices = @transform_11, window_bounds = array<i64: 1, 256>}, {pipeline_mode = #tpu.pipeline_mode<synchronous>, transform_indices = @transform_12, window_bounds = array<i64: 256, 1024>}, {pipeline_mode = #tpu.pipeline_mode<synchronous>, transform_indices = @transform_13, window_bounds = array<i64: 1, 1024>}, {pipeline_mode = #tpu.pipeline_mode<synchronous>, transform_indices = @transform_14, window_bounds = array<i64: 1024, 256>}, {pipeline_mode = #tpu.pipeline_mode<synchronous>, transform_indices = @transform_15, window_bounds = array<i64: 1, 256>}, {pipeline_mode = #tpu.pipeline_mode<synchronous>, transform_indices = @transform_16, window_bounds = array<i64: 1, 256>}, {pipeline_mode = #tpu.pipeline_mode<synchronous>, transform_indices = @transform_17, window_bounds = array<i64: 1, 256>}, {pipeline_mode = #tpu.pipeline_mode<synchronous>, transform_indices = @transform_18, window_bounds = array<i64: 256, 128>}, {pipeline_mode = #tpu.pipeline_mode<synchronous>, transform_indices = @transform_19, window_bounds = array<i64: 1, 128>}, {transform_indices = @transform_20, window_bounds = array<i64: 2, 8, 128>}]} {
    %c0 = arith.constant 0 : index
    %c0_0 = arith.constant 0 : index
    %c0_1 = arith.constant 0 : index
    %0 = vector.load %arg1[%c0, %c0_0, %c0_1] : memref<2x8x128xf32, #tpu.memory_space<vmem>>, vector<2x8x128xf32>
    %1 = vector.shape_cast %0 : vector<2x8x128xf32> to vector<16x128xf32>
    %2 = arith.truncf %1 : vector<16x128xf32> to vector<16x128xbf16>
    %c0_2 = arith.constant 0 : index
    %c0_3 = arith.constant 0 : index
    %3 = vector.load %arg3[%c0_2, %c0_3] : memref<128x256xbf16, #tpu.memory_space<vmem>>, vector<128x256xbf16>
    %cst = arith.constant dense<0.000000e+00> : vector<16x256xf32>
    %4 = tpu.matmul %2, %3, %cst {dimension_numbers = #tpu.dot_dimension_numbers<[1], [0], [0], [1], [0, 0, 1, 1], [], []>} : vector<16x128xbf16>, vector<128x256xbf16>, vector<16x256xf32> -> vector<16x256xf32>
    %c0_4 = arith.constant 0 : index
    %c0_5 = arith.constant 0 : index
    %5 = vector.load %arg4[%c0_4, %c0_5] : memref<1x256xf32, #tpu.memory_space<vmem>>, vector<1x256xf32>
    %6 = vector.broadcast %5 : vector<1x256xf32> to vector<16x256xf32>
    %7 = arith.addf %4, %6 : vector<16x256xf32>
    %c0_6 = arith.constant 0 : index
    %c0_7 = arith.constant 0 : index
    %c0_8 = arith.constant 0 : index
    %8 = vector.load %arg2[%c0_6, %c0_7, %c0_8] : memref<2x8x256xf32, #tpu.memory_space<vmem>>, vector<2x8x256xf32>
    %9 = vector.shape_cast %8 : vector<2x8x256xf32> to vector<16x256xf32>
    %10 = arith.addf %7, %9 : vector<16x256xf32>
    %c0_9 = arith.constant 0 : index
    %c0_10 = arith.constant 0 : index
    %11 = vector.load %arg5[%c0_9, %c0_10] : memref<1x256xf32, #tpu.memory_space<vmem>>, vector<1x256xf32>
    %c0_11 = arith.constant 0 : index
    %c0_12 = arith.constant 0 : index
    %12 = vector.load %arg6[%c0_11, %c0_12] : memref<1x256xf32, #tpu.memory_space<vmem>>, vector<1x256xf32>
    %c0_13 = arith.constant 0 : index
    %c0_14 = arith.constant 0 : index
    %13 = vector.load %arg7[%c0_13, %c0_14] : memref<256x768xbf16, #tpu.memory_space<vmem>>, vector<256x768xbf16>
    %c0_15 = arith.constant 0 : index
    %c0_16 = arith.constant 0 : index
    %14 = vector.load %arg8[%c0_15, %c0_16] : memref<1x768xf32, #tpu.memory_space<vmem>>, vector<1x768xf32>
    %c0_17 = arith.constant 0 : index
    %c0_18 = arith.constant 0 : index
    %15 = vector.load %arg9[%c0_17, %c0_18] : memref<256x256xbf16, #tpu.memory_space<vmem>>, vector<256x256xbf16>
    %c0_19 = arith.constant 0 : index
    %c0_20 = arith.constant 0 : index
    %16 = vector.load %arg10[%c0_19, %c0_20] : memref<1x256xf32, #tpu.memory_space<vmem>>, vector<1x256xf32>
    %c0_21 = arith.constant 0 : index
    %c0_22 = arith.constant 0 : index
    %17 = vector.load %arg11[%c0_21, %c0_22] : memref<1x256xf32, #tpu.memory_space<vmem>>, vector<1x256xf32>
    %c0_23 = arith.constant 0 : index
    %c0_24 = arith.constant 0 : index
    %18 = vector.load %arg12[%c0_23, %c0_24] : memref<1x256xf32, #tpu.memory_space<vmem>>, vector<1x256xf32>
    %c0_25 = arith.constant 0 : index
    %c0_26 = arith.constant 0 : index
    %19 = vector.load %arg13[%c0_25, %c0_26] : memref<256x1024xbf16, #tpu.memory_space<vmem>>, vector<256x1024xbf16>
    %c0_27 = arith.constant 0 : index
    %c0_28 = arith.constant 0 : index
    %20 = vector.load %arg14[%c0_27, %c0_28] : memref<1x1024xf32, #tpu.memory_space<vmem>>, vector<1x1024xf32>
    %c0_29 = arith.constant 0 : index
    %c0_30 = arith.constant 0 : index
    %21 = vector.load %arg15[%c0_29, %c0_30] : memref<1024x256xbf16, #tpu.memory_space<vmem>>, vector<1024x256xbf16>
    %c0_31 = arith.constant 0 : index
    %c0_32 = arith.constant 0 : index
    %22 = vector.load %arg16[%c0_31, %c0_32] : memref<1x256xf32, #tpu.memory_space<vmem>>, vector<1x256xf32>
    %cst_33 = arith.constant dense<0.000000e+00> : vector<16xf32>
    %23 = vector.multi_reduction <add>, %10, %cst_33 [1] : vector<16x256xf32> to vector<16xf32>
    %24 = vector.shape_cast %23 : vector<16xf32> to vector<16x1xf32>
    %cst_34 = arith.constant 2.560000e+02 : f32
    %25 = vector.broadcast %cst_34 : f32 to vector<16x1xf32>
    %26 = arith.divf %24, %25 : vector<16x1xf32>
    %27 = vector.broadcast %26 : vector<16x1xf32> to vector<16x256xf32>
    %28 = arith.subf %10, %27 : vector<16x256xf32>
    %29 = arith.mulf %28, %28 : vector<16x256xf32>
    %cst_35 = arith.constant dense<0.000000e+00> : vector<16xf32>
    %30 = vector.multi_reduction <add>, %29, %cst_35 [1] : vector<16x256xf32> to vector<16xf32>
    %31 = vector.shape_cast %30 : vector<16xf32> to vector<16x1xf32>
    %cst_36 = arith.constant 2.560000e+02 : f32
    %32 = vector.broadcast %cst_36 : f32 to vector<16x1xf32>
    %33 = arith.divf %31, %32 : vector<16x1xf32>
    %34 = vector.broadcast %26 : vector<16x1xf32> to vector<16x256xf32>
    %35 = arith.subf %10, %34 : vector<16x256xf32>
    %cst_37 = arith.constant 9.99999974E-6 : f32
    %36 = vector.broadcast %cst_37 : f32 to vector<16x1xf32>
    %37 = arith.addf %33, %36 : vector<16x1xf32>
    %38 = math.rsqrt %37 : vector<16x1xf32>
    %39 = vector.broadcast %38 : vector<16x1xf32> to vector<16x256xf32>
    %40 = arith.mulf %35, %39 : vector<16x256xf32>
    %41 = vector.broadcast %11 : vector<1x256xf32> to vector<16x256xf32>
    %42 = arith.mulf %40, %41 : vector<16x256xf32>
    %43 = vector.broadcast %12 : vector<1x256xf32> to vector<16x256xf32>
    %44 = arith.addf %42, %43 : vector<16x256xf32>
    %45 = arith.truncf %44 : vector<16x256xf32> to vector<16x256xbf16>
    %cst_38 = arith.constant dense<0.000000e+00> : vector<16x768xf32>
    %46 = tpu.matmul %45, %13, %cst_38 {dimension_numbers = #tpu.dot_dimension_numbers<[1], [0], [0], [1], [0, 0, 1, 1], [], []>} : vector<16x256xbf16>, vector<256x768xbf16>, vector<16x768xf32> -> vector<16x768xf32>
    %47 = vector.broadcast %14 : vector<1x768xf32> to vector<16x768xf32>
    %48 = arith.addf %46, %47 : vector<16x768xf32>
    %49 = vector.shape_cast %48 : vector<16x768xf32> to vector<2x8x768xf32>
    %50 = vector.extract_strided_slice %49 {offsets = [0, 0, 0], sizes = [2, 8, 64], strides = [1, 1, 1]} : vector<2x8x768xf32> to vector<2x8x64xf32>
    %51 = vector.extract_strided_slice %49 {offsets = [0, 0, 256], sizes = [2, 8, 64], strides = [1, 1, 1]} : vector<2x8x768xf32> to vector<2x8x64xf32>
    %52 = vector.extract_strided_slice %49 {offsets = [0, 0, 512], sizes = [2, 8, 64], strides = [1, 1, 1]} : vector<2x8x768xf32> to vector<2x8x64xf32>
    %53 = arith.truncf %50 : vector<2x8x64xf32> to vector<2x8x64xbf16>
    %54 = arith.truncf %51 : vector<2x8x64xf32> to vector<2x8x64xbf16>
    "tpu.trace_start"() <{level = 10 : i32, message = "bqe,bke->bqk"}> : () -> ()
    %cst_39 = arith.constant dense<0.000000e+00> : vector<2x8x8xf32>
    %55 = tpu.matmul %53, %54, %cst_39 {dimension_numbers = #tpu.dot_dimension_numbers<[2], [2], [1], [1], [0, 0, 0, 1, 1, 1], [0], [0]>} : vector<2x8x64xbf16>, vector<2x8x64xbf16>, vector<2x8x8xf32> -> vector<2x8x8xf32>
    "tpu.trace_stop"() : () -> ()
    %cst_40 = arith.constant 1.250000e-01 : f32
    %56 = vector.broadcast %cst_40 : f32 to vector<2x8x8xf32>
    %57 = arith.mulf %55, %56 : vector<2x8x8xf32>
    %cst_41 = arith.constant dense<0xFF800000> : vector<2x8xf32>
    %58 = vector.multi_reduction <maximumf>, %57, %cst_41 [2] : vector<2x8x8xf32> to vector<2x8xf32>
    %59 = vector.shape_cast %58 : vector<2x8xf32> to vector<2x8x1xf32>
    %60 = vector.broadcast %59 : vector<2x8x1xf32> to vector<2x8x8xf32>
    %61 = arith.subf %57, %60 : vector<2x8x8xf32>
    %62 = math.exp %61 : vector<2x8x8xf32>
    %cst_42 = arith.constant dense<0.000000e+00> : vector<2x8xf32>
    %63 = vector.multi_reduction <add>, %62, %cst_42 [2] : vector<2x8x8xf32> to vector<2x8xf32>
    %64 = vector.shape_cast %63 : vector<2x8xf32> to vector<2x8x1xf32>
    %65 = tpu.reciprocal %64 {approx = true} : vector<2x8x1xf32> -> vector<2x8x1xf32>
    %66 = vector.broadcast %65 : vector<2x8x1xf32> to vector<2x8x8xf32>
    %67 = arith.mulf %62, %66 : vector<2x8x8xf32>
    %68 = arith.truncf %67 : vector<2x8x8xf32> to vector<2x8x8xbf16>
    %69 = arith.truncf %52 : vector<2x8x64xf32> to vector<2x8x64xbf16>
    "tpu.trace_start"() <{level = 10 : i32, message = "bqk,bke->bqe"}> : () -> ()
    %cst_43 = arith.constant dense<0.000000e+00> : vector<2x8x64xf32>
    %70 = tpu.matmul %68, %69, %cst_43 {dimension_numbers = #tpu.dot_dimension_numbers<[2], [1], [1], [2], [0, 0, 0, 1, 1, 2], [0], [0]>} : vector<2x8x8xbf16>, vector<2x8x64xbf16>, vector<2x8x64xf32> -> vector<2x8x64xf32>
    "tpu.trace_stop"() : () -> ()
    %71 = vector.extract_strided_slice %49 {offsets = [0, 0, 64], sizes = [2, 8, 64], strides = [1, 1, 1]} : vector<2x8x768xf32> to vector<2x8x64xf32>
    %72 = vector.extract_strided_slice %49 {offsets = [0, 0, 320], sizes = [2, 8, 64], strides = [1, 1, 1]} : vector<2x8x768xf32> to vector<2x8x64xf32>
    %73 = vector.extract_strided_slice %49 {offsets = [0, 0, 576], sizes = [2, 8, 64], strides = [1, 1, 1]} : vector<2x8x768xf32> to vector<2x8x64xf32>
    %74 = arith.truncf %71 : vector<2x8x64xf32> to vector<2x8x64xbf16>
    %75 = arith.truncf %72 : vector<2x8x64xf32> to vector<2x8x64xbf16>
    "tpu.trace_start"() <{level = 10 : i32, message = "bqe,bke->bqk"}> : () -> ()
    %cst_44 = arith.constant dense<0.000000e+00> : vector<2x8x8xf32>
    %76 = tpu.matmul %74, %75, %cst_44 {dimension_numbers = #tpu.dot_dimension_numbers<[2], [2], [1], [1], [0, 0, 0, 1, 1, 1], [0], [0]>} : vector<2x8x64xbf16>, vector<2x8x64xbf16>, vector<2x8x8xf32> -> vector<2x8x8xf32>
    "tpu.trace_stop"() : () -> ()
    %cst_45 = arith.constant 1.250000e-01 : f32
    %77 = vector.broadcast %cst_45 : f32 to vector<2x8x8xf32>
    %78 = arith.mulf %76, %77 : vector<2x8x8xf32>
    %cst_46 = arith.constant dense<0xFF800000> : vector<2x8xf32>
    %79 = vector.multi_reduction <maximumf>, %78, %cst_46 [2] : vector<2x8x8xf32> to vector<2x8xf32>
    %80 = vector.shape_cast %79 : vector<2x8xf32> to vector<2x8x1xf32>
    %81 = vector.broadcast %80 : vector<2x8x1xf32> to vector<2x8x8xf32>
    %82 = arith.subf %78, %81 : vector<2x8x8xf32>
    %83 = math.exp %82 : vector<2x8x8xf32>
    %cst_47 = arith.constant dense<0.000000e+00> : vector<2x8xf32>
    %84 = vector.multi_reduction <add>, %83, %cst_47 [2] : vector<2x8x8xf32> to vector<2x8xf32>
    %85 = vector.shape_cast %84 : vector<2x8xf32> to vector<2x8x1xf32>
    %86 = tpu.reciprocal %85 {approx = true} : vector<2x8x1xf32> -> vector<2x8x1xf32>
    %87 = vector.broadcast %86 : vector<2x8x1xf32> to vector<2x8x8xf32>
    %88 = arith.mulf %83, %87 : vector<2x8x8xf32>
    %89 = arith.truncf %88 : vector<2x8x8xf32> to vector<2x8x8xbf16>
    %90 = arith.truncf %73 : vector<2x8x64xf32> to vector<2x8x64xbf16>
    "tpu.trace_start"() <{level = 10 : i32, message = "bqk,bke->bqe"}> : () -> ()
    %cst_48 = arith.constant dense<0.000000e+00> : vector<2x8x64xf32>
    %91 = tpu.matmul %89, %90, %cst_48 {dimension_numbers = #tpu.dot_dimension_numbers<[2], [1], [1], [2], [0, 0, 0, 1, 1, 2], [0], [0]>} : vector<2x8x8xbf16>, vector<2x8x64xbf16>, vector<2x8x64xf32> -> vector<2x8x64xf32>
    "tpu.trace_stop"() : () -> ()
    %92 = vector.extract_strided_slice %49 {offsets = [0, 0, 128], sizes = [2, 8, 64], strides = [1, 1, 1]} : vector<2x8x768xf32> to vector<2x8x64xf32>
    %93 = vector.extract_strided_slice %49 {offsets = [0, 0, 384], sizes = [2, 8, 64], strides = [1, 1, 1]} : vector<2x8x768xf32> to vector<2x8x64xf32>
    %94 = vector.extract_strided_slice %49 {offsets = [0, 0, 640], sizes = [2, 8, 64], strides = [1, 1, 1]} : vector<2x8x768xf32> to vector<2x8x64xf32>
    %95 = arith.truncf %92 : vector<2x8x64xf32> to vector<2x8x64xbf16>
    %96 = arith.truncf %93 : vector<2x8x64xf32> to vector<2x8x64xbf16>
    "tpu.trace_start"() <{level = 10 : i32, message = "bqe,bke->bqk"}> : () -> ()
    %cst_49 = arith.constant dense<0.000000e+00> : vector<2x8x8xf32>
    %97 = tpu.matmul %95, %96, %cst_49 {dimension_numbers = #tpu.dot_dimension_numbers<[2], [2], [1], [1], [0, 0, 0, 1, 1, 1], [0], [0]>} : vector<2x8x64xbf16>, vector<2x8x64xbf16>, vector<2x8x8xf32> -> vector<2x8x8xf32>
    "tpu.trace_stop"() : () -> ()
    %cst_50 = arith.constant 1.250000e-01 : f32
    %98 = vector.broadcast %cst_50 : f32 to vector<2x8x8xf32>
    %99 = arith.mulf %97, %98 : vector<2x8x8xf32>
    %cst_51 = arith.constant dense<0xFF800000> : vector<2x8xf32>
    %100 = vector.multi_reduction <maximumf>, %99, %cst_51 [2] : vector<2x8x8xf32> to vector<2x8xf32>
    %101 = vector.shape_cast %100 : vector<2x8xf32> to vector<2x8x1xf32>
    %102 = vector.broadcast %101 : vector<2x8x1xf32> to vector<2x8x8xf32>
    %103 = arith.subf %99, %102 : vector<2x8x8xf32>
    %104 = math.exp %103 : vector<2x8x8xf32>
    %cst_52 = arith.constant dense<0.000000e+00> : vector<2x8xf32>
    %105 = vector.multi_reduction <add>, %104, %cst_52 [2] : vector<2x8x8xf32> to vector<2x8xf32>
    %106 = vector.shape_cast %105 : vector<2x8xf32> to vector<2x8x1xf32>
    %107 = tpu.reciprocal %106 {approx = true} : vector<2x8x1xf32> -> vector<2x8x1xf32>
    %108 = vector.broadcast %107 : vector<2x8x1xf32> to vector<2x8x8xf32>
    %109 = arith.mulf %104, %108 : vector<2x8x8xf32>
    %110 = arith.truncf %109 : vector<2x8x8xf32> to vector<2x8x8xbf16>
    %111 = arith.truncf %94 : vector<2x8x64xf32> to vector<2x8x64xbf16>
    "tpu.trace_start"() <{level = 10 : i32, message = "bqk,bke->bqe"}> : () -> ()
    %cst_53 = arith.constant dense<0.000000e+00> : vector<2x8x64xf32>
    %112 = tpu.matmul %110, %111, %cst_53 {dimension_numbers = #tpu.dot_dimension_numbers<[2], [1], [1], [2], [0, 0, 0, 1, 1, 2], [0], [0]>} : vector<2x8x8xbf16>, vector<2x8x64xbf16>, vector<2x8x64xf32> -> vector<2x8x64xf32>
    "tpu.trace_stop"() : () -> ()
    %113 = vector.extract_strided_slice %49 {offsets = [0, 0, 192], sizes = [2, 8, 64], strides = [1, 1, 1]} : vector<2x8x768xf32> to vector<2x8x64xf32>
    %114 = vector.extract_strided_slice %49 {offsets = [0, 0, 448], sizes = [2, 8, 64], strides = [1, 1, 1]} : vector<2x8x768xf32> to vector<2x8x64xf32>
    %115 = vector.extract_strided_slice %49 {offsets = [0, 0, 704], sizes = [2, 8, 64], strides = [1, 1, 1]} : vector<2x8x768xf32> to vector<2x8x64xf32>
    %116 = arith.truncf %113 : vector<2x8x64xf32> to vector<2x8x64xbf16>
    %117 = arith.truncf %114 : vector<2x8x64xf32> to vector<2x8x64xbf16>
    "tpu.trace_start"() <{level = 10 : i32, message = "bqe,bke->bqk"}> : () -> ()
    %cst_54 = arith.constant dense<0.000000e+00> : vector<2x8x8xf32>
    %118 = tpu.matmul %116, %117, %cst_54 {dimension_numbers = #tpu.dot_dimension_numbers<[2], [2], [1], [1], [0, 0, 0, 1, 1, 1], [0], [0]>} : vector<2x8x64xbf16>, vector<2x8x64xbf16>, vector<2x8x8xf32> -> vector<2x8x8xf32>
    "tpu.trace_stop"() : () -> ()
    %cst_55 = arith.constant 1.250000e-01 : f32
    %119 = vector.broadcast %cst_55 : f32 to vector<2x8x8xf32>
    %120 = arith.mulf %118, %119 : vector<2x8x8xf32>
    %cst_56 = arith.constant dense<0xFF800000> : vector<2x8xf32>
    %121 = vector.multi_reduction <maximumf>, %120, %cst_56 [2] : vector<2x8x8xf32> to vector<2x8xf32>
    %122 = vector.shape_cast %121 : vector<2x8xf32> to vector<2x8x1xf32>
    %123 = vector.broadcast %122 : vector<2x8x1xf32> to vector<2x8x8xf32>
    %124 = arith.subf %120, %123 : vector<2x8x8xf32>
    %125 = math.exp %124 : vector<2x8x8xf32>
    %cst_57 = arith.constant dense<0.000000e+00> : vector<2x8xf32>
    %126 = vector.multi_reduction <add>, %125, %cst_57 [2] : vector<2x8x8xf32> to vector<2x8xf32>
    %127 = vector.shape_cast %126 : vector<2x8xf32> to vector<2x8x1xf32>
    %128 = tpu.reciprocal %127 {approx = true} : vector<2x8x1xf32> -> vector<2x8x1xf32>
    %129 = vector.broadcast %128 : vector<2x8x1xf32> to vector<2x8x8xf32>
    %130 = arith.mulf %125, %129 : vector<2x8x8xf32>
    %131 = arith.truncf %130 : vector<2x8x8xf32> to vector<2x8x8xbf16>
    %132 = arith.truncf %115 : vector<2x8x64xf32> to vector<2x8x64xbf16>
    "tpu.trace_start"() <{level = 10 : i32, message = "bqk,bke->bqe"}> : () -> ()
    %cst_58 = arith.constant dense<0.000000e+00> : vector<2x8x64xf32>
    %133 = tpu.matmul %131, %132, %cst_58 {dimension_numbers = #tpu.dot_dimension_numbers<[2], [1], [1], [2], [0, 0, 0, 1, 1, 2], [0], [0]>} : vector<2x8x8xbf16>, vector<2x8x64xbf16>, vector<2x8x64xf32> -> vector<2x8x64xf32>
    "tpu.trace_stop"() : () -> ()
    %134 = tpu.concatenate %70, %91, %112, %133 in 2 : vector<2x8x64xf32>, vector<2x8x64xf32>, vector<2x8x64xf32>, vector<2x8x64xf32> -> vector<2x8x256xf32>
    %135 = vector.shape_cast %134 : vector<2x8x256xf32> to vector<16x256xf32>
    %136 = arith.truncf %135 : vector<16x256xf32> to vector<16x256xbf16>
    %cst_59 = arith.constant dense<0.000000e+00> : vector<16x256xf32>
    %137 = tpu.matmul %136, %15, %cst_59 {dimension_numbers = #tpu.dot_dimension_numbers<[1], [0], [0], [1], [0, 0, 1, 1], [], []>} : vector<16x256xbf16>, vector<256x256xbf16>, vector<16x256xf32> -> vector<16x256xf32>
    %138 = vector.broadcast %16 : vector<1x256xf32> to vector<16x256xf32>
    %139 = arith.addf %137, %138 : vector<16x256xf32>
    %140 = arith.addf %10, %139 : vector<16x256xf32>
    %cst_60 = arith.constant dense<0.000000e+00> : vector<16xf32>
    %141 = vector.multi_reduction <add>, %140, %cst_60 [1] : vector<16x256xf32> to vector<16xf32>
    %142 = vector.shape_cast %141 : vector<16xf32> to vector<16x1xf32>
    %cst_61 = arith.constant 2.560000e+02 : f32
    %143 = vector.broadcast %cst_61 : f32 to vector<16x1xf32>
    %144 = arith.divf %142, %143 : vector<16x1xf32>
    %145 = vector.broadcast %144 : vector<16x1xf32> to vector<16x256xf32>
    %146 = arith.subf %140, %145 : vector<16x256xf32>
    %147 = arith.mulf %146, %146 : vector<16x256xf32>
    %cst_62 = arith.constant dense<0.000000e+00> : vector<16xf32>
    %148 = vector.multi_reduction <add>, %147, %cst_62 [1] : vector<16x256xf32> to vector<16xf32>
    %149 = vector.shape_cast %148 : vector<16xf32> to vector<16x1xf32>
    %cst_63 = arith.constant 2.560000e+02 : f32
    %150 = vector.broadcast %cst_63 : f32 to vector<16x1xf32>
    %151 = arith.divf %149, %150 : vector<16x1xf32>
    %152 = vector.broadcast %144 : vector<16x1xf32> to vector<16x256xf32>
    %153 = arith.subf %140, %152 : vector<16x256xf32>
    %cst_64 = arith.constant 9.99999974E-6 : f32
    %154 = vector.broadcast %cst_64 : f32 to vector<16x1xf32>
    %155 = arith.addf %151, %154 : vector<16x1xf32>
    %156 = math.rsqrt %155 : vector<16x1xf32>
    %157 = vector.broadcast %156 : vector<16x1xf32> to vector<16x256xf32>
    %158 = arith.mulf %153, %157 : vector<16x256xf32>
    %159 = vector.broadcast %17 : vector<1x256xf32> to vector<16x256xf32>
    %160 = arith.mulf %158, %159 : vector<16x256xf32>
    %161 = vector.broadcast %18 : vector<1x256xf32> to vector<16x256xf32>
    %162 = arith.addf %160, %161 : vector<16x256xf32>
    %163 = arith.truncf %162 : vector<16x256xf32> to vector<16x256xbf16>
    %cst_65 = arith.constant dense<0.000000e+00> : vector<16x1024xf32>
    %164 = tpu.matmul %163, %19, %cst_65 {dimension_numbers = #tpu.dot_dimension_numbers<[1], [0], [0], [1], [0, 0, 1, 1], [], []>} : vector<16x256xbf16>, vector<256x1024xbf16>, vector<16x1024xf32> -> vector<16x1024xf32>
    %165 = vector.broadcast %20 : vector<1x1024xf32> to vector<16x1024xf32>
    %166 = arith.addf %164, %165 : vector<16x1024xf32>
    %167 = arith.mulf %166, %166 : vector<16x1024xf32>
    %168 = arith.mulf %166, %167 : vector<16x1024xf32>
    %cst_66 = arith.constant 4.471500e-02 : f32
    %169 = vector.broadcast %cst_66 : f32 to vector<16x1024xf32>
    %170 = arith.mulf %169, %168 : vector<16x1024xf32>
    %171 = arith.addf %166, %170 : vector<16x1024xf32>
    %cst_67 = arith.constant 0.797884583 : f32
    %172 = vector.broadcast %cst_67 : f32 to vector<16x1024xf32>
    %173 = arith.mulf %172, %171 : vector<16x1024xf32>
    %174 = math.tanh %173 : vector<16x1024xf32>
    %cst_68 = arith.constant 1.000000e+00 : f32
    %175 = vector.broadcast %cst_68 : f32 to vector<16x1024xf32>
    %176 = arith.addf %175, %174 : vector<16x1024xf32>
    %cst_69 = arith.constant 5.000000e-01 : f32
    %177 = vector.broadcast %cst_69 : f32 to vector<16x1024xf32>
    %178 = arith.mulf %177, %176 : vector<16x1024xf32>
    %179 = arith.mulf %166, %178 : vector<16x1024xf32>
    %180 = arith.truncf %179 : vector<16x1024xf32> to vector<16x1024xbf16>
    %cst_70 = arith.constant dense<0.000000e+00> : vector<16x256xf32>
    %181 = tpu.matmul %180, %21, %cst_70 {dimension_numbers = #tpu.dot_dimension_numbers<[1], [0], [0], [1], [0, 0, 1, 1], [], []>} : vector<16x1024xbf16>, vector<1024x256xbf16>, vector<16x256xf32> -> vector<16x256xf32>
    %182 = vector.broadcast %22 : vector<1x256xf32> to vector<16x256xf32>
    %183 = arith.addf %181, %182 : vector<16x256xf32>
    %184 = arith.addf %140, %183 : vector<16x256xf32>
    %c0_71 = arith.constant 0 : index
    %c0_72 = arith.constant 0 : index
    %185 = vector.load %arg17[%c0_71, %c0_72] : memref<1x256xf32, #tpu.memory_space<vmem>>, vector<1x256xf32>
    %c0_73 = arith.constant 0 : index
    %c0_74 = arith.constant 0 : index
    %186 = vector.load %arg18[%c0_73, %c0_74] : memref<1x256xf32, #tpu.memory_space<vmem>>, vector<1x256xf32>
    %cst_75 = arith.constant dense<0.000000e+00> : vector<16xf32>
    %187 = vector.multi_reduction <add>, %184, %cst_75 [1] : vector<16x256xf32> to vector<16xf32>
    %188 = vector.shape_cast %187 : vector<16xf32> to vector<16x1xf32>
    %cst_76 = arith.constant 2.560000e+02 : f32
    %189 = vector.broadcast %cst_76 : f32 to vector<16x1xf32>
    %190 = arith.divf %188, %189 : vector<16x1xf32>
    %191 = vector.broadcast %190 : vector<16x1xf32> to vector<16x256xf32>
    %192 = arith.subf %184, %191 : vector<16x256xf32>
    %193 = arith.mulf %192, %192 : vector<16x256xf32>
    %cst_77 = arith.constant dense<0.000000e+00> : vector<16xf32>
    %194 = vector.multi_reduction <add>, %193, %cst_77 [1] : vector<16x256xf32> to vector<16xf32>
    %195 = vector.shape_cast %194 : vector<16xf32> to vector<16x1xf32>
    %cst_78 = arith.constant 2.560000e+02 : f32
    %196 = vector.broadcast %cst_78 : f32 to vector<16x1xf32>
    %197 = arith.divf %195, %196 : vector<16x1xf32>
    %198 = vector.broadcast %190 : vector<16x1xf32> to vector<16x256xf32>
    %199 = arith.subf %184, %198 : vector<16x256xf32>
    %cst_79 = arith.constant 9.99999974E-6 : f32
    %200 = vector.broadcast %cst_79 : f32 to vector<16x1xf32>
    %201 = arith.addf %197, %200 : vector<16x1xf32>
    %202 = math.rsqrt %201 : vector<16x1xf32>
    %203 = vector.broadcast %202 : vector<16x1xf32> to vector<16x256xf32>
    %204 = arith.mulf %199, %203 : vector<16x256xf32>
    %205 = vector.broadcast %185 : vector<1x256xf32> to vector<16x256xf32>
    %206 = arith.mulf %204, %205 : vector<16x256xf32>
    %207 = vector.broadcast %186 : vector<1x256xf32> to vector<16x256xf32>
    %208 = arith.addf %206, %207 : vector<16x256xf32>
    %209 = arith.truncf %208 : vector<16x256xf32> to vector<16x256xbf16>
    %c0_80 = arith.constant 0 : index
    %c0_81 = arith.constant 0 : index
    %210 = vector.load %arg19[%c0_80, %c0_81] : memref<256x128xbf16, #tpu.memory_space<vmem>>, vector<256x128xbf16>
    %cst_82 = arith.constant dense<0.000000e+00> : vector<16x128xf32>
    %211 = tpu.matmul %209, %210, %cst_82 {dimension_numbers = #tpu.dot_dimension_numbers<[1], [0], [0], [1], [0, 0, 1, 1], [], []>} : vector<16x256xbf16>, vector<256x128xbf16>, vector<16x128xf32> -> vector<16x128xf32>
    %c0_83 = arith.constant 0 : index
    %c0_84 = arith.constant 0 : index
    %212 = vector.load %arg20[%c0_83, %c0_84] : memref<1x128xf32, #tpu.memory_space<vmem>>, vector<1x128xf32>
    %213 = vector.broadcast %212 : vector<1x128xf32> to vector<16x128xf32>
    %214 = arith.addf %211, %213 : vector<16x128xf32>
    %215 = vector.shape_cast %214 : vector<16x128xf32> to vector<2x8x128xf32>
    %216 = arith.truncf %215 : vector<2x8x128xf32> to vector<2x8x128xbf16>
    %c0_85 = arith.constant 0 : index
    %c0_86 = arith.constant 0 : index
    %c0_87 = arith.constant 0 : index
    %217 = vector.load %arg21[%c0_85, %c0_86, %c0_87] : memref<2x8x128xbf16, #tpu.memory_space<vmem>>, vector<2x8x128xbf16>
    tpu.vector_store %arg21[%c0_85, %c0_86, %c0_87], %216 {strides = array<i32>} : memref<2x8x128xbf16, #tpu.memory_space<vmem>>, vector<2x8x128xbf16>,
    return
  }
  func.func @transform_0(%arg0: i32) -> (i32, i32, i32) {
    %c0_i32 = arith.constant 0 : i32
    %c0_i32_0 = arith.constant 0 : i32
    %c0_i32_1 = arith.constant 0 : i32
    return %arg0, %c0_i32, %c0_i32_0 : i32, i32, i32
  }
  func.func @transform_1(%arg0: i32) -> (i32, i32, i32) {
    %c0_i32 = arith.constant 0 : i32
    %c0_i32_0 = arith.constant 0 : i32
    %c0_i32_1 = arith.constant 0 : i32
    return %arg0, %c0_i32, %c0_i32_0 : i32, i32, i32
  }
  func.func @transform_2(%arg0: i32) -> (i32, i32) {
    %c0_i32 = arith.constant 0 : i32
    %c0_i32_0 = arith.constant 0 : i32
    %c0_i32_1 = arith.constant 0 : i32
    return %c0_i32, %c0_i32_0 : i32, i32
  }
  func.func @transform_3(%arg0: i32) -> (i32, i32) {
    %c0_i32 = arith.constant 0 : i32
    %c0_i32_0 = arith.constant 0 : i32
    %c0_i32_1 = arith.constant 0 : i32
    return %c0_i32, %c0_i32_0 : i32, i32
  }
  func.func @transform_4(%arg0: i32) -> (i32, i32) {
    %c0_i32 = arith.constant 0 : i32
    %c0_i32_0 = arith.constant 0 : i32
    %c0_i32_1 = arith.constant 0 : i32
    return %c0_i32, %c0_i32_0 : i32, i32
  }
  func.func @transform_5(%arg0: i32) -> (i32, i32) {
    %c0_i32 = arith.constant 0 : i32
    %c0_i32_0 = arith.constant 0 : i32
    %c0_i32_1 = arith.constant 0 : i32
    return %c0_i32, %c0_i32_0 : i32, i32
  }
  func.func @transform_6(%arg0: i32) -> (i32, i32) {
    %c0_i32 = arith.constant 0 : i32
    %c0_i32_0 = arith.constant 0 : i32
    %c0_i32_1 = arith.constant 0 : i32
    return %c0_i32, %c0_i32_0 : i32, i32
  }
  func.func @transform_7(%arg0: i32) -> (i32, i32) {
    %c0_i32 = arith.constant 0 : i32
    %c0_i32_0 = arith.constant 0 : i32
    %c0_i32_1 = arith.constant 0 : i32
    return %c0_i32, %c0_i32_0 : i32, i32
  }
  func.func @transform_8(%arg0: i32) -> (i32, i32) {
    %c0_i32 = arith.constant 0 : i32
    %c0_i32_0 = arith.constant 0 : i32
    %c0_i32_1 = arith.constant 0 : i32
    return %c0_i32, %c0_i32_0 : i32, i32
  }
  func.func @transform_9(%arg0: i32) -> (i32, i32) {
    %c0_i32 = arith.constant 0 : i32
    %c0_i32_0 = arith.constant 0 : i32
    %c0_i32_1 = arith.constant 0 : i32
    return %c0_i32, %c0_i32_0 : i32, i32
  }
  func.func @transform_10(%arg0: i32) -> (i32, i32) {
    %c0_i32 = arith.constant 0 : i32
    %c0_i32_0 = arith.constant 0 : i32
    %c0_i32_1 = arith.constant 0 : i32
    return %c0_i32, %c0_i32_0 : i32, i32
  }
  func.func @transform_11(%arg0: i32) -> (i32, i32) {
    %c0_i32 = arith.constant 0 : i32
    %c0_i32_0 = arith.constant 0 : i32
    %c0_i32_1 = arith.constant 0 : i32
    return %c0_i32, %c0_i32_0 : i32, i32
  }
  func.func @transform_12(%arg0: i32) -> (i32, i32) {
    %c0_i32 = arith.constant 0 : i32
    %c0_i32_0 = arith.constant 0 : i32
    %c0_i32_1 = arith.constant 0 : i32
    return %c0_i32, %c0_i32_0 : i32, i32
  }
  func.func @transform_13(%arg0: i32) -> (i32, i32) {
    %c0_i32 = arith.constant 0 : i32
    %c0_i32_0 = arith.constant 0 : i32
    %c0_i32_1 = arith.constant 0 : i32
    return %c0_i32, %c0_i32_0 : i32, i32
  }
  func.func @transform_14(%arg0: i32) -> (i32, i32) {
    %c0_i32 = arith.constant 0 : i32
    %c0_i32_0 = arith.constant 0 : i32
    %c0_i32_1 = arith.constant 0 : i32
    return %c0_i32, %c0_i32_0 : i32, i32
  }
  func.func @transform_15(%arg0: i32) -> (i32, i32) {
    %c0_i32 = arith.constant 0 : i32
    %c0_i32_0 = arith.constant 0 : i32
    %c0_i32_1 = arith.constant 0 : i32
    return %c0_i32, %c0_i32_0 : i32, i32
  }
  func.func @transform_16(%arg0: i32) -> (i32, i32) {
    %c0_i32 = arith.constant 0 : i32
    %c0_i32_0 = arith.constant 0 : i32
    %c0_i32_1 = arith.constant 0 : i32
    return %c0_i32, %c0_i32_0 : i32, i32
  }
  func.func @transform_17(%arg0: i32) -> (i32, i32) {
    %c0_i32 = arith.constant 0 : i32
    %c0_i32_0 = arith.constant 0 : i32
    %c0_i32_1 = arith.constant 0 : i32
    return %c0_i32, %c0_i32_0 : i32, i32
  }
  func.func @transform_18(%arg0: i32) -> (i32, i32) {
    %c0_i32 = arith.constant 0 : i32
    %c0_i32_0 = arith.constant 0 : i32
    %c0_i32_1 = arith.constant 0 : i32
    return %c0_i32, %c0_i32_0 : i32, i32
  }
  func.func @transform_19(%arg0: i32) -> (i32, i32) {
    %c0_i32 = arith.constant 0 : i32
    %c0_i32_0 = arith.constant 0 : i32
    %c0_i32_1 = arith.constant 0 : i32
    return %c0_i32, %c0_i32_0 : i32, i32
  }
  func.func @transform_20(%arg0: i32) -> (i32, i32, i32) {
    %c0_i32 = arith.constant 0 : i32
    %c0_i32_0 = arith.constant 0 : i32
    %c0_i32_1 = arith.constant 0 : i32
    return %arg0, %c0_i32, %c0_i32_0 : i32, i32, i32
  }
}

module attributes {stable_mosaic.version = 11 : i64} {
  func.func @_decoder_kernel(%arg0: i32, %arg1: memref<2x32x128xbf16, #tpu.memory_space<vmem>>, %arg2: memref<2x32x128xf32, #tpu.memory_space<vmem>>, %arg3: memref<1x1x128xf32, #tpu.memory_space<vmem>>, %arg4: memref<1x1x128xf32, #tpu.memory_space<vmem>>, %arg5: memref<1x128x384xbf16, #tpu.memory_space<vmem>>, %arg6: memref<1x1x384xf32, #tpu.memory_space<vmem>>, %arg7: memref<1x128x128xbf16, #tpu.memory_space<vmem>>, %arg8: memref<1x1x128xf32, #tpu.memory_space<vmem>>, %arg9: memref<1x1x128xf32, #tpu.memory_space<vmem>>, %arg10: memref<1x1x128xf32, #tpu.memory_space<vmem>>, %arg11: memref<1x128x512xbf16, #tpu.memory_space<vmem>>, %arg12: memref<1x1x512xf32, #tpu.memory_space<vmem>>, %arg13: memref<1x512x128xbf16, #tpu.memory_space<vmem>>, %arg14: memref<1x1x128xf32, #tpu.memory_space<vmem>>, %arg15: memref<2x32x128xbf16, #tpu.memory_space<vmem>>, %arg16: memref<64x128xf32, #tpu.memory_space<vmem>>) attributes {dimension_semantics = [#tpu.dimension_semantics<arbitrary>], iteration_bounds = array<i64: 2>, scalar_prefetch = 0 : i64, scratch_operands = 1 : i64, tpu.core_type = #tpu.core_type<tc>, window_params = [{pipeline_mode = #tpu.pipeline_mode<synchronous>, transform_indices = @transform_0, window_bounds = array<i64: 2, 32, 128>}, {pipeline_mode = #tpu.pipeline_mode<synchronous>, transform_indices = @transform_1, window_bounds = array<i64: 2, 32, 128>}, {transform_indices = @transform_2, window_bounds = array<i64: 1, 1, 128>}, {transform_indices = @transform_3, window_bounds = array<i64: 1, 1, 128>}, {transform_indices = @transform_4, window_bounds = array<i64: 1, 128, 384>}, {transform_indices = @transform_5, window_bounds = array<i64: 1, 1, 384>}, {transform_indices = @transform_6, window_bounds = array<i64: 1, 128, 128>}, {transform_indices = @transform_7, window_bounds = array<i64: 1, 1, 128>}, {transform_indices = @transform_8, window_bounds = array<i64: 1, 1, 128>}, {transform_indices = @transform_9, window_bounds = array<i64: 1, 1, 128>}, {transform_indices = @transform_10, window_bounds = array<i64: 1, 128, 512>}, {transform_indices = @transform_11, window_bounds = array<i64: 1, 1, 512>}, {transform_indices = @transform_12, window_bounds = array<i64: 1, 512, 128>}, {transform_indices = @transform_13, window_bounds = array<i64: 1, 1, 128>}, {pipeline_mode = #tpu.pipeline_mode<synchronous>, transform_indices = @transform_14, window_bounds = array<i64: 2, 32, 128>}]} {
    %c0_i32 = arith.constant 0 : i32
    %0 = arith.cmpi eq, %arg0, %c0_i32 : i32
    %1 = arith.extui %0 : i1 to i32
    %c0_i32_0 = arith.constant 0 : i32
    %2 = arith.cmpi ne, %1, %c0_i32_0 : i32
    scf.if %2 {
      %c0_78 = arith.constant 0 : index
      %c0_79 = arith.constant 0 : index
      %c0_80 = arith.constant 0 : index
      %194 = vector.load %arg1[%c0_78, %c0_79, %c0_80] : memref<2x32x128xbf16, #tpu.memory_space<vmem>>, vector<2x32x128xbf16>
      %195 = arith.extf %194 : vector<2x32x128xbf16> to vector<2x32x128xf32>
      %c0_81 = arith.constant 0 : index
      %c0_82 = arith.constant 0 : index
      %c0_83 = arith.constant 0 : index
      %196 = vector.load %arg2[%c0_81, %c0_82, %c0_83] : memref<2x32x128xf32, #tpu.memory_space<vmem>>, vector<2x32x128xf32>
      %197 = arith.addf %195, %196 : vector<2x32x128xf32>
      %198 = vector.shape_cast %197 : vector<2x32x128xf32> to vector<64x128xf32>
      %c0_84 = arith.constant 0 : index
      %c0_85 = arith.constant 0 : index
      %199 = vector.load %arg16[%c0_84, %c0_85] : memref<64x128xf32, #tpu.memory_space<vmem>>, vector<64x128xf32>
      tpu.vector_store %arg16[%c0_84, %c0_85], %198 {strides = array<i32>} : memref<64x128xf32, #tpu.memory_space<vmem>>, vector<64x128xf32>,
    } else {
    }
    %c0 = arith.constant 0 : index
    %c0_1 = arith.constant 0 : index
    %3 = vector.load %arg16[%c0, %c0_1] : memref<64x128xf32, #tpu.memory_space<vmem>>, vector<64x128xf32>
    %c0_2 = arith.constant 0 : index
    %c0_3 = arith.constant 0 : index
    %c0_4 = arith.constant 0 : index
    %4 = vector.load %arg3[%c0_2, %c0_3, %c0_4] : memref<1x1x128xf32, #tpu.memory_space<vmem>>, vector<1x1x128xf32>
    %5 = vector.shape_cast %4 : vector<1x1x128xf32> to vector<1x128xf32>
    %c0_5 = arith.constant 0 : index
    %c0_6 = arith.constant 0 : index
    %c0_7 = arith.constant 0 : index
    %6 = vector.load %arg4[%c0_5, %c0_6, %c0_7] : memref<1x1x128xf32, #tpu.memory_space<vmem>>, vector<1x1x128xf32>
    %7 = vector.shape_cast %6 : vector<1x1x128xf32> to vector<1x128xf32>
    %c0_8 = arith.constant 0 : index
    %c0_9 = arith.constant 0 : index
    %c0_10 = arith.constant 0 : index
    %8 = vector.load %arg5[%c0_8, %c0_9, %c0_10] : memref<1x128x384xbf16, #tpu.memory_space<vmem>>, vector<1x128x384xbf16>
    %9 = vector.shape_cast %8 : vector<1x128x384xbf16> to vector<128x384xbf16>
    %c0_11 = arith.constant 0 : index
    %c0_12 = arith.constant 0 : index
    %c0_13 = arith.constant 0 : index
    %10 = vector.load %arg6[%c0_11, %c0_12, %c0_13] : memref<1x1x384xf32, #tpu.memory_space<vmem>>, vector<1x1x384xf32>
    %11 = vector.shape_cast %10 : vector<1x1x384xf32> to vector<1x384xf32>
    %c0_14 = arith.constant 0 : index
    %c0_15 = arith.constant 0 : index
    %c0_16 = arith.constant 0 : index
    %12 = vector.load %arg7[%c0_14, %c0_15, %c0_16] : memref<1x128x128xbf16, #tpu.memory_space<vmem>>, vector<1x128x128xbf16>
    %13 = vector.shape_cast %12 : vector<1x128x128xbf16> to vector<128x128xbf16>
    %c0_17 = arith.constant 0 : index
    %c0_18 = arith.constant 0 : index
    %c0_19 = arith.constant 0 : index
    %14 = vector.load %arg8[%c0_17, %c0_18, %c0_19] : memref<1x1x128xf32, #tpu.memory_space<vmem>>, vector<1x1x128xf32>
    %15 = vector.shape_cast %14 : vector<1x1x128xf32> to vector<1x128xf32>
    %c0_20 = arith.constant 0 : index
    %c0_21 = arith.constant 0 : index
    %c0_22 = arith.constant 0 : index
    %16 = vector.load %arg9[%c0_20, %c0_21, %c0_22] : memref<1x1x128xf32, #tpu.memory_space<vmem>>, vector<1x1x128xf32>
    %17 = vector.shape_cast %16 : vector<1x1x128xf32> to vector<1x128xf32>
    %c0_23 = arith.constant 0 : index
    %c0_24 = arith.constant 0 : index
    %c0_25 = arith.constant 0 : index
    %18 = vector.load %arg10[%c0_23, %c0_24, %c0_25] : memref<1x1x128xf32, #tpu.memory_space<vmem>>, vector<1x1x128xf32>
    %19 = vector.shape_cast %18 : vector<1x1x128xf32> to vector<1x128xf32>
    %c0_26 = arith.constant 0 : index
    %c0_27 = arith.constant 0 : index
    %c0_28 = arith.constant 0 : index
    %20 = vector.load %arg11[%c0_26, %c0_27, %c0_28] : memref<1x128x512xbf16, #tpu.memory_space<vmem>>, vector<1x128x512xbf16>
    %21 = vector.shape_cast %20 : vector<1x128x512xbf16> to vector<128x512xbf16>
    %c0_29 = arith.constant 0 : index
    %c0_30 = arith.constant 0 : index
    %c0_31 = arith.constant 0 : index
    %22 = vector.load %arg12[%c0_29, %c0_30, %c0_31] : memref<1x1x512xf32, #tpu.memory_space<vmem>>, vector<1x1x512xf32>
    %23 = vector.shape_cast %22 : vector<1x1x512xf32> to vector<1x512xf32>
    %c0_32 = arith.constant 0 : index
    %c0_33 = arith.constant 0 : index
    %c0_34 = arith.constant 0 : index
    %24 = vector.load %arg13[%c0_32, %c0_33, %c0_34] : memref<1x512x128xbf16, #tpu.memory_space<vmem>>, vector<1x512x128xbf16>
    %25 = vector.shape_cast %24 : vector<1x512x128xbf16> to vector<512x128xbf16>
    %c0_35 = arith.constant 0 : index
    %c0_36 = arith.constant 0 : index
    %c0_37 = arith.constant 0 : index
    %26 = vector.load %arg14[%c0_35, %c0_36, %c0_37] : memref<1x1x128xf32, #tpu.memory_space<vmem>>, vector<1x1x128xf32>
    %27 = vector.shape_cast %26 : vector<1x1x128xf32> to vector<1x128xf32>
    %cst = arith.constant dense<0.000000e+00> : vector<64xf32>
    %28 = vector.multi_reduction <add>, %3, %cst [1] : vector<64x128xf32> to vector<64xf32>
    %29 = vector.shape_cast %28 : vector<64xf32> to vector<64x1xf32>
    %cst_38 = arith.constant 1.280000e+02 : f32
    %30 = vector.broadcast %cst_38 : f32 to vector<64x1xf32>
    %31 = arith.divf %29, %30 : vector<64x1xf32>
    %32 = vector.broadcast %31 : vector<64x1xf32> to vector<64x128xf32>
    %33 = arith.subf %3, %32 : vector<64x128xf32>
    %34 = arith.mulf %33, %33 : vector<64x128xf32>
    %cst_39 = arith.constant dense<0.000000e+00> : vector<64xf32>
    %35 = vector.multi_reduction <add>, %34, %cst_39 [1] : vector<64x128xf32> to vector<64xf32>
    %36 = vector.shape_cast %35 : vector<64xf32> to vector<64x1xf32>
    %cst_40 = arith.constant 1.280000e+02 : f32
    %37 = vector.broadcast %cst_40 : f32 to vector<64x1xf32>
    %38 = arith.divf %36, %37 : vector<64x1xf32>
    %39 = vector.broadcast %31 : vector<64x1xf32> to vector<64x128xf32>
    %40 = arith.subf %3, %39 : vector<64x128xf32>
    %cst_41 = arith.constant 9.99999974E-6 : f32
    %41 = vector.broadcast %cst_41 : f32 to vector<64x1xf32>
    %42 = arith.addf %38, %41 : vector<64x1xf32>
    %43 = math.rsqrt %42 : vector<64x1xf32>
    %44 = vector.broadcast %43 : vector<64x1xf32> to vector<64x128xf32>
    %45 = arith.mulf %40, %44 : vector<64x128xf32>
    %46 = vector.broadcast %5 : vector<1x128xf32> to vector<64x128xf32>
    %47 = arith.mulf %45, %46 : vector<64x128xf32>
    %48 = vector.broadcast %7 : vector<1x128xf32> to vector<64x128xf32>
    %49 = arith.addf %47, %48 : vector<64x128xf32>
    %50 = arith.truncf %49 : vector<64x128xf32> to vector<64x128xbf16>
    %cst_42 = arith.constant dense<0.000000e+00> : vector<64x384xf32>
    %51 = tpu.matmul %50, %9, %cst_42 {dimension_numbers = #tpu.dot_dimension_numbers<[1], [0], [0], [1], [0, 0, 1, 1], [], []>} : vector<64x128xbf16>, vector<128x384xbf16>, vector<64x384xf32> -> vector<64x384xf32>
    %52 = vector.broadcast %11 : vector<1x384xf32> to vector<64x384xf32>
    %53 = arith.addf %51, %52 : vector<64x384xf32>
    %54 = vector.shape_cast %53 : vector<64x384xf32> to vector<2x32x384xf32>
    %55 = vector.extract_strided_slice %54 {offsets = [0, 0, 0], sizes = [2, 32, 32], strides = [1, 1, 1]} : vector<2x32x384xf32> to vector<2x32x32xf32>
    %56 = vector.extract_strided_slice %54 {offsets = [0, 0, 128], sizes = [2, 32, 32], strides = [1, 1, 1]} : vector<2x32x384xf32> to vector<2x32x32xf32>
    %57 = vector.extract_strided_slice %54 {offsets = [0, 0, 256], sizes = [2, 32, 32], strides = [1, 1, 1]} : vector<2x32x384xf32> to vector<2x32x32xf32>
    %58 = arith.truncf %55 : vector<2x32x32xf32> to vector<2x32x32xbf16>
    %59 = arith.truncf %56 : vector<2x32x32xf32> to vector<2x32x32xbf16>
    "tpu.trace_start"() <{level = 10 : i32, message = "bqe,bke->bqk"}> : () -> ()
    %cst_43 = arith.constant dense<0.000000e+00> : vector<2x32x32xf32>
    %60 = tpu.matmul %58, %59, %cst_43 {dimension_numbers = #tpu.dot_dimension_numbers<[2], [2], [1], [1], [0, 0, 0, 1, 1, 1], [0], [0]>} : vector<2x32x32xbf16>, vector<2x32x32xbf16>, vector<2x32x32xf32> -> vector<2x32x32xf32>
    "tpu.trace_stop"() : () -> ()
    %cst_44 = arith.constant 0.176776692 : f32
    %61 = vector.broadcast %cst_44 : f32 to vector<2x32x32xf32>
    %62 = arith.mulf %60, %61 : vector<2x32x32xf32>
    %cst_45 = arith.constant dense<0xFF800000> : vector<2x32xf32>
    %63 = vector.multi_reduction <maximumf>, %62, %cst_45 [2] : vector<2x32x32xf32> to vector<2x32xf32>
    %64 = vector.shape_cast %63 : vector<2x32xf32> to vector<2x32x1xf32>
    %65 = vector.broadcast %64 : vector<2x32x1xf32> to vector<2x32x32xf32>
    %66 = arith.subf %62, %65 : vector<2x32x32xf32>
    %67 = math.exp %66 : vector<2x32x32xf32>
    %cst_46 = arith.constant dense<0.000000e+00> : vector<2x32xf32>
    %68 = vector.multi_reduction <add>, %67, %cst_46 [2] : vector<2x32x32xf32> to vector<2x32xf32>
    %69 = vector.shape_cast %68 : vector<2x32xf32> to vector<2x32x1xf32>
    %70 = tpu.reciprocal %69 {approx = true} : vector<2x32x1xf32> -> vector<2x32x1xf32>
    %71 = vector.broadcast %70 : vector<2x32x1xf32> to vector<2x32x32xf32>
    %72 = arith.mulf %67, %71 : vector<2x32x32xf32>
    %73 = arith.truncf %72 : vector<2x32x32xf32> to vector<2x32x32xbf16>
    %74 = arith.truncf %57 : vector<2x32x32xf32> to vector<2x32x32xbf16>
    "tpu.trace_start"() <{level = 10 : i32, message = "bqk,bke->bqe"}> : () -> ()
    %cst_47 = arith.constant dense<0.000000e+00> : vector<2x32x32xf32>
    %75 = tpu.matmul %73, %74, %cst_47 {dimension_numbers = #tpu.dot_dimension_numbers<[2], [1], [1], [2], [0, 0, 0, 1, 1, 2], [0], [0]>} : vector<2x32x32xbf16>, vector<2x32x32xbf16>, vector<2x32x32xf32> -> vector<2x32x32xf32>
    "tpu.trace_stop"() : () -> ()
    %76 = vector.extract_strided_slice %54 {offsets = [0, 0, 32], sizes = [2, 32, 32], strides = [1, 1, 1]} : vector<2x32x384xf32> to vector<2x32x32xf32>
    %77 = vector.extract_strided_slice %54 {offsets = [0, 0, 160], sizes = [2, 32, 32], strides = [1, 1, 1]} : vector<2x32x384xf32> to vector<2x32x32xf32>
    %78 = vector.extract_strided_slice %54 {offsets = [0, 0, 288], sizes = [2, 32, 32], strides = [1, 1, 1]} : vector<2x32x384xf32> to vector<2x32x32xf32>
    %79 = arith.truncf %76 : vector<2x32x32xf32> to vector<2x32x32xbf16>
    %80 = arith.truncf %77 : vector<2x32x32xf32> to vector<2x32x32xbf16>
    "tpu.trace_start"() <{level = 10 : i32, message = "bqe,bke->bqk"}> : () -> ()
    %cst_48 = arith.constant dense<0.000000e+00> : vector<2x32x32xf32>
    %81 = tpu.matmul %79, %80, %cst_48 {dimension_numbers = #tpu.dot_dimension_numbers<[2], [2], [1], [1], [0, 0, 0, 1, 1, 1], [0], [0]>} : vector<2x32x32xbf16>, vector<2x32x32xbf16>, vector<2x32x32xf32> -> vector<2x32x32xf32>
    "tpu.trace_stop"() : () -> ()
    %cst_49 = arith.constant 0.176776692 : f32
    %82 = vector.broadcast %cst_49 : f32 to vector<2x32x32xf32>
    %83 = arith.mulf %81, %82 : vector<2x32x32xf32>
    %cst_50 = arith.constant dense<0xFF800000> : vector<2x32xf32>
    %84 = vector.multi_reduction <maximumf>, %83, %cst_50 [2] : vector<2x32x32xf32> to vector<2x32xf32>
    %85 = vector.shape_cast %84 : vector<2x32xf32> to vector<2x32x1xf32>
    %86 = vector.broadcast %85 : vector<2x32x1xf32> to vector<2x32x32xf32>
    %87 = arith.subf %83, %86 : vector<2x32x32xf32>
    %88 = math.exp %87 : vector<2x32x32xf32>
    %cst_51 = arith.constant dense<0.000000e+00> : vector<2x32xf32>
    %89 = vector.multi_reduction <add>, %88, %cst_51 [2] : vector<2x32x32xf32> to vector<2x32xf32>
    %90 = vector.shape_cast %89 : vector<2x32xf32> to vector<2x32x1xf32>
    %91 = tpu.reciprocal %90 {approx = true} : vector<2x32x1xf32> -> vector<2x32x1xf32>
    %92 = vector.broadcast %91 : vector<2x32x1xf32> to vector<2x32x32xf32>
    %93 = arith.mulf %88, %92 : vector<2x32x32xf32>
    %94 = arith.truncf %93 : vector<2x32x32xf32> to vector<2x32x32xbf16>
    %95 = arith.truncf %78 : vector<2x32x32xf32> to vector<2x32x32xbf16>
    "tpu.trace_start"() <{level = 10 : i32, message = "bqk,bke->bqe"}> : () -> ()
    %cst_52 = arith.constant dense<0.000000e+00> : vector<2x32x32xf32>
    %96 = tpu.matmul %94, %95, %cst_52 {dimension_numbers = #tpu.dot_dimension_numbers<[2], [1], [1], [2], [0, 0, 0, 1, 1, 2], [0], [0]>} : vector<2x32x32xbf16>, vector<2x32x32xbf16>, vector<2x32x32xf32> -> vector<2x32x32xf32>
    "tpu.trace_stop"() : () -> ()
    %97 = vector.extract_strided_slice %54 {offsets = [0, 0, 64], sizes = [2, 32, 32], strides = [1, 1, 1]} : vector<2x32x384xf32> to vector<2x32x32xf32>
    %98 = vector.extract_strided_slice %54 {offsets = [0, 0, 192], sizes = [2, 32, 32], strides = [1, 1, 1]} : vector<2x32x384xf32> to vector<2x32x32xf32>
    %99 = vector.extract_strided_slice %54 {offsets = [0, 0, 320], sizes = [2, 32, 32], strides = [1, 1, 1]} : vector<2x32x384xf32> to vector<2x32x32xf32>
    %100 = arith.truncf %97 : vector<2x32x32xf32> to vector<2x32x32xbf16>
    %101 = arith.truncf %98 : vector<2x32x32xf32> to vector<2x32x32xbf16>
    "tpu.trace_start"() <{level = 10 : i32, message = "bqe,bke->bqk"}> : () -> ()
    %cst_53 = arith.constant dense<0.000000e+00> : vector<2x32x32xf32>
    %102 = tpu.matmul %100, %101, %cst_53 {dimension_numbers = #tpu.dot_dimension_numbers<[2], [2], [1], [1], [0, 0, 0, 1, 1, 1], [0], [0]>} : vector<2x32x32xbf16>, vector<2x32x32xbf16>, vector<2x32x32xf32> -> vector<2x32x32xf32>
    "tpu.trace_stop"() : () -> ()
    %cst_54 = arith.constant 0.176776692 : f32
    %103 = vector.broadcast %cst_54 : f32 to vector<2x32x32xf32>
    %104 = arith.mulf %102, %103 : vector<2x32x32xf32>
    %cst_55 = arith.constant dense<0xFF800000> : vector<2x32xf32>
    %105 = vector.multi_reduction <maximumf>, %104, %cst_55 [2] : vector<2x32x32xf32> to vector<2x32xf32>
    %106 = vector.shape_cast %105 : vector<2x32xf32> to vector<2x32x1xf32>
    %107 = vector.broadcast %106 : vector<2x32x1xf32> to vector<2x32x32xf32>
    %108 = arith.subf %104, %107 : vector<2x32x32xf32>
    %109 = math.exp %108 : vector<2x32x32xf32>
    %cst_56 = arith.constant dense<0.000000e+00> : vector<2x32xf32>
    %110 = vector.multi_reduction <add>, %109, %cst_56 [2] : vector<2x32x32xf32> to vector<2x32xf32>
    %111 = vector.shape_cast %110 : vector<2x32xf32> to vector<2x32x1xf32>
    %112 = tpu.reciprocal %111 {approx = true} : vector<2x32x1xf32> -> vector<2x32x1xf32>
    %113 = vector.broadcast %112 : vector<2x32x1xf32> to vector<2x32x32xf32>
    %114 = arith.mulf %109, %113 : vector<2x32x32xf32>
    %115 = arith.truncf %114 : vector<2x32x32xf32> to vector<2x32x32xbf16>
    %116 = arith.truncf %99 : vector<2x32x32xf32> to vector<2x32x32xbf16>
    "tpu.trace_start"() <{level = 10 : i32, message = "bqk,bke->bqe"}> : () -> ()
    %cst_57 = arith.constant dense<0.000000e+00> : vector<2x32x32xf32>
    %117 = tpu.matmul %115, %116, %cst_57 {dimension_numbers = #tpu.dot_dimension_numbers<[2], [1], [1], [2], [0, 0, 0, 1, 1, 2], [0], [0]>} : vector<2x32x32xbf16>, vector<2x32x32xbf16>, vector<2x32x32xf32> -> vector<2x32x32xf32>
    "tpu.trace_stop"() : () -> ()
    %118 = vector.extract_strided_slice %54 {offsets = [0, 0, 96], sizes = [2, 32, 32], strides = [1, 1, 1]} : vector<2x32x384xf32> to vector<2x32x32xf32>
    %119 = vector.extract_strided_slice %54 {offsets = [0, 0, 224], sizes = [2, 32, 32], strides = [1, 1, 1]} : vector<2x32x384xf32> to vector<2x32x32xf32>
    %120 = vector.extract_strided_slice %54 {offsets = [0, 0, 352], sizes = [2, 32, 32], strides = [1, 1, 1]} : vector<2x32x384xf32> to vector<2x32x32xf32>
    %121 = arith.truncf %118 : vector<2x32x32xf32> to vector<2x32x32xbf16>
    %122 = arith.truncf %119 : vector<2x32x32xf32> to vector<2x32x32xbf16>
    "tpu.trace_start"() <{level = 10 : i32, message = "bqe,bke->bqk"}> : () -> ()
    %cst_58 = arith.constant dense<0.000000e+00> : vector<2x32x32xf32>
    %123 = tpu.matmul %121, %122, %cst_58 {dimension_numbers = #tpu.dot_dimension_numbers<[2], [2], [1], [1], [0, 0, 0, 1, 1, 1], [0], [0]>} : vector<2x32x32xbf16>, vector<2x32x32xbf16>, vector<2x32x32xf32> -> vector<2x32x32xf32>
    "tpu.trace_stop"() : () -> ()
    %cst_59 = arith.constant 0.176776692 : f32
    %124 = vector.broadcast %cst_59 : f32 to vector<2x32x32xf32>
    %125 = arith.mulf %123, %124 : vector<2x32x32xf32>
    %cst_60 = arith.constant dense<0xFF800000> : vector<2x32xf32>
    %126 = vector.multi_reduction <maximumf>, %125, %cst_60 [2] : vector<2x32x32xf32> to vector<2x32xf32>
    %127 = vector.shape_cast %126 : vector<2x32xf32> to vector<2x32x1xf32>
    %128 = vector.broadcast %127 : vector<2x32x1xf32> to vector<2x32x32xf32>
    %129 = arith.subf %125, %128 : vector<2x32x32xf32>
    %130 = math.exp %129 : vector<2x32x32xf32>
    %cst_61 = arith.constant dense<0.000000e+00> : vector<2x32xf32>
    %131 = vector.multi_reduction <add>, %130, %cst_61 [2] : vector<2x32x32xf32> to vector<2x32xf32>
    %132 = vector.shape_cast %131 : vector<2x32xf32> to vector<2x32x1xf32>
    %133 = tpu.reciprocal %132 {approx = true} : vector<2x32x1xf32> -> vector<2x32x1xf32>
    %134 = vector.broadcast %133 : vector<2x32x1xf32> to vector<2x32x32xf32>
    %135 = arith.mulf %130, %134 : vector<2x32x32xf32>
    %136 = arith.truncf %135 : vector<2x32x32xf32> to vector<2x32x32xbf16>
    %137 = arith.truncf %120 : vector<2x32x32xf32> to vector<2x32x32xbf16>
    "tpu.trace_start"() <{level = 10 : i32, message = "bqk,bke->bqe"}> : () -> ()
    %cst_62 = arith.constant dense<0.000000e+00> : vector<2x32x32xf32>
    %138 = tpu.matmul %136, %137, %cst_62 {dimension_numbers = #tpu.dot_dimension_numbers<[2], [1], [1], [2], [0, 0, 0, 1, 1, 2], [0], [0]>} : vector<2x32x32xbf16>, vector<2x32x32xbf16>, vector<2x32x32xf32> -> vector<2x32x32xf32>
    "tpu.trace_stop"() : () -> ()
    %139 = tpu.concatenate %75, %96, %117, %138 in 2 : vector<2x32x32xf32>, vector<2x32x32xf32>, vector<2x32x32xf32>, vector<2x32x32xf32> -> vector<2x32x128xf32>
    %140 = vector.shape_cast %139 : vector<2x32x128xf32> to vector<64x128xf32>
    %141 = arith.truncf %140 : vector<64x128xf32> to vector<64x128xbf16>
    %cst_63 = arith.constant dense<0.000000e+00> : vector<64x128xf32>
    %142 = tpu.matmul %141, %13, %cst_63 {dimension_numbers = #tpu.dot_dimension_numbers<[1], [0], [0], [1], [0, 0, 1, 1], [], []>} : vector<64x128xbf16>, vector<128x128xbf16>, vector<64x128xf32> -> vector<64x128xf32>
    %143 = vector.broadcast %15 : vector<1x128xf32> to vector<64x128xf32>
    %144 = arith.addf %142, %143 : vector<64x128xf32>
    %145 = arith.addf %3, %144 : vector<64x128xf32>
    %cst_64 = arith.constant dense<0.000000e+00> : vector<64xf32>
    %146 = vector.multi_reduction <add>, %145, %cst_64 [1] : vector<64x128xf32> to vector<64xf32>
    %147 = vector.shape_cast %146 : vector<64xf32> to vector<64x1xf32>
    %cst_65 = arith.constant 1.280000e+02 : f32
    %148 = vector.broadcast %cst_65 : f32 to vector<64x1xf32>
    %149 = arith.divf %147, %148 : vector<64x1xf32>
    %150 = vector.broadcast %149 : vector<64x1xf32> to vector<64x128xf32>
    %151 = arith.subf %145, %150 : vector<64x128xf32>
    %152 = arith.mulf %151, %151 : vector<64x128xf32>
    %cst_66 = arith.constant dense<0.000000e+00> : vector<64xf32>
    %153 = vector.multi_reduction <add>, %152, %cst_66 [1] : vector<64x128xf32> to vector<64xf32>
    %154 = vector.shape_cast %153 : vector<64xf32> to vector<64x1xf32>
    %cst_67 = arith.constant 1.280000e+02 : f32
    %155 = vector.broadcast %cst_67 : f32 to vector<64x1xf32>
    %156 = arith.divf %154, %155 : vector<64x1xf32>
    %157 = vector.broadcast %149 : vector<64x1xf32> to vector<64x128xf32>
    %158 = arith.subf %145, %157 : vector<64x128xf32>
    %cst_68 = arith.constant 9.99999974E-6 : f32
    %159 = vector.broadcast %cst_68 : f32 to vector<64x1xf32>
    %160 = arith.addf %156, %159 : vector<64x1xf32>
    %161 = math.rsqrt %160 : vector<64x1xf32>
    %162 = vector.broadcast %161 : vector<64x1xf32> to vector<64x128xf32>
    %163 = arith.mulf %158, %162 : vector<64x128xf32>
    %164 = vector.broadcast %17 : vector<1x128xf32> to vector<64x128xf32>
    %165 = arith.mulf %163, %164 : vector<64x128xf32>
    %166 = vector.broadcast %19 : vector<1x128xf32> to vector<64x128xf32>
    %167 = arith.addf %165, %166 : vector<64x128xf32>
    %168 = arith.truncf %167 : vector<64x128xf32> to vector<64x128xbf16>
    %cst_69 = arith.constant dense<0.000000e+00> : vector<64x512xf32>
    %169 = tpu.matmul %168, %21, %cst_69 {dimension_numbers = #tpu.dot_dimension_numbers<[1], [0], [0], [1], [0, 0, 1, 1], [], []>} : vector<64x128xbf16>, vector<128x512xbf16>, vector<64x512xf32> -> vector<64x512xf32>
    %170 = vector.broadcast %23 : vector<1x512xf32> to vector<64x512xf32>
    %171 = arith.addf %169, %170 : vector<64x512xf32>
    %172 = arith.mulf %171, %171 : vector<64x512xf32>
    %173 = arith.mulf %171, %172 : vector<64x512xf32>
    %cst_70 = arith.constant 4.471500e-02 : f32
    %174 = vector.broadcast %cst_70 : f32 to vector<64x512xf32>
    %175 = arith.mulf %174, %173 : vector<64x512xf32>
    %176 = arith.addf %171, %175 : vector<64x512xf32>
    %cst_71 = arith.constant 0.797884583 : f32
    %177 = vector.broadcast %cst_71 : f32 to vector<64x512xf32>
    %178 = arith.mulf %177, %176 : vector<64x512xf32>
    %179 = math.tanh %178 : vector<64x512xf32>
    %cst_72 = arith.constant 1.000000e+00 : f32
    %180 = vector.broadcast %cst_72 : f32 to vector<64x512xf32>
    %181 = arith.addf %180, %179 : vector<64x512xf32>
    %cst_73 = arith.constant 5.000000e-01 : f32
    %182 = vector.broadcast %cst_73 : f32 to vector<64x512xf32>
    %183 = arith.mulf %182, %181 : vector<64x512xf32>
    %184 = arith.mulf %171, %183 : vector<64x512xf32>
    %185 = arith.truncf %184 : vector<64x512xf32> to vector<64x512xbf16>
    %cst_74 = arith.constant dense<0.000000e+00> : vector<64x128xf32>
    %186 = tpu.matmul %185, %25, %cst_74 {dimension_numbers = #tpu.dot_dimension_numbers<[1], [0], [0], [1], [0, 0, 1, 1], [], []>} : vector<64x512xbf16>, vector<512x128xbf16>, vector<64x128xf32> -> vector<64x128xf32>
    %187 = vector.broadcast %27 : vector<1x128xf32> to vector<64x128xf32>
    %188 = arith.addf %186, %187 : vector<64x128xf32>
    %189 = arith.addf %145, %188 : vector<64x128xf32>
    %c0_75 = arith.constant 0 : index
    %c0_76 = arith.constant 0 : index
    %190 = vector.load %arg16[%c0_75, %c0_76] : memref<64x128xf32, #tpu.memory_space<vmem>>, vector<64x128xf32>
    tpu.vector_store %arg16[%c0_75, %c0_76], %189 {strides = array<i32>} : memref<64x128xf32, #tpu.memory_space<vmem>>, vector<64x128xf32>,
    %c1_i32 = arith.constant 1 : i32
    %191 = arith.cmpi eq, %arg0, %c1_i32 : i32
    %192 = arith.extui %191 : i1 to i32
    %c0_i32_77 = arith.constant 0 : i32
    %193 = arith.cmpi ne, %192, %c0_i32_77 : i32
    scf.if %193 {
      %194 = vector.shape_cast %189 : vector<64x128xf32> to vector<2x32x128xf32>
      %195 = arith.truncf %194 : vector<2x32x128xf32> to vector<2x32x128xbf16>
      %c0_78 = arith.constant 0 : index
      %c0_79 = arith.constant 0 : index
      %c0_80 = arith.constant 0 : index
      %196 = vector.load %arg15[%c0_78, %c0_79, %c0_80] : memref<2x32x128xbf16, #tpu.memory_space<vmem>>, vector<2x32x128xbf16>
      tpu.vector_store %arg15[%c0_78, %c0_79, %c0_80], %195 {strides = array<i32>} : memref<2x32x128xbf16, #tpu.memory_space<vmem>>, vector<2x32x128xbf16>,
    } else {
    }
    return
  }
  func.func @transform_0(%arg0: i32) -> (i32, i32, i32) {
    %c0_i32 = arith.constant 0 : i32
    %c0_i32_0 = arith.constant 0 : i32
    %c0_i32_1 = arith.constant 0 : i32
    %c0_i32_2 = arith.constant 0 : i32
    return %c0_i32, %c0_i32_0, %c0_i32_1 : i32, i32, i32
  }
  func.func @transform_1(%arg0: i32) -> (i32, i32, i32) {
    %c0_i32 = arith.constant 0 : i32
    %c0_i32_0 = arith.constant 0 : i32
    %c0_i32_1 = arith.constant 0 : i32
    %c0_i32_2 = arith.constant 0 : i32
    return %c0_i32, %c0_i32_0, %c0_i32_1 : i32, i32, i32
  }
  func.func @transform_2(%arg0: i32) -> (i32, i32, i32) {
    %c0_i32 = arith.constant 0 : i32
    %c0_i32_0 = arith.constant 0 : i32
    %c0_i32_1 = arith.constant 0 : i32
    return %arg0, %c0_i32, %c0_i32_0 : i32, i32, i32
  }
  func.func @transform_3(%arg0: i32) -> (i32, i32, i32) {
    %c0_i32 = arith.constant 0 : i32
    %c0_i32_0 = arith.constant 0 : i32
    %c0_i32_1 = arith.constant 0 : i32
    return %arg0, %c0_i32, %c0_i32_0 : i32, i32, i32
  }
  func.func @transform_4(%arg0: i32) -> (i32, i32, i32) {
    %c0_i32 = arith.constant 0 : i32
    %c0_i32_0 = arith.constant 0 : i32
    %c0_i32_1 = arith.constant 0 : i32
    return %arg0, %c0_i32, %c0_i32_0 : i32, i32, i32
  }
  func.func @transform_5(%arg0: i32) -> (i32, i32, i32) {
    %c0_i32 = arith.constant 0 : i32
    %c0_i32_0 = arith.constant 0 : i32
    %c0_i32_1 = arith.constant 0 : i32
    return %arg0, %c0_i32, %c0_i32_0 : i32, i32, i32
  }
  func.func @transform_6(%arg0: i32) -> (i32, i32, i32) {
    %c0_i32 = arith.constant 0 : i32
    %c0_i32_0 = arith.constant 0 : i32
    %c0_i32_1 = arith.constant 0 : i32
    return %arg0, %c0_i32, %c0_i32_0 : i32, i32, i32
  }
  func.func @transform_7(%arg0: i32) -> (i32, i32, i32) {
    %c0_i32 = arith.constant 0 : i32
    %c0_i32_0 = arith.constant 0 : i32
    %c0_i32_1 = arith.constant 0 : i32
    return %arg0, %c0_i32, %c0_i32_0 : i32, i32, i32
  }
  func.func @transform_8(%arg0: i32) -> (i32, i32, i32) {
    %c0_i32 = arith.constant 0 : i32
    %c0_i32_0 = arith.constant 0 : i32
    %c0_i32_1 = arith.constant 0 : i32
    return %arg0, %c0_i32, %c0_i32_0 : i32, i32, i32
  }
  func.func @transform_9(%arg0: i32) -> (i32, i32, i32) {
    %c0_i32 = arith.constant 0 : i32
    %c0_i32_0 = arith.constant 0 : i32
    %c0_i32_1 = arith.constant 0 : i32
    return %arg0, %c0_i32, %c0_i32_0 : i32, i32, i32
  }
  func.func @transform_10(%arg0: i32) -> (i32, i32, i32) {
    %c0_i32 = arith.constant 0 : i32
    %c0_i32_0 = arith.constant 0 : i32
    %c0_i32_1 = arith.constant 0 : i32
    return %arg0, %c0_i32, %c0_i32_0 : i32, i32, i32
  }
  func.func @transform_11(%arg0: i32) -> (i32, i32, i32) {
    %c0_i32 = arith.constant 0 : i32
    %c0_i32_0 = arith.constant 0 : i32
    %c0_i32_1 = arith.constant 0 : i32
    return %arg0, %c0_i32, %c0_i32_0 : i32, i32, i32
  }
  func.func @transform_12(%arg0: i32) -> (i32, i32, i32) {
    %c0_i32 = arith.constant 0 : i32
    %c0_i32_0 = arith.constant 0 : i32
    %c0_i32_1 = arith.constant 0 : i32
    return %arg0, %c0_i32, %c0_i32_0 : i32, i32, i32
  }
  func.func @transform_13(%arg0: i32) -> (i32, i32, i32) {
    %c0_i32 = arith.constant 0 : i32
    %c0_i32_0 = arith.constant 0 : i32
    %c0_i32_1 = arith.constant 0 : i32
    return %arg0, %c0_i32, %c0_i32_0 : i32, i32, i32
  }
  func.func @transform_14(%arg0: i32) -> (i32, i32, i32) {
    %c0_i32 = arith.constant 0 : i32
    %c0_i32_0 = arith.constant 0 : i32
    %c0_i32_1 = arith.constant 0 : i32
    %c0_i32_2 = arith.constant 0 : i32
    return %c0_i32, %c0_i32_0, %c0_i32_1 : i32, i32, i32
  }
}

module attributes {stable_mosaic.version = 11 : i64} {
  func.func @_head_loss_kernel(%arg0: i32, %arg1: memref<2x32x128xbf16, #tpu.memory_space<vmem>>, %arg2: memref<1x128xf32, #tpu.memory_space<vmem>>, %arg3: memref<1x128xf32, #tpu.memory_space<vmem>>, %arg4: memref<128x128xbf16, #tpu.memory_space<vmem>>, %arg5: memref<1x128xf32, #tpu.memory_space<vmem>>, %arg6: memref<2x32x128xf32, #tpu.memory_space<vmem>>, %arg7: memref<2x32x128xf32, #tpu.memory_space<vmem>>, %arg8: memref<2x32x1xf32, #tpu.memory_space<vmem>>) attributes {dimension_semantics = [#tpu.dimension_semantics<parallel>], iteration_bounds = array<i64: 1>, scalar_prefetch = 0 : i64, scratch_operands = 0 : i64, tpu.core_type = #tpu.core_type<tc>, window_params = [{transform_indices = @transform_0, window_bounds = array<i64: 2, 32, 128>}, {pipeline_mode = #tpu.pipeline_mode<synchronous>, transform_indices = @transform_1, window_bounds = array<i64: 1, 128>}, {pipeline_mode = #tpu.pipeline_mode<synchronous>, transform_indices = @transform_2, window_bounds = array<i64: 1, 128>}, {pipeline_mode = #tpu.pipeline_mode<synchronous>, transform_indices = @transform_3, window_bounds = array<i64: 128, 128>}, {pipeline_mode = #tpu.pipeline_mode<synchronous>, transform_indices = @transform_4, window_bounds = array<i64: 1, 128>}, {transform_indices = @transform_5, window_bounds = array<i64: 2, 32, 128>}, {transform_indices = @transform_6, window_bounds = array<i64: 2, 32, 128>}, {transform_indices = @transform_7, window_bounds = array<i64: 2, 32, 1>}]} {
    %c0 = arith.constant 0 : index
    %c0_0 = arith.constant 0 : index
    %c0_1 = arith.constant 0 : index
    %0 = vector.load %arg1[%c0, %c0_0, %c0_1] : memref<2x32x128xbf16, #tpu.memory_space<vmem>>, vector<2x32x128xbf16>
    %1 = arith.extf %0 : vector<2x32x128xbf16> to vector<2x32x128xf32>
    %2 = vector.shape_cast %1 : vector<2x32x128xf32> to vector<64x128xf32>
    %c0_2 = arith.constant 0 : index
    %c0_3 = arith.constant 0 : index
    %3 = vector.load %arg2[%c0_2, %c0_3] : memref<1x128xf32, #tpu.memory_space<vmem>>, vector<1x128xf32>
    %c0_4 = arith.constant 0 : index
    %c0_5 = arith.constant 0 : index
    %4 = vector.load %arg3[%c0_4, %c0_5] : memref<1x128xf32, #tpu.memory_space<vmem>>, vector<1x128xf32>
    %cst = arith.constant dense<0.000000e+00> : vector<64xf32>
    %5 = vector.multi_reduction <add>, %2, %cst [1] : vector<64x128xf32> to vector<64xf32>
    %6 = vector.shape_cast %5 : vector<64xf32> to vector<64x1xf32>
    %cst_6 = arith.constant 1.280000e+02 : f32
    %7 = vector.broadcast %cst_6 : f32 to vector<64x1xf32>
    %8 = arith.divf %6, %7 : vector<64x1xf32>
    %9 = vector.broadcast %8 : vector<64x1xf32> to vector<64x128xf32>
    %10 = arith.subf %2, %9 : vector<64x128xf32>
    %11 = arith.mulf %10, %10 : vector<64x128xf32>
    %cst_7 = arith.constant dense<0.000000e+00> : vector<64xf32>
    %12 = vector.multi_reduction <add>, %11, %cst_7 [1] : vector<64x128xf32> to vector<64xf32>
    %13 = vector.shape_cast %12 : vector<64xf32> to vector<64x1xf32>
    %cst_8 = arith.constant 1.280000e+02 : f32
    %14 = vector.broadcast %cst_8 : f32 to vector<64x1xf32>
    %15 = arith.divf %13, %14 : vector<64x1xf32>
    %16 = vector.broadcast %8 : vector<64x1xf32> to vector<64x128xf32>
    %17 = arith.subf %2, %16 : vector<64x128xf32>
    %cst_9 = arith.constant 9.99999974E-6 : f32
    %18 = vector.broadcast %cst_9 : f32 to vector<64x1xf32>
    %19 = arith.addf %15, %18 : vector<64x1xf32>
    %20 = math.rsqrt %19 : vector<64x1xf32>
    %21 = vector.broadcast %20 : vector<64x1xf32> to vector<64x128xf32>
    %22 = arith.mulf %17, %21 : vector<64x128xf32>
    %23 = vector.broadcast %3 : vector<1x128xf32> to vector<64x128xf32>
    %24 = arith.mulf %22, %23 : vector<64x128xf32>
    %25 = vector.broadcast %4 : vector<1x128xf32> to vector<64x128xf32>
    %26 = arith.addf %24, %25 : vector<64x128xf32>
    %27 = arith.truncf %26 : vector<64x128xf32> to vector<64x128xbf16>
    %c0_10 = arith.constant 0 : index
    %c0_11 = arith.constant 0 : index
    %28 = vector.load %arg4[%c0_10, %c0_11] : memref<128x128xbf16, #tpu.memory_space<vmem>>, vector<128x128xbf16>
    %cst_12 = arith.constant dense<0.000000e+00> : vector<64x128xf32>
    %29 = tpu.matmul %27, %28, %cst_12 {dimension_numbers = #tpu.dot_dimension_numbers<[1], [0], [0], [1], [0, 0, 1, 1], [], []>} : vector<64x128xbf16>, vector<128x128xbf16>, vector<64x128xf32> -> vector<64x128xf32>
    %c0_13 = arith.constant 0 : index
    %c0_14 = arith.constant 0 : index
    %30 = vector.load %arg5[%c0_13, %c0_14] : memref<1x128xf32, #tpu.memory_space<vmem>>, vector<1x128xf32>
    %31 = vector.broadcast %30 : vector<1x128xf32> to vector<64x128xf32>
    %32 = arith.addf %29, %31 : vector<64x128xf32>
    %33 = vector.shape_cast %32 : vector<64x128xf32> to vector<2x32x128xf32>
    %c0_15 = arith.constant 0 : index
    %c0_16 = arith.constant 0 : index
    %c0_17 = arith.constant 0 : index
    %34 = vector.load %arg7[%c0_15, %c0_16, %c0_17] : memref<2x32x128xf32, #tpu.memory_space<vmem>>, vector<2x32x128xf32>
    tpu.vector_store %arg7[%c0_15, %c0_16, %c0_17], %33 {strides = array<i32>} : memref<2x32x128xf32, #tpu.memory_space<vmem>>, vector<2x32x128xf32>,
    %c0_18 = arith.constant 0 : index
    %c0_19 = arith.constant 0 : index
    %c0_20 = arith.constant 0 : index
    %35 = vector.load %arg6[%c0_18, %c0_19, %c0_20] : memref<2x32x128xf32, #tpu.memory_space<vmem>>, vector<2x32x128xf32>
    %36 = arith.subf %33, %35 : vector<2x32x128xf32>
    %37 = arith.mulf %36, %36 : vector<2x32x128xf32>
    %cst_21 = arith.constant dense<0.000000e+00> : vector<2x32xf32>
    %38 = vector.multi_reduction <add>, %37, %cst_21 [2] : vector<2x32x128xf32> to vector<2x32xf32>
    %39 = vector.shape_cast %38 : vector<2x32xf32> to vector<2x32x1xf32>
    %cst_22 = arith.constant 1.280000e+02 : f32
    %40 = vector.broadcast %cst_22 : f32 to vector<2x32x1xf32>
    %41 = arith.divf %39, %40 : vector<2x32x1xf32>
    %c0_23 = arith.constant 0 : index
    %c0_24 = arith.constant 0 : index
    %c0_25 = arith.constant 0 : index
    %42 = vector.load %arg8[%c0_23, %c0_24, %c0_25] : memref<2x32x1xf32, #tpu.memory_space<vmem>>, vector<2x32x1xf32>
    tpu.vector_store %arg8[%c0_23, %c0_24, %c0_25], %41 {strides = array<i32>} : memref<2x32x1xf32, #tpu.memory_space<vmem>>, vector<2x32x1xf32>,
    return
  }
  func.func @transform_0(%arg0: i32) -> (i32, i32, i32) {
    %c0_i32 = arith.constant 0 : i32
    %c0_i32_0 = arith.constant 0 : i32
    %c0_i32_1 = arith.constant 0 : i32
    return %arg0, %c0_i32, %c0_i32_0 : i32, i32, i32
  }
  func.func @transform_1(%arg0: i32) -> (i32, i32) {
    %c0_i32 = arith.constant 0 : i32
    %c0_i32_0 = arith.constant 0 : i32
    %c0_i32_1 = arith.constant 0 : i32
    return %c0_i32, %c0_i32_0 : i32, i32
  }
  func.func @transform_2(%arg0: i32) -> (i32, i32) {
    %c0_i32 = arith.constant 0 : i32
    %c0_i32_0 = arith.constant 0 : i32
    %c0_i32_1 = arith.constant 0 : i32
    return %c0_i32, %c0_i32_0 : i32, i32
  }
  func.func @transform_3(%arg0: i32) -> (i32, i32) {
    %c0_i32 = arith.constant 0 : i32
    %c0_i32_0 = arith.constant 0 : i32
    %c0_i32_1 = arith.constant 0 : i32
    return %c0_i32, %c0_i32_0 : i32, i32
  }
  func.func @transform_4(%arg0: i32) -> (i32, i32) {
    %c0_i32 = arith.constant 0 : i32
    %c0_i32_0 = arith.constant 0 : i32
    %c0_i32_1 = arith.constant 0 : i32
    return %c0_i32, %c0_i32_0 : i32, i32
  }
  func.func @transform_5(%arg0: i32) -> (i32, i32, i32) {
    %c0_i32 = arith.constant 0 : i32
    %c0_i32_0 = arith.constant 0 : i32
    %c0_i32_1 = arith.constant 0 : i32
    return %arg0, %c0_i32, %c0_i32_0 : i32, i32, i32
  }
  func.func @transform_6(%arg0: i32) -> (i32, i32, i32) {
    %c0_i32 = arith.constant 0 : i32
    %c0_i32_0 = arith.constant 0 : i32
    %c0_i32_1 = arith.constant 0 : i32
    return %arg0, %c0_i32, %c0_i32_0 : i32, i32, i32
  }
  func.func @transform_7(%arg0: i32) -> (i32, i32, i32) {
    %c0_i32 = arith.constant 0 : i32
    %c0_i32_0 = arith.constant 0 : i32
    %c0_i32_1 = arith.constant 0 : i32
    return %arg0, %c0_i32, %c0_i32_0 : i32, i32, i32
  }
}

</mosaic_0001>

<bundles_post_ra>
// kernel: forward.5
= control target key start
LH: loop header
LB: loop body
LE: loop exit
PB: predicated region body
PF: predicated region fallthrough
CT: control target
= control target key end

     0   :  { %s716_s0 = inlined_call_operand.vmem [shape: bf16[2,32,128], index: 0, kind: input, shape index: {}]   ;;  %s717_s1 = inlined_call_operand.vmem [shape: f32[1,128], index: 1, kind: input, shape index: {}]   ;;  %s718_s2 = inlined_call_operand.vmem [shape: f32[1,128], index: 2, kind: input, shape index: {}, may-alias: {2,4}]   ;;  %s719_s3 = inlined_call_operand.vmem [shape: bf16[128,128], index: 3, kind: input, shape index: {}]   ;;  %s720_s4 = inlined_call_operand.vmem [shape: f32[1,128], index: 4, kind: input, shape index: {}, may-alias: {2,4}]   ;;  %s721_s5 = inlined_call_operand.vmem [shape: f32[2,32,128], index: 5, kind: input, shape index: {}]   ;;  %s722_s6 = inlined_call_operand.hbm [shape: f32[2,32,128], index: 6, kind: output, shape index: {0}]   ;;  %s723_s7 = inlined_call_operand.vmem [shape: f32[2,32,1], index: 7, kind: output, shape index: {1}]  }
   0x1   :  { %v399_v0 = vld [vmem:[%s716_s0] sm:$0xff]   ;;  %v415_v1 = vld [vmem:[%s716_s0 + $0x10] sm:$0xff]   ;;  %v414_v4 = vld [vmem:[%s716_s0 + $0x8] sm:$0xff]  }
   0x2   :  { %v400_v2 = vunpack.c.l.bf16 %v399_v0  ;;  %v408_v3 = vunpack.c.l.bf16 %v415_v1  ;;  %v401_v5 = vunpack.c.h.bf16 %v399_v0  ;;  %v409_v6 = vunpack.c.h.bf16 %v415_v1 }
   0x4   :  { %45 = vadd.xlane.f32.xlu0 %v400_v2  ;;  %53 = vadd.xlane.f32.xlu1 %v408_v3 }
   0x5   :  { %13 = vsyncpa [#allocation3], 0  ;;  %v404_v7 = vunpack.c.l.bf16 %v414_v4  ;;  %v405_v8 = vunpack.c.h.bf16 %v414_v4  ;;  %v416_v9 = vld [vmem:[%s716_s0 + $0x18] sm:$0xff]   ;;  %v472_v44 = vld [vmem:[%s719_s3] sm:$0xff]   ;;  %s520_s18 = smov [#allocation2]  }
   0x6   :  { %v412_v10 = vunpack.c.l.bf16 %v416_v9  ;;  %v413_v11 = vunpack.c.h.bf16 %v416_v9  ;;  %429 = vmatprep.subr.bf16.mxu0 %v472_v44  ;;  %453 = vmatprep.subr.bf16.mxu1 %v472_v44  ;;  %v473_v45 = vld [vmem:[%s719_s3 + $0x8] sm:$0xff]   ;;  %v474_v46 = vld [vmem:[%s719_s3 + $0x10] sm:$0xff]   ;;  %v475_v47 = vld [vmem:[%s719_s3 + $0x18] sm:$0xff]   ;;  %s372_s19 = sshll.u32 %s520_s18, 4  ;;  %s373_s19 = int_to_ptr.vmem [resolvable:$true] %s372_s19 }
   0x7   :  { %430 = vmatpush3.bf16.msra.mxu0 %v472_v44  ;;  %461 = vmatpush3.bf16.msra.mxu1 %v472_v44  ;;  %v476_v48 = vld [vmem:[%s719_s3 + $0x20] sm:$0xff]   ;;  %v477_v49 = vld [vmem:[%s719_s3 + $0x28] sm:$0xff]   ;;  %v478_v50 = vld [vmem:[%s719_s3 + $0x30] sm:$0xff]   ;;  %s496_s20 = scalar_lea.vmem %s373_s19, 1024  ;;  %p501_p1 = scmp.lt.s32.totalorder %s373_s19, %s373_s19 }
   0x8   :  { %47 = vadd.xlane.f32.xlu0 %v401_v5  ;;  %55 = vadd.xlane.f32.xlu1 %v409_v6  ;;  %v479_v51 = vld [vmem:[%s719_s3 + $0x38] sm:$0xff]   ;;  %p497_p0 = scmp.ne.s32.totalorder %s373_s19, %s496_s20  ;;  %p502_p2 = scmp.lt.s32.totalorder %s496_s20, %s496_s20 }
   0x9   :  { %431 = vmatprep.subr.bf16.mxu0 %v473_v45  ;;  %454 = vmatprep.subr.bf16.mxu1 %v473_v45 }
   0xa   :  { %p503_p3 = por %p502_p2, %p501_p1 }
   0xb   :  { %432 = vmatpush3.bf16.msra.mxu0 %v473_v45  ;;  %462 = vmatpush3.bf16.msra.mxu1 %v473_v45 }
   0xc   :  { %49 = vadd.xlane.f32.xlu0 %v404_v7  ;;  %51 = vadd.xlane.f32.xlu1 %v405_v8  ;;  %p504_p4 = pnand %p503_p3, %p497_p0 }
   0xd   :  { %433 = vmatprep.subr.bf16.mxu0 %v474_v46  ;;  %455 = vmatprep.subr.bf16.mxu1 %v474_v46 }
   0xf   :  { %434 = vmatpush3.bf16.msra.mxu0 %v474_v46  ;;  %463 = vmatpush3.bf16.msra.mxu1 %v474_v46 }
  0x10   :  { %57 = vadd.xlane.f32.xlu0 %v412_v10  ;;  %59 = vadd.xlane.f32.xlu1 %v413_v11 }
  0x11   :  { %435 = vmatprep.subr.bf16.mxu0 %v475_v47  ;;  %456 = vmatprep.subr.bf16.mxu1 %v475_v47 }
  0x13   :  { %436 = vmatpush3.bf16.msra.mxu0 %v475_v47  ;;  %464 = vmatpush3.bf16.msra.mxu1 %v475_v47 }
  0x14   :  { %437 = vmatprep.subr.bf16.mxu0 %v476_v48  ;;  %457 = vmatprep.subr.bf16.mxu1 %v476_v48 }
  0x17   :  { %438 = vmatpush3.bf16.msra.mxu0 %v476_v48  ;;  %465 = vmatpush3.bf16.msra.mxu1 %v476_v48 }
  0x18   :  { %439 = vmatprep.subr.bf16.mxu0 %v477_v49  ;;  %458 = vmatprep.subr.bf16.mxu1 %v477_v49 }
  0x1b   :  { %440 = vmatpush3.bf16.msra.mxu0 %v477_v49  ;;  %466 = vmatpush3.bf16.msra.mxu1 %v477_v49 }
  0x1c   :  { %441 = vmatprep.subr.bf16.mxu0 %v478_v50  ;;  %459 = vmatprep.subr.bf16.mxu1 %v478_v50 }
  0x1f   :  { %442 = vmatpush3.bf16.msra.mxu0 %v478_v50  ;;  %467 = vmatpush3.bf16.msra.mxu1 %v478_v50 }
  0x20   :  { %443 = vmatprep.subr.bf16.mxu0 %v479_v51  ;;  %460 = vmatprep.subr.bf16.mxu1 %v479_v51 }
  0x23   :  { %444 = vmatpush3.bf16.msra.mxu0 %v479_v51  ;;  %468 = vmatpush3.bf16.msra.mxu1 %v479_v51 }
  0x91   :  { %v46_v12 = vpop.xlane.xlu0 %45  ;;  %v54_v13 = vpop.xlane.xlu1 %53 }
  0x92   :  { %v62_v14 = vmul.f32 0.0078125, %v46_v12  ;;  %v66_v15 = vmul.f32 0.0078125, %v54_v13  ;;  %v387_v13 = vld [vmem:[%s717_s1] ss:$0 sm:$0xff] }
  0x94   :  { %v575_v16 = vsub.f32 %v400_v2, %v62_v14  ;;  %v577_v17 = vsub.f32 %v408_v3, %v66_v15 }
  0x95   :  { %v48_v18 = vpop.xlane.xlu0 %47  ;;  %v56_v19 = vpop.xlane.xlu1 %55 }
  0x96   :  { %v63_v20 = vmul.f32 0.0078125, %v48_v18  ;;  %v78_v21 = vmul.f32 %v575_v16, %v575_v16  ;;  %v67_v22 = vmul.f32 0.0078125, %v56_v19  ;;  %v82_v25 = vmul.f32 %v577_v17, %v577_v17 }
  0x98   :  { %v581_v23 = vsub.f32 %v401_v5, %v63_v20  ;;  %86 = vadd.xlane.f32.xlu0 %v78_v21  ;;  %v583_v24 = vsub.f32 %v409_v6, %v67_v22  ;;  %v388_v21 = vld [vmem:[%s718_s2] ss:$0 sm:$0xff] }
  0x99   :  { %v50_v26 = vpop.xlane.xlu0 %49  ;;  %v52_v27 = vpop.xlane.xlu1 %51 }
  0x9a   :  { %v64_v28 = vmul.f32 0.0078125, %v50_v26  ;;  %v79_v29 = vmul.f32 %v581_v23, %v581_v23  ;;  %v65_v30 = vmul.f32 0.0078125, %v52_v27  ;;  %v83_v33 = vmul.f32 %v583_v24, %v583_v24 }
  0x9c   :  { %v589_v31 = vsub.f32 %v404_v7, %v64_v28  ;;  %94 = vadd.xlane.f32.xlu0 %v82_v25  ;;  %88 = vadd.xlane.f32.xlu1 %v79_v29  ;;  %v591_v32 = vsub.f32 %v405_v8, %v65_v30 }
  0x9d   :  { %v58_v34 = vpop.xlane.xlu0 %57  ;;  %v60_v35 = vpop.xlane.xlu1 %59 }
  0x9e   :  { %v68_v36 = vmul.f32 0.0078125, %v58_v34  ;;  %v80_v37 = vmul.f32 %v589_v31, %v589_v31  ;;  %v69_v38 = vmul.f32 0.0078125, %v60_v35  ;;  %v81_v41 = vmul.f32 %v591_v32, %v591_v32 }
  0xa0   :  { %v597_v39 = vsub.f32 %v412_v10, %v68_v36  ;;  %96 = vadd.xlane.f32.xlu1 %v83_v33  ;;  %90 = vadd.xlane.f32.xlu0 %v80_v37  ;;  %v599_v40 = vsub.f32 %v413_v11, %v69_v38 }
  0xa2   :  { %v84_v42 = vmul.f32 %v597_v39, %v597_v39  ;;  %v85_v43 = vmul.f32 %v599_v40, %v599_v40 }
  0xa4   :  { %92 = vadd.xlane.f32.xlu1 %v81_v41  ;;  %98 = vadd.xlane.f32.xlu0 %v84_v42 }
  0xa8   :  { %100 = vadd.xlane.f32.xlu1 %v85_v43 }
 0x125   :  { %v87_v52 = vpop.xlane.xlu0 %86 }
 0x126   :  { %v102_v53 = vmul.f32 0.0078125, %v87_v52 }
 0x128   :  { %v110_v54 = vadd.f32 1e-05, %v102_v53  ;;  %v312_v53 = vld [vmem:[%s721_s5 + $0x10] sm:$0xff] }
 0x129   :  { %v89_v55 = vpop.xlane.xlu1 %88  ;;  %v95_v56 = vpop.xlane.xlu0 %94 }
 0x12a   :  { %480 = vrsqrt.f32 %v110_v54  ;;  %v103_v57 = vmul.f32 0.0078125, %v89_v55  ;;  %v106_v58 = vmul.f32 0.0078125, %v95_v56 }
 0x12c   :  { %v111_v59 = vadd.f32 1e-05, %v103_v57  ;;  %v114_v60 = vadd.f32 1e-05, %v106_v58  ;;  %v313_v57 = vld [vmem:[%s721_s5 + $0x18] sm:$0xff]  ;;  %v310_v58 = vld [vmem:[%s721_s5] sm:$0xff] }
 0x12d   :  { %v97_v61 = vpop.xlane.xlu1 %96  ;;  %v91_v62 = vpop.xlane.xlu0 %90 }
 0x12e   :  { %482 = vrsqrt.f32 %v111_v59  ;;  %v107_v63 = vmul.f32 0.0078125, %v97_v61  ;;  %v104_v0 = vmul.f32 0.0078125, %v91_v62 }
 0x12f   :  { %484 = vrsqrt.f32 %v114_v60 }
 0x130   :  { %v115_v1 = vadd.f32 1e-05, %v107_v63  ;;  %v112_v2 = vadd.f32 1e-05, %v104_v0  ;;  %v311_v0 = vld [vmem:[%s721_s5 + $0x8] sm:$0xff] }
 0x131   :  { %v93_v3 = vpop.xlane.xlu1 %92  ;;  %v99_v4 = vpop.xlane.xlu0 %98 }
 0x132   :  { %486 = vrsqrt.f32 %v115_v1  ;;  %v105_v5 = vmul.f32 0.0078125, %v93_v3  ;;  %v108_v6 = vmul.f32 0.0078125, %v99_v4 }
 0x133   :  { %488 = vrsqrt.f32 %v112_v2 }
 0x134   :  { %v481_v7 = vpop.eup %480  ;;  %v113_v8 = vadd.f32 1e-05, %v105_v5  ;;  %v116_v9 = vadd.f32 1e-05, %v108_v6 }
 0x135   :  { %v101_v10 = vpop.xlane.xlu1 %100  ;;  %v126_v11 = vmul.f32 %v481_v7, %v575_v16 }
 0x136   :  { %490 = vrsqrt.f32 %v113_v8  ;;  %v109_v12 = vmul.f32 0.0078125, %v101_v10  ;;  %v314_v8 = vld [vmem:[%s721_s5 + $0x20] sm:$0xff] }
 0x137   :  { %492 = vrsqrt.f32 %v116_v9  ;;  %v140_v20 = vmul.f32 %v387_v13, %v126_v11 }
 0x138   :  { %v483_v14 = vpop.eup %482  ;;  %v117_v15 = vadd.f32 1e-05, %v109_v12 }
 0x139   :  { %v485_v18 = vpop.eup %484  ;;  %v127_v19 = vmul.f32 %v483_v14, %v581_v23  ;;  %v154_v27 = vadd.f32 %v388_v21, %v140_v20  ;;  %v315_v14 = vld [vmem:[%s721_s5 + $0x28] sm:$0xff] }
 0x13a   :  { %494 = vrsqrt.f32 %v117_v15  ;;  %v130_v16 = vmul.f32 %v485_v18, %v577_v17 }
 0x13b   :  { %v141_v22 = vmul.f32 %v387_v13, %v127_v19  ;;  %v316_v19 = vld [vmem:[%s721_s5 + $0x30] sm:$0xff] }
 0x13c   :  { %v487_v25 = vpop.eup %486  ;;  %v144_v30 = vmul.f32 %v387_v13, %v130_v16  ;;  %v317_v16 = vld [vmem:[%s721_s5 + $0x38] sm:$0xff] }
 0x13d   :  { %v489_v26 = vpop.eup %488  ;;  %v155_v28 = vadd.f32 %v388_v21, %v141_v22  ;;  %v131_v29 = vmul.f32 %v487_v25, %v583_v24 }
 0x13e   :  { %v128_v33 = vmul.f32 %v489_v26, %v589_v31  ;;  %v158_v37 = vadd.f32 %v388_v21, %v144_v30 }
 0x13f   :  { %v162_v34 = vpack.c.bf16 %v155_v28, %v154_v27  ;;  %v145_v23 = vmul.f32 %v387_v13, %v131_v29 }
 0x140   :  { %v491_v35 = vpop.eup %490  ;;  %v142_v17 = vmul.f32 %v387_v13, %v128_v33 }
 0x141   :  { %v493_v36 = vpop.eup %492  ;;  %445 = vmatprep.mubr.bf16.mxu0 %v162_v34  ;;  %v159_v38 = vadd.f32 %v388_v21, %v145_v23  ;;  %v129_v41 = vmul.f32 %v491_v35, %v591_v32  ;;  %v389_v32 = vld [vmem:[%s720_s4] ss:$0 sm:$0xff] }
 0x142   :  { %v132_v42 = vmul.f32 %v493_v36, %v597_v39  ;;  %v156_v24 = vadd.f32 %v388_v21, %v142_v17 }
 0x143   :  { %v164_v43 = vpack.c.bf16 %v159_v38, %v158_v37  ;;  %v143_v44 = vmul.f32 %v387_v13, %v129_v41 }
 0x144   :  { %v495_v45 = vpop.eup %494  ;;  %v146_v47 = vmul.f32 %v387_v13, %v132_v42 }
 0x145   :  { %449 = vmatprep.mubr.bf16.mxu1 %v164_v43  ;;  %v157_v46 = vadd.f32 %v388_v21, %v143_v44  ;;  %v133_v31 = vmul.f32 %v495_v45, %v599_v40 }
 0x146   :  { %v160_v50 = vadd.f32 %v388_v21, %v146_v47 }
 0x147   :  { %v163_v48 = vpack.c.bf16 %v157_v46, %v156_v24  ;;  %v147_v49 = vmul.f32 %v387_v13, %v133_v31 }
 0x149   :  { %446 = vmatmul.mubr.bf16.vlgmr.msra.gmra.mrb[0].mxu0 %v163_v48  ;;  %v161_v51 = vadd.f32 %v388_v21, %v147_v49 }
 0x14b   :  { %v165_v52 = vpack.c.bf16 %v161_v51, %v160_v50 }
 0x14d   :  { %450 = vmatmul.mubr.bf16.vlgmr.msra.gmra.mrb[0].mxu1 %v165_v52 }
 0x21c   :  { %v447_v39 = vpop.f32.mrb[0].mxu0 }
 0x21d   :  { %v280_v54 = vadd.f32 %v447_v39, %v389_v32  ;;  %v271_v55 = vpop.f32.mrb[1].mxu0 }
 0x21e   :  { %v272_v40 = vadd.f32 %v389_v32, %v271_v55  ;;  %v448_v56 = vpop.f32.mrb[2].mxu0 }
 0x21f   :  { %304 = vst [vmem:[#allocation2 + $0x10] sm:$0xff] %v280_v54  ;;  %v283_v59 = vadd.f32 %v448_v56, %v389_v32  ;;  %v274_v60 = vpop.f32.mrb[3].mxu0  ;;  %v320_v61 = vsub.f32 %v280_v54, %v312_v53 }
 0x220   :  { %302 = vst [vmem:[#allocation2] sm:$0xff] %v272_v40  ;;  %v275_v62 = vadd.f32 %v389_v32, %v274_v60  ;;  %v451_v63 = vpop.f32.mrb[0].mxu1  ;;  %v318_v5 = vsub.f32 %v272_v40, %v310_v58 }
 0x221   :  { %305 = vst [vmem:[#allocation2 + $0x18] sm:$0xff] %v283_v59  ;;  %v296_v1 = vadd.f32 %v451_v63, %v389_v32  ;;  %v287_v2 = vpop.f32.mrb[1].mxu1  ;;  %v328_v3 = vmul.f32 %v320_v61, %v320_v61  ;;  %v321_v4 = vsub.f32 %v283_v59, %v313_v57 }
 0x222   :  { %303 = vst [vmem:[#allocation2 + $0x8] sm:$0xff] %v275_v62  ;;  %v288_v6 = vadd.f32 %v389_v32, %v287_v2  ;;  %v452_v7 = vpop.f32.mrb[2].mxu1  ;;  %v319_v12 = vsub.f32 %v275_v62, %v311_v0  ;;  %v326_v15 = vmul.f32 %v318_v5, %v318_v5 }
 0x223   :  { %308 = vst [vmem:[#allocation2 + $0x30] sm:$0xff] %v296_v1  ;;  %v299_v9 = vadd.f32 %v452_v7, %v389_v32  ;;  %338 = vadd.xlane.f32.xlu0 %v328_v3  ;;  %v290_v10 = vpop.f32.mrb[3].mxu1  ;;  %v329_v11 = vmul.f32 %v321_v4, %v321_v4  ;;  %v324_v25 = vsub.f32 %v296_v1, %v316_v19 }
 0x224   :  { %306 = vst [vmem:[#allocation2 + $0x20] sm:$0xff] %v288_v6  ;;  %v291_v13 = vadd.f32 %v389_v32, %v290_v10  ;;  %v322_v18 = vsub.f32 %v288_v6, %v314_v8  ;;  %v327_v20 = vmul.f32 %v319_v12, %v319_v12 }
 0x225   :  { %309 = vst [vmem:[#allocation2 + $0x38] sm:$0xff] %v299_v9  ;;  %340 = vadd.xlane.f32.xlu1 %v329_v11  ;;  %v325_v27 = vsub.f32 %v299_v9, %v317_v16  ;;  %v332_v28 = vmul.f32 %v324_v25, %v324_v25 }
 0x226   :  { %307 = vst [vmem:[#allocation2 + $0x28] sm:$0xff] %v291_v13  ;;  %v323_v21 = vsub.f32 %v291_v13, %v315_v14  ;;  %v330_v22 = vmul.f32 %v322_v18, %v322_v18 }
 0x227   :  { %334 = vadd.xlane.f32.xlu0 %v326_v15  ;;  %v333_v29 = vmul.f32 %v325_v27, %v325_v27 }
 0x228   :  { %v331_v26 = vmul.f32 %v323_v21, %v323_v21 }
 0x229   :  { %336 = vadd.xlane.f32.xlu1 %v327_v20 }
 0x22b   :  { %342 = vadd.xlane.f32.xlu0 %v330_v22 }
 0x22d   :  { %344 = vadd.xlane.f32.xlu1 %v331_v26 }
 0x22f   :  { %346 = vadd.xlane.f32.xlu0 %v332_v28 }
 0x231   :  { %348 = vadd.xlane.f32.xlu1 %v333_v29 }
 0x232   :  { %507 = shalt.err (!%p504_p4)
}
 0x233   :  { %s508_s22 = scalar_lea.hbm %s722_s6, 1024 }
 0x234   :  { %p509_p5 = scmp.ne.s32.totalorder %s722_s6, %s508_s22  ;;  %p512_p6 = scmp.lt.u32.totalorder %s508_s22, %s722_s6 }
 0x236   :  { %p514_p7 = pnand %p512_p6, %p509_p5 }
 0x238   :  { %517 = shalt.err (!%p514_p7)
}
 0x239   :  { %s521_s26 = smov 128   ;;  %s522_s1 = smov 8   ;;  %vm358_vm0 = vcmask 7168  }
 0x23a   :  { %378 = dma.vmem_to_hbm [thread:$0]  %s373_s19, 1024, %s722_s6, [#allocation3], %s521_s26, %s521_s26, %s522_s1  }
 0x2b0   :  { %v339_v30 = vpop.xlane.xlu0 %338 }
 0x2b1   :  { %v352_v33 = vmul.f32 0.0078125, %v339_v30 }
 0x2b2   :  { %v341_v34 = vpop.xlane.xlu1 %340 }
 0x2b3   :  { %361 = vst.msk [vmem:[%s723_s7 + $0x10] sm:$0xff] %vm358_vm0, %v352_v33  ;;  %v353_v23 = vmul.f32 0.0078125, %v341_v34 }
 0x2b4   :  { %v335_v35 = vpop.xlane.xlu0 %334 }
 0x2b5   :  { %362 = vst.msk [vmem:[%s723_s7 + $0x18] sm:$0xff] %vm358_vm0, %v353_v23  ;;  %v350_v36 = vmul.f32 0.0078125, %v335_v35 }
 0x2b6   :  { %v337_v37 = vpop.xlane.xlu1 %336 }
 0x2b7   :  { %359 = vst.msk [vmem:[%s723_s7] sm:$0xff] %vm358_vm0, %v350_v36  ;;  %v351_v38 = vmul.f32 0.0078125, %v337_v37 }
 0x2b8   :  { %v343_v41 = vpop.xlane.xlu0 %342 }
 0x2b9   :  { %360 = vst.msk [vmem:[%s723_s7 + $0x8] sm:$0xff] %vm358_vm0, %v351_v38  ;;  %v354_v17 = vmul.f32 0.0078125, %v343_v41 }
 0x2ba   :  { %v345_v42 = vpop.xlane.xlu1 %344 }
 0x2bb   :  { %363 = vst.msk [vmem:[%s723_s7 + $0x20] sm:$0xff] %vm358_vm0, %v354_v17  ;;  %v355_v43 = vmul.f32 0.0078125, %v345_v42 }
 0x2bc   :  { %v347_v44 = vpop.xlane.xlu0 %346 }
 0x2bd   :  { %364 = vst.msk [vmem:[%s723_s7 + $0x28] sm:$0xff] %vm358_vm0, %v355_v43  ;;  %v356_v45 = vmul.f32 0.0078125, %v347_v44 }
 0x2be   :  { %v349_v24 = vpop.xlane.xlu1 %348 }
 0x2bf   :  { %365 = vst.msk [vmem:[%s723_s7 + $0x30] sm:$0xff] %vm358_vm0, %v356_v45  ;;  %v357_v46 = vmul.f32 0.0078125, %v349_v24 }
 0x2c1   :  { %366 = vst.msk [vmem:[%s723_s7 + $0x38] sm:$0xff] %vm358_vm0, %v357_v46 }
 0x2c2   :  { %518 = dma.done.wait [#allocation3], 1024  }
 0x2c3   :  { %519 = vsyncadd [#allocation3], 4294966272 }
 0x2c4   :  { %386 = vsyncpa [#allocation3], 1 }

// kernel: forward.4
= control target key start
LH: loop header
LB: loop body
LE: loop exit
PB: predicated region body
PF: predicated region fallthrough
CT: control target
= control target key end

     0   :  { %s5294_s29 = smov 0   ;;  %s6504_s0 = inlined_call_operand.vmem [shape: bf16[2,32,128], index: 0, kind: input, shape index: {}]   ;;  %s6505_s1 = inlined_call_operand.vmem [shape: f32[2,32,128], index: 1, kind: input, shape index: {}]   ;;  %s6506_s2 = inlined_call_operand.vmem [shape: f32[2,1,128], index: 2, kind: input, shape index: {}, may-alias: {2,8}]   ;;  %s6507_s3 = inlined_call_operand.vmem [shape: f32[2,1,128], index: 3, kind: input, shape index: {}, may-alias: {3,7,9,13}]   ;;  %s6508_s4 = inlined_call_operand.vmem [shape: bf16[2,128,384], index: 4, kind: input, shape index: {}]   ;;  %s6509_s5 = inlined_call_operand.vmem [shape: f32[2,1,384], index: 5, kind: input, shape index: {}]   ;;  %s6510_s6 = inlined_call_operand.vmem [shape: bf16[2,128,128], index: 6, kind: input, shape index: {}]   ;;  %s6511_s7 = inlined_call_operand.vmem [shape: f32[2,1,128], index: 7, kind: input, shape index: {}, may-alias: {3,7,9,13}]   ;;  %s6512_s8 = inlined_call_operand.vmem [shape: f32[2,1,128], index: 8, kind: input, shape index: {}, may-alias: {2,8}]   ;;  %s6513_s9 = inlined_call_operand.vmem [shape: f32[2,1,128], index: 9, kind: input, shape index: {}, may-alias: {3,7,9,13}]   ;;  %s6514_s10 = inlined_call_operand.vmem [shape: bf16[2,128,512], index: 10, kind: input, shape index: {}]   ;;  %s6515_s11 = inlined_call_operand.vmem [shape: f32[2,1,512], index: 11, kind: input, shape index: {}]   ;;  %s6516_s12 = inlined_call_operand.vmem [shape: bf16[2,512,128], index: 12, kind: input, shape index: {}]   ;;  %s6517_s13 = inlined_call_operand.vmem [shape: f32[2,1,128], index: 13, kind: input, shape index: {}, may-alias: {3,7,9,13}]   ;;  %s6518_s14 = inlined_call_operand.vmem [shape: bf16[2,32,128], index: 14, kind: output, shape index: {}]  }
   0x1   :  { %6522 = sst [smem:[#allocation5_spill]] %s6506_s2 }
   0x2   :  { %6523 = sst [smem:[#allocation6_spill]] %s6507_s3 }
   0x3   :  { %6524 = sst [smem:[#allocation7_spill]] %s6508_s4 }
   0x4   :  { %6525 = sst [smem:[#allocation8_spill]] %s6510_s6 }
   0x5   :  { %6526 = sst [smem:[#allocation9_spill]] %s6518_s14 }
   0x6 LB: > { %6527 = sst [smem:[#allocation3_spill]] %s5213_s29  ;;  %s5300_s30 = sadd.s32 4294967295, %s5213_s29   ;;  %s5213_s29 = sphi %s5294_s29, %s24_s29  }
   0x7   : > { %p4213_p0 = scmp.ge.s32.totalorder %s5213_s29, 1  ;;  %p503_p1 = scmp.lt.s32.totalorder %s5213_s29, 3 }
   0x9   : > { %p504_p2 = pnand %p4213_p0, %p503_p1 }
   0xb   : > { %507 = sbr.rel (%p504_p2) target bundleno = 4297 (0x10c9), region = 76 }
  0x12   : > { %p585_p3 = scmp.lt.s32.totalorder %s5300_s30, 1  ;;  %s6530_s6 = sld [smem:[#allocation8_spill]] }
  0x13   : > { %s6531_s4 = sld [smem:[#allocation7_spill]]  ;;  %p4222_p4 = scmp.ne.s32.totalorder %s5300_s30, 0 }
  0x14   : > { %s5306_s15 = scalar_select %p585_p3, %s5300_s30, 1 }
  0x15   : > { %v4380_v0 = vld [vmem:[%s6504_s0] sm:$0xff] (!%p4222_p4)   ;;  %v653_v2 = vld [vmem:[%s6505_s1 + $0x8] sm:$0xff] (!%p4222_p4)  ;;  %v654_v6 = vld [vmem:[%s6505_s1 + $0x10] sm:$0xff] (!%p4222_p4) }
  0x16   : > { %s4781_s22 = smul.u32 192, %s5306_s15  ;;  %s4368_s23 = sshll.u32 %s5306_s15, 6  ;;  %v652_v1 = vld [vmem:[%s6505_s1] sm:$0xff] (!%p4222_p4)  ;;  %v4381_v3 = vunpack.c.l.bf16 (!%p4222_p4), %v4380_v0  ;;  %v4382_v4 = vunpack.c.h.bf16 (!%p4222_p4), %v4380_v0  ;;  %v4415_v5 = vld [vmem:[%s6504_s0 + $0x8] sm:$0xff] (!%p4222_p4)   ;;  %v655_v7 = vld [vmem:[%s6505_s1 + $0x18] sm:$0xff] (!%p4222_p4) }
  0x17   : > { %s4782_s24 = smul.u32 3, %s5306_s15  ;;  %s610_s25 = scalar_lea.vmem %s6512_s8, %s5306_s15  ;;  %v4385_v8 = vunpack.c.l.bf16 (!%p4222_p4), %v4415_v5  ;;  %v4386_v9 = vunpack.c.h.bf16 (!%p4222_p4), %v4415_v5  ;;  %v4416_v10 = vld [vmem:[%s6504_s0 + $0x10] sm:$0xff] (!%p4222_p4)   ;;  %v656_v11 = vld [vmem:[%s6505_s1 + $0x20] sm:$0xff] (!%p4222_p4)  ;;  %v657_v12 = vld [vmem:[%s6505_s1 + $0x28] sm:$0xff] (!%p4222_p4) }
  0x18   : > { %s5322_s27 = scalar_lea.vmem %s6530_s6, %s4368_s23  ;;  %s4369_s28 = sshll.u32 %s5306_s15, 8  ;;  %v660_v13 = vadd.f32 (!%p4222_p4), %v4381_v3, %v652_v1  ;;  %v661_v14 = vadd.f32 (!%p4222_p4), %v4382_v4, %v653_v2  ;;  %v4389_v15 = vunpack.c.l.bf16 (!%p4222_p4), %v4416_v10  ;;  %v4390_v16 = vunpack.c.h.bf16 (!%p4222_p4), %v4416_v10  ;;  %v4417_v17 = vld [vmem:[%s6504_s0 + $0x18] sm:$0xff] (!%p4222_p4)   ;;  %v658_v18 = vld [vmem:[%s6505_s1 + $0x30] sm:$0xff] (!%p4222_p4) }
  0x19   : > { %s5327_s17 = scalar_lea.vmem %s6531_s4, %s4781_s22  ;;  %s5336_s21 = scalar_lea.vmem %s6509_s5, %s4782_s24  ;;  %v659_v19 = vld [vmem:[%s6505_s1 + $0x38] sm:$0xff] (!%p4222_p4)  ;;  %v662_v20 = vadd.f32 (!%p4222_p4), %v4385_v8, %v654_v6  ;;  %v663_v21 = vadd.f32 (!%p4222_p4), %v4386_v9, %v655_v7  ;;  %v4393_v22 = vunpack.c.l.bf16 (!%p4222_p4), %v4417_v17  ;;  %v4394_v23 = vunpack.c.h.bf16 (!%p4222_p4), %v4417_v17 }
  0x1a   : > { %s5350_s4 = scalar_lea.vmem %s6514_s10, %s4369_s28  ;;  %s4219_s29 = sshll.u32 %s5306_s15, 2  ;;  %668 = vst [vmem:[#allocation2] sm:$0xff] (!%p4222_p4), %v660_v13  ;;  %669 = vst [vmem:[#allocation2 + $0x8] sm:$0xff] (!%p4222_p4), %v661_v14  ;;  %v664_v24 = vadd.f32 (!%p4222_p4), %v4389_v15, %v656_v11  ;;  %v665_v25 = vadd.f32 (!%p4222_p4), %v4390_v16, %v657_v12 }
  0x1b   : > { %s5356_s24 = scalar_lea.vmem %s6515_s11, %s4219_s29  ;;  %s5361_s2 = scalar_lea.vmem %s6516_s12, %s4369_s28  ;;  %670 = vst [vmem:[#allocation2 + $0x10] sm:$0xff] (!%p4222_p4), %v662_v20  ;;  %671 = vst [vmem:[#allocation2 + $0x18] sm:$0xff] (!%p4222_p4), %v663_v21  ;;  %v666_v26 = vadd.f32 (!%p4222_p4), %v4393_v22, %v658_v18  ;;  %v667_v27 = vadd.f32 (!%p4222_p4), %v4394_v23, %v659_v19 }
  0x1c   : > { %s630_s26 = scalar_lea.vmem %s6517_s13, %s5306_s15  ;;  %635 = sbr.rel (%p4222_p4) target bundleno = 35 (0x23), region = 80  ;;  %672 = vst [vmem:[#allocation2 + $0x20] sm:$0xff] (!%p4222_p4), %v664_v24  ;;  %673 = vst [vmem:[#allocation2 + $0x28] sm:$0xff] (!%p4222_p4), %v665_v25 }
  0x1d   : > { %674 = vst [vmem:[#allocation2 + $0x30] sm:$0xff] (!%p4222_p4), %v666_v26  ;;  %675 = vst [vmem:[#allocation2 + $0x38] sm:$0xff] (!%p4222_p4), %v667_v27 }
  0x23 PF: > { %v676_v28 = vld [vmem:[#allocation2] sm:$0xff]  ;;  %v678_v29 = vld [vmem:[#allocation2 + $0x10] sm:$0xff]  ;;  %v677_v30 = vld [vmem:[#allocation2 + $0x8] sm:$0xff]  ;;  %v5215_v27 = vmov 0   ;;  %s6532_s14 = sld [smem:[#allocation5_spill]]  ;;  %s6534_s19 = sld [smem:[#allocation6_spill]] }
  0x24   : > { %836 = vadd.xlane.f32.xlu0 %v676_v28  ;;  %840 = vadd.xlane.f32.xlu1 %v678_v29  ;;  %v679_v31 = vld [vmem:[#allocation2 + $0x18] sm:$0xff]  ;;  %v680_v32 = vld [vmem:[#allocation2 + $0x20] sm:$0xff]  ;;  %v681_v33 = vld [vmem:[#allocation2 + $0x28] sm:$0xff]  ;;  %vm1247_vm0 = vcmask 261120   ;;  %s5217_s3 = smov 64   ;;  %s5218_s23 = smov 32  }
  0x25   : > { %v682_v34 = vld [vmem:[#allocation2 + $0x30] sm:$0xff]  ;;  %v683_v35 = vld [vmem:[#allocation2 + $0x38] sm:$0xff]  ;;  %v4857_v37 = vld [vmem:[%s5327_s17] ss:$12 sps:$4 sm:$0xff]   ;;  %1133 = vmatprep.mubr.bf16.mxu0 %v5215_v27  ;;  %vm2780_vm1 = vcmask 523264   ;;  %vm2789_vm2 = vcmask 785408   ;;  %s6536_s6 = scalar_lea.vmem %s6511_s7, %s5306_s15 }
  0x26   : > { %v4855_v36 = vld [vmem:[%s5327_s17 + $0x4] ss:$12 sps:$4 sm:$0xff]   ;;  %v4858_v38 = vld [vmem:[%s5327_s17 + $0x1c] ss:$12 sps:$4 sm:$0xff]   ;;  %v4862_v9 = vld [vmem:[%s5327_s17 + $0x34] ss:$12 sps:$4 sm:$0xff]  }
  0x27   : > { %v4860_v39 = vld [vmem:[%s5327_s17 + $0x8] ss:$12 sps:$4 sm:$0xff]   ;;  %1101 = vmatprep.subr.bf16.mxu0 %v4855_v36  ;;  %v4861_v8 = vld [vmem:[%s5327_s17 + $0x18] ss:$12 sps:$4 sm:$0xff]   ;;  %v4864_v10 = vld [vmem:[%s5327_s17 + $0x20] ss:$12 sps:$4 sm:$0xff]  }
  0x28   : > { %838 = vadd.xlane.f32.xlu0 %v677_v30  ;;  %842 = vadd.xlane.f32.xlu1 %v679_v31  ;;  %v4865_v11 = vld [vmem:[%s5327_s17 + $0x30] ss:$12 sps:$4 sm:$0xff]   ;;  %v4866_v12 = vld [vmem:[%s5327_s17 + $0x4c] ss:$12 sps:$4 sm:$0xff]   ;;  %v4869_v14 = vld [vmem:[%s5327_s17 + $0x48] ss:$12 sps:$4 sm:$0xff]  }
  0x29   : > { %1102 = vmatpush1.bf16.msra.mxu0 %v4857_v37  ;;  %4589 = vmatprep.subr.bf16.mxu1 %v4860_v39  ;;  %v4868_v13 = vld [vmem:[%s5327_s17 + $0x38] ss:$12 sps:$4 sm:$0xff]   ;;  %v4872_v16 = vld [vmem:[%s5327_s17 + $0x50] ss:$12 sps:$4 sm:$0xff]   ;;  %v4873_v17 = vld [vmem:[%s5327_s17 + $0x60] ss:$12 sps:$4 sm:$0xff]   ;;  %s6533_s29 = scalar_lea.vmem %s6532_s14, %s5306_s15  ;;  %s6535_s20 = scalar_lea.vmem %s6534_s19, %s5306_s15 }
  0x2a   : > { %1103 = vmatprep.subr.bf16.mxu0 %v4858_v38  ;;  %4590 = vmatpush3.bf16.msra.mxu1 %v4860_v39  ;;  %v4870_v15 = vld [vmem:[%s5327_s17 + $0x64] ss:$12 sps:$4 sm:$0xff]   ;;  %v4874_v18 = vld [vmem:[%s5327_s17 + $0x7c] ss:$12 sps:$4 sm:$0xff]   ;;  %v4878_v21 = vld [vmem:[%s5327_s17 + $0x94] ss:$12 sps:$4 sm:$0xff]  }
  0x2b   : > { %4591 = vmatprep.subr.bf16.mxu1 %v4864_v10  ;;  %v4876_v19 = vld [vmem:[%s5327_s17 + $0x68] ss:$12 sps:$4 sm:$0xff]   ;;  %v4877_v20 = vld [vmem:[%s5327_s17 + $0x78] ss:$12 sps:$4 sm:$0xff]   ;;  %v4880_v22 = vld [vmem:[%s5327_s17 + $0x80] ss:$12 sps:$4 sm:$0xff]  }
  0x2c   : > { %844 = vadd.xlane.f32.xlu0 %v680_v32  ;;  %846 = vadd.xlane.f32.xlu1 %v681_v33  ;;  %v4881_v23 = vld [vmem:[%s5327_s17 + $0x90] ss:$12 sps:$4 sm:$0xff]   ;;  %v4882_v24 = vld [vmem:[%s5327_s17 + $0xac] ss:$12 sps:$4 sm:$0xff]   ;;  %v4885_v26 = vld [vmem:[%s5327_s17 + $0xa8] ss:$12 sps:$4 sm:$0xff]  }
  0x2d   : > { %1104 = vmatpush1.bf16.msra.mxu0 %v4861_v8  ;;  %v4884_v25 = vld [vmem:[%s5327_s17 + $0x98] ss:$12 sps:$4 sm:$0xff]   ;;  %p4357_p5 = scmp.ne.s32.totalorder %s5300_s30, 1 }
  0x2e   : > { %1105 = vmatprep.subr.bf16.mxu0 %v4862_v9  ;;  %4592 = vmatpush3.bf16.msra.mxu1 %v4864_v10 }
  0x2f   : > { %4593 = vmatprep.subr.bf16.mxu1 %v4868_v13 }
  0x30   : > { %848 = vadd.xlane.f32.xlu0 %v682_v34  ;;  %850 = vadd.xlane.f32.xlu1 %v683_v35 }
  0x31   : > { %1106 = vmatpush1.bf16.msra.mxu0 %v4865_v11 }
  0x32   : > { %1107 = vmatprep.subr.bf16.mxu0 %v4866_v12  ;;  %4594 = vmatpush3.bf16.msra.mxu1 %v4868_v13 }
  0x33   : > { %4595 = vmatprep.subr.bf16.mxu1 %v4872_v16 }
  0x35   : > { %1108 = vmatpush1.bf16.msra.mxu0 %v4869_v14 }
  0x36   : > { %1109 = vmatprep.subr.bf16.mxu0 %v4870_v15  ;;  %4596 = vmatpush3.bf16.msra.mxu1 %v4872_v16 }
  0x37   : > { %4597 = vmatprep.subr.bf16.mxu1 %v4876_v19 }
  0x39   : > { %1110 = vmatpush1.bf16.msra.mxu0 %v4873_v17 }
  0x3a   : > { %1111 = vmatprep.subr.bf16.mxu0 %v4874_v18  ;;  %4598 = vmatpush3.bf16.msra.mxu1 %v4876_v19 }
  0x3b   : > { %4599 = vmatprep.subr.bf16.mxu1 %v4880_v22 }
  0x3d   : > { %1112 = vmatpush1.bf16.msra.mxu0 %v4877_v20 }
  0x3e   : > { %1113 = vmatprep.subr.bf16.mxu0 %v4878_v21  ;;  %4600 = vmatpush3.bf16.msra.mxu1 %v4880_v22 }
  0x3f   : > { %4601 = vmatprep.subr.bf16.mxu1 %v4884_v25 }
  0x41   : > { %1114 = vmatpush1.bf16.msra.mxu0 %v4881_v23 }
  0x42   : > { %1115 = vmatprep.subr.bf16.mxu0 %v4882_v24  ;;  %4602 = vmatpush3.bf16.msra.mxu1 %v4884_v25 }
  0x45   : > { %1116 = vmatpush1.bf16.msra.mxu0 %v4885_v26 }
  0xb1   : > { %v837_v40 = vpop.xlane.xlu0 %836  ;;  %v841_v41 = vpop.xlane.xlu1 %840 }
  0xb2   : > { %v853_v42 = vmul.f32 0.0078125, %v837_v40  ;;  %v855_v43 = vmul.f32 0.0078125, %v841_v41 }
  0xb4   : > { %v5408_v44 = vsub.f32 %v676_v28, %v853_v42  ;;  %v5410_v45 = vsub.f32 %v678_v29, %v855_v43  ;;  %v4886_v28 = vld [vmem:[%s5327_s17 + $0xb0] ss:$12 sps:$4 sm:$0xff]  }
  0xb5   : > { %v839_v46 = vpop.xlane.xlu0 %838  ;;  %v843_v47 = vpop.xlane.xlu1 %842  ;;  %4603 = vmatprep.subr.bf16.mxu1 %v4886_v28 }
  0xb6   : > { %v854_v48 = vmul.f32 0.0078125, %v839_v46  ;;  %v869_v49 = vmul.f32 %v5408_v44, %v5408_v44  ;;  %v856_v50 = vmul.f32 0.0078125, %v843_v47  ;;  %v871_v51 = vmul.f32 %v5410_v45, %v5410_v45  ;;  %4604 = vmatpush3.bf16.msra.mxu1 %v4886_v28 }
  0xb8   : > { %877 = vadd.xlane.f32.xlu0 %v869_v49  ;;  %v5416_v52 = vsub.f32 %v677_v30, %v854_v48  ;;  %v5418_v53 = vsub.f32 %v679_v31, %v856_v50 }
  0xb9   : > { %v845_v54 = vpop.xlane.xlu0 %844  ;;  %v847_v55 = vpop.xlane.xlu1 %846 }
  0xba   : > { %v857_v56 = vmul.f32 0.0078125, %v845_v54  ;;  %v870_v57 = vmul.f32 %v5416_v52, %v5416_v52  ;;  %v858_v58 = vmul.f32 0.0078125, %v847_v55  ;;  %v872_v59 = vmul.f32 %v5418_v53, %v5418_v53 }
  0xbc   : > { %881 = vadd.xlane.f32.xlu0 %v871_v51  ;;  %879 = vadd.xlane.f32.xlu1 %v870_v57  ;;  %v5424_v60 = vsub.f32 %v680_v32, %v857_v56  ;;  %v5426_v61 = vsub.f32 %v681_v33, %v858_v58  ;;  %v4223_v58 = vld [vmem:[%s6533_s29] ss:$0 sm:$0xff]  ;;  %s6538_s29 = scalar_lea.vmem %s6513_s9, %s5306_s15 }
  0xbd   : > { %v849_v62 = vpop.xlane.xlu0 %848  ;;  %v851_v63 = vpop.xlane.xlu1 %850 }
  0xbe   : > { %v859_v0 = vmul.f32 0.0078125, %v849_v62  ;;  %v873_v1 = vmul.f32 %v5424_v60, %v5424_v60  ;;  %v860_v2 = vmul.f32 0.0078125, %v851_v63  ;;  %v874_v3 = vmul.f32 %v5426_v61, %v5426_v61 }
  0xc0   : > { %883 = vadd.xlane.f32.xlu1 %v872_v59  ;;  %885 = vadd.xlane.f32.xlu0 %v873_v1  ;;  %v5432_v4 = vsub.f32 %v682_v34, %v859_v0  ;;  %v5434_v5 = vsub.f32 %v683_v35, %v860_v2 }
  0xc2   : > { %v875_v6 = vmul.f32 %v5432_v4, %v5432_v4  ;;  %v876_v7 = vmul.f32 %v5434_v5, %v5434_v5 }
  0xc4   : > { %887 = vadd.xlane.f32.xlu1 %v874_v3  ;;  %889 = vadd.xlane.f32.xlu0 %v875_v6 }
  0xc8   : > { %891 = vadd.xlane.f32.xlu1 %v876_v7 }
 0x145   : > { %v878_v29 = vpop.xlane.xlu0 %877 }
 0x146   : > { %v893_v30 = vmul.f32 0.0078125, %v878_v29 }
 0x148   : > { %v901_v31 = vadd.f32 1e-05, %v893_v30 }
 0x149   : > { %v880_v32 = vpop.xlane.xlu1 %879  ;;  %v882_v33 = vpop.xlane.xlu0 %881 }
 0x14a   : > { %4975 = vrsqrt.f32 %v901_v31  ;;  %v894_v34 = vmul.f32 0.0078125, %v880_v32  ;;  %v895_v35 = vmul.f32 0.0078125, %v882_v33  ;;  %v718_v31 = vld [vmem:[%s5336_s21] sm:$0x7]  ;;  %s5216_s21 = smov 96  }
 0x14c   : > { %v902_v36 = vadd.f32 1e-05, %v894_v34  ;;  %v903_v37 = vadd.f32 1e-05, %v895_v35 }
 0x14d   : > { %v884_v38 = vpop.xlane.xlu1 %883  ;;  %v886_v39 = vpop.xlane.xlu0 %885 }
 0x14e   : > { %4977 = vrsqrt.f32 %v902_v36  ;;  %v896_v40 = vmul.f32 0.0078125, %v884_v38  ;;  %v897_v41 = vmul.f32 0.0078125, %v886_v39 }
 0x14f   : > { %4979 = vrsqrt.f32 %v903_v37 }
 0x150   : > { %v904_v42 = vadd.f32 1e-05, %v896_v40  ;;  %v905_v43 = vadd.f32 1e-05, %v897_v41 }
 0x151   : > { %v888_v46 = vpop.xlane.xlu1 %887  ;;  %v890_v47 = vpop.xlane.xlu0 %889 }
 0x152   : > { %4981 = vrsqrt.f32 %v904_v42  ;;  %v898_v48 = vmul.f32 0.0078125, %v888_v46  ;;  %v899_v49 = vmul.f32 0.0078125, %v890_v47 }
 0x153   : > { %4983 = vrsqrt.f32 %v905_v43 }
 0x154   : > { %v4976_v50 = vpop.eup %4975  ;;  %v906_v51 = vadd.f32 1e-05, %v898_v48  ;;  %v907_v54 = vadd.f32 1e-05, %v899_v49 }
 0x155   : > { %v892_v55 = vpop.xlane.xlu1 %891  ;;  %v917_v56 = vmul.f32 %v4976_v50, %v5408_v44  ;;  %v4224_v44 = vld [vmem:[%s6535_s20] ss:$0 sm:$0xff] }
 0x156   : > { %4985 = vrsqrt.f32 %v906_v51  ;;  %v900_v57 = vmul.f32 0.0078125, %v892_v55 }
 0x157   : > { %4987 = vrsqrt.f32 %v907_v54  ;;  %v931_v1 = vmul.f32 %v4223_v58, %v917_v56 }
 0x158   : > { %v4978_v59 = vpop.eup %4977  ;;  %v908_v62 = vadd.f32 1e-05, %v900_v57 }
 0x159   : > { %v4980_v63 = vpop.eup %4979  ;;  %v918_v0 = vmul.f32 %v4978_v59, %v5416_v52  ;;  %v945_v9 = vadd.f32 %v4224_v44, %v931_v1 }
 0x15a   : > { %4989 = vrsqrt.f32 %v908_v62  ;;  %v919_v2 = vmul.f32 %v4980_v63, %v5410_v45 }
 0x15b   : > { %v932_v3 = vmul.f32 %v4223_v58, %v918_v0 }
 0x15c   : > { %v4982_v6 = vpop.eup %4981  ;;  %v933_v7 = vmul.f32 %v4223_v58, %v919_v2 }
 0x15d   : > { %v4984_v8 = vpop.eup %4983  ;;  %v946_v10 = vadd.f32 %v4224_v44, %v932_v3  ;;  %v920_v11 = vmul.f32 %v4982_v6, %v5418_v53 }
 0x15e   : > { %v921_v12 = vmul.f32 %v4984_v8, %v5424_v60  ;;  %v947_v15 = vadd.f32 %v4224_v44, %v933_v7 }
 0x15f   : > { %v953_v52 = vpack.c.bf16 %v946_v10, %v945_v9  ;;  %v934_v13 = vmul.f32 %v4223_v58, %v920_v11 }
 0x160   : > { %v4986_v14 = vpop.eup %4985  ;;  %v935_v18 = vmul.f32 %v4223_v58, %v921_v12 }
 0x161   : > { %v4988_v16 = vpop.eup %4987  ;;  %1134 = vmatmul.mubr.bf16.vlgmr.msra.gmra.mrb[0].mxu0 %v953_v52  ;;  %4605 = vmatprep.mubr.bf16.mxu1 %v953_v52  ;;  %v948_v17 = vadd.f32 %v4224_v44, %v934_v13  ;;  %v922_v45 = vmul.f32 %v4986_v14, %v5426_v61 }
 0x162   : > { %1143 = vmatprep.mubr.bf16.mxu0 %v5215_v27  ;;  %v923_v19 = vmul.f32 %v4988_v16, %v5432_v4  ;;  %v949_v60 = vadd.f32 %v4224_v44, %v935_v18  ;;  %v958_v4 = vlaneseq }
 0x163   : > { %v954_v20 = vpack.c.bf16 %v948_v17, %v947_v15  ;;  %v936_v21 = vmul.f32 %v4223_v58, %v922_v45 }
 0x164   : > { %v4990_v53 = vpop.eup %4989  ;;  %v937_v24 = vmul.f32 %v4223_v58, %v923_v19  ;;  %v5482_v30 = vshrl.u32 %v958_v4, 7 }
 0x165   : > { %4606 = vmatmul.mubr.bf16.vlgmr.msra.gmra.mrb[0].mxu1 %v954_v20  ;;  %v950_v22 = vadd.f32 %v4224_v44, %v936_v21  ;;  %v924_v23 = vmul.f32 %v4990_v53, %v5434_v5 }
 0x166   : > { %v951_v61 = vadd.f32 %v4224_v44, %v937_v24  ;;  %v960_v5 = vsub.s32 0, %v5482_v30  ;;  %v964_v32 = vsub.s32 1, %v5482_v30  ;;  %v968_v34 = vsub.s32 2, %v5482_v30 }
 0x167   : > { %v955_v25 = vpack.c.bf16 %v950_v22, %v949_v60  ;;  %v938_v26 = vmul.f32 %v4223_v58, %v924_v23 }
 0x168   : > { %v5489_v33 = vrot.slane %v718_v31, %v960_v5  ;;  %v5494_v36 = vrot.slane %v718_v31, %v964_v32  ;;  %v969_v42 = vrot.slane %v718_v31, %v968_v34 }
 0x169   : > { %1144 = vmatmul.mubr.bf16.gmra.mrb[4].mxu0 %v954_v20  ;;  %4609 = vmatprep.mubr.bf16.mxu1 %v955_v25  ;;  %v952_v28 = vadd.f32 %v4224_v44, %v938_v26 }
 0x16a   : > { %1153 = vmatprep.mubr.bf16.mxu0 %v5215_v27 }
 0x16b   : > { %v956_v29 = vpack.c.bf16 %v952_v28, %v951_v61 }
 0x16d   : > { %4610 = vmatmul.mubr.bf16.gmra.mrb[4].mxu1 %v956_v29 }
 0x171   : > { %1154 = vmatmul.mubr.bf16.gmra.mrb[8].mxu0 %v955_v25 }
 0x172   : > { %1163 = vmatprep.mubr.bf16.mxu0 %v5215_v27 }
 0x179   : > { %1164 = vmatmul.mubr.bf16.gmra.mrb[12].mxu0 %v956_v29 }
 0x234   : > { %v1135_v35 = vpop.f32.mrb[0].mxu0 }
 0x235   : > { %v1137_v37 = vpop.f32.mrb[1].mxu0  ;;  %v1136_v39 = vadd.f32 %v1135_v35, %v5489_v33 }
 0x236   : > { %v1139_v38 = vpop.f32.mrb[2].mxu0  ;;  %v1138_v43 = vadd.f32 %v1137_v37, %v5494_v36 }
 0x237   : > { %v1140_v40 = vadd.f32 %v1139_v38, %v5489_v33  ;;  %v1141_v41 = vpop.f32.mrb[3].mxu0 }
 0x238   : > { %v1142_v46 = vadd.f32 %v1141_v41, %v5494_v36  ;;  %v4607_v47 = vpop.f32.mrb[0].mxu1 }
 0x239   : > { %v5502_v48 = vpack.c.bf16 %v1140_v40, %v1136_v39  ;;  %v1208_v49 = vpop.f32.mrb[1].mxu1  ;;  %v1217_v54 = vadd.f32 %v4607_v47, %v969_v42 }
 0x23a   : > { %v5504_v50 = vpack.c.bf16 %v1142_v46, %v1138_v43  ;;  %v4608_v51 = vpop.f32.mrb[2].mxu1  ;;  %v1209_v57 = vadd.f32 %v1208_v49, %v969_v42 }
 0x23b   : > { %v1220_v55 = vadd.f32 %v4608_v51, %v969_v42  ;;  %v1211_v56 = vpop.f32.mrb[3].mxu1  ;;  %4617 = vmatprep.mubr.msk.bf16.mxu1 %vm1247_vm0, %v5502_v48 }
 0x23c   : > { %v1212_v58 = vadd.f32 %v1211_v56, %v969_v42  ;;  %v1145_v59 = vpop.f32.mrb[4].mxu0  ;;  %4765 = vmatprep.subr.msk.bf16.mxu1 %vm1247_vm0, %v5504_v50  ;;  %v1255_v62 = vsel %vm1247_vm0, %v5504_v50, 0 }
 0x23d   : > { %v5512_v63 = vpack.c.bf16 %v1220_v55, %v1217_v54  ;;  %v1147_v0 = vpop.f32.mrb[5].mxu0  ;;  %4614 = vmatpush3.bf16.xpose.msra.mxu1 %v1255_v62  ;;  %v1146_v2 = vadd.f32 %v1145_v59, %v5489_v33 }
 0x23e   : > { %v5514_v1 = vpack.c.bf16 %v1212_v58, %v1209_v57  ;;  %v1149_v44 = vpop.f32.mrb[6].mxu0  ;;  %v1148_v7 = vadd.f32 %v1147_v0, %v5494_v36 }
 0x23f   : > { %v1150_v3 = vadd.f32 %v1149_v44, %v5489_v33  ;;  %v1151_v6 = vpop.f32.mrb[7].mxu0 }
 0x240   : > { %v1152_v8 = vadd.f32 %v1151_v6, %v5494_v36  ;;  %v4611_v9 = vpop.f32.mrb[4].mxu1 }
 0x241   : > { %v5520_v10 = vpack.c.bf16 %v1150_v3, %v1146_v2  ;;  %v1233_v11 = vadd.f32 %v4611_v9, %v969_v42  ;;  %v1224_v12 = vpop.f32.mrb[5].mxu1 }
 0x242   : > { %v5522_v52 = vpack.c.bf16 %v1152_v8, %v1148_v7  ;;  %v4612_v13 = vpop.f32.mrb[6].mxu1  ;;  %v1225_v16 = vadd.f32 %v1224_v12, %v969_v42 }
 0x243   : > { %v1236_v14 = vadd.f32 %v4612_v13, %v969_v42  ;;  %v1227_v15 = vpop.f32.mrb[7].mxu1 }
 0x244   : > { %v1228_v17 = vadd.f32 %v1227_v15, %v969_v42  ;;  %v1155_v45 = vpop.f32.mrb[8].mxu0  ;;  %4766 = vmatprep.subr.msk.bf16.mxu1 %vm1247_vm0, %v5522_v52  ;;  %v1258_v18 = vsel %vm1247_vm0, %v5522_v52, 0 }
 0x245   : > { %v5528_v19 = vpack.c.bf16 %v1236_v14, %v1233_v11  ;;  %v1157_v20 = vpop.f32.mrb[9].mxu0  ;;  %4616 = vmatpush3.bf16.xpose.msra.mxu1 %v1258_v18  ;;  %v1156_v60 = vadd.f32 %v1155_v45, %v5489_v33 }
 0x246   : > { %v5530_v21 = vpack.c.bf16 %v1228_v17, %v1225_v16  ;;  %v1159_v53 = vpop.f32.mrb[10].mxu0  ;;  %v1158_v24 = vadd.f32 %v1157_v20, %v5494_v36 }
 0x247   : > { %v1160_v22 = vadd.f32 %v1159_v53, %v5489_v33  ;;  %v1161_v23 = vpop.f32.mrb[11].mxu0 }
 0x248   : > { %v1162_v25 = vadd.f32 %v1161_v23, %v5494_v36 }
 0x249   : > { %v5536_v26 = vpack.c.bf16 %v1160_v22, %v1156_v60 }
 0x24a   : > { %v5538_v61 = vpack.c.bf16 %v1162_v25, %v1158_v24 }
 0x24c   : > { %v1165_v28 = vpop.f32.mrb[12].mxu0  ;;  %4618 = vmatmul.mubr.msk.bf16.vlgmr.msra.gmra.mrb[8].mxu1 %vm1247_vm0, %v5520_v10  ;;  %4767 = vmatprep.subr.msk.bf16.mxu1 %vm1247_vm0, %v5538_v61  ;;  %v1316_v29 = vsel %vm1247_vm0, %v5538_v61, 0 }
 0x24d   : > { %v1167_v4 = vpop.f32.mrb[13].mxu0  ;;  %4622 = vmatpush3.bf16.xpose.msra.mxu1 %v1316_v29  ;;  %4625 = vmatprep.mubr.msk.bf16.mxu1 %vm1247_vm0, %v5536_v26  ;;  %v1166_v35 = vadd.f32 %v1165_v28, %v5489_v33 }
 0x24e   : > { %v1169_v31 = vpop.f32.mrb[14].mxu0  ;;  %v1168_v39 = vadd.f32 %v1167_v4, %v5494_v36 }
 0x24f   : > { %v1170_v37 = vadd.f32 %v1169_v31, %v5489_v33  ;;  %v1171_v38 = vpop.f32.mrb[15].mxu0 }
 0x250   : > { %v1172_v40 = vadd.f32 %v1171_v38, %v5494_v36 }
 0x251   : > { %v5552_v41 = vpack.c.bf16 %v1170_v37, %v1166_v35 }
 0x252   : > { %v5554_v42 = vpack.c.bf16 %v1172_v40, %v1168_v39 }
 0x254   : > { %4768 = vmatprep.subr.msk.bf16.mxu1 %vm1247_vm0, %v5554_v42  ;;  %v1319_v43 = vsel %vm1247_vm0, %v5554_v42, 0 }
 0x255   : > { %4624 = vmatpush3.bf16.xpose.msra.mxu1 %v1319_v43 }
 0x256   : > { %4629 = vmatprep.subr.bf16.mxu1 %v5514_v1 }
 0x25c   : > { %4626 = vmatmul.mubr.msk.bf16.vlgmr.msra.gmra.mrb[12].mxu1 %vm1247_vm0, %v5552_v41 }
 0x25d   : > { %4630 = vmatpush3.bf16.msra.mxu1 %v5514_v1 }
 0x25e   : > { %4631 = vmatprep.subr.bf16.mxu1 %v5512_v63 }
 0x261   : > { %4632 = vmatpush3.bf16.msra.mxu1 %v5512_v63 }
 0x262   : > { %4637 = vmatprep.subr.bf16.mxu1 %v5530_v21 }
 0x31f   : > { %v4619_v33 = vpop.f32.mrb[8].mxu1 }
 0x320   : > { %v1294_v36 = vpop.f32.mrb[9].mxu1  ;;  %v1372_v51 = vmul.f32 0.17677669, %v4619_v33 }
 0x321   : > { %v1370_v46 = vmul.f32 0.17677669, %v1294_v36  ;;  %v4620_v47 = vpop.f32.mrb[10].mxu1 }
 0x322   : > { %v1297_v49 = vpop.f32.mrb[11].mxu1  ;;  %v1373_v56 = vmul.f32 0.17677669, %v4620_v47  ;;  %v1384_v58 = vsel %vm1247_vm0, %v1372_v51, -inf }
 0x323   : > { %v1371_v54 = vmul.f32 0.17677669, %v1297_v49  ;;  %v1378_v55 = vsel %vm1247_vm0, %v1370_v46, -inf }
 0x324   : > { %1379 = vmax.xlane.f32.xlu0 %v1378_v55  ;;  %v1387_v59 = vsel %vm1247_vm0, %v1373_v56, -inf }
 0x325   : > { %v1381_v57 = vsel %vm1247_vm0, %v1371_v54, -inf }
 0x326   : > { %1382 = vmax.xlane.f32.xlu1 %v1381_v57 }
 0x328   : > { %1385 = vmax.xlane.f32.xlu0 %v1384_v58 }
 0x32a   : > { %1388 = vmax.xlane.f32.xlu1 %v1387_v59 }
 0x32f   : > { %v4627_v62 = vpop.f32.mrb[12].mxu1 }
 0x330   : > { %v1355_v0 = vpop.f32.mrb[13].mxu1  ;;  %v5573_v6 = vmul.f32 0.17677669, %v4627_v62 }
 0x331   : > { %v5571_v44 = vmul.f32 0.17677669, %v1355_v0  ;;  %v4628_v2 = vpop.f32.mrb[14].mxu1 }
 0x332   : > { %v1358_v3 = vpop.f32.mrb[15].mxu1  ;;  %v1377_v9 = vmul.f32 0.17677669, %v4628_v2  ;;  %v1396_v12 = vsel %vm1247_vm0, %v5573_v6, -inf }
 0x333   : > { %v1375_v7 = vmul.f32 0.17677669, %v1358_v3  ;;  %v1390_v8 = vsel %vm1247_vm0, %v5571_v44, -inf }
 0x334   : > { %1391 = vmax.xlane.f32.xlu0 %v1390_v8  ;;  %v1399_v13 = vsel %vm1247_vm0, %v1377_v9, -inf }
 0x335   : > { %v1393_v11 = vsel %vm1247_vm0, %v1375_v7, -inf }
 0x336   : > { %1394 = vmax.xlane.f32.xlu1 %v1393_v11 }
 0x338   : > { %1397 = vmax.xlane.f32.xlu0 %v1396_v12 }
 0x33a   : > { %1400 = vmax.xlane.f32.xlu1 %v1399_v13 }
 0x34b   : > { %1594 = vrot.lane.b32.xlu1 %v5522_v52, %s5216_s21 }
 0x34f   : > { %1586 = vrot.lane.b32.xlu1 %v5502_v48, %s5216_s21 }
 0x3b1   : > { %v1380_v14 = vpop.xlane.xlu0 %1379 }
 0x3b2   : > { %v1402_v15 = vsub.f32 %v1370_v46, %v1380_v14 }
 0x3b3   : > { %v1383_v16 = vpop.xlane.xlu1 %1382 }
 0x3b4   : > { %v1403_v45 = vsub.f32 %v1371_v54, %v1383_v16  ;;  %v1410_v20 = vmul.f32 1.442695, %v1402_v15 }
 0x3b5   : > { %v1386_v17 = vpop.xlane.xlu0 %1385 }
 0x3b6   : > { %v1404_v18 = vsub.f32 %v1372_v51, %v1386_v17  ;;  %v1412_v23 = vmul.f32 1.442695, %v1403_v45 }
 0x3b7   : > { %v1389_v53 = vpop.xlane.xlu1 %1388 }
 0x3b8   : > { %v1414_v60 = vmul.f32 1.442695, %v1404_v18  ;;  %v1405_v22 = vsub.f32 %v1373_v56, %v1389_v53 }
 0x3ba   : > { %4991 = vpow2.f32 %v1414_v60  ;;  %v1416_v24 = vmul.f32 1.442695, %v1405_v22 }
 0x3bb   : > { %4993 = vpow2.f32 %v1410_v20 }
 0x3bc   : > { %4995 = vpow2.f32 %v1416_v24 }
 0x3bd   : > { %4997 = vpow2.f32 %v1412_v23 }
 0x3c1   : > { %v1392_v57 = vpop.xlane.xlu0 %1391 }
 0x3c2   : > { %v1406_v62 = vsub.f32 %v5571_v44, %v1392_v57 }
 0x3c3   : > { %v1395_v25 = vpop.xlane.xlu1 %1394 }
 0x3c4   : > { %v5585_v28 = vpop.eup %4991  ;;  %v1407_v35 = vsub.f32 %v1375_v7, %v1395_v25  ;;  %v1418_v2 = vmul.f32 1.442695, %v1406_v62 }
 0x3c5   : > { %v5587_v29 = vpop.eup %4993  ;;  %v1432_v4 = vsel %vm1247_vm0, %v5585_v28, 0.0  ;;  %v1398_v58 = vpop.xlane.xlu0 %1397 }
 0x3c6   : > { %v4996_v31 = vpop.eup %4995  ;;  %1433 = vadd.xlane.f32.xlu0 %v1432_v4  ;;  %v1426_v43 = vsel %vm1247_vm0, %v5587_v29, 0.0  ;;  %v1420_v33 = vmul.f32 1.442695, %v1407_v35  ;;  %v1408_v59 = vsub.f32 %v5573_v6, %v1398_v58 }
 0x3c7   : > { %v1401_v37 = vpop.xlane.xlu1 %1400  ;;  %v1435_v38 = vsel %vm1247_vm0, %v4996_v31, 0.0  ;;  %v4998_v39 = vpop.eup %4997 }
 0x3c8   : > { %v1409_v40 = vsub.f32 %v1377_v9, %v1401_v37  ;;  %1436 = vadd.xlane.f32.xlu1 %v1435_v38  ;;  %v1429_v47 = vsel %vm1247_vm0, %v4998_v39, 0.0  ;;  %v1422_v0 = vmul.f32 1.442695, %v1408_v59 }
 0x3ca   : > { %v1424_v36 = vmul.f32 1.442695, %v1409_v40  ;;  %1427 = vadd.xlane.f32.xlu0 %v1426_v43 }
 0x3cb   : > { %v1595_v46 = vpop.permute.xlu1 %1594 }
 0x3cc   : > { %4999 = vpow2.f32 %v1424_v36  ;;  %1430 = vadd.xlane.f32.xlu1 %v1429_v47  ;;  %v1606_v20 = vsel %vm1247_vm0, %v1595_v46, 0 }
 0x3cd   : > { %5001 = vpow2.f32 %v1420_v33 }
 0x3ce   : > { %5003 = vpow2.f32 %v1422_v0 }
 0x3cf   : > { %v1587_v49 = vpop.permute.xlu1 %1586  ;;  %5005 = vpow2.f32 %v1418_v2 }
 0x3d0   : > { %4649 = vmatprep.mubr.msk.bf16.mxu0 %vm1247_vm0, %v1587_v49 }
 0x3d6   : > { %v5596_v51 = vpop.eup %4999 }
 0x3d7   : > { %v1447_v54 = vsel %vm1247_vm0, %v5596_v51, 0.0  ;;  %v5600_v55 = vpop.eup %5001 }
 0x3d8   : > { %1448 = vadd.xlane.f32.xlu1 %v1447_v54  ;;  %v1441_v56 = vsel %vm1247_vm0, %v5600_v55, 0.0  ;;  %v5004_v3 = vpop.eup %5003 }
 0x3d9   : > { %v1444_v7 = vsel %vm1247_vm0, %v5004_v3, 0.0  ;;  %v5006_v8 = vpop.eup %5005 }
 0x3da   : > { %v1438_v44 = vsel %vm1247_vm0, %v5006_v8, 0.0 }
 0x3dc   : > { %1442 = vadd.xlane.f32.xlu1 %v1441_v56 }
 0x3e0   : > { %1592 = vrot.lane.b32.xlu0 %v5504_v50, %s5216_s21 }
 0x3ed   : > { %1588 = vrot.lane.b32.xlu1 %v5520_v10, %s5216_s21 }
 0x3f1   : > { %1667 = vrot.lane.b32.xlu1 %v5554_v42, %s5216_s21 }
 0x3f5   : > { %1661 = vrot.lane.b32.xlu1 %v5552_v41, %s5216_s21 }
 0x3ff   : > { %1445 = vadd.xlane.f32.xlu0 %v1444_v7 }
 0x403   : > { %1439 = vadd.xlane.f32.xlu0 %v1438_v44 }
 0x419   : > { %1665 = vrot.lane.b32.xlu0 %v5538_v61, %s5216_s21 }
 0x41d   : > { %1659 = vrot.lane.b32.xlu0 %v5536_v26, %s5216_s21 }
 0x453   : > { %v1434_v6 = vpop.xlane.xlu0 %1433 }
 0x455   : > { %v1437_v9 = vpop.xlane.xlu1 %1436 }
 0x456   : > { %5007 = vrcp.f32 %v1437_v9 }
 0x457   : > { %v1428_v11 = vpop.xlane.xlu0 %1427 }
 0x458   : > { %5009 = vrcp.f32 %v1428_v11 }
 0x459   : > { %5011 = vrcp.f32 %v1434_v6  ;;  %v1431_v12 = vpop.xlane.xlu1 %1430 }
 0x45a   : > { %5013 = vrcp.f32 %v1431_v12 }
 0x45b   : > { %v1593_v13 = vpop.permute.xlu0 %1592 }
 0x45c   : > { %4769 = vmatprep.subr.msk.bf16.mxu0 %vm1247_vm0, %v1593_v13  ;;  %v1603_v14 = vsel %vm1247_vm0, %v1593_v13, 0 }
 0x45d   : > { %4646 = vmatpush3.bf16.xpose.msra.mxu0 %v1603_v14 }
 0x45e   : > { %4770 = vmatprep.subr.msk.bf16.mxu0 %vm1247_vm0, %v1595_v46 }
 0x460   : > { %v5008_v15 = vpop.eup %5007 }
 0x461   : > { %v1461_v18 = vmul.f32 %v5008_v15, %v4996_v31 }
 0x462   : > { %v5010_v16 = vpop.eup %5009 }
 0x463   : > { %v5012_v17 = vpop.eup %5011  ;;  %v1458_v60 = vmul.f32 %v5010_v16, %v5587_v29 }
 0x464   : > { %v5014_v45 = vpop.eup %5013  ;;  %v1460_v23 = vmul.f32 %v5012_v17, %v5585_v28 }
 0x465   : > { %4648 = vmatpush3.bf16.xpose.msra.mxu0 %v1606_v20  ;;  %v1449_v53 = vpop.xlane.xlu1 %1448  ;;  %v1459_v22 = vmul.f32 %v5014_v45, %v4998_v39 }
 0x466   : > { %v1467_v25 = vpack.c.bf16 %v1461_v18, %v1460_v23 }
 0x467   : > { %v1466_v24 = vpack.c.bf16 %v1459_v22, %v1458_v60 }
 0x469   : > { %4633 = vmatprep.mubr.msk.bf16.mxu1 %vm1247_vm0, %v1466_v24  ;;  %v1443_v4 = vpop.xlane.xlu1 %1442 }
 0x46a   : > { %4634 = vmatmul.mubr.msk.bf16.vlgmr.msra.gmra.mrb[16].mxu1 %vm1247_vm0, %v1467_v25 }
 0x46b   : > { %4638 = vmatpush3.bf16.msra.mxu1 %v5530_v21 }
 0x46c   : > { %4639 = vmatprep.subr.bf16.mxu1 %v5528_v19 }
 0x46d   : > { %v1589_v31 = vpop.permute.xlu1 %1588 }
 0x46e   : > { %4650 = vmatmul.mubr.msk.bf16.vlgmr.msra.gmra.mrb[16].mxu0 %vm1247_vm0, %v1589_v31 }
 0x46f   : > { %4640 = vmatpush3.bf16.msra.mxu1 %v5528_v19 }
 0x471   : > { %v1668_v57 = vpop.permute.xlu1 %1667 }
 0x472   : > { %v1679_v58 = vsel %vm1247_vm0, %v1668_v57, 0 }
 0x48c   : > { %v1446_v29 = vpop.xlane.xlu0 %1445 }
 0x48d   : > { %5015 = vrcp.f32 %v1446_v29 }
 0x48e   : > { %5017 = vrcp.f32 %v1443_v4 }
 0x48f   : > { %5019 = vrcp.f32 %v1449_v53 }
 0x490   : > { %v1440_v28 = vpop.xlane.xlu0 %1439 }
 0x491   : > { %5021 = vrcp.f32 %v1440_v28 }
 0x494   : > { %v1666_v35 = vpop.permute.xlu0 %1665 }
 0x495   : > { %4771 = vmatprep.subr.msk.bf16.mxu1 %vm1247_vm0, %v1666_v35  ;;  %v1676_v56 = vsel %vm1247_vm0, %v1666_v35, 0 }
 0x497   : > { %v5016_v37 = vpop.eup %5015 }
 0x498   : > { %v5018_v38 = vpop.eup %5017  ;;  %v1464_v43 = vmul.f32 %v5016_v37, %v5004_v3  ;;  %v1660_v54 = vpop.permute.xlu0 %1659 }
 0x499   : > { %v5020_v39 = vpop.eup %5019  ;;  %v1463_v36 = vmul.f32 %v5018_v38, %v5600_v55  ;;  %v1662_v55 = vpop.permute.xlu1 %1661 }
 0x49a   : > { %v1465_v46 = vmul.f32 %v5020_v39, %v5596_v51 }
 0x49b   : > { %v5022_v40 = vpop.eup %5021 }
 0x49c   : > { %v1462_v33 = vmul.f32 %v5022_v40, %v5006_v8  ;;  %v1469_v49 = vpack.c.bf16 %v1465_v46, %v1464_v43 }
 0x49e   : > { %v1468_v47 = vpack.c.bf16 %v1463_v36, %v1462_v33 }
 0x4a0   : > { %4641 = vmatprep.mubr.msk.bf16.mxu1 %vm1247_vm0, %v1468_v47 }
 0x4a1   : > { %4642 = vmatmul.mubr.msk.bf16.vlgmr.msra.gmra.mrb[20].mxu1 %vm1247_vm0, %v1469_v49 }
 0x4a2   : > { %4654 = vmatpush3.bf16.xpose.msra.mxu1 %v1676_v56  ;;  %4657 = vmatprep.mubr.msk.bf16.mxu1 %vm1247_vm0, %v1660_v54 }
 0x4a3   : > { %4772 = vmatprep.subr.msk.bf16.mxu1 %vm1247_vm0, %v1668_v57 }
 0x4aa   : > { %4656 = vmatpush3.bf16.xpose.msra.mxu1 %v1679_v58 }
 0x4b1   : > { %4658 = vmatmul.mubr.msk.bf16.vlgmr.msra.gmra.mrb[24].mxu1 %vm1247_vm0, %v1662_v55 }
 0x53d   : > { %v5642_v51 = vpop.f32.mrb[16].mxu1 }
 0x53e   : > { %v5644_v59 = vpop.f32.mrb[17].mxu1 }
 0x53f   : > { %v5646_v62 = vpop.f32.mrb[18].mxu1 }
 0x540   : > { %v5648_v0 = vpop.f32.mrb[19].mxu1 }
 0x541   : > { %v4651_v2 = vpop.f32.mrb[16].mxu0 }
 0x542   : > { %v1642_v3 = vpop.f32.mrb[17].mxu0  ;;  %v1732_v6 = vmul.f32 0.17677669, %v4651_v2 }
 0x543   : > { %v1730_v7 = vmul.f32 0.17677669, %v1642_v3  ;;  %v4652_v8 = vpop.f32.mrb[18].mxu0 }
 0x544   : > { %v1645_v44 = vpop.f32.mrb[19].mxu0  ;;  %v1733_v13 = vmul.f32 0.17677669, %v4652_v8  ;;  %v1744_v14 = vsel %vm1247_vm0, %v1732_v6, -inf }
 0x545   : > { %v1731_v9 = vmul.f32 0.17677669, %v1645_v44  ;;  %v1738_v11 = vsel %vm1247_vm0, %v1730_v7, -inf }
 0x546   : > { %1739 = vmax.xlane.f32.xlu0 %v1738_v11  ;;  %v1747_v15 = vsel %vm1247_vm0, %v1733_v13, -inf }
 0x547   : > { %v1741_v12 = vsel %vm1247_vm0, %v1731_v9, -inf }
 0x548   : > { %1742 = vmax.xlane.f32.xlu1 %v1741_v12 }
 0x54a   : > { %1745 = vmax.xlane.f32.xlu0 %v1744_v14 }
 0x54e   : > { %1748 = vmax.xlane.f32.xlu0 %v1747_v15 }
 0x574   : > { %v5654_v16 = vpop.f32.mrb[20].mxu1 }
 0x575   : > { %v5656_v17 = vpop.f32.mrb[21].mxu1 }
 0x576   : > { %v5658_v45 = vpop.f32.mrb[22].mxu1 }
 0x577   : > { %v5660_v18 = vpop.f32.mrb[23].mxu1 }
 0x584   : > { %v4659_v20 = vpop.f32.mrb[24].mxu1 }
 0x585   : > { %v1715_v53 = vpop.f32.mrb[25].mxu1  ;;  %v1736_v24 = vmul.f32 0.17677669, %v4659_v20 }
 0x586   : > { %v1734_v60 = vmul.f32 0.17677669, %v1715_v53  ;;  %v4660_v22 = vpop.f32.mrb[26].mxu1 }
 0x587   : > { %v1718_v23 = vpop.f32.mrb[27].mxu1  ;;  %v1737_v31 = vmul.f32 0.17677669, %v4660_v22  ;;  %v1756_v28 = vsel %vm1247_vm0, %v1736_v24, -inf }
 0x588   : > { %v1735_v25 = vmul.f32 0.17677669, %v1718_v23  ;;  %v1750_v4 = vsel %vm1247_vm0, %v1734_v60, -inf }
 0x589   : > { %1751 = vmax.xlane.f32.xlu0 %v1750_v4  ;;  %v1759_v35 = vsel %vm1247_vm0, %v1737_v31, -inf }
 0x58a   : > { %v1753_v29 = vsel %vm1247_vm0, %v1735_v25, -inf }
 0x58b   : > { %1754 = vmax.xlane.f32.xlu1 %v1753_v29 }
 0x58d   : > { %1757 = vmax.xlane.f32.xlu0 %v1756_v28 }
 0x58f   : > { %1760 = vmax.xlane.f32.xlu1 %v1759_v35 }
 0x5d3   : > { %v1740_v37 = vpop.xlane.xlu0 %1739 }
 0x5d4   : > { %v1762_v38 = vsub.f32 %v1730_v7, %v1740_v37 }
 0x5d5   : > { %v1743_v39 = vpop.xlane.xlu1 %1742 }
 0x5d6   : > { %v1770_v40 = vmul.f32 1.442695, %v1762_v38  ;;  %v1763_v43 = vsub.f32 %v1731_v9, %v1743_v39 }
 0x5d7   : > { %v1746_v33 = vpop.xlane.xlu0 %1745 }
 0x5d8   : > { %5023 = vpow2.f32 %v1770_v40  ;;  %v1772_v36 = vmul.f32 1.442695, %v1763_v43  ;;  %v1764_v46 = vsub.f32 %v1732_v6, %v1746_v33 }
 0x5da   : > { %5025 = vpow2.f32 %v1772_v36  ;;  %v1774_v47 = vmul.f32 1.442695, %v1764_v46 }
 0x5db   : > { %v1749_v49 = vpop.xlane.xlu0 %1748 }
 0x5dc   : > { %5027 = vpow2.f32 %v1774_v47  ;;  %v1765_v54 = vsub.f32 %v1733_v13, %v1749_v49 }
 0x5de   : > { %v1776_v56 = vmul.f32 1.442695, %v1765_v54 }
 0x5e0   : > { %5029 = vpow2.f32 %v1776_v56 }
 0x5e2   : > { %v5666_v57 = vpop.eup %5023 }
 0x5e3   : > { %v1786_v58 = vsel %vm1247_vm0, %v5666_v57, 0.0 }
 0x5e4   : > { %v5670_v55 = vpop.eup %5025  ;;  %1787 = vadd.xlane.f32.xlu0 %v1786_v58 }
 0x5e5   : > { %v1789_v2 = vsel %vm1247_vm0, %v5670_v55, 0.0 }
 0x5e6   : > { %v5674_v3 = vpop.eup %5027  ;;  %1790 = vadd.xlane.f32.xlu1 %v1789_v2 }
 0x5e7   : > { %v1792_v7 = vsel %vm1247_vm0, %v5674_v3, 0.0 }
 0x5e8   : > { %1793 = vadd.xlane.f32.xlu0 %v1792_v7 }
 0x5ea   : > { %v5678_v8 = vpop.eup %5029 }
 0x5eb   : > { %v1795_v44 = vsel %vm1247_vm0, %v5678_v8, 0.0 }
 0x5ec   : > { %1796 = vadd.xlane.f32.xlu1 %v1795_v44 }
 0x5fd   : > { %1834 = vrot.lane.b32.xlu1 %v5512_v63, %s5216_s21 }
 0x5fe   : > { %1832 = vrot.lane.b32.xlu0 %v5514_v1, %s5216_s21 }
 0x601   : > { %1895 = vrot.lane.b32.xlu1 %v5530_v21, %s5216_s21 }
 0x602   : > { %1960 = vrot.lane.b32.xlu0 %v5504_v50, %s5217_s3 }
 0x605   : > { %1962 = vrot.lane.b32.xlu1 %v5522_v52, %s5217_s3 }
 0x606   : > { %1897 = vrot.lane.b32.xlu0 %v5528_v19, %s5216_s21 }
 0x60a   : > { %1956 = vrot.lane.b32.xlu0 %v5502_v48, %s5217_s3 }
 0x616   : > { %v1752_v6 = vpop.xlane.xlu0 %1751 }
 0x617   : > { %v1766_v9 = vsub.f32 %v1734_v60, %v1752_v6 }
 0x618   : > { %v1755_v11 = vpop.xlane.xlu1 %1754 }
 0x619   : > { %v1778_v12 = vmul.f32 1.442695, %v1766_v9  ;;  %v1767_v20 = vsub.f32 %v1735_v25, %v1755_v11 }
 0x61a   : > { %v1758_v13 = vpop.xlane.xlu0 %1757 }
 0x61b   : > { %5031 = vpow2.f32 %v1778_v12  ;;  %v1768_v14 = vsub.f32 %v1736_v24, %v1758_v13  ;;  %v1780_v4 = vmul.f32 1.442695, %v1767_v20 }
 0x61c   : > { %v1761_v15 = vpop.xlane.xlu1 %1760 }
 0x61d   : > { %v1782_v53 = vmul.f32 1.442695, %v1768_v14  ;;  %v1769_v22 = vsub.f32 %v1737_v31, %v1761_v15 }
 0x61f   : > { %5033 = vpow2.f32 %v1782_v53  ;;  %v1784_v23 = vmul.f32 1.442695, %v1769_v22 }
 0x621   : > { %5035 = vpow2.f32 %v1784_v23 }
 0x622   : > { %5037 = vpow2.f32 %v1780_v4 }
 0x625   : > { %v5696_v29 = vpop.eup %5031 }
 0x626   : > { %v1798_v28 = vsel %vm1247_vm0, %v5696_v29, 0.0 }
 0x629   : > { %v5700_v60 = vpop.eup %5033  ;;  %1799 = vadd.xlane.f32.xlu0 %v1798_v28 }
 0x62a   : > { %v1804_v24 = vsel %vm1247_vm0, %v5700_v60, 0.0 }
 0x62b   : > { %v5704_v35 = vpop.eup %5035  ;;  %1805 = vadd.xlane.f32.xlu1 %v1804_v24 }
 0x62c   : > { %v1807_v25 = vsel %vm1247_vm0, %v5704_v35, 0.0  ;;  %v5708_v31 = vpop.eup %5037 }
 0x62d   : > { %v1801_v37 = vsel %vm1247_vm0, %v5708_v31, 0.0 }
 0x62f   : > { %1808 = vadd.xlane.f32.xlu1 %v1807_v25 }
 0x633   : > { %1802 = vadd.xlane.f32.xlu1 %v1801_v37 }
 0x63f   : > { %2029 = vrot.lane.b32.xlu0 %v5538_v61, %s5217_s3 }
 0x643   : > { %2025 = vrot.lane.b32.xlu0 %v5536_v26, %s5217_s3 }
 0x644   : > { %1958 = vrot.lane.b32.xlu1 %v5520_v10, %s5217_s3 }
 0x648   : > { %2031 = vrot.lane.b32.xlu1 %v5554_v42, %s5217_s3 }
 0x64c   : > { %2027 = vrot.lane.b32.xlu1 %v5552_v41, %s5217_s3 }
 0x671   : > { %v1788_v38 = vpop.xlane.xlu0 %1787 }
 0x672   : > { %5039 = vrcp.f32 %v1788_v38 }
 0x673   : > { %v1791_v39 = vpop.xlane.xlu1 %1790 }
 0x674   : > { %5041 = vrcp.f32 %v1791_v39 }
 0x675   : > { %v1794_v40 = vpop.xlane.xlu0 %1793 }
 0x676   : > { %5043 = vrcp.f32 %v1794_v40 }
 0x679   : > { %v1833_v43 = vpop.permute.xlu0 %1832  ;;  %v1797_v33 = vpop.xlane.xlu1 %1796 }
 0x67a   : > { %5045 = vrcp.f32 %v1797_v33  ;;  %4661 = vmatprep.subr.bf16.mxu0 %v1833_v43 }
 0x67b   : > { %4662 = vmatpush3.bf16.msra.mxu0 %v1833_v43 }
 0x67c   : > { %v5040_v36 = vpop.eup %5039 }
 0x67d   : > { %v1961_v46 = vpop.permute.xlu0 %1960  ;;  %v1835_v47 = vpop.permute.xlu1 %1834  ;;  %v1818_v54 = vmul.f32 %v5040_v36, %v5666_v57 }
 0x67e   : > { %v5042_v49 = vpop.eup %5041  ;;  %4663 = vmatprep.subr.bf16.mxu0 %v1835_v47 }
 0x67f   : > { %4664 = vmatpush3.bf16.msra.mxu0 %v1835_v47  ;;  %v1819_v56 = vmul.f32 %v5042_v49, %v5670_v55  ;;  %v1971_v55 = vsel %vm1247_vm0, %v1961_v46, 0 }
 0x680   : > { %4773 = vmatprep.subr.msk.bf16.mxu0 %vm1247_vm0, %v1961_v46  ;;  %v5044_v7 = vpop.eup %5043 }
 0x681   : > { %v1896_v58 = vpop.permute.xlu1 %1895  ;;  %v1826_v2 = vpack.c.bf16 %v1819_v56, %v1818_v54  ;;  %v1898_v44 = vpop.permute.xlu0 %1897  ;;  %v1820_v9 = vmul.f32 %v5044_v7, %v5674_v3 }
 0x682   : > { %4669 = vmatprep.subr.bf16.mxu1 %v1896_v58 }
 0x683   : > { %4665 = vmatprep.mubr.msk.bf16.mxu0 %vm1247_vm0, %v1826_v2  ;;  %4670 = vmatpush3.bf16.msra.mxu1 %v1896_v58 }
 0x684   : > { %v5046_v6 = vpop.eup %5045  ;;  %4671 = vmatprep.subr.bf16.mxu1 %v1898_v44 }
 0x685   : > { %v1821_v11 = vmul.f32 %v5046_v6, %v5678_v8  ;;  %v1957_v12 = vpop.permute.xlu0 %1956  ;;  %v1963_v13 = vpop.permute.xlu1 %1962 }
 0x686   : > { %v1974_v14 = vsel %vm1247_vm0, %v1963_v13, 0 }
 0x687   : > { %4672 = vmatpush3.bf16.msra.mxu1 %v1898_v44  ;;  %v1827_v57 = vpack.c.bf16 %v1821_v11, %v1820_v9 }
 0x689   : > { %4666 = vmatmul.mubr.msk.bf16.vlgmr.msra.gmra.mrb[20].mxu0 %vm1247_vm0, %v1827_v57 }
 0x68a   : > { %4678 = vmatpush3.bf16.xpose.msra.mxu0 %v1971_v55  ;;  %4681 = vmatprep.mubr.msk.bf16.mxu0 %vm1247_vm0, %v1957_v12 }
 0x68b   : > { %4774 = vmatprep.subr.msk.bf16.mxu0 %vm1247_vm0, %v1963_v13 }
 0x692   : > { %4680 = vmatpush3.bf16.xpose.msra.mxu0 %v1974_v14 }
 0x6b6   : > { %v1800_v15 = vpop.xlane.xlu0 %1799 }
 0x6b8   : > { %v1806_v3 = vpop.xlane.xlu1 %1805 }
 0x6ba   : > { %v2030_v20 = vpop.permute.xlu0 %2029 }
 0x6bb   : > { %4775 = vmatprep.subr.msk.bf16.mxu1 %vm1247_vm0, %v2030_v20  ;;  %v2040_v33 = vsel %vm1247_vm0, %v2030_v20, 0 }
 0x6bc   : > { %v1809_v8 = vpop.xlane.xlu1 %1808 }
 0x6bd   : > { %5047 = vrcp.f32 %v1809_v8 }
 0x6be   : > { %5049 = vrcp.f32 %v1800_v15  ;;  %v2026_v36 = vpop.permute.xlu0 %2025 }
 0x6bf   : > { %5051 = vrcp.f32 %v1806_v3 }
 0x6c0   : > { %v1803_v53 = vpop.xlane.xlu1 %1802 }
 0x6c1   : > { %5053 = vrcp.f32 %v1803_v53 }
 0x6c4   : > { %v1959_v22 = vpop.permute.xlu1 %1958 }
 0x6c5   : > { %4682 = vmatmul.mubr.msk.bf16.vlgmr.msra.gmra.mrb[24].mxu0 %vm1247_vm0, %v1959_v22 }
 0x6c7   : > { %v5048_v23 = vpop.eup %5047 }
 0x6c8   : > { %v5050_v4 = vpop.eup %5049  ;;  %v1825_v25 = vmul.f32 %v5048_v23, %v5704_v35  ;;  %v2032_v46 = vpop.permute.xlu1 %2031 }
 0x6c9   : > { %v5052_v28 = vpop.eup %5051  ;;  %v1822_v37 = vmul.f32 %v5050_v4, %v5696_v29  ;;  %v2043_v29 = vsel %vm1247_vm0, %v2032_v46, 0 }
 0x6ca   : > { %v1824_v39 = vmul.f32 %v5052_v28, %v5700_v60 }
 0x6cb   : > { %v5054_v24 = vpop.eup %5053 }
 0x6cc   : > { %v1823_v38 = vmul.f32 %v5054_v24, %v5708_v31  ;;  %v1829_v43 = vpack.c.bf16 %v1825_v25, %v1824_v39  ;;  %v2028_v35 = vpop.permute.xlu1 %2027 }
 0x6ce   : > { %v1828_v40 = vpack.c.bf16 %v1823_v38, %v1822_v37 }
 0x6d0   : > { %4673 = vmatprep.mubr.msk.bf16.mxu1 %vm1247_vm0, %v1828_v40 }
 0x6d1   : > { %4674 = vmatmul.mubr.msk.bf16.vlgmr.msra.gmra.mrb[28].mxu1 %vm1247_vm0, %v1829_v43 }
 0x6d2   : > { %4686 = vmatpush3.bf16.xpose.msra.mxu1 %v2040_v33  ;;  %4689 = vmatprep.mubr.msk.bf16.mxu1 %vm1247_vm0, %v2026_v36 }
 0x6d3   : > { %4776 = vmatprep.subr.msk.bf16.mxu1 %vm1247_vm0, %v2032_v46 }
 0x6da   : > { %4688 = vmatpush3.bf16.xpose.msra.mxu1 %v2043_v29 }
 0x6e1   : > { %4690 = vmatmul.mubr.msk.bf16.vlgmr.msra.gmra.mrb[32].mxu1 %vm1247_vm0, %v2028_v35 }
 0x75c   : > { %v5746_v60 = vpop.f32.mrb[20].mxu0 }
 0x75d   : > { %v5748_v31 = vpop.f32.mrb[21].mxu0 }
 0x75e   : > { %v5750_v47 = vpop.f32.mrb[22].mxu0 }
 0x75f   : > { %v4800_v49 = vpack.i.bf16 %v5750_v47, %v5746_v60  ;;  %v5754_v54 = vpop.f32.mrb[23].mxu0 }
 0x760   : > { %v4795_v56 = vpack.i.bf16 %v5754_v54, %v5748_v31 }
 0x798   : > { %v4683_v58 = vpop.f32.mrb[24].mxu0 }
 0x799   : > { %v2010_v2 = vpop.f32.mrb[25].mxu0  ;;  %v2096_v9 = vmul.f32 0.17677669, %v4683_v58 }
 0x79a   : > { %v2094_v7 = vmul.f32 0.17677669, %v2010_v2  ;;  %v4684_v44 = vpop.f32.mrb[26].mxu0 }
 0x79b   : > { %v2013_v6 = vpop.f32.mrb[27].mxu0  ;;  %v2097_v12 = vmul.f32 0.17677669, %v4684_v44  ;;  %v2108_v13 = vsel %vm1247_vm0, %v2096_v9, -inf }
 0x79c   : > { %v2095_v11 = vmul.f32 0.17677669, %v2013_v6  ;;  %v2102_v57 = vsel %vm1247_vm0, %v2094_v7, -inf }
 0x79d   : > { %2103 = vmax.xlane.f32.xlu0 %v2102_v57  ;;  %v2111_v15 = vsel %vm1247_vm0, %v2097_v12, -inf }
 0x79e   : > { %v2105_v55 = vsel %vm1247_vm0, %v2095_v11, -inf }
 0x79f   : > { %2106 = vmax.xlane.f32.xlu1 %v2105_v55 }
 0x7a1   : > { %2109 = vmax.xlane.f32.xlu0 %v2108_v13 }
 0x7a4   : > { %v5761_v14 = vpop.f32.mrb[28].mxu1 }
 0x7a5   : > { %v5764_v3 = vpop.f32.mrb[29].mxu1  ;;  %2112 = vmax.xlane.f32.xlu0 %v2111_v15 }
 0x7a6   : > { %v5766_v20 = vpop.f32.mrb[30].mxu1 }
 0x7a7   : > { %v4830_v8 = vpack.i.bf16 %v5766_v20, %v5761_v14  ;;  %v5770_v53 = vpop.f32.mrb[31].mxu1 }
 0x7a8   : > { %v4825_v22 = vpack.i.bf16 %v5770_v53, %v5764_v3 }
 0x7b4   : > { %v4691_v23 = vpop.f32.mrb[32].mxu1 }
 0x7b5   : > { %v2079_v4 = vpop.f32.mrb[33].mxu1  ;;  %v2100_v37 = vmul.f32 0.17677669, %v4691_v23 }
 0x7b6   : > { %v2098_v28 = vmul.f32 0.17677669, %v2079_v4  ;;  %v4692_v24 = vpop.f32.mrb[34].mxu1 }
 0x7b7   : > { %v2082_v25 = vpop.f32.mrb[35].mxu1  ;;  %v2101_v40 = vmul.f32 0.17677669, %v4692_v24  ;;  %v2120_v33 = vsel %vm1247_vm0, %v2100_v37, -inf }
 0x7b8   : > { %v2099_v38 = vmul.f32 0.17677669, %v2082_v25  ;;  %v2114_v39 = vsel %vm1247_vm0, %v2098_v28, -inf }
 0x7b9   : > { %2115 = vmax.xlane.f32.xlu0 %v2114_v39  ;;  %v2123_v36 = vsel %vm1247_vm0, %v2101_v40, -inf }
 0x7ba   : > { %v2117_v43 = vsel %vm1247_vm0, %v2099_v38, -inf }
 0x7bb   : > { %2118 = vmax.xlane.f32.xlu1 %v2117_v43 }
 0x7bd   : > { %2121 = vmax.xlane.f32.xlu0 %v2120_v33 }
 0x7bf   : > { %2124 = vmax.xlane.f32.xlu1 %v2123_v36 }
 0x82a   : > { %v2104_v46 = vpop.xlane.xlu0 %2103 }
 0x82b   : > { %v2126_v29 = vsub.f32 %v2094_v7, %v2104_v46 }
 0x82c   : > { %v2107_v35 = vpop.xlane.xlu1 %2106 }
 0x82d   : > { %v2134_v58 = vmul.f32 1.442695, %v2126_v29  ;;  %v2127_v2 = vsub.f32 %v2095_v11, %v2107_v35 }
 0x82e   : > { %v2110_v44 = vpop.xlane.xlu0 %2109 }
 0x82f   : > { %5055 = vpow2.f32 %v2134_v58  ;;  %v2136_v6 = vmul.f32 1.442695, %v2127_v2  ;;  %v2128_v57 = vsub.f32 %v2096_v9, %v2110_v44 }
 0x831   : > { %5057 = vpow2.f32 %v2136_v6  ;;  %v2138_v55 = vmul.f32 1.442695, %v2128_v57 }
 0x832   : > { %v2113_v13 = vpop.xlane.xlu0 %2112 }
 0x833   : > { %5059 = vpow2.f32 %v2138_v55  ;;  %v2129_v15 = vsub.f32 %v2097_v12, %v2113_v13 }
 0x835   : > { %v2140_v23 = vmul.f32 1.442695, %v2129_v15 }
 0x837   : > { %5061 = vpow2.f32 %v2140_v23 }
 0x839   : > { %v5778_v4 = vpop.eup %5055 }
 0x83a   : > { %v2150_v24 = vsel %vm1247_vm0, %v5778_v4, 0.0 }
 0x83b   : > { %v5782_v7 = vpop.eup %5057  ;;  %2151 = vadd.xlane.f32.xlu0 %v2150_v24 }
 0x83c   : > { %v2153_v11 = vsel %vm1247_vm0, %v5782_v7, 0.0 }
 0x83d   : > { %v5786_v25 = vpop.eup %5059  ;;  %2154 = vadd.xlane.f32.xlu1 %v2153_v11 }
 0x83e   : > { %v2156_v9 = vsel %vm1247_vm0, %v5786_v25, 0.0 }
 0x83f   : > { %2157 = vadd.xlane.f32.xlu0 %v2156_v9 }
 0x841   : > { %v5790_v12 = vpop.eup %5061 }
 0x842   : > { %v2159_v39 = vsel %vm1247_vm0, %v5790_v12, 0.0 }
 0x843   : > { %2160 = vadd.xlane.f32.xlu1 %v2159_v39 }
 0x846   : > { %v2116_v43 = vpop.xlane.xlu0 %2115 }
 0x847   : > { %v2130_v46 = vsub.f32 %v2098_v28, %v2116_v43 }
 0x848   : > { %v2119_v33 = vpop.xlane.xlu1 %2118 }
 0x849   : > { %v2142_v58 = vmul.f32 1.442695, %v2130_v46 }
 0x84a   : > { %v2122_v36 = vpop.xlane.xlu0 %2121 }
 0x84b   : > { %v2132_v29 = vsub.f32 %v2100_v37, %v2122_v36  ;;  %5063 = vpow2.f32 %v2142_v58 }
 0x84c   : > { %v2125_v35 = vpop.xlane.xlu1 %2124 }
 0x84d   : > { %v2146_v2 = vmul.f32 1.442695, %v2132_v29  ;;  %v2133_v44 = vsub.f32 %v2101_v40, %v2125_v35 }
 0x84f   : > { %5065 = vpow2.f32 %v2146_v2  ;;  %v2148_v6 = vmul.f32 1.442695, %v2133_v44 }
 0x851   : > { %5067 = vpow2.f32 %v2148_v6 }
 0x854   : > { %2196 = vrot.lane.b32.xlu1 %v5512_v63, %s5217_s3 }
 0x855   : > { %2194 = vrot.lane.b32.xlu0 %v5514_v1, %s5217_s3  ;;  %v5808_v57 = vpop.eup %5063 }
 0x858   : > { %2255 = vrot.lane.b32.xlu1 %v5530_v21, %s5217_s3 }
 0x859   : > { %2320 = vrot.lane.b32.xlu0 %v5504_v50, %s5218_s23  ;;  %v2131_v50 = vsub.f32 %v2099_v38, %v2119_v33  ;;  %v5810_v55 = vpop.eup %5065 }
 0x85a   : > { %v2168_v28 = vsel %vm1247_vm0, %v5810_v55, 0.0 }
 0x85b   : > { %v5816_v37 = vpop.eup %5067 }
 0x85c   : > { %2322 = vrot.lane.b32.xlu1 %v5522_v52, %s5218_s23  ;;  %v2144_v52 = vmul.f32 1.442695, %v2131_v50  ;;  %v2171_v38 = vsel %vm1247_vm0, %v5816_v37, 0.0 }
 0x85d   : > { %2257 = vrot.lane.b32.xlu0 %v5528_v19, %s5217_s3 }
 0x85e   : > { %5069 = vpow2.f32 %v2144_v52 }
 0x861   : > { %2316 = vrot.lane.b32.xlu0 %v5502_v48, %s5218_s23  ;;  %v2162_v48 = vsel %vm1247_vm0, %v5808_v57, 0.0 }
 0x868   : > { %v5820_v40 = vpop.eup %5069 }
 0x869   : > { %v2165_v13 = vsel %vm1247_vm0, %v5820_v40, 0.0 }
 0x880   : > { %2163 = vadd.xlane.f32.xlu0 %v2162_v48  ;;  %2169 = vadd.xlane.f32.xlu1 %v2168_v28 }
 0x884   : > { %2172 = vadd.xlane.f32.xlu1 %v2171_v38 }
 0x888   : > { %2166 = vadd.xlane.f32.xlu1 %v2165_v13 }
 0x896   : > { %2389 = vrot.lane.b32.xlu0 %v5538_v61, %s5218_s23 }
 0x899   : > { %2318 = vrot.lane.b32.xlu1 %v5520_v10, %s5218_s23 }
 0x89a   : > { %2385 = vrot.lane.b32.xlu0 %v5536_v26, %s5218_s23 }
 0x89d   : > { %2391 = vrot.lane.b32.xlu1 %v5554_v42, %s5218_s23 }
 0x8a1   : > { %2387 = vrot.lane.b32.xlu1 %v5552_v41, %s5218_s23 }
 0x8c8   : > { %v2152_v15 = vpop.xlane.xlu0 %2151 }
 0x8c9   : > { %5071 = vrcp.f32 %v2152_v15 }
 0x8ca   : > { %v2155_v23 = vpop.xlane.xlu1 %2154 }
 0x8cb   : > { %5073 = vrcp.f32 %v2155_v23 }
 0x8cc   : > { %v2158_v24 = vpop.xlane.xlu0 %2157 }
 0x8cd   : > { %5075 = vrcp.f32 %v2158_v24 }
 0x8d0   : > { %v2195_v11 = vpop.permute.xlu0 %2194  ;;  %v2161_v61 = vpop.xlane.xlu1 %2160 }
 0x8d1   : > { %5077 = vrcp.f32 %v2161_v61  ;;  %4693 = vmatprep.subr.bf16.mxu0 %v2195_v11 }
 0x8d2   : > { %4694 = vmatpush3.bf16.msra.mxu0 %v2195_v11 }
 0x8d3   : > { %v5072_v10 = vpop.eup %5071 }
 0x8d4   : > { %v2321_v9 = vpop.permute.xlu0 %2320  ;;  %v2197_v26 = vpop.permute.xlu1 %2196  ;;  %v2182_v42 = vmul.f32 %v5072_v10, %v5778_v4 }
 0x8d5   : > { %v5074_v39 = vpop.eup %5073  ;;  %4695 = vmatprep.subr.bf16.mxu0 %v2197_v26 }
 0x8d6   : > { %4696 = vmatpush3.bf16.msra.mxu0 %v2197_v26  ;;  %v2183_v41 = vmul.f32 %v5074_v39, %v5782_v7  ;;  %v2331_v7 = vsel %vm1247_vm0, %v2321_v9, 0 }
 0x8d7   : > { %4777 = vmatprep.subr.msk.bf16.mxu0 %vm1247_vm0, %v2321_v9  ;;  %v5076_v36 = vpop.eup %5075 }
 0x8d8   : > { %v2256_v43 = vpop.permute.xlu1 %2255  ;;  %v2190_v33 = vpack.c.bf16 %v2183_v41, %v2182_v42  ;;  %v2258_v46 = vpop.permute.xlu0 %2257  ;;  %v2184_v35 = vmul.f32 %v5076_v36, %v5786_v25 }
 0x8d9   : > { %4701 = vmatprep.subr.bf16.mxu1 %v2256_v43 }
 0x8da   : > { %4697 = vmatprep.mubr.msk.bf16.mxu0 %vm1247_vm0, %v2190_v33  ;;  %4702 = vmatpush3.bf16.msra.mxu1 %v2256_v43 }
 0x8db   : > { %v5078_v29 = vpop.eup %5077  ;;  %4703 = vmatprep.subr.bf16.mxu1 %v2258_v46 }
 0x8dc   : > { %v2185_v58 = vmul.f32 %v5078_v29, %v5790_v12  ;;  %v2317_v2 = vpop.permute.xlu0 %2316  ;;  %v2323_v44 = vpop.permute.xlu1 %2322 }
 0x8dd   : > { %v2334_v50 = vsel %vm1247_vm0, %v2323_v44, 0 }
 0x8de   : > { %4704 = vmatpush3.bf16.msra.mxu1 %v2258_v46  ;;  %v2191_v4 = vpack.c.bf16 %v2185_v58, %v2184_v35 }
 0x8e0   : > { %4698 = vmatmul.mubr.msk.bf16.vlgmr.msra.gmra.mrb[28].mxu0 %vm1247_vm0, %v2191_v4 }
 0x8e1   : > { %4710 = vmatpush3.bf16.xpose.msra.mxu0 %v2331_v7  ;;  %4713 = vmatprep.mubr.msk.bf16.mxu0 %vm1247_vm0, %v2317_v2 }
 0x8e2   : > { %4778 = vmatprep.subr.msk.bf16.mxu0 %vm1247_vm0, %v2323_v44 }
 0x8e9   : > { %4712 = vmatpush3.bf16.xpose.msra.mxu0 %v2334_v50 }
 0x90d   : > { %v2164_v6 = vpop.xlane.xlu0 %2163  ;;  %v2170_v25 = vpop.xlane.xlu1 %2169 }
 0x911   : > { %v2390_v52 = vpop.permute.xlu0 %2389  ;;  %v2173_v12 = vpop.xlane.xlu1 %2172 }
 0x912   : > { %4779 = vmatprep.subr.msk.bf16.mxu1 %vm1247_vm0, %v2390_v52  ;;  %5079 = vrcp.f32 %v2173_v12  ;;  %v2400_v39 = vsel %vm1247_vm0, %v2390_v52, 0 }
 0x913   : > { %5081 = vrcp.f32 %v2164_v6 }
 0x914   : > { %5083 = vrcp.f32 %v2170_v25 }
 0x915   : > { %v2167_v48 = vpop.xlane.xlu1 %2166  ;;  %v2386_v42 = vpop.permute.xlu0 %2385 }
 0x916   : > { %5085 = vrcp.f32 %v2167_v48 }
 0x919   : > { %v2319_v28 = vpop.permute.xlu1 %2318 }
 0x91a   : > { %4714 = vmatmul.mubr.msk.bf16.vlgmr.msra.gmra.mrb[32].mxu0 %vm1247_vm0, %v2319_v28 }
 0x91c   : > { %v5080_v38 = vpop.eup %5079 }
 0x91d   : > { %v5082_v13 = vpop.eup %5081  ;;  %v2189_v24 = vmul.f32 %v5080_v38, %v5816_v37  ;;  %v2392_v41 = vpop.permute.xlu1 %2391 }
 0x91e   : > { %v5084_v15 = vpop.eup %5083  ;;  %v2186_v11 = vmul.f32 %v5082_v13, %v5808_v57  ;;  %v2403_v57 = vsel %vm1247_vm0, %v2392_v41, 0 }
 0x91f   : > { %v2188_v10 = vmul.f32 %v5084_v15, %v5810_v55 }
 0x920   : > { %v5086_v23 = vpop.eup %5085 }
 0x921   : > { %v2187_v61 = vmul.f32 %v5086_v23, %v5820_v40  ;;  %v2193_v26 = vpack.c.bf16 %v2189_v24, %v2188_v10  ;;  %v2388_v37 = vpop.permute.xlu1 %2387 }
 0x923   : > { %v2192_v9 = vpack.c.bf16 %v2187_v61, %v2186_v11 }
 0x925   : > { %4705 = vmatprep.mubr.msk.bf16.mxu1 %vm1247_vm0, %v2192_v9 }
 0x926   : > { %4706 = vmatmul.mubr.msk.bf16.vlgmr.msra.gmra.mrb[36].mxu1 %vm1247_vm0, %v2193_v26 }
 0x927   : > { %4718 = vmatpush3.bf16.xpose.msra.mxu1 %v2400_v39  ;;  %4721 = vmatprep.mubr.msk.bf16.mxu1 %vm1247_vm0, %v2386_v42 }
 0x928   : > { %4780 = vmatprep.subr.msk.bf16.mxu1 %vm1247_vm0, %v2392_v41 }
 0x92f   : > { %4720 = vmatpush3.bf16.xpose.msra.mxu1 %v2403_v57 }
 0x936   : > { %4722 = vmatmul.mubr.msk.bf16.vlgmr.msra.gmra.mrb[40].mxu1 %vm1247_vm0, %v2388_v37 }
 0x9b3   : > { %v5858_v55 = vpop.f32.mrb[28].mxu0 }
 0x9b4   : > { %v5860_v40 = vpop.f32.mrb[29].mxu0 }
 0x9b5   : > { %v5862_v43 = vpop.f32.mrb[30].mxu0 }
 0x9b6   : > { %v4810_v33 = vpack.i.bf16 %v5862_v43, %v5858_v55  ;;  %v5866_v36 = vpop.f32.mrb[31].mxu0 }
 0x9b7   : > { %v4805_v46 = vpack.i.bf16 %v5866_v36, %v5860_v40 }
 0x9ed   : > { %v4715_v29 = vpop.f32.mrb[32].mxu0 }
 0x9ee   : > { %v2370_v35 = vpop.f32.mrb[33].mxu0  ;;  %v2456_v2 = vmul.f32 0.17677669, %v4715_v29 }
 0x9ef   : > { %v2454_v58 = vmul.f32 0.17677669, %v2370_v35  ;;  %v4716_v4 = vpop.f32.mrb[34].mxu0 }
 0x9f0   : > { %v2373_v7 = vpop.f32.mrb[35].mxu0  ;;  %v2457_v25 = vmul.f32 0.17677669, %v4716_v4  ;;  %v2468_v52 = vsel %vm1247_vm0, %v2456_v2, -inf }
 0x9f1   : > { %v2455_v44 = vmul.f32 0.17677669, %v2373_v7  ;;  %v2462_v50 = vsel %vm1247_vm0, %v2454_v58, -inf }
 0x9f2   : > { %2463 = vmax.xlane.f32.xlu0 %v2462_v50  ;;  %v2471_v48 = vsel %vm1247_vm0, %v2457_v25, -inf }
 0x9f3   : > { %v2465_v6 = vsel %vm1247_vm0, %v2455_v44, -inf }
 0x9f4   : > { %2466 = vmax.xlane.f32.xlu1 %v2465_v6 }
 0x9f6   : > { %2469 = vmax.xlane.f32.xlu0 %v2468_v52 }
 0x9f9   : > { %v5873_v12 = vpop.f32.mrb[36].mxu1 }
 0x9fa   : > { %v5876_v28 = vpop.f32.mrb[37].mxu1  ;;  %2472 = vmax.xlane.f32.xlu0 %v2471_v48 }
 0x9fb   : > { %v5878_v38 = vpop.f32.mrb[38].mxu1 }
 0x9fc   : > { %v4840_v13 = vpack.i.bf16 %v5878_v38, %v5873_v12  ;;  %v5882_v15 = vpop.f32.mrb[39].mxu1 }
 0x9fd   : > { %v4835_v23 = vpack.i.bf16 %v5882_v15, %v5876_v28 }
 0xa09   : > { %v4723_v24 = vpop.f32.mrb[40].mxu1 }
 0xa0a   : > { %v2439_v11 = vpop.f32.mrb[41].mxu1  ;;  %v2460_v26 = vmul.f32 0.17677669, %v4723_v24 }
 0xa0b   : > { %v2458_v61 = vmul.f32 0.17677669, %v2439_v11  ;;  %v4724_v10 = vpop.f32.mrb[42].mxu1 }
 0xa0c   : > { %v2442_v9 = vpop.f32.mrb[43].mxu1  ;;  %v2461_v41 = vmul.f32 0.17677669, %v4724_v10  ;;  %v2480_v37 = vsel %vm1247_vm0, %v2460_v26, -inf }
 0xa0d   : > { %v2459_v39 = vmul.f32 0.17677669, %v2442_v9  ;;  %v2474_v42 = vsel %vm1247_vm0, %v2458_v61, -inf }
 0xa0e   : > { %2475 = vmax.xlane.f32.xlu0 %v2474_v42  ;;  %v2483_v29 = vsel %vm1247_vm0, %v2461_v41, -inf }
 0xa0f   : > { %v2477_v57 = vsel %vm1247_vm0, %v2459_v39, -inf }
 0xa10   : > { %2478 = vmax.xlane.f32.xlu1 %v2477_v57 }
 0xa12   : > { %2481 = vmax.xlane.f32.xlu0 %v2480_v37 }
 0xa14   : > { %2484 = vmax.xlane.f32.xlu1 %v2483_v29 }
 0xa7f   : > { %v2464_v35 = vpop.xlane.xlu0 %2463 }
 0xa80   : > { %v2486_v4 = vsub.f32 %v2454_v58, %v2464_v35 }
 0xa81   : > { %v2467_v7 = vpop.xlane.xlu1 %2466 }
 0xa82   : > { %v2494_v50 = vmul.f32 1.442695, %v2486_v4  ;;  %v2487_v6 = vsub.f32 %v2455_v44, %v2467_v7 }
 0xa83   : > { %v2470_v52 = vpop.xlane.xlu0 %2469 }
 0xa84   : > { %5087 = vpow2.f32 %v2494_v50  ;;  %v2496_v48 = vmul.f32 1.442695, %v2487_v6  ;;  %v2488_v24 = vsub.f32 %v2456_v2, %v2470_v52 }
 0xa86   : > { %5089 = vpow2.f32 %v2496_v48  ;;  %v2498_v11 = vmul.f32 1.442695, %v2488_v24 }
 0xa87   : > { %v2473_v10 = vpop.xlane.xlu0 %2472 }
 0xa88   : > { %5091 = vpow2.f32 %v2498_v11  ;;  %v2489_v9 = vsub.f32 %v2457_v25, %v2473_v10 }
 0xa8a   : > { %v2500_v42 = vmul.f32 1.442695, %v2489_v9 }
 0xa8c   : > { %5093 = vpow2.f32 %v2500_v42 }
 0xa8e   : > { %v5088_v57 = vpop.eup %5087 }
 0xa8f   : > { %v2510_v37 = vsel %vm1247_vm0, %v5088_v57, 0.0 }
 0xa90   : > { %v5090_v29 = vpop.eup %5089  ;;  %2511 = vadd.xlane.f32.xlu0 %v2510_v37 }
 0xa91   : > { %v2513_v58 = vsel %vm1247_vm0, %v5090_v29, 0.0 }
 0xa92   : > { %v5892_v35 = vpop.eup %5091  ;;  %2514 = vadd.xlane.f32.xlu1 %v2513_v58 }
 0xa93   : > { %v2516_v2 = vsel %vm1247_vm0, %v5892_v35, 0.0 }
 0xa94   : > { %2517 = vadd.xlane.f32.xlu0 %v2516_v2 }
 0xa96   : > { %v5896_v44 = vpop.eup %5093 }
 0xa97   : > { %v2519_v25 = vsel %vm1247_vm0, %v5896_v44, 0.0 }
 0xa98   : > { %2520 = vadd.xlane.f32.xlu1 %v2519_v25 }
 0xa9b   : > { %v2476_v4 = vpop.xlane.xlu0 %2475 }
 0xa9c   : > { %v2490_v7 = vsub.f32 %v2458_v61, %v2476_v4 }
 0xa9d   : > { %v2479_v61 = vpop.xlane.xlu1 %2478 }
 0xa9e   : > { %v2502_v52 = vmul.f32 1.442695, %v2490_v7  ;;  %v2491_v37 = vsub.f32 %v2459_v39, %v2479_v61 }
 0xa9f   : > { %v2482_v50 = vpop.xlane.xlu0 %2481 }
 0xaa0   : > { %v2492_v6 = vsub.f32 %v2460_v26, %v2482_v50  ;;  %v2504_v58 = vmul.f32 1.442695, %v2491_v37 }
 0xaa1   : > { %v2485_v9 = vpop.xlane.xlu1 %2484 }
 0xaa2   : > { %v2506_v48 = vmul.f32 1.442695, %v2492_v6  ;;  %v2493_v42 = vsub.f32 %v2461_v41, %v2485_v9 }
 0xaa4   : > { %5095 = vpow2.f32 %v2506_v48 }
 0xaa5   : > { %5097 = vpow2.f32 %v2502_v52 }
 0xaa9   : > { %2556 = vrot.lane.b32.xlu1 %v5512_v63, %s5218_s23  ;;  %v2508_v63 = vmul.f32 1.442695, %v2493_v42 }
 0xaab   : > { %5099 = vpow2.f32 %v2508_v63 }
 0xaac   : > { %5101 = vpow2.f32 %v2504_v58  ;;  %v4887_v58 = vld [vmem:[%s5322_s27] sm:$0xff]  }
 0xaad   : > { %2615 = vrot.lane.b32.xlu1 %v5530_v21, %s5218_s23 }
 0xaae   : > { %v5904_v24 = vpop.eup %5095 }
 0xaaf   : > { %v2528_v11 = vsel %vm1247_vm0, %v5904_v24, 0.0  ;;  %v5908_v10 = vpop.eup %5097 }
 0xab0   : > { %2529 = vadd.xlane.f32.xlu0 %v2528_v11  ;;  %v2522_v26 = vsel %vm1247_vm0, %v5908_v10, 0.0 }
 0xab4   : > { %2523 = vadd.xlane.f32.xlu0 %v2522_v26 }
 0xab5   : > { %v5100_v21 = vpop.eup %5099 }
 0xab6   : > { %v2531_v2 = vsel %vm1247_vm0, %v5100_v21, 0.0  ;;  %v5102_v25 = vpop.eup %5101 }
 0xab7   : > { %v2525_v39 = vsel %vm1247_vm0, %v5102_v25, 0.0 }
 0xaca   : > { %2554 = vrot.lane.b32.xlu0 %v5514_v1, %s5218_s23 }
 0xace   : > { %4796 = vrot.lane.b32.xlu0 %v4795_v56, %s5218_s23 }
 0xad1   : > { %2532 = vadd.xlane.f32.xlu1 %v2531_v2  ;;  %v4888_v2 = vld [vmem:[%s5322_s27 + $0x8] sm:$0xff]  }
 0xad2   : > { %4806 = vrot.lane.b32.xlu0 %v4805_v46, %s5217_s3 }
 0xad5   : > { %2526 = vadd.xlane.f32.xlu1 %v2525_v39  ;;  %v4893_v39 = vld [vmem:[%s5322_s27 + $0x30] sm:$0xff]  }
 0xae6   : > { %2617 = vrot.lane.b32.xlu1 %v5528_v19, %s5218_s23 }
 0xaea   : > { %4801 = vrot.lane.b32.xlu1 %v4800_v49, %s5218_s23 }
 0xaee   : > { %4811 = vrot.lane.b32.xlu1 %v4810_v33, %s5217_s3 }
 0xb1d   : > { %v2512_v1 = vpop.xlane.xlu0 %2511 }
 0xb1e   : > { %5103 = vrcp.f32 %v2512_v1  ;;  %v4894_v1 = vld [vmem:[%s5322_s27 + $0x38] sm:$0xff]  }
 0xb1f   : > { %v2515_v31 = vpop.xlane.xlu1 %2514 }
 0xb20   : > { %5105 = vrcp.f32 %v2515_v31 }
 0xb21   : > { %v2518_v60 = vpop.xlane.xlu0 %2517 }
 0xb25   : > { %v2521_v54 = vpop.xlane.xlu1 %2520 }
 0xb26   : > { %5107 = vrcp.f32 %v2521_v54 }
 0xb27   : > { %5109 = vrcp.f32 %v2518_v60 }
 0xb28   : > { %v5104_v56 = vpop.eup %5103 }
 0xb29   : > { %v2557_v40 = vpop.permute.xlu1 %2556  ;;  %v2542_v46 = vmul.f32 %v5104_v56, %v5088_v57 }
 0xb2a   : > { %v5106_v36 = vpop.eup %5105 }
 0xb2b   : > { %v2543_v19 = vmul.f32 %v5106_v36, %v5090_v29 }
 0xb2d   : > { %v2616_v41 = vpop.permute.xlu1 %2615  ;;  %v2550_v4 = vpack.c.bf16 %v2543_v19, %v2542_v46 }
 0xb2e   : > { %4733 = vmatprep.subr.bf16.mxu1 %v2616_v41 }
 0xb2f   : > { %4729 = vmatprep.mubr.msk.bf16.mxu0 %vm1247_vm0, %v2550_v4  ;;  %4734 = vmatpush3.bf16.msra.mxu1 %v2616_v41 }
 0xb30   : > { %v5108_v55 = vpop.eup %5107 }
 0xb31   : > { %v5110_v33 = vpop.eup %5109  ;;  %v2545_v7 = vmul.f32 %v5108_v55, %v5896_v44 }
 0xb32   : > { %v2544_v57 = vmul.f32 %v5110_v33, %v5892_v35 }
 0xb34   : > { %v2551_v29 = vpack.c.bf16 %v2545_v7, %v2544_v57 }
 0xb3d   : > { %v2530_v47 = vpop.xlane.xlu0 %2529 }
 0xb41   : > { %v2524_v49 = vpop.xlane.xlu0 %2523 }
 0xb45   : > { %v2555_v43 = vpop.permute.xlu0 %2554 }
 0xb46   : > { %4725 = vmatprep.subr.bf16.mxu0 %v2555_v43 }
 0xb47   : > { %4726 = vmatpush3.bf16.msra.mxu0 %v2555_v43 }
 0xb48   : > { %4727 = vmatprep.subr.bf16.mxu0 %v2557_v40 }
 0xb49   : > { %v4797_v53 = vpop.permute.xlu0 %4796 }
 0xb4a   : > { %v4799_v12 = vunpack.i.h.bf16 %v4797_v53  ;;  %v4798_v38 = vunpack.i.l.bf16 %v4797_v53 }
 0xb4b   : > { %4728 = vmatpush3.bf16.msra.mxu0 %v2557_v40 }
 0xb4c   : > { %4741 = vmatprep.subr.bf16.mxu0 %v4887_v58  ;;  %v2773_v55 = vsel %vm1247_vm0, %v5648_v0, %v4799_v12  ;;  %v2772_v43 = vsel %vm1247_vm0, %v5644_v59, %v4798_v38 }
 0xb4e   : > { %4730 = vmatmul.mubr.msk.bf16.vlgmr.msra.gmra.mrb[36].mxu0 %vm1247_vm0, %v2551_v29 }
 0xb4f   : > { %4742 = vmatpush3.bf16.msra.mxu0 %v4887_v58 }
 0xb50   : > { %4743 = vmatprep.subr.bf16.mxu0 %v4888_v2 }
 0xb53   : > { %4744 = vmatpush3.bf16.msra.mxu0 %v4888_v2 }
 0xb5e   : > { %v2533_v50 = vpop.xlane.xlu1 %2532 }
 0xb5f   : > { %5111 = vrcp.f32 %v2533_v50 }
 0xb60   : > { %5113 = vrcp.f32 %v2524_v49 }
 0xb61   : > { %5115 = vrcp.f32 %v2530_v47 }
 0xb62   : > { %v2527_v6 = vpop.xlane.xlu1 %2526 }
 0xb63   : > { %5117 = vrcp.f32 %v2527_v6 }
 0xb66   : > { %v2618_v52 = vpop.permute.xlu1 %2617 }
 0xb67   : > { %4735 = vmatprep.subr.bf16.mxu1 %v2618_v52 }
 0xb68   : > { %4736 = vmatpush3.bf16.msra.mxu1 %v2618_v52 }
 0xb69   : > { %v5112_v48 = vpop.eup %5111 }
 0xb6a   : > { %v5114_v44 = vpop.eup %5113  ;;  %v2549_v61 = vmul.f32 %v5112_v48, %v5100_v21  ;;  %v4891_v21 = vld [vmem:[%s5322_s27 + $0x20] sm:$0xff]   ;;  %v4802_v3 = vpop.permute.xlu1 %4801 }
 0xb6b   : > { %v5116_v11 = vpop.eup %5115  ;;  %v2546_v26 = vmul.f32 %v5114_v44, %v5908_v10  ;;  %v4889_v10 = vld [vmem:[%s5322_s27 + $0x10] sm:$0xff]   ;;  %v4804_v60 = vunpack.i.h.bf16 %v4802_v3  ;;  %v4803_v47 = vunpack.i.l.bf16 %v4802_v3 }
 0xb6c   : > { %v2548_v42 = vmul.f32 %v5116_v11, %v5904_v24  ;;  %4745 = vmatprep.subr.bf16.mxu0 %v4889_v10  ;;  %v4890_v24 = vld [vmem:[%s5322_s27 + $0x18] sm:$0xff]  }
 0xb6d   : > { %v5118_v35 = vpop.eup %5117  ;;  %4746 = vmatpush3.bf16.msra.mxu0 %v4889_v10  ;;  %v2775_v7 = vsel %vm1247_vm0, %v5646_v62, %v4804_v60  ;;  %v2774_v57 = vsel %vm1247_vm0, %v5642_v51, %v4803_v47 }
 0xb6e   : > { %v2547_v9 = vmul.f32 %v5118_v35, %v5102_v25  ;;  %v2553_v63 = vpack.c.bf16 %v2549_v61, %v2548_v42  ;;  %4747 = vmatprep.subr.bf16.mxu0 %v4890_v24  ;;  %v4892_v25 = vld [vmem:[%s5322_s27 + $0x28] sm:$0xff]  }
 0xb70   : > { %v2552_v37 = vpack.c.bf16 %v2547_v9, %v2546_v26 }
 0xb71   : > { %4748 = vmatpush3.bf16.msra.mxu0 %v4890_v24 }
 0xb72   : > { %4737 = vmatprep.mubr.msk.bf16.mxu1 %vm1247_vm0, %v2552_v37  ;;  %4749 = vmatprep.subr.bf16.mxu0 %v4891_v21 }
 0xb73   : > { %4738 = vmatmul.mubr.msk.bf16.vlgmr.msra.gmra.mrb[44].mxu1 %vm1247_vm0, %v2553_v63 }
 0xb74   : > { %3262 = vmatprep.mubr.bf16.mxu1 %v5215_v27 }
 0xb75   : > { %4750 = vmatpush3.bf16.msra.mxu0 %v4891_v21 }
 0xb76   : > { %4751 = vmatprep.subr.bf16.mxu0 %v4892_v25 }
 0xb79   : > { %4752 = vmatpush3.bf16.msra.mxu0 %v4892_v25 }
 0xb7a   : > { %4753 = vmatprep.subr.bf16.mxu0 %v4893_v39 }
 0xb7d   : > { %4754 = vmatpush3.bf16.msra.mxu0 %v4893_v39 }
 0xb7e   : > { %4755 = vmatprep.subr.bf16.mxu0 %v4894_v1 }
 0xb81   : > { %4756 = vmatpush3.bf16.msra.mxu0 %v4894_v1 }
 0xc21   : > { %v4731_v31 = vpop.f32.mrb[36].mxu0 }
 0xc22   : > { %v2600_v54 = vpop.f32.mrb[37].mxu0 }
 0xc23   : > { %v4732_v56 = vpop.f32.mrb[38].mxu0 }
 0xc24   : > { %v4820_v40 = vpack.i.bf16 %v4732_v56, %v4731_v31  ;;  %v2603_v36 = vpop.f32.mrb[39].mxu0 }
 0xc25   : > { %v4815_v46 = vpack.i.bf16 %v2603_v36, %v2600_v54 }
 0xc26   : > { %4821 = vrot.lane.b32.xlu1 %v4820_v40, %s5216_s21 }
 0xc27   : > { %4816 = vrot.lane.b32.xlu0 %v4815_v46, %s5216_s21 }
 0xc2a   : > { %4831 = vrot.lane.b32.xlu1 %v4830_v8, %s5218_s23 }
 0xc2b   : > { %4826 = vrot.lane.b32.xlu0 %v4825_v22, %s5218_s23  ;;  %v4812_v22 = vpop.permute.xlu1 %4811 }
 0xc2c   : > { %v4814_v28 = vunpack.i.h.bf16 %v4812_v22  ;;  %v4813_v15 = vunpack.i.l.bf16 %v4812_v22 }
 0xc2e   : > { %4841 = vrot.lane.b32.xlu1 %v4840_v13, %s5217_s3  ;;  %v4807_v13 = vpop.permute.xlu0 %4806  ;;  %v2783_v52 = vsel %vm2780_vm1, %v2774_v57, %v4813_v15  ;;  %v2784_v48 = vsel %vm2780_vm1, %v2775_v7, %v4814_v28  ;;  %v5200_v7 = vld [vmem:[#allocation2 + $0x8] sm:$0xff] }
 0xc2f   : > { %4836 = vrot.lane.b32.xlu0 %v4835_v23, %s5217_s3  ;;  %v4809_v23 = vunpack.i.h.bf16 %v4807_v13  ;;  %v4808_v49 = vunpack.i.l.bf16 %v4807_v13  ;;  %v4281_v13 = vld [vmem:[%s6536_s6] ss:$0 sm:$0xff] }
 0xc31   : > { %v2781_v59 = vsel %vm2780_vm1, %v2772_v43, %v4808_v49  ;;  %v2782_v11 = vsel %vm2780_vm1, %v2773_v55, %v4809_v23  ;;  %v5199_v55 = vld [vmem:[#allocation2] sm:$0xff] }
 0xc46   : > { %v4739_v19 = vpop.f32.mrb[44].mxu1 }
 0xc47   : > { %v2661_v41 = vpop.f32.mrb[45].mxu1 }
 0xc48   : > { %v4740_v4 = vpop.f32.mrb[46].mxu1 }
 0xc49   : > { %v4850_v14 = vpack.i.bf16 %v4740_v4, %v4739_v19  ;;  %v2664_v20 = vpop.f32.mrb[47].mxu1 }
 0xc4a   : > { %v4845_v8 = vpack.i.bf16 %v2664_v20, %v2661_v41 }
 0xc4b   : > { %4851 = vrot.lane.b32.xlu1 %v4850_v14, %s5216_s21 }
 0xc4c   : > { %4846 = vrot.lane.b32.xlu0 %v4845_v8, %s5216_s21 }
 0xc98   : > { %v4822_v33 = vpop.permute.xlu1 %4821 }
 0xc99   : > { %v4824_v29 = vunpack.i.h.bf16 %v4822_v33  ;;  %v4823_v50 = vunpack.i.l.bf16 %v4822_v33  ;;  %v4817_v6 = vpop.permute.xlu0 %4816 }
 0xc9a   : > { %v4819_v0 = vunpack.i.h.bf16 %v4817_v6  ;;  %v4818_v44 = vunpack.i.l.bf16 %v4817_v6 }
 0xc9b   : > { %v2792_v35 = vsel %vm2789_vm2, %v2783_v52, %v4823_v50  ;;  %v2793_v62 = vsel %vm2789_vm2, %v2784_v48, %v4824_v29  ;;  %v5201_v29 = vld [vmem:[#allocation2 + $0x10] sm:$0xff]  ;;  %v5202_v52 = vld [vmem:[#allocation2 + $0x18] sm:$0xff] }
 0xc9c   : > { %v2799_v61 = vpack.c.bf16 %v2793_v62, %v2792_v35  ;;  %v2790_v51 = vsel %vm2789_vm2, %v2781_v59, %v4818_v44  ;;  %v2791_v26 = vsel %vm2789_vm2, %v2782_v11, %v4819_v0  ;;  %v4832_v42 = vpop.permute.xlu1 %4831 }
 0xc9d   : > { %v2798_v9 = vpack.c.bf16 %v2791_v26, %v2790_v51  ;;  %v4827_v37 = vpop.permute.xlu0 %4826  ;;  %v4834_v58 = vunpack.i.h.bf16 %v4832_v42  ;;  %v4833_v2 = vunpack.i.l.bf16 %v4832_v42  ;;  %v5204_v42 = vld [vmem:[#allocation2 + $0x28] sm:$0xff] }
 0xc9e   : > { %v4829_v24 = vunpack.i.h.bf16 %v4827_v37  ;;  %v4828_v21 = vunpack.i.l.bf16 %v4827_v37 }
 0xc9f   : > { %4757 = vmatprep.mubr.bf16.mxu0 %v2798_v9  ;;  %v2779_v54 = vsel %vm1247_vm0, %v5658_v45, %v4834_v58  ;;  %v2778_v56 = vsel %vm1247_vm0, %v5654_v16, %v4833_v2  ;;  %v5206_v2 = vld [vmem:[#allocation2 + $0x38] sm:$0xff] }
 0xca0   : > { %4758 = vmatmul.mubr.bf16.vlgmr.msra.gmra.mrb[40].mxu0 %v2799_v61  ;;  %v4842_v63 = vpop.permute.xlu1 %4841  ;;  %v2777_v36 = vsel %vm1247_vm0, %v5660_v18, %v4829_v24  ;;  %v2776_v46 = vsel %vm1247_vm0, %v5656_v17, %v4828_v21  ;;  %v5203_v61 = vld [vmem:[#allocation2 + $0x20] sm:$0xff] }
 0xca1   : > { %v4837_v10 = vpop.permute.xlu0 %4836  ;;  %v4844_v25 = vunpack.i.h.bf16 %v4842_v63  ;;  %v4843_v39 = vunpack.i.l.bf16 %v4842_v63  ;;  %v5205_v63 = vld [vmem:[#allocation2 + $0x30] sm:$0xff] }
 0xca2   : > { %v4839_v1 = vunpack.i.h.bf16 %v4837_v10  ;;  %v4838_v31 = vunpack.i.l.bf16 %v4837_v10  ;;  %v4895_v24 = vld [vmem:[%s5350_s4] ss:$16 sps:$4 sm:$0xff]   ;;  %v4897_v21 = vld [vmem:[%s5350_s4 + $0x4] ss:$16 sps:$4 sm:$0xff]  }
 0xca3   : > { %v2787_v14 = vsel %vm2780_vm1, %v2778_v56, %v4843_v39  ;;  %v2788_v20 = vsel %vm2780_vm1, %v2779_v54, %v4844_v25  ;;  %v4898_v25 = vld [vmem:[%s5350_s4 + $0x8] ss:$16 sps:$4 sm:$0xff]   ;;  %v4900_v39 = vld [vmem:[%s5350_s4 + $0xc] ss:$16 sps:$4 sm:$0xff]   ;;  %3230 = vmatprep.subr.bf16.mxu1 %v4897_v21  ;;  %v4901_v54 = vld [vmem:[%s5350_s4 + $0x20] ss:$16 sps:$4 sm:$0xff]  }
 0xca4   : > { %v2785_v3 = vsel %vm2780_vm1, %v2776_v46, %v4838_v31  ;;  %v2786_v16 = vsel %vm2780_vm1, %v2777_v36, %v4839_v1  ;;  %v4903_v1 = vld [vmem:[%s5350_s4 + $0x24] ss:$16 sps:$4 sm:$0xff]   ;;  %v4906_v31 = vld [vmem:[%s5350_s4 + $0x2c] ss:$16 sps:$4 sm:$0xff]   ;;  %3303 = vmatprep.subr.bf16.mxu0 %v4900_v39  ;;  %3231 = vmatpush1.bf16.msra.mxu1 %v4895_v24  ;;  %v4904_v56 = vld [vmem:[%s5350_s4 + $0x28] ss:$16 sps:$4 sm:$0xff]  }
 0xca5   : > { %3304 = vmatpush1.bf16.msra.mxu0 %v4898_v25  ;;  %3232 = vmatprep.subr.bf16.mxu1 %v4903_v1 }
 0xca6   : > { %3305 = vmatprep.subr.bf16.mxu0 %v4906_v31 }
 0xca8   : > { %3233 = vmatpush1.bf16.msra.mxu1 %v4901_v54 }
 0xca9   : > { %3306 = vmatpush1.bf16.msra.mxu0 %v4904_v56 }
 0xcbd   : > { %v4852_v40 = vpop.permute.xlu1 %4851 }
 0xcbe   : > { %v4854_v19 = vunpack.i.h.bf16 %v4852_v40  ;;  %v4853_v41 = vunpack.i.l.bf16 %v4852_v40  ;;  %v4847_v4 = vpop.permute.xlu0 %4846 }
 0xcbf   : > { %v4849_v8 = vunpack.i.h.bf16 %v4847_v4  ;;  %v4848_v45 = vunpack.i.l.bf16 %v4847_v4 }
 0xcc0   : > { %v2796_v53 = vsel %vm2789_vm2, %v2787_v14, %v4853_v41  ;;  %v2797_v18 = vsel %vm2789_vm2, %v2788_v20, %v4854_v19 }
 0xcc1   : > { %v2794_v17 = vsel %vm2789_vm2, %v2785_v3, %v4848_v45  ;;  %v2795_v22 = vsel %vm2789_vm2, %v2786_v16, %v4849_v8  ;;  %v2801_v12 = vpack.c.bf16 %v2797_v18, %v2796_v53 }
 0xcc2   : > { %v2800_v38 = vpack.c.bf16 %v2795_v22, %v2794_v17 }
 0xcc4   : > { %4761 = vmatprep.mubr.bf16.mxu0 %v2800_v38  ;;  %v4912_v38 = vld [vmem:[%s5350_s4 + $0x4c] ss:$16 sps:$4 sm:$0xff]  }
 0xcc5   : > { %4762 = vmatmul.mubr.bf16.gmra.mrb[44].mxu0 %v2801_v12  ;;  %v4909_v12 = vld [vmem:[%s5350_s4 + $0x44] ss:$16 sps:$4 sm:$0xff]   ;;  %3307 = vmatprep.subr.bf16.mxu0 %v4912_v38 }
 0xcc6   : > { %3335 = vmatprep.mubr.bf16.mxu0 %v5215_v27  ;;  %3234 = vmatprep.subr.bf16.mxu1 %v4909_v12 }
 0xd73   : > { %v4759_v60 = vpop.f32.mrb[40].mxu0 }
 0xd74   : > { %v2890_v47 = vpop.f32.mrb[41].mxu0  ;;  %v2899_v49 = vadd.f32 %v4759_v60, %v4281_v13  ;;  %v4910_v60 = vld [vmem:[%s5350_s4 + $0x48] ss:$16 sps:$4 sm:$0xff]  }
 0xd75   : > { %v2891_v28 = vadd.f32 %v4281_v13, %v2890_v47  ;;  %v4760_v15 = vpop.f32.mrb[42].mxu0  ;;  %3308 = vmatpush1.bf16.msra.mxu0 %v4910_v60  ;;  %v4915_v47 = vld [vmem:[%s5350_s4 + $0x64] ss:$16 sps:$4 sm:$0xff]  }
 0xd76   : > { %v2893_v23 = vpop.f32.mrb[43].mxu0  ;;  %v6014_v50 = vadd.f32 %v5201_v29, %v2899_v49  ;;  %v2902_v6 = vadd.f32 %v4760_v15, %v4281_v13  ;;  %v4913_v15 = vld [vmem:[%s5350_s4 + $0x60] ss:$16 sps:$4 sm:$0xff]   ;;  %v4921_v49 = vld [vmem:[%s5350_s4 + $0x84] ss:$16 sps:$4 sm:$0xff]  }
 0xd77   : > { %v6009_v43 = vadd.f32 %v5199_v55, %v2891_v28  ;;  %v2894_v33 = vadd.f32 %v4281_v13, %v2893_v23  ;;  %v4918_v28 = vld [vmem:[%s5350_s4 + $0x6c] ss:$16 sps:$4 sm:$0xff]   ;;  %v4916_v23 = vld [vmem:[%s5350_s4 + $0x68] ss:$16 sps:$4 sm:$0xff]   ;;  %v4927_v29 = vld [vmem:[%s5350_s4 + $0xa4] ss:$16 sps:$4 sm:$0xff]  }
 0xd78   : > { %v6018_v48 = vadd.f32 %v5202_v52, %v2902_v6  ;;  %3309 = vmatprep.subr.bf16.mxu0 %v4918_v28  ;;  %v4924_v55 = vld [vmem:[%s5350_s4 + $0x8c] ss:$16 sps:$4 sm:$0xff]   ;;  %v4925_v52 = vld [vmem:[%s5350_s4 + $0xa0] ss:$16 sps:$4 sm:$0xff]  }
 0xd79   : > { %v6011_v57 = vadd.f32 %v5200_v7, %v2894_v33  ;;  %2929 = vadd.xlane.f32.xlu0 %v6009_v43  ;;  %3310 = vmatpush1.bf16.msra.mxu0 %v4916_v23  ;;  %v4919_v33 = vld [vmem:[%s5350_s4 + $0x80] ss:$16 sps:$4 sm:$0xff]   ;;  %v4922_v7 = vld [vmem:[%s5350_s4 + $0x88] ss:$16 sps:$4 sm:$0xff]   ;;  %v4930_v6 = vld [vmem:[%s5350_s4 + $0xac] ss:$16 sps:$4 sm:$0xff]  }
 0xd7a   : > { %3311 = vmatprep.subr.bf16.mxu0 %v4924_v55 }
 0xd7b   : > { %2931 = vadd.xlane.f32.xlu1 %v6011_v57 }
 0xd7d   : > { %2933 = vadd.xlane.f32.xlu0 %v6014_v50  ;;  %3312 = vmatpush1.bf16.msra.mxu0 %v4922_v7 }
 0xd7e   : > { %3313 = vmatprep.subr.bf16.mxu0 %v4930_v6 }
 0xd81   : > { %2935 = vadd.xlane.f32.xlu0 %v6018_v48 }
 0xd98   : > { %v4763_v0 = vpop.f32.mrb[44].mxu0 }
 0xd99   : > { %v2906_v44 = vpop.f32.mrb[45].mxu0  ;;  %v2915_v62 = vadd.f32 %v4763_v0, %v4281_v13  ;;  %v4928_v0 = vld [vmem:[%s5350_s4 + $0xa8] ss:$16 sps:$4 sm:$0xff]  }
 0xd9a   : > { %v2907_v59 = vadd.f32 %v4281_v13, %v2906_v44  ;;  %v4764_v11 = vpop.f32.mrb[46].mxu0  ;;  %3314 = vmatpush1.bf16.msra.mxu0 %v4928_v0  ;;  %v4933_v44 = vld [vmem:[%s5350_s4 + $0xc4] ss:$16 sps:$4 sm:$0xff]  }
 0xd9b   : > { %v2909_v35 = vpop.f32.mrb[47].mxu0  ;;  %v2918_v9 = vadd.f32 %v4764_v11, %v4281_v13  ;;  %v6026_v58 = vadd.f32 %v5205_v63, %v2915_v62  ;;  %v4934_v62 = vld [vmem:[%s5350_s4 + $0xc8] ss:$16 sps:$4 sm:$0xff]  }
 0xd9c   : > { %v6021_v51 = vadd.f32 %v5203_v61, %v2907_v59  ;;  %v2910_v26 = vadd.f32 %v4281_v13, %v2909_v35  ;;  %v4907_v13 = vld [vmem:[%s5350_s4 + $0x40] ss:$16 sps:$4 sm:$0xff]   ;;  %v4936_v59 = vld [vmem:[%s5350_s4 + $0xcc] ss:$16 sps:$4 sm:$0xff]   ;;  %v4940_v63 = vld [vmem:[%s5350_s4 + $0xe8] ss:$16 sps:$4 sm:$0xff]  }
 0xd9d   : > { %v6029_v10 = vadd.f32 %v5206_v2, %v2918_v9  ;;  %3235 = vmatpush1.bf16.msra.mxu1 %v4907_v13  ;;  %v4931_v35 = vld [vmem:[%s5350_s4 + $0xc0] ss:$16 sps:$4 sm:$0xff]   ;;  %3315 = vmatprep.subr.bf16.mxu0 %v4936_v59  ;;  %v4942_v2 = vld [vmem:[%s5350_s4 + $0xec] ss:$16 sps:$4 sm:$0xff]  }
 0xd9e   : > { %v6023_v37 = vadd.f32 %v5204_v42, %v2910_v26  ;;  %2937 = vadd.xlane.f32.xlu0 %v6021_v51  ;;  %3236 = vmatprep.subr.bf16.mxu1 %v4915_v47  ;;  %v4939_v26 = vld [vmem:[%s5350_s4 + $0xe4] ss:$16 sps:$4 sm:$0xff]   ;;  %v4937_v42 = vld [vmem:[%s5350_s4 + $0xe0] ss:$16 sps:$4 sm:$0xff]  }
 0xd9f   : > { %6537 = vst [vmem:[#allocation4_spill] sm:$0xff] %v6029_v10  ;;  %3316 = vmatpush1.bf16.msra.mxu0 %v4934_v62 }
 0xda0   : > { %2939 = vadd.xlane.f32.xlu1 %v6023_v37  ;;  %3317 = vmatprep.subr.bf16.mxu0 %v4942_v2 }
 0xda1   : > { %3237 = vmatpush1.bf16.msra.mxu1 %v4913_v15  ;;  %v4290_v15 = vld [vmem:[%s610_s25] ss:$0 sm:$0xff] }
 0xda2   : > { %2941 = vadd.xlane.f32.xlu0 %v6026_v58  ;;  %3238 = vmatprep.subr.bf16.mxu1 %v4921_v49 }
 0xda3   : > { %3318 = vmatpush1.bf16.msra.mxu0 %v4940_v63 }
 0xda4   : > { %2943 = vadd.xlane.f32.xlu1 %v6029_v10 }
 0xda5   : > { %3239 = vmatpush1.bf16.msra.mxu1 %v4919_v33 }
 0xda6   : > { %3240 = vmatprep.subr.bf16.mxu1 %v4927_v29  ;;  %v4291_v29 = vld [vmem:[%s6538_s29] ss:$0 sm:$0xff] }
 0xda9   : > { %3241 = vmatpush1.bf16.msra.mxu1 %v4925_v52 }
 0xdaa   : > { %3242 = vmatprep.subr.bf16.mxu1 %v4933_v44 }
 0xdad   : > { %3243 = vmatpush1.bf16.msra.mxu1 %v4931_v35 }
 0xdae   : > { %3244 = vmatprep.subr.bf16.mxu1 %v4939_v26 }
 0xdb1   : > { %3245 = vmatpush1.bf16.msra.mxu1 %v4937_v42 }
 0xe06   : > { %v2930_v40 = vpop.xlane.xlu0 %2929 }
 0xe07   : > { %v2945_v36 = vmul.f32 0.0078125, %v2930_v40 }
 0xe08   : > { %v2932_v46 = vpop.xlane.xlu1 %2931 }
 0xe09   : > { %v6042_v19 = vsub.f32 %v6009_v43, %v2945_v36  ;;  %v2946_v41 = vmul.f32 0.0078125, %v2932_v46 }
 0xe0a   : > { %v2934_v4 = vpop.xlane.xlu0 %2933 }
 0xe0b   : > { %v6045_v14 = vsub.f32 %v6011_v57, %v2946_v41  ;;  %v2947_v20 = vmul.f32 0.0078125, %v2934_v4  ;;  %v2961_v8 = vmul.f32 %v6042_v19, %v6042_v19 }
 0xe0d   : > { %v6050_v45 = vsub.f32 %v6014_v50, %v2947_v20  ;;  %2969 = vadd.xlane.f32.xlu0 %v2961_v8  ;;  %v2962_v3 = vmul.f32 %v6045_v14, %v6045_v14 }
 0xe0e   : > { %v2936_v16 = vpop.xlane.xlu0 %2935 }
 0xe0f   : > { %v2948_v53 = vmul.f32 0.0078125, %v2936_v16  ;;  %2971 = vadd.xlane.f32.xlu1 %v2962_v3  ;;  %v2963_v18 = vmul.f32 %v6050_v45, %v6050_v45 }
 0xe11   : > { %v6057_v17 = vsub.f32 %v6018_v48, %v2948_v53  ;;  %2973 = vadd.xlane.f32.xlu0 %v2963_v18 }
 0xe13   : > { %v2964_v22 = vmul.f32 %v6057_v17, %v6057_v17 }
 0xe15   : > { %2975 = vadd.xlane.f32.xlu1 %v2964_v22 }
 0xe2b   : > { %v2938_v11 = vpop.xlane.xlu0 %2937 }
 0xe2c   : > { %v2949_v61 = vmul.f32 0.0078125, %v2938_v11 }
 0xe2d   : > { %v2940_v9 = vpop.xlane.xlu1 %2939 }
 0xe2e   : > { %v6086_v24 = vsub.f32 %v6021_v51, %v2949_v61  ;;  %v2950_v21 = vmul.f32 0.0078125, %v2940_v9 }
 0xe2f   : > { %v2942_v25 = vpop.xlane.xlu0 %2941 }
 0xe30   : > { %v6089_v39 = vsub.f32 %v6023_v37, %v2950_v21  ;;  %v2951_v1 = vmul.f32 0.0078125, %v2942_v25  ;;  %v2965_v31 = vmul.f32 %v6086_v24, %v6086_v24 }
 0xe31   : > { %v2944_v54 = vpop.xlane.xlu1 %2943 }
 0xe32   : > { %v6094_v56 = vsub.f32 %v6026_v58, %v2951_v1  ;;  %v2952_v40 = vmul.f32 0.0078125, %v2944_v54  ;;  %2977 = vadd.xlane.f32.xlu0 %v2965_v31  ;;  %v2966_v36 = vmul.f32 %v6089_v39, %v6089_v39 }
 0xe34   : > { %v6099_v46 = vsub.f32 %v6029_v10, %v2952_v40  ;;  %2979 = vadd.xlane.f32.xlu1 %v2966_v36  ;;  %v2967_v41 = vmul.f32 %v6094_v56, %v6094_v56 }
 0xe36   : > { %2981 = vadd.xlane.f32.xlu0 %v2967_v41  ;;  %v2968_v4 = vmul.f32 %v6099_v46, %v6099_v46 }
 0xe38   : > { %2983 = vadd.xlane.f32.xlu1 %v2968_v4 }
 0xe9a   : > { %v2970_v20 = vpop.xlane.xlu0 %2969 }
 0xe9b   : > { %v2985_v8 = vmul.f32 0.0078125, %v2970_v20 }
 0xe9c   : > { %v2972_v3 = vpop.xlane.xlu1 %2971 }
 0xe9d   : > { %v2993_v16 = vadd.f32 1e-05, %v2985_v8  ;;  %v2986_v53 = vmul.f32 0.0078125, %v2972_v3 }
 0xe9e   : > { %v2974_v18 = vpop.xlane.xlu0 %2973 }
 0xe9f   : > { %5119 = vrsqrt.f32 %v2993_v16  ;;  %v2994_v22 = vadd.f32 1e-05, %v2986_v53  ;;  %v2987_v12 = vmul.f32 0.0078125, %v2974_v18 }
 0xea1   : > { %5121 = vrsqrt.f32 %v2994_v22  ;;  %v2995_v38 = vadd.f32 1e-05, %v2987_v12 }
 0xea2   : > { %v2976_v13 = vpop.xlane.xlu1 %2975 }
 0xea3   : > { %5123 = vrsqrt.f32 %v2995_v38  ;;  %v2988_v60 = vmul.f32 0.0078125, %v2976_v13 }
 0xea5   : > { %v2996_v47 = vadd.f32 1e-05, %v2988_v60 }
 0xea7   : > { %5125 = vrsqrt.f32 %v2996_v47 }
 0xea9   : > { %v5120_v28 = vpop.eup %5119 }
 0xeaa   : > { %v3009_v23 = vmul.f32 %v5120_v28, %v6042_v19 }
 0xeab   : > { %v5122_v49 = vpop.eup %5121 }
 0xeac   : > { %v3010_v55 = vmul.f32 %v5122_v49, %v6045_v14  ;;  %v3023_v33 = vmul.f32 %v4290_v15, %v3009_v23  ;;  %v4945_v23 = vld [vmem:[%s5361_s2] sm:$0xff]   ;;  %v4948_v49 = vld [vmem:[%s5361_s2 + $0xc8] sm:$0xff]  }
 0xead   : > { %v5124_v7 = vpop.eup %5123 }
 0xeae   : > { %v3024_v6 = vmul.f32 %v4290_v15, %v3010_v55  ;;  %v3037_v52 = vadd.f32 %v4291_v29, %v3023_v33  ;;  %v3011_v44 = vmul.f32 %v5124_v7, %v6050_v45  ;;  %v4949_v55 = vld [vmem:[%s5361_s2 + $0x8] sm:$0xff]   ;;  %v4951_v7 = vld [vmem:[%s5361_s2 + $0x50] sm:$0xff]  }
 0xeaf   : > { %v4950_v33 = vld [vmem:[%s5361_s2 + $0x88] sm:$0xff]  }
 0xeb0   : > { %v3038_v0 = vadd.f32 %v4291_v29, %v3024_v6  ;;  %v3025_v19 = vmul.f32 %v4290_v15, %v3011_v44  ;;  %v4953_v6 = vld [vmem:[%s5361_s2 + $0x10] sm:$0xff]   ;;  %v4956_v44 = vld [vmem:[%s5361_s2 + $0xd8] sm:$0xff]  }
 0xeb1   : > { %v5126_v59 = vpop.eup %5125 }
 0xeb2   : > { %v3045_v11 = vpack.c.bf16 %v3038_v0, %v3037_v52  ;;  %v3012_v35 = vmul.f32 %v5126_v59, %v6057_v17  ;;  %v3039_v61 = vadd.f32 %v4291_v29, %v3025_v19  ;;  %v4954_v52 = vld [vmem:[%s5361_s2 + $0x90] sm:$0xff]   ;;  %v4955_v0 = vld [vmem:[%s5361_s2 + $0x58] sm:$0xff]   ;;  %v4960_v19 = vld [vmem:[%s5361_s2 + $0xe0] sm:$0xff]  }
 0xeb3   : > { %v4957_v59 = vld [vmem:[%s5361_s2 + $0x18] sm:$0xff]  }
 0xeb4   : > { %3263 = vmatmul.mubr.bf16.vlgmr.msra.gmra.mrb[48].mxu1 %v3045_v11  ;;  %3336 = vmatmul.mubr.bf16.vlgmr.msra.gmra.mrb[48].mxu0 %v3045_v11  ;;  %v3026_v14 = vmul.f32 %v4290_v15, %v3012_v35  ;;  %v4958_v11 = vld [vmem:[%s5361_s2 + $0x98] sm:$0xff]   ;;  %v4959_v35 = vld [vmem:[%s5361_s2 + $0x60] sm:$0xff]  }
 0xeb5   : > { %3272 = vmatprep.mubr.bf16.mxu1 %v5215_v27  ;;  %3345 = vmatprep.mubr.bf16.mxu0 %v5215_v27 }
 0xeb6   : > { %v3040_v62 = vadd.f32 %v4291_v29, %v3026_v14  ;;  %v4961_v14 = vld [vmem:[%s5361_s2 + $0x20] sm:$0xff]  }
 0xeb8   : > { %v3046_v26 = vpack.c.bf16 %v3040_v62, %v3039_v61  ;;  %v4962_v62 = vld [vmem:[%s5361_s2 + $0xa0] sm:$0xff]   ;;  %v4963_v61 = vld [vmem:[%s5361_s2 + $0x68] sm:$0xff]  }
 0xebc   : > { %3273 = vmatmul.mubr.bf16.gmra.mrb[52].mxu1 %v3046_v26  ;;  %3346 = vmatmul.mubr.bf16.gmra.mrb[52].mxu0 %v3046_v26  ;;  %v4964_v26 = vld [vmem:[%s5361_s2 + $0xe8] sm:$0xff]  }
 0xebd   : > { %3282 = vmatprep.mubr.bf16.mxu1 %v5215_v27  ;;  %3355 = vmatprep.mubr.bf16.mxu0 %v5215_v27 }
 0xebf   : > { %v2978_v45 = vpop.xlane.xlu0 %2977 }
 0xec0   : > { %v2989_v9 = vmul.f32 0.0078125, %v2978_v45  ;;  %v4965_v45 = vld [vmem:[%s5361_s2 + $0x28] sm:$0xff]  }
 0xec1   : > { %v2980_v17 = vpop.xlane.xlu1 %2979 }
 0xec2   : > { %v2997_v42 = vadd.f32 1e-05, %v2989_v9  ;;  %v2990_v63 = vmul.f32 0.0078125, %v2980_v17  ;;  %v4966_v9 = vld [vmem:[%s5361_s2 + $0xa8] sm:$0xff]   ;;  %v4967_v17 = vld [vmem:[%s5361_s2 + $0x70] sm:$0xff]  }
 0xec3   : > { %v2982_v2 = vpop.xlane.xlu0 %2981 }
 0xec4   : > { %5127 = vrsqrt.f32 %v2997_v42  ;;  %v2998_v21 = vadd.f32 1e-05, %v2990_v63  ;;  %v2991_v25 = vmul.f32 0.0078125, %v2982_v2  ;;  %v4968_v42 = vld [vmem:[%s5361_s2 + $0xf0] sm:$0xff]  }
 0xec5   : > { %v2984_v1 = vpop.xlane.xlu1 %2983  ;;  %v4969_v63 = vld [vmem:[%s5361_s2 + $0x30] sm:$0xff]  }
 0xec6   : > { %5129 = vrsqrt.f32 %v2998_v21  ;;  %v2999_v31 = vadd.f32 1e-05, %v2991_v25  ;;  %v2992_v54 = vmul.f32 0.0078125, %v2984_v1  ;;  %v4970_v2 = vld [vmem:[%s5361_s2 + $0xb0] sm:$0xff]   ;;  %v4971_v21 = vld [vmem:[%s5361_s2 + $0x78] sm:$0xff]  }
 0xec7   : > { %v4972_v25 = vld [vmem:[%s5361_s2 + $0xf8] sm:$0xff]  }
 0xec8   : > { %5131 = vrsqrt.f32 %v2999_v31  ;;  %v3000_v40 = vadd.f32 1e-05, %v2992_v54  ;;  %v4973_v1 = vld [vmem:[%s5361_s2 + $0x38] sm:$0xff]   ;;  %v770_v54 = vld [vmem:[%s5356_s24] sm:$0xf] }
 0xec9   : > { %v4974_v31 = vld [vmem:[%s5361_s2 + $0xb8] sm:$0xff]  }
 0xeca   : > { %5133 = vrsqrt.f32 %v3000_v40  ;;  %v3064_v40 = vsub.s32 3, %v5482_v30 }
 0xece   : > { %v5128_v36 = vpop.eup %5127 }
 0xecf   : > { %v3013_v41 = vmul.f32 %v5128_v36, %v6086_v24  ;;  %v6165_v36 = vrot.slane %v770_v54, %v960_v5 }
 0xed0   : > { %v5130_v4 = vpop.eup %5129 }
 0xed1   : > { %v3014_v20 = vmul.f32 %v5130_v4, %v6089_v39  ;;  %v3027_v8 = vmul.f32 %v4290_v15, %v3013_v41  ;;  %v6169_v41 = vrot.slane %v770_v54, %v968_v34  ;;  %v6173_v4 = vrot.slane %v770_v54, %v964_v32 }
 0xed2   : > { %v5132_v3 = vpop.eup %5131 }
 0xed3   : > { %v3028_v16 = vmul.f32 %v4290_v15, %v3014_v20  ;;  %v3041_v18 = vadd.f32 %v4291_v29, %v3027_v8  ;;  %v3015_v12 = vmul.f32 %v5132_v3, %v6094_v56  ;;  %v4943_v56 = vld [vmem:[%s5361_s2 + $0x40] sm:$0xff]   ;;  %v6175_v20 = vrot.slane %v770_v54, %v3064_v40 }
 0xed4   : > { %v5134_v53 = vpop.eup %5133  ;;  %4509 = vmatprep.subr.bf16.mxu1 %v4943_v56 }
 0xed5   : > { %v3042_v22 = vadd.f32 %v4291_v29, %v3028_v16  ;;  %v3016_v38 = vmul.f32 %v5134_v53, %v6099_v46  ;;  %v3029_v24 = vmul.f32 %v4290_v15, %v3015_v12  ;;  %v4944_v46 = vld [vmem:[%s5361_s2 + $0xc0] sm:$0xff]   ;;  %4510 = vmatpush3.bf16.msra.mxu1 %v4945_v23 }
 0xed6   : > { %4549 = vmatprep.subr.bf16.mxu0 %v4944_v46 }
 0xed7   : > { %v3047_v13 = vpack.c.bf16 %v3042_v22, %v3041_v18  ;;  %v3030_v60 = vmul.f32 %v4290_v15, %v3016_v38  ;;  %v3043_v47 = vadd.f32 %v4291_v29, %v3029_v24  ;;  %v4946_v15 = vld [vmem:[%s5361_s2 + $0x80] sm:$0xff]  }
 0xed8   : > { %4550 = vmatpush3.bf16.msra.mxu0 %v4946_v15 }
 0xed9   : > { %3283 = vmatmul.mubr.bf16.gmra.mrb[56].mxu1 %v3047_v13  ;;  %3356 = vmatmul.mubr.bf16.gmra.mrb[56].mxu0 %v3047_v13  ;;  %v3044_v39 = vadd.f32 %v4291_v29, %v3030_v60  ;;  %v4952_v29 = vld [vmem:[%s5361_s2 + $0xd0] sm:$0xff]  }
 0xeda   : > { %3292 = vmatprep.mubr.bf16.mxu1 %v5215_v27  ;;  %3365 = vmatprep.mubr.bf16.mxu0 %v5215_v27  ;;  %v4947_v27 = vld [vmem:[%s5361_s2 + $0x48] sm:$0xff]  }
 0xedb   : > { %v3048_v28 = vpack.c.bf16 %v3044_v39, %v3043_v47  ;;  %4511 = vmatprep.subr.bf16.mxu1 %v4947_v27  ;;  %4551 = vmatprep.subr.bf16.mxu0 %v4948_v49 }
 0xedc   : > { %4512 = vmatpush3.bf16.msra.mxu1 %v4949_v55  ;;  %4552 = vmatpush3.bf16.msra.mxu0 %v4950_v33 }
 0xedd   : > { %4513 = vmatprep.subr.bf16.mxu1 %v4951_v7  ;;  %4553 = vmatprep.subr.bf16.mxu0 %v4952_v29 }
 0xee0   : > { %4514 = vmatpush3.bf16.msra.mxu1 %v4953_v6  ;;  %4554 = vmatpush3.bf16.msra.mxu0 %v4954_v52 }
 0xee1   : > { %3293 = vmatmul.mubr.bf16.gmra.mrb[60].mxu1 %v3048_v28  ;;  %3366 = vmatmul.mubr.bf16.gmra.mrb[60].mxu0 %v3048_v28 }
 0xee2   : > { %4515 = vmatprep.subr.bf16.mxu1 %v4955_v0  ;;  %4555 = vmatprep.subr.bf16.mxu0 %v4956_v44 }
 0xee4   : > { %4516 = vmatpush3.bf16.msra.mxu1 %v4957_v59  ;;  %4556 = vmatpush3.bf16.msra.mxu0 %v4958_v11 }
 0xee5   : > { %4517 = vmatprep.subr.bf16.mxu1 %v4959_v35  ;;  %4557 = vmatprep.subr.bf16.mxu0 %v4960_v19 }
 0xee8   : > { %4518 = vmatpush3.bf16.msra.mxu1 %v4961_v14  ;;  %4558 = vmatpush3.bf16.msra.mxu0 %v4962_v62 }
 0xee9   : > { %4519 = vmatprep.subr.bf16.mxu1 %v4963_v61  ;;  %4559 = vmatprep.subr.bf16.mxu0 %v4964_v26 }
 0xeec   : > { %4520 = vmatpush3.bf16.msra.mxu1 %v4965_v45  ;;  %4560 = vmatpush3.bf16.msra.mxu0 %v4966_v9 }
 0xeed   : > { %4521 = vmatprep.subr.bf16.mxu1 %v4967_v17  ;;  %4561 = vmatprep.subr.bf16.mxu0 %v4968_v42 }
 0xef0   : > { %4522 = vmatpush3.bf16.msra.mxu1 %v4969_v63  ;;  %4562 = vmatpush3.bf16.msra.mxu0 %v4970_v2 }
 0xef1   : > { %4523 = vmatprep.subr.bf16.mxu1 %v4971_v21  ;;  %4563 = vmatprep.subr.bf16.mxu0 %v4972_v25 }
 0xef4   : > { %4524 = vmatpush3.bf16.msra.mxu1 %v4973_v1  ;;  %4564 = vmatpush3.bf16.msra.mxu0 %v4974_v31 }
 0xf87   : > { %v3264_v8 = vpop.f32.mrb[48].mxu1  ;;  %v3337_v3 = vpop.f32.mrb[48].mxu0 }
 0xf88   : > { %v6178_v16 = vadd.f32 %v3264_v8, %v6165_v36  ;;  %v6181_v53 = vadd.f32 %v3337_v3, %v6169_v41  ;;  %v3266_v5 = vpop.f32.mrb[49].mxu1  ;;  %v3339_v18 = vpop.f32.mrb[49].mxu0 }
 0xf89   : > { %v6184_v22 = vadd.f32 %v3266_v5, %v6173_v4  ;;  %v6187_v34 = vadd.f32 %v3339_v18, %v6175_v20  ;;  %v3268_v30 = vpop.f32.mrb[50].mxu1  ;;  %v3341_v32 = vpop.f32.mrb[50].mxu0 }
 0xf8a   : > { %v3376_v12 = vmul.f32 %v6178_v16, %v6178_v16  ;;  %v3378_v38 = vmul.f32 %v6181_v53, %v6181_v53  ;;  %v6194_v13 = vadd.f32 %v3268_v30, %v6165_v36  ;;  %v6197_v60 = vadd.f32 %v3341_v32, %v6169_v41  ;;  %v3270_v24 = vpop.f32.mrb[51].mxu1  ;;  %v3343_v39 = vpop.f32.mrb[51].mxu0 }
 0xf8b   : > { %v3377_v47 = vmul.f32 %v6184_v22, %v6184_v22  ;;  %v3379_v28 = vmul.f32 %v6187_v34, %v6187_v34  ;;  %v6204_v56 = vadd.f32 %v3270_v24, %v6173_v4  ;;  %v6207_v46 = vadd.f32 %v3343_v39, %v6175_v20 }
 0xf8c   : > { %v3408_v23 = vmul.f32 %v3376_v12, %v6178_v16  ;;  %v3410_v15 = vmul.f32 %v3378_v38, %v6181_v53  ;;  %v3380_v27 = vmul.f32 %v6194_v13, %v6194_v13  ;;  %v3382_v49 = vmul.f32 %v6197_v60, %v6197_v60 }
 0xf8d   : > { %v3409_v55 = vmul.f32 %v3377_v47, %v6184_v22  ;;  %v3411_v33 = vmul.f32 %v3379_v28, %v6187_v34  ;;  %v3381_v7 = vmul.f32 %v6204_v56, %v6204_v56  ;;  %v3383_v29 = vmul.f32 %v6207_v46, %v6207_v46 }
 0xf8e   : > { %v3440_v6 = vmul.f32 0.044715, %v3408_v23  ;;  %v3442_v52 = vmul.f32 0.044715, %v3410_v15  ;;  %v3412_v0 = vmul.f32 %v3380_v27, %v6194_v13  ;;  %v3414_v44 = vmul.f32 %v3382_v49, %v6197_v60 }
 0xf8f   : > { %v3441_v59 = vmul.f32 0.044715, %v3409_v55  ;;  %v3443_v11 = vmul.f32 0.044715, %v3411_v33  ;;  %v3413_v35 = vmul.f32 %v3381_v7, %v6204_v56  ;;  %v3415_v19 = vmul.f32 %v3383_v29, %v6207_v46  ;;  %v3274_v14 = vpop.f32.mrb[52].mxu1  ;;  %v3347_v62 = vpop.f32.mrb[52].mxu0 }
 0xf90   : > { %v3472_v61 = vadd.f32 %v3440_v6, %v6178_v16  ;;  %v3474_v26 = vadd.f32 %v3442_v52, %v6181_v53  ;;  %v3444_v45 = vmul.f32 0.044715, %v3412_v0  ;;  %v3446_v9 = vmul.f32 0.044715, %v3414_v44  ;;  %v3276_v17 = vpop.f32.mrb[53].mxu1  ;;  %v3349_v42 = vpop.f32.mrb[53].mxu0 }
 0xf91   : > { %v3473_v63 = vadd.f32 %v3441_v59, %v6184_v22  ;;  %v3475_v2 = vadd.f32 %v3443_v11, %v6187_v34  ;;  %v3445_v21 = vmul.f32 0.044715, %v3413_v35  ;;  %v3447_v25 = vmul.f32 0.044715, %v3415_v19  ;;  %v3278_v1 = vpop.f32.mrb[54].mxu1  ;;  %v3351_v31 = vpop.f32.mrb[54].mxu0 }
 0xf92   : > { %v3504_v54 = vmul.f32 0.7978846, %v3472_v61  ;;  %v3506_v40 = vmul.f32 0.7978846, %v3474_v26  ;;  %v3476_v8 = vadd.f32 %v3444_v45, %v6194_v13  ;;  %v3478_v3 = vadd.f32 %v3446_v9, %v6197_v60  ;;  %v3280_v5 = vpop.f32.mrb[55].mxu1  ;;  %v3353_v18 = vpop.f32.mrb[55].mxu0 }
 0xf93   : > { %v3505_v30 = vmul.f32 0.7978846, %v3473_v63  ;;  %v3507_v32 = vmul.f32 0.7978846, %v3475_v2  ;;  %v3477_v12 = vadd.f32 %v3445_v21, %v6204_v56  ;;  %v3479_v38 = vadd.f32 %v3447_v25, %v6207_v46 }
 0xf94   : > { %5135 = vtanh.f32 %v3504_v54  ;;  %v3508_v24 = vmul.f32 0.7978846, %v3476_v8  ;;  %v3510_v39 = vmul.f32 0.7978846, %v3478_v3  ;;  %v6234_v47 = vadd.f32 %v3274_v14, %v6165_v36 }
 0xf95   : > { %5137 = vtanh.f32 %v3506_v40  ;;  %v3509_v28 = vmul.f32 0.7978846, %v3477_v12  ;;  %v3511_v23 = vmul.f32 0.7978846, %v3479_v38  ;;  %v6237_v15 = vadd.f32 %v3347_v62, %v6169_v41 }
 0xf96   : > { %5139 = vtanh.f32 %v3505_v30  ;;  %v3384_v27 = vmul.f32 %v6234_v47, %v6234_v47  ;;  %v6242_v49 = vadd.f32 %v3276_v17, %v6173_v4  ;;  %v6245_v55 = vadd.f32 %v3349_v42, %v6175_v20 }
 0xf97   : > { %5141 = vtanh.f32 %v3507_v32  ;;  %v3386_v33 = vmul.f32 %v6237_v15, %v6237_v15  ;;  %v6250_v7 = vadd.f32 %v3278_v1, %v6165_v36  ;;  %v6253_v29 = vadd.f32 %v3351_v31, %v6169_v41 }
 0xf98   : > { %5143 = vtanh.f32 %v3508_v24  ;;  %v3416_v6 = vmul.f32 %v3384_v27, %v6234_v47  ;;  %v3385_v52 = vmul.f32 %v6242_v49, %v6242_v49  ;;  %v3387_v0 = vmul.f32 %v6245_v55, %v6245_v55 }
 0xf99   : > { %5145 = vtanh.f32 %v3510_v39  ;;  %v3418_v44 = vmul.f32 %v3386_v33, %v6237_v15  ;;  %v3388_v59 = vmul.f32 %v6250_v7, %v6250_v7  ;;  %v3390_v11 = vmul.f32 %v6253_v29, %v6253_v29 }
 0xf9a   : > { %5147 = vtanh.f32 %v3509_v28  ;;  %v3448_v35 = vmul.f32 0.044715, %v3416_v6  ;;  %v3417_v19 = vmul.f32 %v3385_v52, %v6242_v49  ;;  %v3419_v14 = vmul.f32 %v3387_v0, %v6245_v55 }
 0xf9b   : > { %5149 = vtanh.f32 %v3511_v23  ;;  %v3450_v62 = vmul.f32 0.044715, %v3418_v44  ;;  %v3420_v61 = vmul.f32 %v3388_v59, %v6250_v7  ;;  %v3422_v26 = vmul.f32 %v3390_v11, %v6253_v29 }
 0xf9c   : > { %v3480_v45 = vadd.f32 %v3448_v35, %v6234_v47  ;;  %v3449_v9 = vmul.f32 0.044715, %v3417_v19  ;;  %v3451_v17 = vmul.f32 0.044715, %v3419_v14  ;;  %v6271_v42 = vadd.f32 %v3280_v5, %v6173_v4 }
 0xf9d   : > { %v3482_v63 = vadd.f32 %v3450_v62, %v6237_v15  ;;  %v3452_v2 = vmul.f32 0.044715, %v3420_v61  ;;  %v3454_v21 = vmul.f32 0.044715, %v3422_v26  ;;  %v6275_v25 = vadd.f32 %v3353_v18, %v6175_v20 }
 0xf9e   : > { %v5136_v1 = vpop.eup %5135  ;;  %v3512_v31 = vmul.f32 0.7978846, %v3480_v45  ;;  %v3481_v54 = vadd.f32 %v3449_v9, %v6242_v49  ;;  %v3483_v40 = vadd.f32 %v3451_v17, %v6245_v55  ;;  %v3389_v8 = vmul.f32 %v6271_v42, %v6271_v42 }
 0xf9f   : > { %v5138_v3 = vpop.eup %5137  ;;  %v3568_v30 = vadd.f32 1.0, %v5136_v1  ;;  %v3514_v5 = vmul.f32 0.7978846, %v3482_v63  ;;  %v3484_v32 = vadd.f32 %v3452_v2, %v6250_v7  ;;  %v3486_v12 = vadd.f32 %v3454_v21, %v6253_v29 }
 0xfa0   : > { %v5140_v38 = vpop.eup %5139  ;;  %v3570_v24 = vadd.f32 1.0, %v5138_v3  ;;  %5151 = vtanh.f32 %v3512_v31  ;;  %v3513_v18 = vmul.f32 0.7978846, %v3481_v54  ;;  %v3515_v39 = vmul.f32 0.7978846, %v3483_v40 }
 0xfa1   : > { %v5142_v28 = vpop.eup %5141  ;;  %v3600_v23 = vmul.f32 0.5, %v3568_v30  ;;  %5153 = vtanh.f32 %v3514_v5  ;;  %v3516_v27 = vmul.f32 0.7978846, %v3484_v32  ;;  %v3421_v52 = vmul.f32 %v3389_v8, %v6271_v42 }
 0xfa2   : > { %v5144_v33 = vpop.eup %5143  ;;  %v3602_v6 = vmul.f32 0.5, %v3570_v24  ;;  %5155 = vtanh.f32 %v3513_v18  ;;  %v3391_v0 = vmul.f32 %v6275_v25, %v6275_v25  ;;  %v3518_v11 = vmul.f32 0.7978846, %v3486_v12 }
 0xfa3   : > { %v5146_v44 = vpop.eup %5145  ;;  %v3572_v59 = vadd.f32 1.0, %v5144_v33  ;;  %5157 = vtanh.f32 %v3515_v39  ;;  %v3569_v35 = vadd.f32 1.0, %v5140_v38  ;;  %v3632_v14 = vmul.f32 %v3600_v23, %v6178_v16 }
 0xfa4   : > { %v5148_v19 = vpop.eup %5147  ;;  %v3634_v62 = vmul.f32 %v3602_v6, %v6181_v53  ;;  %v3574_v61 = vadd.f32 1.0, %v5146_v44  ;;  %v3453_v26 = vmul.f32 0.044715, %v3421_v52  ;;  %5159 = vtanh.f32 %v3516_v27 }
 0xfa5   : > { %v5150_v45 = vpop.eup %5149  ;;  %v3604_v9 = vmul.f32 0.5, %v3572_v59  ;;  %v3423_v17 = vmul.f32 %v3391_v0, %v6275_v25  ;;  %v3573_v63 = vadd.f32 1.0, %v5148_v19  ;;  %v3601_v1 = vmul.f32 0.5, %v3569_v35 }
 0xfa6   : > { %v3606_v2 = vmul.f32 0.5, %v3574_v61  ;;  %v3485_v21 = vadd.f32 %v3453_v26, %v6271_v42  ;;  %v3571_v31 = vadd.f32 1.0, %v5142_v28  ;;  %v3575_v16 = vadd.f32 1.0, %v5150_v45 }
 0xfa7   : > { %v3636_v54 = vmul.f32 %v3604_v9, %v6194_v13  ;;  %v3455_v40 = vmul.f32 0.044715, %v3423_v17  ;;  %v3605_v8 = vmul.f32 0.5, %v3573_v63  ;;  %v3633_v30 = vmul.f32 %v3601_v1, %v6184_v22 }
 0xfa8   : > { %v3638_v53 = vmul.f32 %v3606_v2, %v6197_v60  ;;  %v3517_v3 = vmul.f32 0.7978846, %v3485_v21  ;;  %v3603_v5 = vmul.f32 0.5, %v3571_v31  ;;  %v3607_v24 = vmul.f32 0.5, %v3575_v16 }
 0xfa9   : > { %v3664_v32 = vpack.c.bf16 %v3636_v54, %v3632_v14  ;;  %v3487_v12 = vadd.f32 %v3455_v40, %v6275_v25  ;;  %v3637_v38 = vmul.f32 %v3605_v8, %v6204_v56  ;;  %5161 = vtanh.f32 %v3518_v11 }
 0xfaa   : > { %v5152_v18 = vpop.eup %5151  ;;  %v3666_v39 = vpack.c.bf16 %v3638_v53, %v3634_v62  ;;  %v3635_v27 = vmul.f32 %v3603_v5, %v6187_v34  ;;  %v3639_v60 = vmul.f32 %v3607_v24, %v6207_v46  ;;  %5163 = vtanh.f32 %v3517_v3 }
 0xfab   : > { %v5154_v28 = vpop.eup %5153  ;;  %v3519_v13 = vmul.f32 0.7978846, %v3487_v12  ;;  %v3665_v23 = vpack.c.bf16 %v3637_v38, %v3633_v30  ;;  %v6297_v52 = vadd.f32 1.0, %v5152_v18 }
 0xfac   : > { %v5156_v33 = vpop.eup %5155  ;;  %v3284_v22 = vpop.f32.mrb[56].mxu1  ;;  %v6299_v0 = vadd.f32 1.0, %v5154_v28  ;;  %v3667_v44 = vpack.c.bf16 %v3639_v60, %v3635_v27 }
 0xfad   : > { %v3357_v6 = vpop.f32.mrb[56].mxu0  ;;  %v5158_v56 = vpop.eup %5157  ;;  %5165 = vtanh.f32 %v3519_v13  ;;  %3910 = vmatprep.mubr.bf16.mxu1 %v3665_v23  ;;  %v6302_v59 = vadd.f32 %v3284_v22, %v6165_v36  ;;  %v6313_v61 = vadd.f32 1.0, %v5156_v33 }
 0xfae   : > { %v6305_v11 = vadd.f32 %v3357_v6, %v6169_v41  ;;  %v3286_v34 = vpop.f32.mrb[57].mxu1  ;;  %v3359_v46 = vpop.f32.mrb[57].mxu0  ;;  %3911 = vmatmul.mubr.bf16.vlgmr.msra.gmra.mrb[64].mxu1 %v3664_v32  ;;  %v6315_v26 = vadd.f32 1.0, %v5158_v56  ;;  %3975 = vmatprep.mubr.bf16.mxu0 %v3667_v44 }
 0xfaf   : > { %v6308_v35 = vadd.f32 %v3286_v34, %v6173_v4  ;;  %v6311_v19 = vadd.f32 %v3359_v46, %v6175_v20  ;;  %v3288_v14 = vpop.f32.mrb[58].mxu1  ;;  %v3361_v62 = vpop.f32.mrb[58].mxu0  ;;  %v3392_v9 = vmul.f32 %v6302_v59, %v6302_v59  ;;  %3976 = vmatmul.mubr.bf16.vlgmr.msra.gmra.mrb[64].mxu0 %v3666_v39 }
 0xfb0   : > { %v6317_v45 = vpop.eup %5159  ;;  %v3394_v17 = vmul.f32 %v6305_v11, %v6305_v11  ;;  %v6324_v63 = vadd.f32 %v3288_v14, %v6165_v36  ;;  %v6327_v2 = vadd.f32 %v3361_v62, %v6169_v41  ;;  %v3290_v21 = vpop.f32.mrb[59].mxu1  ;;  %v3611_v10 = vmul.f32 0.5, %v6315_v26 }
 0xfb1   : > { %v3363_v1 = vpop.f32.mrb[59].mxu0  ;;  %v3393_v31 = vmul.f32 %v6308_v35, %v6308_v35  ;;  %v3395_v54 = vmul.f32 %v6311_v19, %v6311_v19  ;;  %v6334_v40 = vadd.f32 %v3290_v21, %v6173_v4  ;;  %v3424_v16 = vmul.f32 %v3392_v9, %v6302_v59 }
 0xfb2   : > { %v6337_v8 = vadd.f32 %v3363_v1, %v6175_v20  ;;  %v3426_v53 = vmul.f32 %v3394_v17, %v6305_v11  ;;  %v3396_v3 = vmul.f32 %v6324_v63, %v6324_v63  ;;  %v3398_v30 = vmul.f32 %v6327_v2, %v6327_v2 }
 0xfb3   : > { %v3425_v5 = vmul.f32 %v3393_v31, %v6308_v35  ;;  %v3427_v32 = vmul.f32 %v3395_v54, %v6311_v19  ;;  %v3397_v12 = vmul.f32 %v6334_v40, %v6334_v40  ;;  %v3456_v24 = vmul.f32 0.044715, %v3424_v16  ;;  %v5162_v13 = vpop.eup %5161 }
 0xfb4   : > { %v3399_v38 = vmul.f32 %v6337_v8, %v6337_v8  ;;  %v3458_v18 = vmul.f32 0.044715, %v3426_v53  ;;  %v3428_v39 = vmul.f32 %v3396_v3, %v6324_v63  ;;  %v3430_v28 = vmul.f32 %v3398_v30, %v6327_v2  ;;  %v3294_v22 = vpop.f32.mrb[60].mxu1  ;;  %v3367_v6 = vpop.f32.mrb[60].mxu0 }
 0xfb5   : > { %v3457_v23 = vmul.f32 0.044715, %v3425_v5  ;;  %v3459_v27 = vmul.f32 0.044715, %v3427_v32  ;;  %v3429_v60 = vmul.f32 %v3397_v12, %v6334_v40  ;;  %v3488_v56 = vadd.f32 %v3456_v24, %v6302_v59  ;;  %v3296_v14 = vpop.f32.mrb[61].mxu1  ;;  %v3369_v62 = vpop.f32.mrb[61].mxu0 }
 0xfb6   : > { %v3431_v33 = vmul.f32 %v3399_v38, %v6337_v8  ;;  %v3490_v44 = vadd.f32 %v3458_v18, %v6305_v11  ;;  %v3460_v34 = vmul.f32 0.044715, %v3428_v39  ;;  %v3462_v46 = vmul.f32 0.044715, %v3430_v28  ;;  %v5164_v9 = vpop.eup %5163  ;;  %v3298_v54 = vpop.f32.mrb[62].mxu1 }
 0xfb7   : > { %v3489_v17 = vadd.f32 %v3457_v23, %v6308_v35  ;;  %v3491_v21 = vadd.f32 %v3459_v27, %v6311_v19  ;;  %v3461_v1 = vmul.f32 0.044715, %v3429_v60  ;;  %v3371_v16 = vpop.f32.mrb[62].mxu0  ;;  %v5166_v53 = vpop.eup %5165  ;;  %v3520_v3 = vmul.f32 0.7978846, %v3488_v56 }
 0xfb8   : > { %v3463_v31 = vmul.f32 0.044715, %v3431_v33  ;;  %v3522_v30 = vmul.f32 0.7978846, %v3490_v44  ;;  %v3492_v5 = vadd.f32 %v3460_v34, %v6324_v63  ;;  %v3494_v32 = vadd.f32 %v3462_v46, %v6327_v2  ;;  %v3300_v12 = vpop.f32.mrb[63].mxu1  ;;  %v6361_v38 = vpop.f32.mrb[63].mxu0 }
 0xfb9   : > { %v3521_v24 = vmul.f32 0.7978846, %v3489_v17  ;;  %v3523_v18 = vmul.f32 0.7978846, %v3491_v21  ;;  %v3493_v39 = vadd.f32 %v3461_v1, %v6334_v40  ;;  %5167 = vtanh.f32 %v3520_v3 }
 0xfba   : > { %v3495_v28 = vadd.f32 %v3463_v31, %v6337_v8  ;;  %v3524_v23 = vmul.f32 0.7978846, %v3492_v5  ;;  %v3526_v27 = vmul.f32 0.7978846, %v3494_v32  ;;  %v3581_v60 = vadd.f32 1.0, %v5164_v9 }
 0xfbb   : > { %5169 = vtanh.f32 %v3522_v30  ;;  %v3525_v33 = vmul.f32 0.7978846, %v3493_v39  ;;  %v3609_v44 = vmul.f32 0.5, %v6313_v61  ;;  %v3583_v46 = vadd.f32 1.0, %v5166_v53 }
 0xfbc   : > { %v3527_v56 = vmul.f32 0.7978846, %v3495_v28  ;;  %5171 = vtanh.f32 %v3521_v24  ;;  %v3613_v34 = vmul.f32 0.5, %v3581_v60  ;;  %v3580_v21 = vadd.f32 1.0, %v6317_v45 }
 0xfbd   : > { %5173 = vtanh.f32 %v3523_v18  ;;  %v3641_v17 = vmul.f32 %v3609_v44, %v6242_v49  ;;  %v3608_v1 = vmul.f32 0.5, %v6297_v52  ;;  %v3615_v31 = vmul.f32 0.5, %v3583_v46 }
 0xfbe   : > { %5175 = vtanh.f32 %v3524_v23  ;;  %v3645_v9 = vmul.f32 %v3613_v34, %v6271_v42  ;;  %v3643_v3 = vmul.f32 %v3611_v10, %v6245_v55  ;;  %v3612_v61 = vmul.f32 0.5, %v3580_v21 }
 0xfbf   : > { %5177 = vtanh.f32 %v3526_v27  ;;  %v3640_v30 = vmul.f32 %v3608_v1, %v6234_v47  ;;  %v3582_v53 = vadd.f32 1.0, %v5162_v13  ;;  %v3647_v5 = vmul.f32 %v3615_v31, %v6275_v25 }
 0xfc0   : > { %5179 = vtanh.f32 %v3525_v33  ;;  %v3669_v26 = vpack.c.bf16 %v3645_v9, %v3641_v17  ;;  %v3610_v49 = vmul.f32 0.5, %v6299_v0  ;;  %v3644_v52 = vmul.f32 %v3612_v61, %v6250_v7 }
 0xfc1   : > { %5181 = vtanh.f32 %v3527_v56  ;;  %v3614_v45 = vmul.f32 0.5, %v3582_v53  ;;  %v6377_v42 = vadd.f32 %v3294_v22, %v6165_v36  ;;  %v3671_v10 = vpack.c.bf16 %v3647_v5, %v3643_v3 }
 0xfc2   : > { %3918 = vmatprep.mubr.bf16.mxu1 %v3669_v26  ;;  %v3642_v55 = vmul.f32 %v3610_v49, %v6237_v15  ;;  %v6381_v47 = vadd.f32 %v3367_v6, %v6169_v41  ;;  %v6384_v13 = vadd.f32 %v3296_v14, %v6173_v4  ;;  %v3668_v25 = vpack.c.bf16 %v3644_v52, %v3640_v30 }
 0xfc3   : > { %v3646_v0 = vmul.f32 %v3614_v45, %v6253_v29  ;;  %v3400_v7 = vmul.f32 %v6377_v42, %v6377_v42  ;;  %v6390_v32 = vadd.f32 %v3369_v62, %v6175_v20  ;;  %v6392_v22 = vpop.eup %5167  ;;  %3983 = vmatprep.mubr.bf16.mxu0 %v3671_v10  ;;  %v6399_v14 = vadd.f32 %v3298_v54, %v6165_v36 }
 0xfc4   : > { %v3402_v15 = vmul.f32 %v6381_v47, %v6381_v47  ;;  %v3401_v6 = vmul.f32 %v6384_v13, %v6384_v13  ;;  %v6402_v29 = vadd.f32 %v3371_v16, %v6169_v41  ;;  %3919 = vmatmul.mubr.bf16.gmra.mrb[68].mxu1 %v3668_v25  ;;  %v6410_v28 = vadd.f32 %v3300_v12, %v6173_v4 }
 0xfc5   : > { %v6404_v24 = vpop.eup %5169  ;;  %v3670_v62 = vpack.c.bf16 %v3646_v0, %v3642_v55  ;;  %v3432_v18 = vmul.f32 %v3400_v7, %v6377_v42  ;;  %v3403_v39 = vmul.f32 %v6390_v32, %v6390_v32  ;;  %v3404_v41 = vmul.f32 %v6399_v14, %v6399_v14 }
 0xfc6   : > { %v5172_v23 = vpop.eup %5171  ;;  %v3434_v27 = vmul.f32 %v3402_v15, %v6381_v47  ;;  %v3433_v36 = vmul.f32 %v3401_v6, %v6384_v13  ;;  %v3406_v54 = vmul.f32 %v6402_v29, %v6402_v29  ;;  %v3405_v4 = vmul.f32 %v6410_v28, %v6410_v28 }
 0xfc7   : > { %v5174_v16 = vpop.eup %5173  ;;  %3984 = vmatmul.mubr.bf16.gmra.mrb[68].mxu0 %v3670_v62  ;;  %v3464_v60 = vmul.f32 0.044715, %v3432_v18  ;;  %v3435_v33 = vmul.f32 %v3403_v39, %v6390_v32  ;;  %v6423_v12 = vadd.f32 %v6361_v38, %v6175_v20  ;;  %v3436_v46 = vmul.f32 %v3404_v41, %v6399_v14 }
 0xfc8   : > { %v5176_v56 = vpop.eup %5175  ;;  %v3466_v44 = vmul.f32 0.044715, %v3434_v27  ;;  %v3465_v34 = vmul.f32 0.044715, %v3433_v36  ;;  %v3438_v17 = vmul.f32 %v3406_v54, %v6402_v29  ;;  %v3437_v31 = vmul.f32 %v3405_v4, %v6410_v28 }
 0xfc9   : > { %v5178_v21 = vpop.eup %5177  ;;  %v3496_v1 = vadd.f32 %v3464_v60, %v6377_v42  ;;  %v3467_v9 = vmul.f32 0.044715, %v3435_v33  ;;  %v3407_v3 = vmul.f32 %v6423_v12, %v6423_v12  ;;  %v3468_v30 = vmul.f32 0.044715, %v3436_v46 }
 0xfca   : > { %v5180_v61 = vpop.eup %5179  ;;  %v3498_v20 = vadd.f32 %v3466_v44, %v6381_v47  ;;  %v3497_v38 = vadd.f32 %v3465_v34, %v6384_v13  ;;  %v3470_v53 = vmul.f32 0.044715, %v3438_v17  ;;  %v3469_v52 = vmul.f32 0.044715, %v3437_v31 }
 0xfcb   : > { %v5182_v26 = vpop.eup %5181  ;;  %v3528_v5 = vmul.f32 0.7978846, %v3496_v1  ;;  %v3499_v49 = vadd.f32 %v3467_v9, %v6390_v32  ;;  %v3439_v45 = vmul.f32 %v3407_v3, %v6423_v12  ;;  %v3500_v25 = vadd.f32 %v3468_v30, %v6399_v14 }
 0xfcc   : > { %v3530_v10 = vmul.f32 0.7978846, %v3498_v20  ;;  %v3529_v55 = vmul.f32 0.7978846, %v3497_v38  ;;  %v3502_v0 = vadd.f32 %v3470_v53, %v6402_v29  ;;  %v3501_v15 = vadd.f32 %v3469_v52, %v6410_v28 }
 0xfcd   : > { %5183 = vtanh.f32 %v3528_v5  ;;  %v3531_v7 = vmul.f32 0.7978846, %v3499_v49  ;;  %v3471_v6 = vmul.f32 0.044715, %v3439_v45  ;;  %v3532_v62 = vmul.f32 0.7978846, %v3500_v25 }
 0xfce   : > { %5185 = vtanh.f32 %v3530_v10  ;;  %v3534_v18 = vmul.f32 0.7978846, %v3502_v0  ;;  %v3585_v39 = vadd.f32 1.0, %v5172_v23  ;;  %v3533_v27 = vmul.f32 0.7978846, %v3501_v15 }
 0xfcf   : > { %5187 = vtanh.f32 %v3529_v55  ;;  %v3503_v36 = vadd.f32 %v3471_v6, %v6423_v12  ;;  %v3589_v41 = vadd.f32 1.0, %v5180_v61  ;;  %v3587_v60 = vadd.f32 1.0, %v5174_v16 }
 0xfd0   : > { %5189 = vtanh.f32 %v3531_v7  ;;  %v3617_v54 = vmul.f32 0.5, %v3585_v39  ;;  %v3591_v33 = vadd.f32 1.0, %v5182_v26  ;;  %v3584_v34 = vadd.f32 1.0, %v6392_v22 }
 0xfd1   : > { %5191 = vtanh.f32 %v3532_v62  ;;  %v3535_v4 = vmul.f32 0.7978846, %v3503_v36  ;;  %v3621_v44 = vmul.f32 0.5, %v3589_v41  ;;  %v3619_v17 = vmul.f32 0.5, %v3587_v60 }
 0xfd2   : > { %5193 = vtanh.f32 %v3534_v18  ;;  %v3649_v46 = vmul.f32 %v3617_v54, %v6308_v35  ;;  %v3623_v1 = vmul.f32 0.5, %v3591_v33  ;;  %v3588_v9 = vadd.f32 1.0, %v5176_v56 }
 0xfd3   : > { %5195 = vtanh.f32 %v3533_v27  ;;  %v3653_v23 = vmul.f32 %v3621_v44, %v6334_v40  ;;  %v3616_v31 = vmul.f32 0.5, %v3584_v34  ;;  %v3651_v3 = vmul.f32 %v3619_v17, %v6311_v19 }
 0xfd4   : > { %5197 = vtanh.f32 %v3535_v4  ;;  %v3655_v16 = vmul.f32 %v3623_v1, %v6337_v8  ;;  %v3586_v61 = vadd.f32 1.0, %v6404_v24  ;;  %v3620_v38 = vmul.f32 0.5, %v3588_v9 }
 0xfd5   : > { %v3673_v20 = vpack.c.bf16 %v3653_v23, %v3649_v46  ;;  %v3590_v22 = vadd.f32 1.0, %v5178_v21  ;;  %v3648_v26 = vmul.f32 %v3616_v31, %v6302_v59 }
 0xfd6   : > { %v3675_v30 = vpack.c.bf16 %v3655_v16, %v3651_v3  ;;  %v3618_v53 = vmul.f32 0.5, %v3586_v61  ;;  %v3652_v40 = vmul.f32 %v3620_v38, %v6324_v63 }
 0xfd7   : > { %v5184_v35 = vpop.eup %5183  ;;  %3926 = vmatprep.mubr.bf16.mxu1 %v3673_v20  ;;  %v3622_v56 = vmul.f32 0.5, %v3590_v22 }
 0xfd8   : > { %v5186_v5 = vpop.eup %5185  ;;  %3991 = vmatprep.mubr.bf16.mxu0 %v3675_v30  ;;  %v3592_v49 = vadd.f32 1.0, %v5184_v35  ;;  %v3672_v52 = vpack.c.bf16 %v3652_v40, %v3648_v26  ;;  %v3650_v8 = vmul.f32 %v3618_v53, %v6305_v11 }
 0xfd9   : > { %v5188_v19 = vpop.eup %5187  ;;  %v3654_v24 = vmul.f32 %v3622_v56, %v6327_v2  ;;  %v3594_v45 = vadd.f32 1.0, %v5186_v5 }
 0xfda   : > { %v5190_v21 = vpop.eup %5189  ;;  %v3593_v10 = vadd.f32 1.0, %v5188_v19  ;;  %3927 = vmatmul.mubr.bf16.gmra.mrb[72].mxu1 %v3672_v52  ;;  %v3624_v63 = vmul.f32 0.5, %v3592_v49 }
 0xfdb   : > { %v5192_v55 = vpop.eup %5191  ;;  %v3674_v25 = vpack.c.bf16 %v3654_v24, %v3650_v8  ;;  %v3595_v0 = vadd.f32 1.0, %v5190_v21  ;;  %v3626_v62 = vmul.f32 0.5, %v3594_v45 }
 0xfdc   : > { %v5194_v59 = vpop.eup %5193  ;;  %v3596_v7 = vadd.f32 1.0, %v5192_v55  ;;  %v3625_v27 = vmul.f32 0.5, %v3593_v10  ;;  %v3656_v60 = vmul.f32 %v3624_v63, %v6377_v42 }
 0xfdd   : > { %v5196_v15 = vpop.eup %5195  ;;  %3992 = vmatmul.mubr.bf16.gmra.mrb[72].mxu0 %v3674_v25  ;;  %v3598_v6 = vadd.f32 1.0, %v5194_v59  ;;  %v3627_v2 = vmul.f32 0.5, %v3595_v0  ;;  %v3658_v44 = vmul.f32 %v3626_v62, %v6381_v47  ;;  %v6462_v47 = vld [vmem:[%s630_s26] ss:$0 sm:$0xff]  ;;  %s6540_s26 = sld [smem:[#allocation9_spill]] (!%p4357_p5) }
 0xfde   : > { %v5198_v18 = vpop.eup %5197  ;;  %v3597_v39 = vadd.f32 1.0, %v5196_v15  ;;  %v3628_v11 = vmul.f32 0.5, %v3596_v7  ;;  %v3657_v46 = vmul.f32 %v3625_v27, %v6384_v13 }
 0xfdf   : > { %v3599_v36 = vadd.f32 1.0, %v5198_v18  ;;  %v3630_v41 = vmul.f32 0.5, %v3598_v6  ;;  %v3659_v23 = vmul.f32 %v3627_v2, %v6390_v32 }
 0xfe0   : > { %v3629_v54 = vmul.f32 0.5, %v3597_v39  ;;  %v3660_v33 = vmul.f32 %v3628_v11, %v6399_v14 }
 0xfe1   : > { %v3631_v4 = vmul.f32 0.5, %v3599_v36  ;;  %v3662_v34 = vmul.f32 %v3630_v41, %v6402_v29 }
 0xfe2   : > { %v3661_v17 = vmul.f32 %v3629_v54, %v6410_v28  ;;  %v3676_v1 = vpack.c.bf16 %v3660_v33, %v3656_v60 }
 0xfe3   : > { %v3663_v9 = vmul.f32 %v3631_v4, %v6423_v12  ;;  %v3678_v31 = vpack.c.bf16 %v3662_v34, %v3658_v44 }
 0xfe4   : > { %v3677_v3 = vpack.c.bf16 %v3661_v17, %v3657_v46 }
 0xfe5   : > { %v3679_v42 = vpack.c.bf16 %v3663_v9, %v3659_v23 }
 0xfe6   : > { %3934 = vmatprep.mubr.bf16.mxu1 %v3677_v3 }
 0xfe7   : > { %3999 = vmatprep.mubr.bf16.mxu0 %v3679_v42  ;;  %3935 = vmatmul.mubr.bf16.gmra.mrb[76].mxu1 %v3676_v1 }
 0xfe8   : > { %4000 = vmatmul.mubr.bf16.gmra.mrb[76].mxu0 %v3678_v31 }
0x1081   : > { %v4525_v14 = vpop.f32.mrb[64].mxu1 }
0x1082   : > { %v4526_v13 = vpop.f32.mrb[65].mxu1  ;;  %v4565_v29 = vpop.f32.mrb[64].mxu0 }
0x1083   : > { %v4527_v28 = vadd.f32 %v4526_v13, %v4525_v14  ;;  %v4528_v32 = vpop.f32.mrb[66].mxu1  ;;  %v4566_v16 = vpop.f32.mrb[65].mxu0 }
0x1084   : > { %v4529_v12 = vpop.f32.mrb[67].mxu1  ;;  %v4567_v20 = vadd.f32 %v4566_v16, %v4565_v29  ;;  %v4568_v38 = vpop.f32.mrb[66].mxu0 }
0x1085   : > { %v3913_v61 = vadd.f32 %v4527_v28, %v6462_v47  ;;  %v4530_v22 = vadd.f32 %v4529_v12, %v4528_v32  ;;  %v4569_v30 = vpop.f32.mrb[67].mxu0 }
0x1086   : > { %v4570_v26 = vadd.f32 %v4569_v30, %v4568_v38  ;;  %v6539_v38 = vld [vmem:[#allocation4_spill] sm:$0xff] }
0x1087   : > { %v3978_v53 = vadd.f32 %v4567_v20, %v3913_v61  ;;  %v3916_v35 = vadd.f32 %v4530_v22, %v6462_v47 }
0x1089   : > { %v6467_v40 = vadd.f32 %v3978_v53, %v6009_v43  ;;  %v3981_v56 = vadd.f32 %v4570_v26, %v3916_v35 }
0x108b   : > { %4016 = vst [vmem:[#allocation2] sm:$0xff] %v6467_v40  ;;  %v6471_v5 = vadd.f32 %v3981_v56, %v6011_v57 }
0x108d   : > { %4017 = vst [vmem:[#allocation2 + $0x8] sm:$0xff] %v6471_v5  ;;  %v4398_v30 = vpack.c.bf16 (!%p4357_p5), %v6471_v5, %v6467_v40 }
0x108f   : > { %4399 = vst [vmem:[%s6540_s26] sm:$0xff] (!%p4357_p5), %v4398_v30  }
0x1097   : > { %v4531_v49 = vpop.f32.mrb[68].mxu1 }
0x1098   : > { %v4532_v19 = vpop.f32.mrb[69].mxu1 }
0x1099   : > { %v4533_v8 = vadd.f32 %v4532_v19, %v4531_v49  ;;  %v4534_v24 = vpop.f32.mrb[70].mxu1 }
0x109a   : > { %v4571_v52 = vpop.f32.mrb[68].mxu0  ;;  %v4535_v21 = vpop.f32.mrb[71].mxu1 }
0x109b   : > { %v4572_v45 = vpop.f32.mrb[69].mxu0  ;;  %v3921_v10 = vadd.f32 %v4533_v8, %v6462_v47  ;;  %v4536_v25 = vadd.f32 %v4535_v21, %v4534_v24 }
0x109c   : > { %v4573_v55 = vadd.f32 %v4572_v45, %v4571_v52  ;;  %v4574_v43 = vpop.f32.mrb[70].mxu0 }
0x109d   : > { %v4575_v0 = vpop.f32.mrb[71].mxu0  ;;  %v3924_v7 = vadd.f32 %v4536_v25, %v6462_v47 }
0x109e   : > { %v3986_v59 = vadd.f32 %v4573_v55, %v3921_v10  ;;  %v4576_v57 = vadd.f32 %v4575_v0, %v4574_v43 }
0x10a0   : > { %v4010_v63 = vadd.f32 %v3986_v59, %v6014_v50  ;;  %v3989_v15 = vadd.f32 %v4576_v57, %v3924_v7 }
0x10a2   : > { %4018 = vst [vmem:[#allocation2 + $0x10] sm:$0xff] %v4010_v63  ;;  %v4011_v6 = vadd.f32 %v3989_v15, %v6018_v48 }
0x10a4   : > { %4019 = vst [vmem:[#allocation2 + $0x18] sm:$0xff] %v4011_v6  ;;  %v4403_v53 = vpack.c.bf16 (!%p4357_p5), %v4011_v6, %v4010_v63 }
0x10a6   : > { %4418 = vst [vmem:[%s6540_s26 + $0x8] sm:$0xff] (!%p4357_p5), %v4403_v53  }
0x10ad   : > { %v4537_v62 = vpop.f32.mrb[72].mxu1 }
0x10ae   : > { %v4538_v18 = vpop.f32.mrb[73].mxu1 }
0x10af   : > { %v4539_v27 = vadd.f32 %v4538_v18, %v4537_v62  ;;  %v4540_v11 = vpop.f32.mrb[74].mxu1 }
0x10b0   : > { %v4577_v39 = vpop.f32.mrb[72].mxu0  ;;  %v4541_v2 = vpop.f32.mrb[75].mxu1 }
0x10b1   : > { %v4578_v36 = vpop.f32.mrb[73].mxu0  ;;  %v3929_v41 = vadd.f32 %v4539_v27, %v6462_v47  ;;  %v4542_v33 = vadd.f32 %v4541_v2, %v4540_v11 }
0x10b2   : > { %v4579_v54 = vadd.f32 %v4578_v36, %v4577_v39  ;;  %v4580_v60 = vpop.f32.mrb[74].mxu0 }
0x10b3   : > { %v4581_v4 = vpop.f32.mrb[75].mxu0  ;;  %v3932_v50 = vadd.f32 %v4542_v33, %v6462_v47 }
0x10b4   : > { %v3994_v44 = vadd.f32 %v4579_v54, %v3929_v41  ;;  %v4582_v34 = vadd.f32 %v4581_v4, %v4580_v60 }
0x10b6   : > { %v4012_v48 = vadd.f32 %v3994_v44, %v6021_v51  ;;  %v3997_v46 = vadd.f32 %v4582_v34, %v3932_v50 }
0x10b8   : > { %4020 = vst [vmem:[#allocation2 + $0x20] sm:$0xff] %v4012_v48  ;;  %v4013_v17 = vadd.f32 %v3997_v46, %v6023_v37 }
0x10ba   : > { %4021 = vst [vmem:[#allocation2 + $0x28] sm:$0xff] %v4013_v17  ;;  %v4543_v1 = vpop.f32.mrb[76].mxu1  ;;  %v4408_v35 = vpack.c.bf16 (!%p4357_p5), %v4013_v17, %v4012_v48 }
0x10bb   : > { %v4583_v23 = vpop.f32.mrb[76].mxu0  ;;  %v4544_v9 = vpop.f32.mrb[77].mxu1 }
0x10bc   : > { %v4545_v31 = vadd.f32 %v4544_v9, %v4543_v1  ;;  %v4584_v3 = vpop.f32.mrb[77].mxu0  ;;  %v4546_v42 = vpop.f32.mrb[78].mxu1  ;;  %4419 = vst [vmem:[%s6540_s26 + $0x10] sm:$0xff] (!%p4357_p5), %v4408_v35  }
0x10bd   : > { %v4585_v14 = vadd.f32 %v4584_v3, %v4583_v23  ;;  %v4586_v13 = vpop.f32.mrb[78].mxu0  ;;  %v4547_v29 = vpop.f32.mrb[79].mxu1 }
0x10be   : > { %v3937_v28 = vadd.f32 %v4545_v31, %v6462_v47  ;;  %v4548_v32 = vadd.f32 %v4547_v29, %v4546_v42  ;;  %v4587_v16 = vpop.f32.mrb[79].mxu0 }
0x10bf   : > { %v4588_v12 = vadd.f32 %v4587_v16, %v4586_v13 }
0x10c0   : > { %v4002_v51 = vadd.f32 %v4585_v14, %v3937_v28  ;;  %v3940_v61 = vadd.f32 %v4548_v32, %v6462_v47  ;;  %4027 = sbr.rel (%p4357_p5) target bundleno = 4297 (0x10c9), region = 84 }
0x10c2   : > { %v4014_v37 = vadd.f32 %v4002_v51, %v6026_v58  ;;  %v4005_v20 = vadd.f32 %v4588_v12, %v3940_v61 }
0x10c4   : > { %4022 = vst [vmem:[#allocation2 + $0x30] sm:$0xff] %v4014_v37  ;;  %v4015_v22 = vadd.f32 %v4005_v20, %v6539_v38 }
0x10c6   : > { %4023 = vst [vmem:[#allocation2 + $0x38] sm:$0xff] %v4015_v22  ;;  %v4413_v26 = vpack.c.bf16 (!%p4357_p5), %v4015_v22, %v4014_v37 }
0x10c8   : > { %4420 = vst [vmem:[%s6540_s26 + $0x18] sm:$0xff] %v4413_v26  }
0x10c9 PF: > { %s6541_s3 = sld [smem:[#allocation3_spill]] }
0x10cf   : > { %s24_s29 = sadd.s32 1, %s6541_s3  }
0x10d0   : > { %p21_p6 = scmp.ge.s32.totalorder %s24_s29, 4  }
0x10d2   :  { %23 = sbr.rel (!%p21_p6) target bundleno = 6 (0x6), region = 143 }

// kernel: forward.3
= control target key start
LH: loop header
LB: loop body
LE: loop exit
PB: predicated region body
PF: predicated region fallthrough
CT: control target
= control target key end

     0   :  { %v5720_v1 = vmov 0   ;;  %v87_v20 = vlaneseq  ;;  %vm5722_vm0 = vmmov 0   ;;  %vm1329_vm1 = vcmask 523264   ;;  %s7616_s2 = inlined_call_operand.vmem [shape: bf16[128,256], index: 2, kind: input, shape index: {}]   ;;  %s7617_s0 = inlined_call_operand.vmem [shape: f32[2,8,128], index: 0, kind: input, shape index: {}]   ;;  %s7618_s3 = inlined_call_operand.vmem [shape: f32[1,256], index: 3, kind: input, shape index: {}, may-alias: {3,5,9,11,15,17}]   ;;  %s7619_s1 = inlined_call_operand.vmem [shape: f32[2,8,256], index: 1, kind: input, shape index: {}]   ;;  %s7620_s6 = inlined_call_operand.vmem [shape: bf16[256,768], index: 6, kind: input, shape index: {}]   ;;  %s7621_s4 = inlined_call_operand.vmem [shape: f32[1,256], index: 4, kind: input, shape index: {}, may-alias: {4,10,16}]   ;;  %s7622_s5 = inlined_call_operand.vmem [shape: f32[1,256], index: 5, kind: input, shape index: {}, may-alias: {3,5,9,11,15,17}]   ;;  %s7623_s7 = inlined_call_operand.vmem [shape: f32[1,768], index: 7, kind: input, shape index: {}]   ;;  %s7624_s8 = inlined_call_operand.vmem [shape: bf16[256,256], index: 8, kind: input, shape index: {}]   ;;  %s7625_s9 = inlined_call_operand.vmem [shape: f32[1,256], index: 9, kind: input, shape index: {}, may-alias: {3,5,9,11,15,17}]   ;;  %s7626_s12 = inlined_call_operand.vmem [shape: bf16[256,1024], index: 12, kind: input, shape index: {}]   ;;  %s7627_s14 = inlined_call_operand.vmem [shape: bf16[1024,256], index: 14, kind: input, shape index: {}]   ;;  %s7628_s10 = inlined_call_operand.vmem [shape: f32[1,256], index: 10, kind: input, shape index: {}, may-alias: {4,10,16}]   ;;  %s7629_s11 = inlined_call_operand.vmem [shape: f32[1,256], index: 11, kind: input, shape index: {}, may-alias: {3,5,9,11,15,17}]   ;;  %s7630_s13 = inlined_call_operand.vmem [shape: f32[1,1024], index: 13, kind: input, shape index: {}]   ;;  %s7631_s15 = inlined_call_operand.vmem [shape: f32[1,256], index: 15, kind: input, shape index: {}, may-alias: {3,5,9,11,15,17}]   ;;  %s7632_s18 = inlined_call_operand.vmem [shape: bf16[256,128], index: 18, kind: input, shape index: {}]   ;;  %s7633_s16 = inlined_call_operand.vmem [shape: f32[1,256], index: 16, kind: input, shape index: {}, may-alias: {4,10,16}]   ;;  %s7634_s17 = inlined_call_operand.vmem [shape: f32[1,256], index: 17, kind: input, shape index: {}, may-alias: {3,5,9,11,15,17}]   ;;  %s7635_s19 = inlined_call_operand.vmem [shape: f32[1,128], index: 19, kind: input, shape index: {}]   ;;  %s7636_s20 = inlined_call_operand.vmem [shape: bf16[2,8,128], index: 20, kind: output, shape index: {}]  }
   0x1   :  { %7641 = sst [smem:[#allocation2_spill]] %s7616_s2  ;;  %209 = vmatprep.mubr.bf16.mxu0 %v5720_v1  ;;  %vm1454_vm2 = vcmask 1043456   ;;  %vm1424_vm3 = vcmask 64512  }
   0x2   :  { %7642 = sst [smem:[#allocation3_spill]] %s7617_s0  ;;  %s7646_s23 = sld [smem:[#allocation2_spill]]  ;;  %v5883_v21 = vshrl.u32 %v87_v20, 7 }
   0x3   :  { %7643 = sst [smem:[#allocation4_spill]] %s7618_s3  ;;  %s7647_s26 = sld [smem:[#allocation3_spill]] }
   0x4   :  { %7644 = sst [smem:[#allocation5_spill]] %s7619_s1  ;;  %v5886_v22 = vsub.s32 0, %v5883_v21  ;;  %s7648_s29 = sld [smem:[#allocation4_spill]]  ;;  %v5892_v24 = vsub.s32 1, %v5883_v21 }
   0x5   :  { %7645 = sst [smem:[#allocation6_spill]] %s7620_s6  ;;  %s7649_s21 = sld [smem:[#allocation5_spill]] }
   0x6   :  { %s7650_s28 = sld [smem:[#allocation6_spill]] }
   0x8   :  { %v5220_v0 = vld [vmem:[%s7646_s23 + $0x4] ss:$8 sps:$4 sm:$0xff]   ;;  %v5222_v2 = vld [vmem:[%s7646_s23] ss:$8 sps:$4 sm:$0xff]   ;;  %v5223_v3 = vld [vmem:[%s7646_s23 + $0x14] ss:$8 sps:$4 sm:$0xff]  }
   0x9   :  { %177 = vmatprep.subr.bf16.mxu0 %v5220_v0  ;;  %v5225_v4 = vld [vmem:[%s7646_s23 + $0x10] ss:$8 sps:$4 sm:$0xff]   ;;  %v5226_v5 = vld [vmem:[%s7646_s23 + $0x24] ss:$8 sps:$4 sm:$0xff]   ;;  %v5228_v6 = vld [vmem:[%s7646_s23 + $0x20] ss:$8 sps:$4 sm:$0xff]  }
   0xa   :  { %178 = vmatpush1.bf16.msra.mxu0 %v5222_v2  ;;  %v5229_v7 = vld [vmem:[%s7646_s23 + $0x34] ss:$8 sps:$4 sm:$0xff]   ;;  %v5231_v8 = vld [vmem:[%s7646_s23 + $0x30] ss:$8 sps:$4 sm:$0xff]   ;;  %v5232_v9 = vld [vmem:[%s7646_s23 + $0x44] ss:$8 sps:$4 sm:$0xff]  }
   0xb   :  { %179 = vmatprep.subr.bf16.mxu0 %v5223_v3  ;;  %v5234_v10 = vld [vmem:[%s7646_s23 + $0x40] ss:$8 sps:$4 sm:$0xff]   ;;  %v5235_v11 = vld [vmem:[%s7646_s23 + $0x54] ss:$8 sps:$4 sm:$0xff]   ;;  %v5237_v12 = vld [vmem:[%s7646_s23 + $0x50] ss:$8 sps:$4 sm:$0xff]  }
   0xc   :  { %v5238_v13 = vld [vmem:[%s7646_s23 + $0x64] ss:$8 sps:$4 sm:$0xff]   ;;  %v5240_v14 = vld [vmem:[%s7646_s23 + $0x60] ss:$8 sps:$4 sm:$0xff]   ;;  %v5241_v15 = vld [vmem:[%s7646_s23 + $0x74] ss:$8 sps:$4 sm:$0xff]  }
   0xd   :  { %v5243_v16 = vld [vmem:[%s7646_s23 + $0x70] ss:$8 sps:$4 sm:$0xff]   ;;  %v66_v17 = vld [vmem:[%s7647_s26] sm:$0xff]  ;;  %v67_v18 = vld [vmem:[%s7647_s26 + $0x8] sm:$0xff] }
   0xe   :  { %180 = vmatpush1.bf16.msra.mxu0 %v5225_v4  ;;  %v68_v19 = vpack.c.bf16 %v67_v18, %v66_v17  ;;  %v85_v23 = vld [vmem:[%s7648_s29] sm:$0x3]  ;;  %v221_v31 = vld [vmem:[%s7649_s21 + $0x8] sm:$0xff]  ;;  %v222_v36 = vld [vmem:[%s7649_s21 + $0x10] sm:$0xff] }
   0xf   :  { %181 = vmatprep.subr.bf16.mxu0 %v5226_v5  ;;  %v90_v25 = vrot.slane %v85_v23, %v5886_v22  ;;  %v94_v26 = vrot.slane %v85_v23, %v5892_v24  ;;  %v220_v28 = vld [vmem:[%s7649_s21] sm:$0xff]  ;;  %v223_v38 = vld [vmem:[%s7649_s21 + $0x18] sm:$0xff]  ;;  %v5247_v47 = vld [vmem:[%s7650_s28 + $0x14] ss:$24 sps:$4 sm:$0xff]  }
  0x10   :  { %v5244_v45 = vld [vmem:[%s7650_s28] ss:$24 sps:$4 sm:$0xff]   ;;  %v5246_v46 = vld [vmem:[%s7650_s28 + $0x4] ss:$24 sps:$4 sm:$0xff]   ;;  %v5249_v48 = vld [vmem:[%s7650_s28 + $0x10] ss:$24 sps:$4 sm:$0xff]   ;;  %1282 = vmatprep.subr.bf16.mxu1 %v5247_v47 }
  0x11   :  { %v5250_v49 = vld [vmem:[%s7650_s28 + $0x30] ss:$24 sps:$4 sm:$0xff]   ;;  %v5252_v50 = vld [vmem:[%s7650_s28 + $0x34] ss:$24 sps:$4 sm:$0xff]   ;;  %v5253_v51 = vld [vmem:[%s7650_s28 + $0x44] ss:$24 sps:$4 sm:$0xff]   ;;  %1283 = vmatpush1.bf16.msra.mxu1 %v5249_v48 }
  0x12   :  { %182 = vmatpush1.bf16.msra.mxu0 %v5228_v6  ;;  %v5255_v52 = vld [vmem:[%s7650_s28 + $0x40] ss:$24 sps:$4 sm:$0xff]   ;;  %1284 = vmatprep.subr.bf16.mxu1 %v5253_v51  ;;  %v5258_v53 = vld [vmem:[%s7650_s28 + $0x64] ss:$24 sps:$4 sm:$0xff]   ;;  %v5259_v55 = vld [vmem:[%s7650_s28 + $0x74] ss:$24 sps:$4 sm:$0xff]  }
  0x13   :  { %183 = vmatprep.subr.bf16.mxu0 %v5229_v7  ;;  %v5256_v54 = vld [vmem:[%s7650_s28 + $0x60] ss:$24 sps:$4 sm:$0xff]   ;;  %v5261_v56 = vld [vmem:[%s7650_s28 + $0x70] ss:$24 sps:$4 sm:$0xff]   ;;  %v5264_v57 = vld [vmem:[%s7650_s28 + $0x94] ss:$24 sps:$4 sm:$0xff]  }
  0x14   :  { %v5265_v58 = vld [vmem:[%s7650_s28 + $0xa4] ss:$24 sps:$4 sm:$0xff]   ;;  %v5262_v59 = vld [vmem:[%s7650_s28 + $0x90] ss:$24 sps:$4 sm:$0xff]   ;;  %v5267_v60 = vld [vmem:[%s7650_s28 + $0xa0] ss:$24 sps:$4 sm:$0xff]  }
  0x15   :  { %1285 = vmatpush1.bf16.msra.mxu1 %v5255_v52  ;;  %v5270_v61 = vld [vmem:[%s7650_s28 + $0xc4] ss:$24 sps:$4 sm:$0xff]   ;;  %v5271_v62 = vld [vmem:[%s7650_s28 + $0xd4] ss:$24 sps:$4 sm:$0xff]   ;;  %v5268_v63 = vld [vmem:[%s7650_s28 + $0xc0] ss:$24 sps:$4 sm:$0xff]  }
  0x16   :  { %184 = vmatpush1.bf16.msra.mxu0 %v5231_v8  ;;  %1286 = vmatprep.subr.bf16.mxu1 %v5259_v55  ;;  %v5273_v0 = vld [vmem:[%s7650_s28 + $0xd0] ss:$24 sps:$4 sm:$0xff]   ;;  %v5276_v1 = vld [vmem:[%s7650_s28 + $0xf4] ss:$24 sps:$4 sm:$0xff]   ;;  %v5277_v2 = vld [vmem:[%s7650_s28 + $0x104] ss:$24 sps:$4 sm:$0xff]  }
  0x17   :  { %185 = vmatprep.subr.bf16.mxu0 %v5232_v9  ;;  %v5274_v3 = vld [vmem:[%s7650_s28 + $0xf0] ss:$24 sps:$4 sm:$0xff]   ;;  %v5279_v4 = vld [vmem:[%s7650_s28 + $0x100] ss:$24 sps:$4 sm:$0xff]   ;;  %v5282_v5 = vld [vmem:[%s7650_s28 + $0x124] ss:$24 sps:$4 sm:$0xff]  }
  0x18   :  { %v5283_v6 = vld [vmem:[%s7650_s28 + $0x134] ss:$24 sps:$4 sm:$0xff]   ;;  %v5280_v7 = vld [vmem:[%s7650_s28 + $0x120] ss:$24 sps:$4 sm:$0xff]   ;;  %v5285_v8 = vld [vmem:[%s7650_s28 + $0x130] ss:$24 sps:$4 sm:$0xff]  }
  0x19   :  { %1287 = vmatpush1.bf16.msra.mxu1 %v5261_v56  ;;  %v5288_v9 = vld [vmem:[%s7650_s28 + $0x154] ss:$24 sps:$4 sm:$0xff]   ;;  %v5298_v18 = vld [vmem:[%s7650_s28 + $0x1b0] ss:$24 sps:$4 sm:$0xff]   ;;  %v5313_v48 = vld [vmem:[%s7650_s28 + $0x224] ss:$24 sps:$4 sm:$0xff]  }
  0x1a   :  { %186 = vmatpush1.bf16.msra.mxu0 %v5234_v10  ;;  %1288 = vmatprep.subr.bf16.mxu1 %v5265_v58  ;;  %v5289_v10 = vld [vmem:[%s7650_s28 + $0x164] ss:$24 sps:$4 sm:$0xff]   ;;  %v5300_v17 = vld [vmem:[%s7650_s28 + $0x1b4] ss:$24 sps:$4 sm:$0xff]   ;;  %v5310_v47 = vld [vmem:[%s7650_s28 + $0x210] ss:$24 sps:$4 sm:$0xff]  }
  0x1b   :  { %187 = vmatprep.subr.bf16.mxu0 %v5235_v11  ;;  %v5286_v11 = vld [vmem:[%s7650_s28 + $0x150] ss:$24 sps:$4 sm:$0xff]   ;;  %v5316_v51 = vld [vmem:[%s7650_s28 + $0x240] ss:$24 sps:$4 sm:$0xff]   ;;  %v5319_v52 = vld [vmem:[%s7650_s28 + $0x254] ss:$24 sps:$4 sm:$0xff]  }
  0x1c   :  { %v5322_v55 = vld [vmem:[%s7650_s28 + $0x270] ss:$24 sps:$4 sm:$0xff]   ;;  %v5325_v56 = vld [vmem:[%s7650_s28 + $0x284] ss:$24 sps:$4 sm:$0xff]  }
  0x1d   :  { %1289 = vmatpush1.bf16.msra.mxu1 %v5267_v60  ;;  %v5330_v58 = vld [vmem:[%s7650_s28 + $0x2a4] ss:$24 sps:$4 sm:$0xff]   ;;  %v5331_v60 = vld [vmem:[%s7650_s28 + $0x2b4] ss:$24 sps:$4 sm:$0xff]  }
  0x1e   :  { %188 = vmatpush1.bf16.msra.mxu0 %v5237_v12  ;;  %1290 = vmatprep.subr.bf16.mxu1 %v5271_v62  ;;  %v5291_v12 = vld [vmem:[%s7650_s28 + $0x160] ss:$24 sps:$4 sm:$0xff]   ;;  %v5336_v62 = vld [vmem:[%s7650_s28 + $0x2d4] ss:$24 sps:$4 sm:$0xff]  }
  0x1f   :  { %189 = vmatprep.subr.bf16.mxu0 %v5238_v13  ;;  %v5294_v13 = vld [vmem:[%s7650_s28 + $0x184] ss:$24 sps:$4 sm:$0xff]  }
  0x21   :  { %1291 = vmatpush1.bf16.msra.mxu1 %v5273_v0  ;;  %v5337_v0 = vld [vmem:[%s7650_s28 + $0x2e4] ss:$24 sps:$4 sm:$0xff]  }
  0x22   :  { %190 = vmatpush1.bf16.msra.mxu0 %v5240_v14  ;;  %1292 = vmatprep.subr.bf16.mxu1 %v5277_v2  ;;  %v5295_v14 = vld [vmem:[%s7650_s28 + $0x194] ss:$24 sps:$4 sm:$0xff]  }
  0x23   :  { %191 = vmatprep.subr.bf16.mxu0 %v5241_v15  ;;  %v5292_v15 = vld [vmem:[%s7650_s28 + $0x180] ss:$24 sps:$4 sm:$0xff]   ;;  %v5342_v2 = vld [vmem:[%s7650_s28 + $0xc] ss:$24 sps:$4 sm:$0xff]  }
  0x25   :  { %1293 = vmatpush1.bf16.msra.mxu1 %v5279_v4 }
  0x26   :  { %192 = vmatpush1.bf16.msra.mxu0 %v5243_v16  ;;  %1294 = vmatprep.subr.bf16.mxu1 %v5283_v6  ;;  %v5297_v16 = vld [vmem:[%s7650_s28 + $0x190] ss:$24 sps:$4 sm:$0xff]  }
  0x27   :  { %1196 = vmatprep.subr.bf16.mxu0 %v5246_v46  ;;  %v5312_v46 = vld [vmem:[%s7650_s28 + $0x214] ss:$24 sps:$4 sm:$0xff]  }
  0x29   :  { %210 = vmatmul.mubr.bf16.vlgmr.msra.gmra.mrb[0].mxu0 %v68_v19  ;;  %1295 = vmatpush1.bf16.msra.mxu1 %v5285_v8 }
  0x2a   :  { %1197 = vmatpush1.bf16.msra.mxu0 %v5244_v45  ;;  %1296 = vmatprep.subr.bf16.mxu1 %v5289_v10  ;;  %v5309_v45 = vld [vmem:[%s7650_s28 + $0x1f0] ss:$24 sps:$4 sm:$0xff]  }
  0x2b   :  { %1198 = vmatprep.subr.bf16.mxu0 %v5252_v50  ;;  %v5318_v50 = vld [vmem:[%s7650_s28 + $0x244] ss:$24 sps:$4 sm:$0xff]  }
  0x2d   :  { %1297 = vmatpush1.bf16.msra.mxu1 %v5291_v12  ;;  %v229_v12 = vld [vmem:[%s7622_s5] sm:$0x3] }
  0x2e   :  { %1199 = vmatpush1.bf16.msra.mxu0 %v5250_v49  ;;  %1298 = vmatprep.subr.bf16.mxu1 %v5295_v14  ;;  %v5315_v49 = vld [vmem:[%s7650_s28 + $0x220] ss:$24 sps:$4 sm:$0xff]  }
  0x2f   :  { %1200 = vmatprep.subr.bf16.mxu0 %v5258_v53  ;;  %v5321_v53 = vld [vmem:[%s7650_s28 + $0x250] ss:$24 sps:$4 sm:$0xff]  }
  0x31   :  { %1299 = vmatpush1.bf16.msra.mxu1 %v5297_v16 }
  0x32   :  { %1201 = vmatpush1.bf16.msra.mxu0 %v5256_v54  ;;  %v5324_v54 = vld [vmem:[%s7650_s28 + $0x274] ss:$24 sps:$4 sm:$0xff]  }
  0x33   :  { %1202 = vmatprep.subr.bf16.mxu0 %v5264_v57  ;;  %v5327_v57 = vld [vmem:[%s7650_s28 + $0x280] ss:$24 sps:$4 sm:$0xff]  }
  0x36   :  { %1203 = vmatpush1.bf16.msra.mxu0 %v5262_v59  ;;  %v5328_v59 = vld [vmem:[%s7650_s28 + $0x2a0] ss:$24 sps:$4 sm:$0xff]  }
  0x37   :  { %1204 = vmatprep.subr.bf16.mxu0 %v5270_v61  ;;  %v5333_v61 = vld [vmem:[%s7650_s28 + $0x2b0] ss:$24 sps:$4 sm:$0xff]  }
  0x3a   :  { %1205 = vmatpush1.bf16.msra.mxu0 %v5268_v63  ;;  %v5334_v63 = vld [vmem:[%s7650_s28 + $0x2d0] ss:$24 sps:$4 sm:$0xff]  }
  0x3b   :  { %1206 = vmatprep.subr.bf16.mxu0 %v5276_v1  ;;  %v5339_v1 = vld [vmem:[%s7650_s28 + $0x2e0] ss:$24 sps:$4 sm:$0xff]  }
  0x3e   :  { %1207 = vmatpush1.bf16.msra.mxu0 %v5274_v3 }
  0x3f   :  { %1208 = vmatprep.subr.bf16.mxu0 %v5282_v5 }
  0x42   :  { %1209 = vmatpush1.bf16.msra.mxu0 %v5280_v7 }
  0x43   :  { %1210 = vmatprep.subr.bf16.mxu0 %v5288_v9  ;;  %v228_v9 = vld [vmem:[%s7621_s4] sm:$0x3] }
  0x44   :  { %v657_v14 = vrot.slane %v228_v9, %v5886_v22 }
  0x46   :  { %1211 = vmatpush1.bf16.msra.mxu0 %v5286_v11 }
  0x47   :  { %1212 = vmatprep.subr.bf16.mxu0 %v5294_v13 }
  0x4a   :  { %1213 = vmatpush1.bf16.msra.mxu0 %v5292_v15  ;;  %v661_v15 = vrot.slane %v228_v9, %v5892_v24 }
  0x4b   :  { %1214 = vmatprep.subr.bf16.mxu0 %v5300_v17  ;;  %v672_v17 = vrot.slane %v229_v12, %v5886_v22 }
  0x4e   :  { %1215 = vmatpush1.bf16.msra.mxu0 %v5298_v18  ;;  %v676_v18 = vrot.slane %v229_v12, %v5892_v24 }
  0xfc   :  { %v211_v27 = vpop.f32.mrb[0].mxu0 }
  0xfd   :  { %v212_v29 = vadd.f32 %v211_v27, %v90_v25  ;;  %v213_v30 = vpop.f32.mrb[1].mxu0 }
  0xfe   :  { %v214_v32 = vadd.f32 %v213_v30, %v94_v26  ;;  %v215_v33 = vpop.f32.mrb[2].mxu0 }
  0xff   :  { %v5902_v34 = vadd.f32 %v220_v28, %v212_v29  ;;  %v216_v35 = vadd.f32 %v215_v33, %v90_v25  ;;  %v217_v37 = vpop.f32.mrb[3].mxu0 }
 0x100   :  { %v5910_v39 = vadd.f32 %v221_v31, %v214_v32  ;;  %v218_v40 = vadd.f32 %v217_v37, %v94_v26  ;;  %v5301_v37 = vld [vmem:[%s7650_s28 + $0x1c4] ss:$24 sps:$4 sm:$0xff]  }
 0x101   :  { %v5912_v41 = vadd.f32 %v222_v36, %v216_v35  ;;  %1300 = vmatprep.subr.bf16.mxu1 %v5301_v37 }
 0x102   :  { %v5914_v42 = vadd.f32 %v223_v38, %v218_v40  ;;  %v620_v43 = vadd.f32 %v5910_v39, %v5902_v34  ;;  %v5303_v38 = vld [vmem:[%s7650_s28 + $0x1c0] ss:$24 sps:$4 sm:$0xff]   ;;  %v5306_v40 = vld [vmem:[%s7650_s28 + $0x1e4] ss:$24 sps:$4 sm:$0xff]  }
 0x103   :  { %1301 = vmatpush1.bf16.msra.mxu1 %v5303_v38  ;;  %1216 = vmatprep.subr.bf16.mxu0 %v5306_v40  ;;  %v5348_v38 = vld [vmem:[%s7650_s28 + $0x6c] ss:$24 sps:$4 sm:$0xff]   ;;  %v5346_v40 = vld [vmem:[%s7650_s28 + $0x68] ss:$24 sps:$4 sm:$0xff]  }
 0x104   :  { %621 = vadd.xlane.f32.xlu0 %v620_v43  ;;  %v623_v44 = vadd.f32 %v5914_v42, %v5912_v41  ;;  %v5304_v43 = vld [vmem:[%s7650_s28 + $0x1e0] ss:$24 sps:$4 sm:$0xff]  }
 0x105   :  { %1217 = vmatpush1.bf16.msra.mxu0 %v5304_v43  ;;  %v5351_v43 = vld [vmem:[%s7650_s28 + $0x9c] ss:$24 sps:$4 sm:$0xff]  }
 0x106   :  { %1218 = vmatprep.subr.bf16.mxu0 %v5312_v46  ;;  %v5352_v46 = vld [vmem:[%s7650_s28 + $0xc8] ss:$24 sps:$4 sm:$0xff]  }
 0x108   :  { %624 = vadd.xlane.f32.xlu0 %v623_v44  ;;  %v5307_v44 = vld [vmem:[%s7650_s28 + $0x1f4] ss:$24 sps:$4 sm:$0xff]  }
 0x109   :  { %1302 = vmatprep.subr.bf16.mxu1 %v5307_v44  ;;  %1219 = vmatpush1.bf16.msra.mxu0 %v5310_v47  ;;  %v5349_v44 = vld [vmem:[%s7650_s28 + $0x98] ss:$24 sps:$4 sm:$0xff]   ;;  %v5357_v47 = vld [vmem:[%s7650_s28 + $0xfc] ss:$24 sps:$4 sm:$0xff]  }
 0x10a   :  { %1303 = vmatpush1.bf16.msra.mxu1 %v5309_v45  ;;  %1220 = vmatprep.subr.bf16.mxu0 %v5318_v50  ;;  %v5354_v45 = vld [vmem:[%s7650_s28 + $0xcc] ss:$24 sps:$4 sm:$0xff]   ;;  %v5358_v50 = vld [vmem:[%s7650_s28 + $0x128] ss:$24 sps:$4 sm:$0xff]  }
 0x10b   :  { %1304 = vmatprep.subr.bf16.mxu1 %v5313_v48  ;;  %v5355_v48 = vld [vmem:[%s7650_s28 + $0xf8] ss:$24 sps:$4 sm:$0xff]  }
 0x10d   :  { %1221 = vmatpush1.bf16.msra.mxu0 %v5316_v51  ;;  %v5363_v51 = vld [vmem:[%s7650_s28 + $0x15c] ss:$24 sps:$4 sm:$0xff]  }
 0x10e   :  { %1305 = vmatpush1.bf16.msra.mxu1 %v5315_v49  ;;  %1222 = vmatprep.subr.bf16.mxu0 %v5324_v54  ;;  %v5360_v49 = vld [vmem:[%s7650_s28 + $0x12c] ss:$24 sps:$4 sm:$0xff]   ;;  %v5364_v54 = vld [vmem:[%s7650_s28 + $0x188] ss:$24 sps:$4 sm:$0xff]  }
 0x10f   :  { %1306 = vmatprep.subr.bf16.mxu1 %v5319_v52  ;;  %v5361_v52 = vld [vmem:[%s7650_s28 + $0x158] ss:$24 sps:$4 sm:$0xff]  }
 0x111   :  { %1223 = vmatpush1.bf16.msra.mxu0 %v5322_v55  ;;  %v5369_v55 = vld [vmem:[%s7650_s28 + $0x1bc] ss:$24 sps:$4 sm:$0xff]  }
 0x112   :  { %1307 = vmatpush1.bf16.msra.mxu1 %v5321_v53  ;;  %1224 = vmatprep.subr.bf16.mxu0 %v5330_v58  ;;  %v5366_v53 = vld [vmem:[%s7650_s28 + $0x18c] ss:$24 sps:$4 sm:$0xff]   ;;  %v5370_v58 = vld [vmem:[%s7650_s28 + $0x1e8] ss:$24 sps:$4 sm:$0xff]  }
 0x113   :  { %1308 = vmatprep.subr.bf16.mxu1 %v5325_v56  ;;  %v5367_v56 = vld [vmem:[%s7650_s28 + $0x1b8] ss:$24 sps:$4 sm:$0xff]  }
 0x115   :  { %1225 = vmatpush1.bf16.msra.mxu0 %v5328_v59  ;;  %v5375_v59 = vld [vmem:[%s7650_s28 + $0x21c] ss:$24 sps:$4 sm:$0xff]  }
 0x116   :  { %1309 = vmatpush1.bf16.msra.mxu1 %v5327_v57  ;;  %1226 = vmatprep.subr.bf16.mxu0 %v5336_v62  ;;  %v5372_v57 = vld [vmem:[%s7650_s28 + $0x1ec] ss:$24 sps:$4 sm:$0xff]   ;;  %v5376_v62 = vld [vmem:[%s7650_s28 + $0x248] ss:$24 sps:$4 sm:$0xff]  }
 0x117   :  { %1310 = vmatprep.subr.bf16.mxu1 %v5331_v60  ;;  %v5373_v60 = vld [vmem:[%s7650_s28 + $0x218] ss:$24 sps:$4 sm:$0xff]  }
 0x119   :  { %1227 = vmatpush1.bf16.msra.mxu0 %v5334_v63  ;;  %v5381_v63 = vld [vmem:[%s7650_s28 + $0x27c] ss:$24 sps:$4 sm:$0xff]  }
 0x11a   :  { %1311 = vmatpush1.bf16.msra.mxu1 %v5333_v61  ;;  %1239 = vmatprep.subr.bf16.mxu0 %v5342_v2  ;;  %v5378_v61 = vld [vmem:[%s7650_s28 + $0x24c] ss:$24 sps:$4 sm:$0xff]   ;;  %v5382_v2 = vld [vmem:[%s7650_s28 + $0x2a8] ss:$24 sps:$4 sm:$0xff]  }
 0x11b   :  { %1312 = vmatprep.subr.bf16.mxu1 %v5337_v0  ;;  %v5379_v0 = vld [vmem:[%s7650_s28 + $0x278] ss:$24 sps:$4 sm:$0xff]  }
 0x11e   :  { %1313 = vmatpush1.bf16.msra.mxu1 %v5339_v1  ;;  %v5384_v1 = vld [vmem:[%s7650_s28 + $0x2ac] ss:$24 sps:$4 sm:$0xff]  }
 0x191   :  { %v622_v19 = vpop.xlane.xlu0 %621 }
 0x192   :  { %v627_v20 = vmul.f32 0.00390625, %v622_v19 }
 0x194   :  { %v6035_v23 = vsub.f32 %v5902_v34, %v627_v20  ;;  %v6038_v25 = vsub.f32 %v5910_v39, %v627_v20 }
 0x195   :  { %v625_v26 = vpop.xlane.xlu0 %624 }
 0x196   :  { %v628_v27 = vmul.f32 0.00390625, %v625_v26  ;;  %v633_v28 = vmul.f32 %v6035_v23, %v6035_v23  ;;  %v634_v29 = vmul.f32 %v6038_v25, %v6038_v25 }
 0x198   :  { %v6045_v30 = vsub.f32 %v5912_v41, %v628_v27  ;;  %v6048_v31 = vsub.f32 %v5914_v42, %v628_v27  ;;  %v637_v32 = vadd.f32 %v634_v29, %v633_v28 }
 0x19a   :  { %638 = vadd.xlane.f32.xlu1 %v637_v32  ;;  %v635_v33 = vmul.f32 %v6045_v30, %v6045_v30  ;;  %v636_v35 = vmul.f32 %v6048_v31, %v6048_v31 }
 0x19c   :  { %v640_v36 = vadd.f32 %v636_v35, %v635_v33 }
 0x19e   :  { %641 = vadd.xlane.f32.xlu1 %v640_v36  ;;  %v5340_v36 = vld [vmem:[%s7650_s28 + $0x8] ss:$24 sps:$4 sm:$0xff]  }
 0x227   :  { %v639_v3 = vpop.xlane.xlu1 %638 }
 0x228   :  { %v643_v4 = vmul.f32 0.00390625, %v639_v3  ;;  %v5387_v3 = vld [vmem:[%s7650_s28 + $0x2dc] ss:$24 sps:$4 sm:$0xff]  }
 0x22a   :  { %v645_v5 = vadd.f32 1e-05, %v643_v4  ;;  %v5385_v4 = vld [vmem:[%s7650_s28 + $0x2d8] ss:$24 sps:$4 sm:$0xff]  }
 0x22b   :  { %v642_v6 = vpop.xlane.xlu1 %641 }
 0x22c   :  { %5644 = vrsqrt.f32 %v645_v5  ;;  %v644_v7 = vmul.f32 0.00390625, %v642_v6  ;;  %v5721_v5 = vmov 0.0   ;;  %v708_v6 = vsub.s32 5, %v5883_v21 }
 0x22d   :  { %5148 = vmatprep.subr.bf16.mxu1 %v5721_v5 }
 0x22e   :  { %v646_v8 = vadd.f32 1e-05, %v644_v7  ;;  %v326_v7 = vld [vmem:[%s7623_s7] sm:$0x3f]  ;;  %s5723_s7 = smov 64  }
 0x22f   :  { %v693_v9 = vrot.slane %v326_v7, %v5892_v24 }
 0x230   :  { %5646 = vrsqrt.f32 %v646_v8  ;;  %v704_v8 = vsub.s32 4, %v5883_v21 }
 0x236   :  { %v5645_v10 = vpop.eup %5644 }
 0x237   :  { %v649_v11 = vmul.f32 %v5645_v10, %v6035_v23  ;;  %v650_v13 = vmul.f32 %v5645_v10, %v6038_v25  ;;  %v709_v10 = vrot.slane %v326_v7, %v708_v6 }
 0x239   :  { %v665_v23 = vmul.f32 %v661_v15, %v650_v13  ;;  %v664_v26 = vmul.f32 %v657_v14, %v649_v11  ;;  %v705_v13 = vrot.slane %v326_v7, %v704_v8 }
 0x23a   :  { %v5647_v16 = vpop.eup %5646 }
 0x23b   :  { %v651_v19 = vmul.f32 %v5647_v16, %v6045_v30  ;;  %v652_v20 = vmul.f32 %v5647_v16, %v6048_v31  ;;  %v680_v29 = vadd.f32 %v676_v18, %v665_v23  ;;  %v679_v25 = vadd.f32 %v672_v17, %v664_v26  ;;  %v5345_v30 = vld [vmem:[%s7650_s28 + $0x3c] ss:$24 sps:$4 sm:$0xff]   ;;  %v5343_v31 = vld [vmem:[%s7650_s28 + $0x38] ss:$24 sps:$4 sm:$0xff]  }
 0x23d   :  { %v667_v27 = vmul.f32 %v661_v15, %v652_v20  ;;  %v666_v28 = vmul.f32 %v657_v14, %v651_v19 }
 0x23f   :  { %v682_v32 = vadd.f32 %v676_v18, %v667_v27  ;;  %v681_v33 = vadd.f32 %v672_v17, %v666_v28  ;;  %v696_v27 = vsub.s32 2, %v5883_v21  ;;  %v700_v28 = vsub.s32 3, %v5883_v21 }
 0x241   :  { %v684_v35 = vpack.c.bf16 %v682_v32, %v680_v29  ;;  %v6152_v37 = vpack.c.bf16 %v681_v33, %v679_v25  ;;  %v697_v29 = vrot.slane %v326_v7, %v696_v27  ;;  %v701_v32 = vrot.slane %v326_v7, %v700_v28 }
 0x243   :  { %1228 = vmatprep.mubr.bf16.mxu0 %v684_v35  ;;  %1314 = vmatprep.mubr.bf16.mxu1 %v684_v35 }
 0x244   :  { %1229 = vmatmul.mubr.bf16.vlgmr.msra.gmra.mrb[4].mxu0 %v6152_v37  ;;  %1315 = vmatmul.mubr.bf16.vlgmr.msra.gmra.mrb[0].mxu1 %v6152_v37 }
 0x245   :  { %1240 = vmatpush1.bf16.msra.mxu0 %v5340_v36  ;;  %1271 = vmatprep.mubr.bf16.mxu0 %v684_v35 }
 0x246   :  { %1241 = vmatprep.subr.bf16.mxu0 %v5345_v30  ;;  %5150 = vmatprep.mubr.msk.bf16.mxu1 %vm5722_vm0, %v5721_v5  ;;  %v689_v30 = vrot.slane %v326_v7, %v5886_v22 }
 0x249   :  { %1242 = vmatpush1.bf16.msra.mxu0 %v5343_v31 }
 0x24a   :  { %1243 = vmatprep.subr.bf16.mxu0 %v5348_v38 }
 0x24d   :  { %1244 = vmatpush1.bf16.msra.mxu0 %v5346_v40 }
 0x24e   :  { %1245 = vmatprep.subr.bf16.mxu0 %v5351_v43 }
 0x251   :  { %1246 = vmatpush1.bf16.msra.mxu0 %v5349_v44 }
 0x252   :  { %1247 = vmatprep.subr.bf16.mxu0 %v5354_v45 }
 0x255   :  { %1248 = vmatpush1.bf16.msra.mxu0 %v5352_v46 }
 0x256   :  { %1249 = vmatprep.subr.bf16.mxu0 %v5357_v47 }
 0x259   :  { %1250 = vmatpush1.bf16.msra.mxu0 %v5355_v48 }
 0x25a   :  { %1251 = vmatprep.subr.bf16.mxu0 %v5360_v49 }
 0x25d   :  { %1252 = vmatpush1.bf16.msra.mxu0 %v5358_v50 }
 0x25e   :  { %1253 = vmatprep.subr.bf16.mxu0 %v5363_v51 }
 0x261   :  { %1254 = vmatpush1.bf16.msra.mxu0 %v5361_v52 }
 0x262   :  { %1255 = vmatprep.subr.bf16.mxu0 %v5366_v53 }
 0x265   :  { %1256 = vmatpush1.bf16.msra.mxu0 %v5364_v54 }
 0x266   :  { %1257 = vmatprep.subr.bf16.mxu0 %v5369_v55 }
 0x269   :  { %1258 = vmatpush1.bf16.msra.mxu0 %v5367_v56 }
 0x26a   :  { %1259 = vmatprep.subr.bf16.mxu0 %v5372_v57 }
 0x26d   :  { %1260 = vmatpush1.bf16.msra.mxu0 %v5370_v58 }
 0x26e   :  { %1261 = vmatprep.subr.bf16.mxu0 %v5375_v59 }
 0x271   :  { %1262 = vmatpush1.bf16.msra.mxu0 %v5373_v60 }
 0x272   :  { %1263 = vmatprep.subr.bf16.mxu0 %v5378_v61 }
 0x275   :  { %1264 = vmatpush1.bf16.msra.mxu0 %v5376_v62 }
 0x276   :  { %1265 = vmatprep.subr.bf16.mxu0 %v5381_v63 }
 0x279   :  { %1266 = vmatpush1.bf16.msra.mxu0 %v5379_v0 }
 0x27a   :  { %1267 = vmatprep.subr.bf16.mxu0 %v5384_v1 }
 0x27d   :  { %1268 = vmatpush1.bf16.msra.mxu0 %v5382_v2 }
 0x27e   :  { %1269 = vmatprep.subr.bf16.mxu0 %v5387_v3 }
 0x281   :  { %1270 = vmatpush1.bf16.msra.mxu0 %v5385_v4 }
 0x282   :  { %5094 = vmatprep.subr.bf16.mxu0 %v5721_v5 }
 0x284   :  { %1272 = vmatmul.mubr.bf16.vlgmr.msra.gmra.mrb[8].mxu0 %v6152_v37 }
 0x285   :  { %5096 = vmatprep.mubr.msk.bf16.mxu0 %vm5722_vm0, %v5721_v5 }
 0x317   :  { %v1230_v11 = vpop.f32.mrb[4].mxu0  ;;  %v1316_v12 = vpop.f32.mrb[0].mxu1 }
 0x318   :  { %v1232_v14 = vpop.f32.mrb[5].mxu0  ;;  %v1318_v15 = vpop.f32.mrb[1].mxu1  ;;  %v1231_v46 = vadd.f32 %v1230_v11, %v689_v30  ;;  %v1317_v53 = vadd.f32 %v1316_v12, %v705_v13 }
 0x319   :  { %v6263_v16 = vadd.f32 %v1232_v14, %v693_v9  ;;  %v6265_v17 = vadd.f32 %v1318_v15, %v709_v10  ;;  %v1234_v18 = vpop.f32.mrb[6].mxu0  ;;  %v1320_v19 = vpop.f32.mrb[2].mxu1 }
 0x31a   :  { %v6267_v20 = vadd.f32 %v1320_v19, %v705_v13  ;;  %v1236_v23 = vpop.f32.mrb[7].mxu0  ;;  %v1322_v26 = vpop.f32.mrb[3].mxu1  ;;  %v1325_v51 = vpack.c.bf16 %v1231_v46, %v1231_v46  ;;  %v1235_v56 = vadd.f32 %v1234_v18, %v689_v30  ;;  %v6301_v58 = vpack.c.bf16 %v1317_v53, %v1317_v53 }
 0x31b   :  { %v1323_v47 = vadd.f32 %v1322_v26, %v709_v10  ;;  %v1237_v50 = vadd.f32 %v1236_v23, %v693_v9 }
 0x31c   :  { %v1326_v59 = vpack.c.bf16 %v1235_v56, %v1235_v56  ;;  %v1456_v60 = vsel %vm1454_vm2, %v6301_v58, 0 }
 0x31d   :  { %v6288_v52 = vpack.c.bf16 %v1323_v47, %v1323_v47  ;;  %v6292_v55 = vpack.c.bf16 %v1237_v50, %v1237_v50 }
 0x31f   :  { %v1946_v57 = vsel %vm1454_vm2, %v6288_v52, 0 }
 0x357   :  { %v1273_v25 = vpop.f32.mrb[8].mxu0 }
 0x358   :  { %v1274_v33 = vadd.f32 %v1273_v25, %v697_v29  ;;  %v1275_v35 = vpop.f32.mrb[9].mxu0 }
 0x359   :  { %v6275_v36 = vadd.f32 %v1275_v35, %v701_v32  ;;  %v1277_v37 = vpop.f32.mrb[10].mxu0 }
 0x35a   :  { %v6278_v31 = vpack.c.bf16 %v1274_v33, %v1274_v33  ;;  %v1279_v38 = vpop.f32.mrb[11].mxu0  ;;  %v1278_v44 = vadd.f32 %v1277_v37, %v697_v29 }
 0x35b   :  { %v1280_v40 = vadd.f32 %v1279_v38, %v701_v32 }
 0x35c   :  { %v1334_v43 = vsel %vm1329_vm1, %v6278_v31, 0  ;;  %v1328_v49 = vpack.c.bf16 %v1278_v44, %v1278_v44 }
 0x35d   :  { %v6282_v45 = vpack.c.bf16 %v1280_v40, %v1280_v40  ;;  %5095 = vmatpush3.bf16.xpose.msra.mxu0 %v1334_v43  ;;  %v1450_v43 = vpack.c.bf16 %v6267_v20, %v6267_v20 }
 0x35e   :  { %5100 = vmatprep.subr.bf16.mxu0 %v5721_v5  ;;  %v1380_v54 = vsel %vm1329_vm1, %v1328_v49, 0 }
 0x35f   :  { %v1826_v48 = vsel %vm1329_vm1, %v6282_v45, 0  ;;  %v1502_v47 = vsel %vm1454_vm2, %v1450_v43, 0 }
 0x360   :  { %5149 = vmatpush3.bf16.xpose.msra.mxu1 %v1826_v48 }
 0x361   :  { %5160 = vmatprep.subr.bf16.mxu1 %v5721_v5 }
 0x364   :  { %5097 = vmatmul.mubr.msk.bf16.vlgmr.msra.gmra.mrb[12].mxu0 %vm1329_vm1, %v1325_v51 }
 0x365   :  { %5101 = vmatpush3.bf16.xpose.msra.mxu0 %v1380_v54  ;;  %5102 = vmatprep.mubr.msk.bf16.mxu0 %vm5722_vm0, %v5721_v5 }
 0x366   :  { %5106 = vmatprep.subr.bf16.mxu0 %v5721_v5 }
 0x367   :  { %5151 = vmatmul.mubr.msk.bf16.vlgmr.msra.gmra.mrb[4].mxu1 %vm1329_vm1, %v6292_v55 }
 0x368   :  { %5161 = vmatpush3.bf16.msra.mxu1 %v1946_v57  ;;  %5162 = vmatprep.mubr.msk.bf16.mxu1 %vm5722_vm0, %v5721_v5 }
 0x369   :  { %5172 = vmatprep.subr.bf16.mxu1 %v5721_v5 }
 0x36c   :  { %5103 = vmatmul.mubr.msk.bf16.vlgmr.msra.gmra.mrb[16].mxu0 %vm1329_vm1, %v1326_v59 }
 0x36d   :  { %5107 = vmatpush3.bf16.msra.mxu0 %v1456_v60  ;;  %5108 = vmatprep.mubr.msk.bf16.mxu0 %vm5722_vm0, %v5721_v5 }
 0x36e   :  { %5112 = vmatprep.subr.bf16.mxu0 %v5721_v5 }
 0x437   :  { %v1370_v61 = vpop.f32.mrb[12].mxu0 }
 0x438   :  { %v1422_v62 = vmul.f32 0.125, %v1370_v61  ;;  %v5098_v63 = vpop.f32.mrb[13].mxu0 }
 0x439   :  { %v1373_v0 = vpop.f32.mrb[14].mxu0 }
 0x43a   :  { %v5099_v1 = vpop.f32.mrb[15].mxu0  ;;  %v6312_v2 = vpop.f32.mrb[4].mxu1  ;;  %v1425_v3 = vsel %vm1424_vm3, %v1422_v62, -inf }
 0x43b   :  { %v5152_v4 = vpop.f32.mrb[5].mxu1  ;;  %1426 = vmax.xlane.f32.xlu0 %v1425_v3 }
 0x43c   :  { %v1865_v7 = vpop.f32.mrb[6].mxu1 }
 0x43d   :  { %v5153_v9 = vpop.f32.mrb[7].mxu1 }
 0x43f   :  { %v1416_v10 = vpop.f32.mrb[16].mxu0 }
 0x440   :  { %v1423_v11 = vmul.f32 0.125, %v1416_v10  ;;  %v5104_v12 = vpop.f32.mrb[17].mxu0 }
 0x441   :  { %v1419_v13 = vpop.f32.mrb[18].mxu0 }
 0x442   :  { %v5105_v14 = vpop.f32.mrb[19].mxu0  ;;  %v1428_v15 = vsel %vm1424_vm3, %v1423_v11, -inf }
 0x443   :  { %1429 = vmax.xlane.f32.xlu1 %v1428_v15 }
 0x4c8   :  { %v1427_v18 = vpop.xlane.xlu0 %1426 }
 0x4c9   :  { %v1431_v19 = vsub.f32 %v1422_v62, %v1427_v18 }
 0x4cb   :  { %v1433_v23 = vmul.f32 1.442695, %v1431_v19 }
 0x4cd   :  { %5648 = vpow2.f32 %v1433_v23 }
 0x4d0   :  { %v1430_v26 = vpop.xlane.xlu1 %1429 }
 0x4d1   :  { %v1432_v29 = vsub.f32 %v1423_v11, %v1430_v26 }
 0x4d3   :  { %v1435_v32 = vmul.f32 1.442695, %v1432_v29 }
 0x4d5   :  { %5650 = vpow2.f32 %v1435_v32 }
 0x4d7   :  { %v5649_v25 = vpop.eup %5648 }
 0x4d8   :  { %v1437_v33 = vsel %vm1424_vm3, %v5649_v25, 0.0 }
 0x4d9   :  { %1438 = vadd.xlane.f32.xlu0 %v1437_v33 }
 0x4df   :  { %v5651_v35 = vpop.eup %5650 }
 0x4e0   :  { %v1440_v37 = vsel %vm1424_vm3, %v5651_v35, 0.0 }
 0x4e1   :  { %1441 = vadd.xlane.f32.xlu1 %v1440_v37 }
 0x4ef   :  { %1548 = vrot.lane.b32.xlu0 %v6278_v31, %s5723_s7 }
 0x4f2   :  { %1545 = vrot.lane.b32.xlu1 %v1325_v51, %s5723_s7 }
 0x4f6   :  { %1600 = vrot.lane.b32.xlu1 %v1328_v49, %s5723_s7 }
 0x4fa   :  { %1597 = vrot.lane.b32.xlu1 %v1326_v59, %s5723_s7 }
 0x566   :  { %v1439_v30 = vpop.xlane.xlu0 %1438 }
 0x567   :  { %5652 = vrcp.f32 %v1439_v30 }
 0x56a   :  { %v1549_v49 = vpop.permute.xlu0 %1548 }
 0x56b   :  { %v1554_v20 = vsel %vm1329_vm1, %v1549_v49, 0 }
 0x56e   :  { %v1442_v38 = vpop.xlane.xlu1 %1441 }
 0x56f   :  { %5654 = vrcp.f32 %v1442_v38 }
 0x571   :  { %v5653_v40 = vpop.eup %5652 }
 0x572   :  { %v1445_v44 = vmul.f32 %v5653_v40, %v5649_v25  ;;  %v1546_v51 = vpop.permute.xlu1 %1545  ;;  %v1869_v40 = vmul.f32 0.125, %v6312_v2 }
 0x574   :  { %v1447_v46 = vpack.c.bf16 %v1445_v44, %v1445_v44 }
 0x576   :  { %5109 = vmatmul.mubr.msk.bf16.vlgmr.msra.gmra.mrb[20].mxu0 %vm1424_vm3, %v1447_v46  ;;  %v1601_v53 = vpop.permute.xlu1 %1600 }
 0x577   :  { %5113 = vmatpush3.bf16.msra.mxu0 %v1502_v47  ;;  %5114 = vmatprep.mubr.msk.bf16.mxu0 %vm5722_vm0, %v5721_v5  ;;  %v1606_v54 = vsel %vm1329_vm1, %v1601_v53, 0  ;;  %v1774_v53 = vpack.c.bf16 %v6275_v36, %v6275_v36 }
 0x578   :  { %5118 = vmatprep.subr.bf16.mxu0 %v5721_v5 }
 0x579   :  { %v5655_v31 = vpop.eup %5654 }
 0x57a   :  { %v1446_v48 = vmul.f32 %v5655_v31, %v5651_v35  ;;  %v1598_v56 = vpop.permute.xlu1 %1597 }
 0x57c   :  { %v1448_v50 = vpack.c.bf16 %v1446_v48, %v1446_v48 }
 0x57e   :  { %5115 = vmatmul.mubr.msk.bf16.vlgmr.msra.gmra.mrb[24].mxu0 %vm1424_vm3, %v1448_v50 }
 0x57f   :  { %5120 = vmatprep.mubr.msk.bf16.mxu0 %vm5722_vm0, %v5721_v5 }
 0x580   :  { %5119 = vmatpush3.bf16.xpose.msra.mxu0 %v1554_v20 }
 0x581   :  { %5124 = vmatprep.subr.bf16.mxu0 %v5721_v5 }
 0x587   :  { %5121 = vmatmul.mubr.msk.bf16.vlgmr.msra.gmra.mrb[28].mxu0 %vm1329_vm1, %v1546_v51 }
 0x588   :  { %5125 = vmatpush3.bf16.xpose.msra.mxu0 %v1606_v54  ;;  %5126 = vmatprep.mubr.msk.bf16.mxu0 %vm5722_vm0, %v5721_v5 }
 0x589   :  { %5130 = vmatprep.subr.bf16.mxu0 %v5721_v5 }
 0x58f   :  { %5127 = vmatmul.mubr.msk.bf16.vlgmr.msra.gmra.mrb[32].mxu0 %vm1329_vm1, %v1598_v56  ;;  %v1780_v56 = vsel %vm1329_vm1, %v1774_v53, 0 }
 0x590   :  { %5132 = vmatprep.mubr.msk.bf16.mxu0 %vm5722_vm0, %v5721_v5 }
 0x649   :  { %v6343_v57 = vpop.f32.mrb[20].mxu0 }
 0x64a   :  { %v5110_v59 = vpop.f32.mrb[21].mxu0 }
 0x64b   :  { %v1495_v60 = vpop.f32.mrb[22].mxu0  ;;  %v6372_v59 = vpack.c.bf16 %v6265_v17, %v6265_v17 }
 0x64c   :  { %v5111_v61 = vpop.f32.mrb[23].mxu0  ;;  %v1772_v60 = vpack.c.bf16 %v6263_v16, %v6263_v16 }
 0x64d   :  { %v1900_v36 = vsel %vm1454_vm2, %v6372_v59, 0 }
 0x651   :  { %v6345_v62 = vpop.f32.mrb[24].mxu0 }
 0x652   :  { %v5116_v63 = vpop.f32.mrb[25].mxu0 }
 0x653   :  { %v1541_v0 = vpop.f32.mrb[26].mxu0 }
 0x654   :  { %v5117_v1 = vpop.f32.mrb[27].mxu0 }
 0x65a   :  { %v1590_v3 = vpop.f32.mrb[28].mxu0 }
 0x65b   :  { %v1648_v4 = vmul.f32 0.125, %v1590_v3  ;;  %v5122_v7 = vpop.f32.mrb[29].mxu0 }
 0x65c   :  { %v1593_v9 = vpop.f32.mrb[30].mxu0 }
 0x65d   :  { %v5123_v10 = vpop.f32.mrb[31].mxu0  ;;  %v1650_v11 = vsel %vm1424_vm3, %v1648_v4, -inf }
 0x65e   :  { %1651 = vmax.xlane.f32.xlu0 %v1650_v11 }
 0x662   :  { %v1642_v12 = vpop.f32.mrb[32].mxu0 }
 0x663   :  { %v1649_v13 = vmul.f32 0.125, %v1642_v12  ;;  %v5128_v14 = vpop.f32.mrb[33].mxu0 }
 0x664   :  { %v1645_v15 = vpop.f32.mrb[34].mxu0 }
 0x665   :  { %v5129_v18 = vpop.f32.mrb[35].mxu0  ;;  %v1653_v19 = vsel %vm1424_vm3, %v1649_v13, -inf }
 0x666   :  { %1654 = vmax.xlane.f32.xlu1 %v1653_v19 }
 0x677   :  { %1724 = vrot.lane.b32.xlu1 %v1450_v43, %s5723_s7  ;;  %v1873_v43 = vsel %vm1424_vm3, %v1869_v40, -inf }
 0x6eb   :  { %v1652_v23 = vpop.xlane.xlu0 %1651 }
 0x6ec   :  { %v1656_v26 = vsub.f32 %v1648_v4, %v1652_v23 }
 0x6ee   :  { %v1658_v29 = vmul.f32 1.442695, %v1656_v26 }
 0x6f0   :  { %5656 = vpow2.f32 %v1658_v29 }
 0x6f3   :  { %v1655_v32 = vpop.xlane.xlu1 %1654 }
 0x6f4   :  { %v1657_v25 = vsub.f32 %v1649_v13, %v1655_v32 }
 0x6f6   :  { %v1660_v33 = vmul.f32 1.442695, %v1657_v25 }
 0x6f7   :  { %v1725_v50 = vpop.permute.xlu1 %1724 }
 0x6f8   :  { %5658 = vpow2.f32 %v1660_v33 }
 0x6fa   :  { %v5657_v35 = vpop.eup %5656 }
 0x6fb   :  { %v1662_v37 = vsel %vm1424_vm3, %v5657_v35, 0.0 }
 0x6fc   :  { %1663 = vadd.xlane.f32.xlu0 %v1662_v37 }
 0x702   :  { %v5659_v30 = vpop.eup %5658 }
 0x703   :  { %v1665_v38 = vsel %vm1424_vm3, %v5659_v30, 0.0 }
 0x704   :  { %1666 = vadd.xlane.f32.xlu0 %v1665_v38 }
 0x71a   :  { %1675 = vrot.lane.b32.xlu0 %v6301_v58, %s5723_s7  ;;  %v1730_v58 = vsel %vm1454_vm2, %v1725_v50, 0 }
 0x739   :  { %1874 = vmax.xlane.f32.xlu0 %v1873_v43 }
 0x789   :  { %v1664_v44 = vpop.xlane.xlu0 %1663 }
 0x78a   :  { %5660 = vrcp.f32 %v1664_v44 }
 0x791   :  { %v1667_v46 = vpop.xlane.xlu0 %1666 }
 0x792   :  { %5662 = vrcp.f32 %v1667_v46 }
 0x794   :  { %v5661_v47 = vpop.eup %5660 }
 0x795   :  { %v1670_v31 = vmul.f32 %v5661_v47, %v5657_v35  ;;  %v1676_v48 = vpop.permute.xlu0 %1675 }
 0x796   :  { %v1681_v49 = vsel %vm1454_vm2, %v1676_v48, 0 }
 0x797   :  { %5131 = vmatpush3.bf16.msra.mxu0 %v1681_v49  ;;  %v1672_v51 = vpack.c.bf16 %v1670_v31, %v1670_v31 }
 0x798   :  { %5136 = vmatprep.subr.bf16.mxu0 %v5721_v5 }
 0x79a   :  { %5133 = vmatmul.mubr.msk.bf16.vlgmr.msra.gmra.mrb[36].mxu0 %vm1424_vm3, %v1672_v51 }
 0x79b   :  { %5137 = vmatpush3.bf16.msra.mxu0 %v1730_v58  ;;  %5138 = vmatprep.mubr.msk.bf16.mxu0 %vm5722_vm0, %v5721_v5 }
 0x79c   :  { %v5663_v2 = vpop.eup %5662  ;;  %5142 = vmatprep.subr.bf16.mxu0 %v5721_v5 }
 0x79d   :  { %v1671_v20 = vmul.f32 %v5663_v2, %v5659_v30 }
 0x79f   :  { %v1673_v54 = vpack.c.bf16 %v1671_v20, %v1671_v20 }
 0x7a2   :  { %5139 = vmatmul.mubr.msk.bf16.vlgmr.msra.gmra.mrb[40].mxu0 %vm1424_vm3, %v1673_v54 }
 0x7a3   :  { %5144 = vmatprep.mubr.msk.bf16.mxu0 %vm5722_vm0, %v5721_v5 }
 0x7a4   :  { %5143 = vmatpush3.bf16.xpose.msra.mxu0 %v1780_v56 }
 0x7a5   :  { %5154 = vmatprep.subr.bf16.mxu0 %v5721_v5 }
 0x7ab   :  { %5145 = vmatmul.mubr.msk.bf16.vlgmr.msra.gmra.mrb[44].mxu0 %vm1329_vm1, %v1772_v60 }
 0x7ac   :  { %5155 = vmatpush3.bf16.msra.mxu0 %v1900_v36  ;;  %5156 = vmatprep.mubr.msk.bf16.mxu0 %vm5722_vm0, %v5721_v5 }
 0x7ad   :  { %5166 = vmatprep.subr.bf16.mxu0 %v5721_v5 }
 0x7c6   :  { %v1875_v61 = vpop.xlane.xlu0 %1874 }
 0x7c7   :  { %v1877_v1 = vsub.f32 %v1869_v40, %v1875_v61 }
 0x7c9   :  { %v1880_v4 = vmul.f32 1.442695, %v1877_v1 }
 0x7cb   :  { %5664 = vpow2.f32 %v1880_v4 }
 0x7d5   :  { %v5665_v23 = vpop.eup %5664 }
 0x7d6   :  { %v1885_v26 = vsel %vm1424_vm3, %v5665_v23, 0.0 }
 0x86d   :  { %v6382_v63 = vpop.f32.mrb[36].mxu0 }
 0x86e   :  { %v5134_v0 = vpop.f32.mrb[37].mxu0 }
 0x86f   :  { %v1720_v17 = vpop.f32.mrb[38].mxu0 }
 0x870   :  { %v5135_v3 = vpop.f32.mrb[39].mxu0 }
 0x875   :  { %v6384_v16 = vpop.f32.mrb[40].mxu0 }
 0x876   :  { %v5215_v7 = vpack.i.bf16 %v6384_v16, %v6382_v63  ;;  %v5140_v9 = vpop.f32.mrb[41].mxu0 }
 0x877   :  { %v1769_v10 = vpop.f32.mrb[42].mxu0 }
 0x878   :  { %v5141_v11 = vpop.f32.mrb[43].mxu0 }
 0x87e   :  { %v1816_v12 = vpop.f32.mrb[44].mxu0 }
 0x87f   :  { %v1868_v13 = vmul.f32 0.125, %v1816_v12  ;;  %v5146_v14 = vpop.f32.mrb[45].mxu0 }
 0x880   :  { %v1819_v15 = vpop.f32.mrb[46].mxu0 }
 0x881   :  { %v5147_v18 = vpop.f32.mrb[47].mxu0  ;;  %v1870_v19 = vsel %vm1424_vm3, %v1868_v13, -inf }
 0x882   :  { %1871 = vmax.xlane.f32.xlu1 %v1870_v19 }
 0x886   :  { %1886 = vadd.xlane.f32.xlu1 %v1885_v26 }
 0x897   :  { %2044 = vrot.lane.b32.xlu1 %v6282_v45, %s5723_s7 }
 0x89b   :  { %1989 = vrot.lane.b32.xlu1 %v1772_v60, %s5723_s7 }
 0x89f   :  { %2041 = vrot.lane.b32.xlu1 %v6292_v55, %s5723_s7 }
 0x90f   :  { %v1872_v29 = vpop.xlane.xlu1 %1871 }
 0x910   :  { %v1876_v32 = vsub.f32 %v1868_v13, %v1872_v29 }
 0x912   :  { %v1878_v25 = vmul.f32 1.442695, %v1876_v32 }
 0x913   :  { %v1887_v33 = vpop.xlane.xlu1 %1886 }
 0x914   :  { %5666 = vpow2.f32 %v1878_v25 }
 0x915   :  { %5668 = vrcp.f32 %v1887_v33 }
 0x917   :  { %v2045_v30 = vpop.permute.xlu1 %2044 }
 0x918   :  { %v2050_v45 = vsel %vm1329_vm1, %v2045_v30, 0 }
 0x91b   :  { %v1990_v44 = vpop.permute.xlu1 %1989 }
 0x91e   :  { %v5667_v35 = vpop.eup %5666 }
 0x91f   :  { %v5669_v37 = vpop.eup %5668  ;;  %v1882_v38 = vsel %vm1424_vm3, %v5667_v35, 0.0  ;;  %v2042_v55 = vpop.permute.xlu1 %2041 }
 0x920   :  { %v1891_v40 = vmul.f32 %v5669_v37, %v5665_v23  ;;  %1883 = vadd.xlane.f32.xlu0 %v1882_v38 }
 0x922   :  { %v1893_v43 = vpack.c.bf16 %v1891_v40, %v1891_v40 }
 0x924   :  { %5163 = vmatmul.mubr.msk.bf16.vlgmr.msra.gmra.mrb[8].mxu1 %vm1424_vm3, %v1893_v43 }
 0x925   :  { %5173 = vmatpush3.bf16.xpose.msra.mxu1 %v2050_v45  ;;  %5174 = vmatprep.mubr.msk.bf16.mxu1 %vm5722_vm0, %v5721_v5 }
 0x926   :  { %5184 = vmatprep.subr.bf16.mxu1 %v5721_v5 }
 0x92c   :  { %5175 = vmatmul.mubr.msk.bf16.vlgmr.msra.gmra.mrb[12].mxu1 %vm1329_vm1, %v2042_v55 }
 0x92d   :  { %5186 = vmatprep.mubr.msk.bf16.mxu1 %vm5722_vm0, %v5721_v5 }
 0x936   :  { %1992 = vrot.lane.b32.xlu0 %v1774_v53, %s5723_s7 }
 0x9ad   :  { %v1884_v46 = vpop.xlane.xlu0 %1883 }
 0x9ae   :  { %5670 = vrcp.f32 %v1884_v46 }
 0x9b1   :  { %v1993_v48 = vpop.permute.xlu0 %1992 }
 0x9b2   :  { %v1998_v50 = vsel %vm1329_vm1, %v1993_v48, 0 }
 0x9b8   :  { %v5671_v47 = vpop.eup %5670 }
 0x9b9   :  { %v1890_v31 = vmul.f32 %v5671_v47, %v5667_v35 }
 0x9bb   :  { %v1892_v49 = vpack.c.bf16 %v1890_v31, %v1890_v31 }
 0x9bd   :  { %5157 = vmatmul.mubr.msk.bf16.vlgmr.msra.gmra.mrb[48].mxu0 %vm1424_vm3, %v1892_v49 }
 0x9be   :  { %5167 = vmatpush3.bf16.xpose.msra.mxu0 %v1998_v50  ;;  %5168 = vmatprep.mubr.msk.bf16.mxu0 %vm5722_vm0, %v5721_v5  ;;  %v5390_v50 = vld [vmem:[%s7624_s8 + $0x4] ss:$8 sps:$4 sm:$0xff]  }
 0x9bf   :  { %5178 = vmatprep.subr.bf16.mxu0 %v5721_v5 }
 0x9c5   :  { %5169 = vmatmul.mubr.msk.bf16.vlgmr.msra.gmra.mrb[52].mxu0 %vm1329_vm1, %v1990_v44 }
 0x9c6   :  { %5180 = vmatprep.mubr.msk.bf16.mxu0 %vm5722_vm0, %v5721_v5 }
 0x9f7   :  { %v6413_v51 = vpop.f32.mrb[8].mxu1 }
 0x9f8   :  { %v5164_v58 = vpop.f32.mrb[9].mxu1 }
 0x9f9   :  { %v1985_v2 = vpop.f32.mrb[10].mxu1  ;;  %v5393_v58 = vld [vmem:[%s7624_s8 + $0x14] ss:$8 sps:$4 sm:$0xff]  }
 0x9fa   :  { %v5165_v20 = vpop.f32.mrb[11].mxu1  ;;  %v5391_v2 = vld [vmem:[%s7624_s8 + $0x10] ss:$8 sps:$4 sm:$0xff]  }
 0x9fb   :  { %v5396_v20 = vld [vmem:[%s7624_s8 + $0x24] ss:$8 sps:$4 sm:$0xff]  }
 0x9ff   :  { %v2086_v53 = vpop.f32.mrb[12].mxu1 }
 0xa00   :  { %v2093_v54 = vmul.f32 0.125, %v2086_v53  ;;  %v5176_v56 = vpop.f32.mrb[13].mxu1  ;;  %v5394_v53 = vld [vmem:[%s7624_s8 + $0x20] ss:$8 sps:$4 sm:$0xff]  }
 0xa01   :  { %v2089_v60 = vpop.f32.mrb[14].mxu1  ;;  %v5397_v56 = vld [vmem:[%s7624_s8 + $0x30] ss:$8 sps:$4 sm:$0xff]  }
 0xa02   :  { %v5177_v36 = vpop.f32.mrb[15].mxu1  ;;  %v2097_v61 = vsel %vm1424_vm3, %v2093_v54, -inf  ;;  %v5402_v60 = vld [vmem:[%s7624_s8 + $0x44] ss:$8 sps:$4 sm:$0xff]  }
 0xa03   :  { %2098 = vmax.xlane.f32.xlu1 %v2097_v61  ;;  %v5400_v36 = vld [vmem:[%s7624_s8 + $0x40] ss:$8 sps:$4 sm:$0xff]   ;;  %v5405_v61 = vld [vmem:[%s7624_s8 + $0x54] ss:$8 sps:$4 sm:$0xff]  }
 0xa14   :  { %2168 = vrot.lane.b32.xlu1 %v6288_v52, %s5723_s7 }
 0xa90   :  { %v2099_v0 = vpop.xlane.xlu1 %2098  ;;  %v6418_v17 = vpop.f32.mrb[48].mxu0 }
 0xa91   :  { %v2101_v5 = vsub.f32 %v2093_v54, %v2099_v0  ;;  %v5158_v1 = vpop.f32.mrb[49].mxu0  ;;  %v5399_v54 = vld [vmem:[%s7624_s8 + $0x34] ss:$8 sps:$4 sm:$0xff]   ;;  %v5403_v0 = vld [vmem:[%s7624_s8 + $0x50] ss:$8 sps:$4 sm:$0xff]  }
 0xa92   :  { %v1939_v3 = vpop.f32.mrb[50].mxu0  ;;  %v5406_v1 = vld [vmem:[%s7624_s8 + $0x60] ss:$8 sps:$4 sm:$0xff]  }
 0xa93   :  { %v2104_v4 = vmul.f32 1.442695, %v2101_v5  ;;  %v5159_v9 = vpop.f32.mrb[51].mxu0  ;;  %v5408_v5 = vld [vmem:[%s7624_s8 + $0x64] ss:$8 sps:$4 sm:$0xff]  }
 0xa94   :  { %v2169_v10 = vpop.permute.xlu1 %2168  ;;  %v5411_v3 = vld [vmem:[%s7624_s8 + $0x74] ss:$8 sps:$4 sm:$0xff]   ;;  %v5414_v9 = vld [vmem:[%s7624_s8 + $0x84] ss:$8 sps:$4 sm:$0xff]  }
 0xa95   :  { %5672 = vpow2.f32 %v2104_v4  ;;  %v2174_v11 = vsel %vm1454_vm2, %v2169_v10, 0  ;;  %v5409_v4 = vld [vmem:[%s7624_s8 + $0x70] ss:$8 sps:$4 sm:$0xff]   ;;  %v5412_v10 = vld [vmem:[%s7624_s8 + $0x80] ss:$8 sps:$4 sm:$0xff]  }
 0xa96   :  { %5185 = vmatpush3.bf16.msra.mxu1 %v2174_v11  ;;  %v5417_v11 = vld [vmem:[%s7624_s8 + $0x94] ss:$8 sps:$4 sm:$0xff]  }
 0xa98   :  { %v2034_v12 = vpop.f32.mrb[52].mxu0 }
 0xa99   :  { %v2092_v13 = vmul.f32 0.125, %v2034_v12  ;;  %v5170_v14 = vpop.f32.mrb[53].mxu0  ;;  %v5415_v12 = vld [vmem:[%s7624_s8 + $0x90] ss:$8 sps:$4 sm:$0xff]  }
 0xa9a   :  { %v2037_v15 = vpop.f32.mrb[54].mxu0  ;;  %v5418_v14 = vld [vmem:[%s7624_s8 + $0xa0] ss:$8 sps:$4 sm:$0xff]  }
 0xa9b   :  { %v5171_v18 = vpop.f32.mrb[55].mxu0  ;;  %v2094_v52 = vsel %vm1424_vm3, %v2092_v13, -inf  ;;  %v5423_v15 = vld [vmem:[%s7624_s8 + $0xb4] ss:$8 sps:$4 sm:$0xff]  }
 0xa9c   :  { %2095 = vmax.xlane.f32.xlu0 %v2094_v52  ;;  %v5421_v18 = vld [vmem:[%s7624_s8 + $0xb0] ss:$8 sps:$4 sm:$0xff]   ;;  %v5426_v52 = vld [vmem:[%s7624_s8 + $0xc4] ss:$8 sps:$4 sm:$0xff]  }
 0xa9f   :  { %v5673_v19 = vpop.eup %5672 }
 0xaa0   :  { %v2109_v23 = vsel %vm1424_vm3, %v5673_v19, 0.0 }
 0xaa1   :  { %2110 = vadd.xlane.f32.xlu0 %v2109_v23  ;;  %v5429_v23 = vld [vmem:[%s7624_s8 + $0xd4] ss:$8 sps:$4 sm:$0xff]  }
 0xb29   :  { %v2096_v26 = vpop.xlane.xlu0 %2095 }
 0xb2a   :  { %v2100_v29 = vsub.f32 %v2092_v13, %v2096_v26  ;;  %v5420_v13 = vld [vmem:[%s7624_s8 + $0xa4] ss:$8 sps:$4 sm:$0xff]   ;;  %v5427_v26 = vld [vmem:[%s7624_s8 + $0xd0] ss:$8 sps:$4 sm:$0xff]  }
 0xb2c   :  { %v2102_v32 = vmul.f32 1.442695, %v2100_v29  ;;  %v5430_v29 = vld [vmem:[%s7624_s8 + $0xe0] ss:$8 sps:$4 sm:$0xff]  }
 0xb2e   :  { %5674 = vpow2.f32 %v2102_v32  ;;  %v2111_v25 = vpop.xlane.xlu0 %2110  ;;  %v5432_v32 = vld [vmem:[%s7624_s8 + $0xe4] ss:$8 sps:$4 sm:$0xff]  }
 0xb2f   :  { %5676 = vrcp.f32 %v2111_v25  ;;  %v5435_v25 = vld [vmem:[%s7624_s8 + $0xf4] ss:$8 sps:$4 sm:$0xff]  }
 0xb38   :  { %v5675_v33 = vpop.eup %5674 }
 0xb39   :  { %v5677_v35 = vpop.eup %5676  ;;  %v2106_v37 = vsel %vm1424_vm3, %v5675_v33, 0.0 }
 0xb3a   :  { %v2115_v30 = vmul.f32 %v5677_v35, %v5673_v19  ;;  %2107 = vadd.xlane.f32.xlu0 %v2106_v37  ;;  %v5424_v19 = vld [vmem:[%s7624_s8 + $0xc0] ss:$8 sps:$4 sm:$0xff]  }
 0xb3c   :  { %v2117_v38 = vpack.c.bf16 %v2115_v30, %v2115_v30 }
 0xb3e   :  { %5187 = vmatmul.mubr.msk.bf16.vlgmr.msra.gmra.mrb[16].mxu1 %vm1424_vm3, %v2117_v38 }
 0xb50   :  { %2119 = vrot.lane.b32.xlu0 %v6372_v59, %s5723_s7  ;;  %v5388_v59 = vld [vmem:[%s7624_s8] ss:$8 sps:$4 sm:$0xff]  }
 0xbc7   :  { %v2108_v40 = vpop.xlane.xlu0 %2107 }
 0xbc8   :  { %5678 = vrcp.f32 %v2108_v40 }
 0xbcb   :  { %v2120_v43 = vpop.permute.xlu0 %2119 }
 0xbcc   :  { %v2125_v45 = vsel %vm1454_vm2, %v2120_v43, 0 }
 0xbcd   :  { %5179 = vmatpush3.bf16.msra.mxu0 %v2125_v45 }
 0xbce   :  { %2409 = vmatprep.subr.bf16.mxu0 %v5390_v50 }
 0xbd2   :  { %v5679_v44 = vpop.eup %5678 }
 0xbd3   :  { %v2114_v55 = vmul.f32 %v5679_v44, %v5675_v33  ;;  %v5433_v33 = vld [vmem:[%s7624_s8 + $0xf0] ss:$8 sps:$4 sm:$0xff]  }
 0xbd5   :  { %v2116_v46 = vpack.c.bf16 %v2114_v55, %v2114_v55 }
 0xbd7   :  { %5181 = vmatmul.mubr.msk.bf16.vlgmr.msra.gmra.mrb[56].mxu0 %vm1424_vm3, %v2116_v46 }
 0xbd8   :  { %2410 = vmatpush1.bf16.msra.mxu0 %v5388_v59 }
 0xbd9   :  { %2411 = vmatprep.subr.bf16.mxu0 %v5393_v58 }
 0xbdc   :  { %2412 = vmatpush1.bf16.msra.mxu0 %v5391_v2 }
 0xbdd   :  { %2413 = vmatprep.subr.bf16.mxu0 %v5396_v20 }
 0xbe0   :  { %2414 = vmatpush1.bf16.msra.mxu0 %v5394_v53 }
 0xbe1   :  { %2415 = vmatprep.subr.bf16.mxu0 %v5399_v54 }
 0xbe4   :  { %2416 = vmatpush1.bf16.msra.mxu0 %v5397_v56 }
 0xbe5   :  { %2417 = vmatprep.subr.bf16.mxu0 %v5402_v60 }
 0xbe8   :  { %2418 = vmatpush1.bf16.msra.mxu0 %v5400_v36 }
 0xbe9   :  { %2419 = vmatprep.subr.bf16.mxu0 %v5405_v61 }
 0xbec   :  { %2420 = vmatpush1.bf16.msra.mxu0 %v5403_v0 }
 0xbed   :  { %2421 = vmatprep.subr.bf16.mxu0 %v5408_v5 }
 0xbf0   :  { %2422 = vmatpush1.bf16.msra.mxu0 %v5406_v1 }
 0xbf1   :  { %2423 = vmatprep.subr.bf16.mxu0 %v5411_v3  ;;  %v367_v3 = vld [vmem:[%s7626_s12 + $0x28] sm:$0xff] }
 0xbf4   :  { %2424 = vmatpush1.bf16.msra.mxu0 %v5409_v4  ;;  %v370_v4 = vld [vmem:[%s7626_s12 + $0x40] sm:$0xff] }
 0xbf5   :  { %2425 = vmatprep.subr.bf16.mxu0 %v5414_v9  ;;  %v374_v9 = vld [vmem:[%s7626_s12 + $0x60] sm:$0xff] }
 0xbf8   :  { %2426 = vmatpush1.bf16.msra.mxu0 %v5412_v10 }
 0xbf9   :  { %2427 = vmatprep.subr.bf16.mxu0 %v5417_v11 }
 0xbfc   :  { %2428 = vmatpush1.bf16.msra.mxu0 %v5415_v12  ;;  %v4771_v12 = vcombine.high %v370_v4, %v374_v9 }
 0xbfd   :  { %2429 = vmatprep.subr.bf16.mxu0 %v5420_v13  ;;  %v371_v13 = vld [vmem:[%s7626_s12 + $0x48] sm:$0xff] }
 0xc00   :  { %2430 = vmatpush1.bf16.msra.mxu0 %v5418_v14  ;;  %v375_v14 = vld [vmem:[%s7626_s12 + $0x68] sm:$0xff] }
 0xc01   :  { %2431 = vmatprep.subr.bf16.mxu0 %v5423_v15  ;;  %v378_v15 = vld [vmem:[%s7626_s12 + $0x80] sm:$0xff] }
 0xc04   :  { %2432 = vmatpush1.bf16.msra.mxu0 %v5421_v18  ;;  %v4773_v18 = vcombine.high %v371_v13, %v375_v14 }
 0xc05   :  { %2433 = vmatprep.subr.bf16.mxu0 %v5426_v52  ;;  %v382_v52 = vld [vmem:[%s7626_s12 + $0xa0] sm:$0xff] }
 0xc08   :  { %2434 = vmatpush1.bf16.msra.mxu0 %v5424_v19  ;;  %v379_v19 = vld [vmem:[%s7626_s12 + $0x88] sm:$0xff] }
 0xc09   :  { %2435 = vmatprep.subr.bf16.mxu0 %v5429_v23  ;;  %v383_v23 = vld [vmem:[%s7626_s12 + $0xa8] sm:$0xff] }
 0xc0c   :  { %2436 = vmatpush1.bf16.msra.mxu0 %v5427_v26  ;;  %v4770_v26 = vcombine.low %v370_v4, %v374_v9 }
 0xc0d   :  { %2437 = vmatprep.subr.bf16.mxu0 %v5432_v32  ;;  %v4779_v32 = vcombine.high %v378_v15, %v382_v52 }
 0xc10   :  { %2438 = vmatpush1.bf16.msra.mxu0 %v5430_v29  ;;  %v4772_v29 = vcombine.low %v371_v13, %v375_v14  ;;  %v427_v13 = vld [vmem:[%s7626_s12 + $0x208] sm:$0xff] }
 0xc11   :  { %v6429_v47 = vpop.f32.mrb[16].mxu1  ;;  %2439 = vmatprep.subr.bf16.mxu0 %v5435_v25  ;;  %v4781_v25 = vcombine.high %v379_v19, %v383_v23  ;;  %v431_v14 = vld [vmem:[%s7626_s12 + $0x228] sm:$0xff] }
 0xc12   :  { %v5188_v31 = vpop.f32.mrb[17].mxu1 }
 0xc13   :  { %v2213_v48 = vpop.f32.mrb[18].mxu1 }
 0xc14   :  { %v5189_v49 = vpop.f32.mrb[19].mxu1  ;;  %2440 = vmatpush1.bf16.msra.mxu0 %v5433_v33  ;;  %v386_v33 = vld [vmem:[%s7626_s12 + $0xc0] sm:$0xff] }
 0xcaa   :  { %v2161_v35 = vpop.f32.mrb[56].mxu0 }
 0xcab   :  { %v5210_v37 = vpack.i.bf16 %v6429_v47, %v2161_v35  ;;  %v5182_v30 = vpop.f32.mrb[57].mxu0  ;;  %v390_v35 = vld [vmem:[%s7626_s12 + $0xe0] sm:$0xff] }
 0xcac   :  { %v2164_v38 = vpop.f32.mrb[58].mxu0  ;;  %v391_v30 = vld [vmem:[%s7626_s12 + $0xe8] sm:$0xff] }
 0xcad   :  { %5211 = vrot.lane.b32.xlu1 %v5210_v37, %s5723_s7  ;;  %v5183_v40 = vpop.f32.mrb[59].mxu0  ;;  %v387_v37 = vld [vmem:[%s7626_s12 + $0xc8] sm:$0xff]  ;;  %v4778_v38 = vcombine.low %v378_v15, %v382_v52 }
 0xcae   :  { %v4780_v40 = vcombine.low %v379_v19, %v383_v23  ;;  %v4829_v19 = vcombine.high %v427_v13, %v431_v14  ;;  %v434_v23 = vld [vmem:[%s7626_s12 + $0x240] sm:$0xff] }
 0xcb1   :  { %5216 = vrot.lane.b32.xlu1 %v5215_v7, %s5723_s7  ;;  %v359_v7 = vld [vmem:[%s7625_s9] sm:$0x3] }
 0xd1f   :  { %v5212_v43 = vpop.permute.xlu1 %5211 }
 0xd20   :  { %v5214_v45 = vunpack.i.h.bf16 %v5212_v43  ;;  %v5213_v44 = vunpack.i.l.bf16 %v5212_v43  ;;  %v4787_v43 = vcombine.high %v386_v33, %v390_v35 }
 0xd22   :  { %v2234_v55 = vsel %vm1329_vm1, %v6418_v17, %v5213_v44  ;;  %v2235_v46 = vsel %vm1329_vm1, %v6413_v51, %v5214_v45  ;;  %v2242_v17 = vrot.slane %v359_v7, %v5886_v22  ;;  %v2246_v51 = vrot.slane %v359_v7, %v5892_v24  ;;  %v394_v44 = vld [vmem:[%s7626_s12 + $0x100] sm:$0xff]  ;;  %v403_v7 = vld [vmem:[%s7626_s12 + $0x148] sm:$0xff] }
 0xd23   :  { %v5217_v47 = vpop.permute.xlu1 %5216  ;;  %v2237_v31 = vpack.c.bf16 %v2235_v46, %v2234_v55  ;;  %v4789_v45 = vcombine.high %v387_v37, %v391_v30  ;;  %v398_v55 = vld [vmem:[%s7626_s12 + $0x120] sm:$0xff]  ;;  %v395_v46 = vld [vmem:[%s7626_s12 + $0x108] sm:$0xff] }
 0xd24   :  { %v5219_v48 = vunpack.i.h.bf16 %v5217_v47  ;;  %v5218_v49 = vunpack.i.l.bf16 %v5217_v47  ;;  %v399_v47 = vld [vmem:[%s7626_s12 + $0x128] sm:$0xff] }
 0xd25   :  { %2441 = vmatprep.mubr.bf16.mxu0 %v2237_v31  ;;  %v4786_v31 = vcombine.low %v386_v33, %v390_v35  ;;  %v4828_v33 = vcombine.low %v427_v13, %v431_v14  ;;  %v466_v14 = vld [vmem:[%s7626_s12 + $0x340] sm:$0xff] }
 0xd26   :  { %v2233_v59 = vsel %vm1329_vm1, %v6345_v62, %v5219_v48  ;;  %v2232_v63 = vsel %vm1329_vm1, %v6343_v57, %v5218_v49  ;;  %v4788_v48 = vcombine.low %v387_v37, %v391_v30  ;;  %v4795_v49 = vcombine.high %v394_v44, %v398_v55 }
 0xd27   :  { %v2236_v16 = vpack.c.bf16 %v2233_v59, %v2232_v63  ;;  %v4797_v59 = vcombine.high %v395_v46, %v399_v47  ;;  %v402_v63 = vld [vmem:[%s7626_s12 + $0x140] sm:$0xff] }
 0xd29   :  { %2442 = vmatmul.mubr.bf16.vlgmr.msra.gmra.mrb[60].mxu0 %v2236_v16  ;;  %v406_v16 = vld [vmem:[%s7626_s12 + $0x160] sm:$0xff] }
 0xdfc   :  { %v2443_v50 = vpop.f32.mrb[60].mxu0 }
 0xdfd   :  { %v2444_v58 = vadd.f32 %v2443_v50, %v2242_v17  ;;  %v2445_v2 = vpop.f32.mrb[61].mxu0  ;;  %v4796_v50 = vcombine.low %v395_v46, %v399_v47 }
 0xdfe   :  { %v2446_v20 = vadd.f32 %v2445_v2, %v2246_v51  ;;  %v2447_v53 = vpop.f32.mrb[62].mxu0 }
 0xdff   :  { %v6547_v62 = vadd.f32 %v2444_v58, %v5902_v34  ;;  %v2448_v54 = vadd.f32 %v2447_v53, %v2242_v17  ;;  %v2449_v57 = vpop.f32.mrb[63].mxu0  ;;  %v407_v17 = vld [vmem:[%s7626_s12 + $0x168] sm:$0xff]  ;;  %v4803_v58 = vcombine.high %v402_v63, %v406_v16  ;;  %v414_v53 = vld [vmem:[%s7626_s12 + $0x1a0] sm:$0xff] }
 0xe00   :  { %v6550_v56 = vadd.f32 %v2446_v20, %v5910_v39  ;;  %v2450_v60 = vadd.f32 %v2449_v57, %v2246_v51  ;;  %v362_v39 = vld [vmem:[%s7626_s12] sm:$0xff]  ;;  %v4794_v51 = vcombine.low %v394_v44, %v398_v55  ;;  %v4805_v2 = vcombine.high %v403_v7, %v407_v17  ;;  %v415_v57 = vld [vmem:[%s7626_s12 + $0x1a8] sm:$0xff] }
 0xe01   :  { %v6553_v36 = vadd.f32 %v2448_v54, %v5912_v41  ;;  %v366_v41 = vld [vmem:[%s7626_s12 + $0x20] sm:$0xff]  ;;  %v411_v54 = vld [vmem:[%s7626_s12 + $0x188] sm:$0xff] }
 0xe02   :  { %v6556_v61 = vadd.f32 %v2450_v60, %v5914_v42  ;;  %v2456_v0 = vadd.f32 %v6550_v56, %v6547_v62  ;;  %v363_v42 = vld [vmem:[%s7626_s12 + $0x8] sm:$0xff]  ;;  %v4762_v5 = vcombine.low %v362_v39, %v366_v41  ;;  %v4763_v1 = vcombine.high %v362_v39, %v366_v41  ;;  %v410_v20 = vld [vmem:[%s7626_s12 + $0x180] sm:$0xff] }
 0xe03   :  { %v4764_v10 = vcombine.low %v363_v42, %v367_v3  ;;  %v4765_v11 = vcombine.high %v363_v42, %v367_v3  ;;  %v4802_v60 = vcombine.low %v402_v63, %v406_v16  ;;  %v4813_v39 = vcombine.high %v411_v54, %v415_v57  ;;  %v418_v41 = vld [vmem:[%s7626_s12 + $0x1c0] sm:$0xff] }
 0xe04   :  { %2457 = vadd.xlane.f32.xlu0 %v2456_v0  ;;  %v2459_v34 = vadd.f32 %v6556_v61, %v6553_v36  ;;  %3201 = vmatprep.subr.bf16.mxu1 %v4763_v1  ;;  %v4804_v0 = vcombine.low %v403_v7, %v407_v17  ;;  %v422_v42 = vld [vmem:[%s7626_s12 + $0x1e0] sm:$0xff]  ;;  %v423_v1 = vld [vmem:[%s7626_s12 + $0x1e8] sm:$0xff]  ;;  %v4810_v3 = vcombine.low %v410_v20, %v414_v53 }
 0xe05   :  { %3244 = vmatprep.subr.bf16.mxu0 %v4765_v11  ;;  %3202 = vmatpush1.bf16.msra.mxu1 %v4762_v5  ;;  %v419_v5 = vld [vmem:[%s7626_s12 + $0x1c8] sm:$0xff]  ;;  %v4812_v4 = vcombine.low %v411_v54, %v415_v57  ;;  %v4819_v9 = vcombine.high %v418_v41, %v422_v42  ;;  %v426_v11 = vld [vmem:[%s7626_s12 + $0x200] sm:$0xff]  ;;  %v4818_v15 = vcombine.low %v418_v41, %v422_v42 }
 0xe06   :  { %2460 = vadd.xlane.f32.xlu1 %v2459_v34  ;;  %3245 = vmatpush1.bf16.msra.mxu0 %v4764_v10  ;;  %v4811_v34 = vcombine.high %v410_v20, %v414_v53  ;;  %v4821_v10 = vcombine.high %v419_v5, %v423_v1  ;;  %v442_v17 = vld [vmem:[%s7626_s12 + $0x280] sm:$0xff] }
 0xe07   :  { %3203 = vmatprep.subr.bf16.mxu1 %v4771_v12  ;;  %3246 = vmatprep.subr.bf16.mxu0 %v4773_v18  ;;  %v430_v12 = vld [vmem:[%s7626_s12 + $0x220] sm:$0xff]  ;;  %v4820_v18 = vcombine.low %v419_v5, %v423_v1 }
 0xe08   :  { %v4827_v52 = vcombine.high %v426_v11, %v430_v12  ;;  %v450_v57 = vld [vmem:[%s7626_s12 + $0x2c0] sm:$0xff] }
 0xe09   :  { %3204 = vmatpush1.bf16.msra.mxu1 %v4770_v26  ;;  %v438_v26 = vld [vmem:[%s7626_s12 + $0x260] sm:$0xff] }
 0xe0a   :  { %3247 = vmatpush1.bf16.msra.mxu0 %v4772_v29  ;;  %3205 = vmatprep.subr.bf16.mxu1 %v4779_v32  ;;  %v435_v29 = vld [vmem:[%s7626_s12 + $0x248] sm:$0xff]  ;;  %v4835_v35 = vcombine.high %v434_v23, %v438_v26  ;;  %v4834_v30 = vcombine.low %v434_v23, %v438_v26  ;;  %v458_v1 = vld [vmem:[%s7626_s12 + $0x300] sm:$0xff] }
 0xe0b   :  { %3248 = vmatprep.subr.bf16.mxu0 %v4781_v25  ;;  %v439_v32 = vld [vmem:[%s7626_s12 + $0x268] sm:$0xff]  ;;  %v4826_v25 = vcombine.low %v426_v11, %v430_v12 }
 0xe0c   :  { %v4837_v37 = vcombine.high %v435_v29, %v439_v32 }
 0xe0d   :  { %3206 = vmatpush1.bf16.msra.mxu1 %v4778_v38  ;;  %v4836_v38 = vcombine.low %v435_v29, %v439_v32  ;;  %v474_v32 = vld [vmem:[%s7626_s12 + $0x380] sm:$0xff] }
 0xe0e   :  { %3249 = vmatpush1.bf16.msra.mxu0 %v4780_v40  ;;  %3207 = vmatprep.subr.bf16.mxu1 %v4787_v43 }
 0xe0f   :  { %3250 = vmatprep.subr.bf16.mxu0 %v4789_v45 }
 0xe11   :  { %3208 = vmatpush1.bf16.msra.mxu1 %v4786_v31 }
 0xe12   :  { %3251 = vmatpush1.bf16.msra.mxu0 %v4788_v48  ;;  %3209 = vmatprep.subr.bf16.mxu1 %v4795_v49 }
 0xe13   :  { %3252 = vmatprep.subr.bf16.mxu0 %v4797_v59 }
 0xe15   :  { %3210 = vmatpush1.bf16.msra.mxu1 %v4794_v51  ;;  %v446_v51 = vld [vmem:[%s7626_s12 + $0x2a0] sm:$0xff] }
 0xe16   :  { %3253 = vmatpush1.bf16.msra.mxu0 %v4796_v50  ;;  %3211 = vmatprep.subr.bf16.mxu1 %v4803_v58  ;;  %v443_v50 = vld [vmem:[%s7626_s12 + $0x288] sm:$0xff]  ;;  %v4843_v58 = vcombine.high %v442_v17, %v446_v51  ;;  %v4842_v20 = vcombine.low %v442_v17, %v446_v51  ;;  %v368_v17 = vld [vmem:[%s7626_s12 + $0x30] sm:$0xff]  ;;  %v365_v51 = vld [vmem:[%s7626_s12 + $0x18] sm:$0xff] }
 0xe17   :  { %3254 = vmatprep.subr.bf16.mxu0 %v4805_v2  ;;  %v447_v2 = vld [vmem:[%s7626_s12 + $0x2a8] sm:$0xff] }
 0xe18   :  { %v4844_v53 = vcombine.low %v443_v50, %v447_v2  ;;  %v4845_v54 = vcombine.high %v443_v50, %v447_v2  ;;  %v369_v2 = vld [vmem:[%s7626_s12 + $0x38] sm:$0xff] }
 0xe19   :  { %3212 = vmatpush1.bf16.msra.mxu1 %v4802_v60  ;;  %v454_v60 = vld [vmem:[%s7626_s12 + $0x2e0] sm:$0xff] }
 0xe1a   :  { %3255 = vmatpush1.bf16.msra.mxu0 %v4804_v0  ;;  %3213 = vmatprep.subr.bf16.mxu1 %v4811_v34  ;;  %v451_v0 = vld [vmem:[%s7626_s12 + $0x2c8] sm:$0xff]  ;;  %v4851_v34 = vcombine.high %v450_v57, %v454_v60  ;;  %v4850_v41 = vcombine.low %v450_v57, %v454_v60 }
 0xe1b   :  { %3256 = vmatprep.subr.bf16.mxu0 %v4813_v39  ;;  %v455_v39 = vld [vmem:[%s7626_s12 + $0x2e8] sm:$0xff] }
 0xe1c   :  { %v4852_v42 = vcombine.low %v451_v0, %v455_v39  ;;  %v4853_v5 = vcombine.high %v451_v0, %v455_v39 }
 0xe1d   :  { %3214 = vmatpush1.bf16.msra.mxu1 %v4810_v3  ;;  %v462_v3 = vld [vmem:[%s7626_s12 + $0x320] sm:$0xff] }
 0xe1e   :  { %3257 = vmatpush1.bf16.msra.mxu0 %v4812_v4  ;;  %3215 = vmatprep.subr.bf16.mxu1 %v4819_v9  ;;  %v459_v4 = vld [vmem:[%s7626_s12 + $0x308] sm:$0xff]  ;;  %v4859_v9 = vcombine.high %v458_v1, %v462_v3  ;;  %v4858_v11 = vcombine.low %v458_v1, %v462_v3  ;;  %v361_v3 = vld [vmem:[%s7629_s11] sm:$0x3] }
 0xe1f   :  { %3258 = vmatprep.subr.bf16.mxu0 %v4821_v10  ;;  %v463_v10 = vld [vmem:[%s7626_s12 + $0x328] sm:$0xff] }
 0xe20   :  { %v4860_v12 = vcombine.low %v459_v4, %v463_v10  ;;  %v4861_v13 = vcombine.high %v459_v4, %v463_v10 }
 0xe21   :  { %3216 = vmatpush1.bf16.msra.mxu1 %v4818_v15  ;;  %v470_v15 = vld [vmem:[%s7626_s12 + $0x360] sm:$0xff] }
 0xe22   :  { %3259 = vmatpush1.bf16.msra.mxu0 %v4820_v18  ;;  %3217 = vmatprep.subr.bf16.mxu1 %v4827_v52  ;;  %v467_v18 = vld [vmem:[%s7626_s12 + $0x348] sm:$0xff]  ;;  %v4867_v52 = vcombine.high %v466_v14, %v470_v15  ;;  %v4866_v23 = vcombine.low %v466_v14, %v470_v15 }
 0xe23   :  { %3260 = vmatprep.subr.bf16.mxu0 %v4829_v19  ;;  %v471_v19 = vld [vmem:[%s7626_s12 + $0x368] sm:$0xff] }
 0xe24   :  { %v4868_v26 = vcombine.low %v467_v18, %v471_v19  ;;  %v4869_v29 = vcombine.high %v467_v18, %v471_v19 }
 0xe25   :  { %3218 = vmatpush1.bf16.msra.mxu1 %v4826_v25  ;;  %v478_v25 = vld [vmem:[%s7626_s12 + $0x3a0] sm:$0xff] }
 0xe26   :  { %3261 = vmatpush1.bf16.msra.mxu0 %v4828_v33  ;;  %3219 = vmatprep.subr.bf16.mxu1 %v4835_v35  ;;  %v475_v33 = vld [vmem:[%s7626_s12 + $0x388] sm:$0xff]  ;;  %v4874_v35 = vcombine.low %v474_v32, %v478_v25 }
 0xe27   :  { %3262 = vmatprep.subr.bf16.mxu0 %v4837_v37  ;;  %v4875_v37 = vcombine.high %v474_v32, %v478_v25  ;;  %v376_v32 = vld [vmem:[%s7626_s12 + $0x70] sm:$0xff] }
 0xe29   :  { %3220 = vmatpush1.bf16.msra.mxu1 %v4834_v30  ;;  %v479_v30 = vld [vmem:[%s7626_s12 + $0x3a8] sm:$0xff] }
 0xe2a   :  { %3263 = vmatpush1.bf16.msra.mxu0 %v4836_v38  ;;  %3221 = vmatprep.subr.bf16.mxu1 %v4843_v58  ;;  %v482_v38 = vld [vmem:[%s7626_s12 + $0x3c0] sm:$0xff] }
 0xe2b   :  { %3264 = vmatprep.subr.bf16.mxu0 %v4845_v54 }
 0xe2d   :  { %3222 = vmatpush1.bf16.msra.mxu1 %v4842_v20  ;;  %v4768_v20 = vcombine.low %v365_v51, %v369_v2 }
 0xe2e   :  { %3265 = vmatpush1.bf16.msra.mxu0 %v4844_v53  ;;  %3223 = vmatprep.subr.bf16.mxu1 %v4851_v34  ;;  %v4769_v53 = vcombine.high %v365_v51, %v369_v2  ;;  %v396_v2 = vld [vmem:[%s7626_s12 + $0x110] sm:$0xff] }
 0xe2f   :  { %3266 = vmatprep.subr.bf16.mxu0 %v4853_v5 }
 0xe31   :  { %3224 = vmatpush1.bf16.msra.mxu1 %v4850_v41  ;;  %v360_v41 = vld [vmem:[%s7628_s10] sm:$0x3] }
 0xe32   :  { %3267 = vmatpush1.bf16.msra.mxu0 %v4852_v42  ;;  %3225 = vmatprep.subr.bf16.mxu1 %v4859_v9  ;;  %v2496_v4 = vrot.slane %v360_v41, %v5892_v24  ;;  %v2492_v9 = vrot.slane %v360_v41, %v5886_v22  ;;  %v408_v41 = vld [vmem:[%s7626_s12 + $0x170] sm:$0xff] }
 0xe33   :  { %3268 = vmatprep.subr.bf16.mxu0 %v4861_v13 }
 0xe35   :  { %3226 = vmatpush1.bf16.msra.mxu1 %v4858_v11  ;;  %v2511_v11 = vrot.slane %v361_v3, %v5892_v24 }
 0xe36   :  { %3269 = vmatpush1.bf16.msra.mxu0 %v4860_v12  ;;  %3227 = vmatprep.subr.bf16.mxu1 %v4867_v52  ;;  %v2507_v12 = vrot.slane %v361_v3, %v5886_v22 }
 0xe37   :  { %3270 = vmatprep.subr.bf16.mxu0 %v4869_v29  ;;  %v372_v29 = vld [vmem:[%s7626_s12 + $0x50] sm:$0xff] }
 0xe39   :  { %3228 = vmatpush1.bf16.msra.mxu1 %v4866_v23 }
 0xe3a   :  { %3271 = vmatpush1.bf16.msra.mxu0 %v4868_v26  ;;  %3229 = vmatprep.subr.bf16.mxu1 %v4875_v37  ;;  %v4775_v37 = vcombine.high %v372_v29, %v376_v32 }
 0xe3d   :  { %3230 = vmatpush1.bf16.msra.mxu1 %v4874_v35  ;;  %v380_v35 = vld [vmem:[%s7626_s12 + $0x90] sm:$0xff] }
 0xe91   :  { %v2458_v40 = vpop.xlane.xlu0 %2457 }
 0xe92   :  { %v2462_v43 = vmul.f32 0.00390625, %v2458_v40  ;;  %v486_v40 = vld [vmem:[%s7626_s12 + $0x3e0] sm:$0xff] }
 0xe93   :  { %v2461_v45 = vpop.xlane.xlu1 %2460 }
 0xe94   :  { %v6683_v44 = vsub.f32 %v6547_v62, %v2462_v43  ;;  %v6686_v55 = vsub.f32 %v6550_v56, %v2462_v43  ;;  %v2463_v46 = vmul.f32 0.00390625, %v2461_v45  ;;  %v4876_v43 = vcombine.low %v475_v33, %v479_v30 }
 0xe95   :  { %v4877_v45 = vcombine.high %v475_v33, %v479_v30 }
 0xe96   :  { %v6689_v47 = vsub.f32 %v6553_v36, %v2463_v46  ;;  %v6692_v31 = vsub.f32 %v6556_v61, %v2463_v46  ;;  %v2468_v48 = vmul.f32 %v6683_v44, %v6683_v44  ;;  %v2469_v49 = vmul.f32 %v6686_v55, %v6686_v55 }
 0xe97   :  { %v4883_v46 = vcombine.high %v482_v38, %v486_v40  ;;  %3272 = vmatprep.subr.bf16.mxu0 %v4877_v45  ;;  %v4774_v45 = vcombine.low %v372_v29, %v376_v32 }
 0xe98   :  { %v2472_v59 = vadd.f32 %v2469_v49, %v2468_v48  ;;  %v2470_v63 = vmul.f32 %v6689_v47, %v6689_v47  ;;  %v2471_v16 = vmul.f32 %v6692_v31, %v6692_v31  ;;  %v483_v48 = vld [vmem:[%s7626_s12 + $0x3c8] sm:$0xff]  ;;  %3273 = vmatpush1.bf16.msra.mxu0 %v4876_v43  ;;  %v385_v43 = vld [vmem:[%s7626_s12 + $0xb8] sm:$0xff] }
 0xe99   :  { %v487_v49 = vld [vmem:[%s7626_s12 + $0x3e8] sm:$0xff]  ;;  %3231 = vmatprep.subr.bf16.mxu1 %v4883_v46 }
 0xe9a   :  { %2473 = vadd.xlane.f32.xlu0 %v2472_v59  ;;  %v2475_v7 = vadd.f32 %v2471_v16, %v2470_v63  ;;  %v4885_v59 = vcombine.high %v483_v48, %v487_v49  ;;  %v4882_v63 = vcombine.low %v482_v38, %v486_v40  ;;  %v4884_v16 = vcombine.low %v483_v48, %v487_v49  ;;  %v384_v38 = vld [vmem:[%s7626_s12 + $0xb0] sm:$0xff]  ;;  %v381_v40 = vld [vmem:[%s7626_s12 + $0x98] sm:$0xff] }
 0xe9b   :  { %v4783_v48 = vcombine.high %v380_v35, %v384_v38  ;;  %v4785_v49 = vcombine.high %v381_v40, %v385_v43  ;;  %v4784_v51 = vcombine.low %v381_v40, %v385_v43 }
 0xe9c   :  { %3274 = vmatprep.subr.bf16.mxu0 %v4885_v59  ;;  %3232 = vmatpush1.bf16.msra.mxu1 %v4882_v63  ;;  %v388_v59 = vld [vmem:[%s7626_s12 + $0xd0] sm:$0xff] }
 0xe9d   :  { %3275 = vmatpush1.bf16.msra.mxu0 %v4884_v16  ;;  %v392_v63 = vld [vmem:[%s7626_s12 + $0xf0] sm:$0xff]  ;;  %v389_v16 = vld [vmem:[%s7626_s12 + $0xd8] sm:$0xff] }
 0xe9e   :  { %2476 = vadd.xlane.f32.xlu0 %v2475_v7  ;;  %v364_v7 = vld [vmem:[%s7626_s12 + $0x10] sm:$0xff]  ;;  %3330 = vmatprep.subr.bf16.mxu0 %v4769_v53  ;;  %v397_v53 = vld [vmem:[%s7626_s12 + $0x118] sm:$0xff] }
 0xe9f   :  { %v4766_v50 = vcombine.low %v364_v7, %v368_v17  ;;  %v4767_v58 = vcombine.high %v364_v7, %v368_v17  ;;  %v393_v7 = vld [vmem:[%s7626_s12 + $0xf8] sm:$0xff]  ;;  %v4782_v17 = vcombine.low %v380_v35, %v384_v38 }
 0xea0   :  { %v429_v35 = vld [vmem:[%s7626_s12 + $0x218] sm:$0xff] }
 0xea1   :  { %3287 = vmatprep.subr.bf16.mxu1 %v4767_v58  ;;  %v4793_v58 = vcombine.high %v389_v16, %v393_v7 }
 0xf27   :  { %v2474_v54 = vpop.xlane.xlu0 %2473 }
 0xf28   :  { %v2478_v57 = vmul.f32 0.00390625, %v2474_v54  ;;  %v401_v54 = vld [vmem:[%s7626_s12 + $0x138] sm:$0xff] }
 0xf29   :  { %v4800_v3 = vcombine.low %v397_v53, %v401_v54 }
 0xf2a   :  { %v2480_v60 = vadd.f32 1e-05, %v2478_v57  ;;  %v4790_v57 = vcombine.low %v388_v59, %v392_v63 }
 0xf2b   :  { %v2477_v0 = vpop.xlane.xlu0 %2476 }
 0xf2c   :  { %5680 = vrsqrt.f32 %v2480_v60  ;;  %v2479_v34 = vmul.f32 0.00390625, %v2477_v0  ;;  %v4792_v60 = vcombine.low %v389_v16, %v393_v7 }
 0xf2e   :  { %v2481_v39 = vadd.f32 1e-05, %v2479_v34  ;;  %v4801_v34 = vcombine.high %v397_v53, %v401_v54 }
 0xf30   :  { %5682 = vrsqrt.f32 %v2481_v39  ;;  %v404_v39 = vld [vmem:[%s7626_s12 + $0x150] sm:$0xff] }
 0xf36   :  { %v5681_v42 = vpop.eup %5680 }
 0xf37   :  { %v2484_v5 = vmul.f32 %v5681_v42, %v6683_v44  ;;  %v2485_v1 = vmul.f32 %v5681_v42, %v6686_v55  ;;  %v405_v42 = vld [vmem:[%s7626_s12 + $0x158] sm:$0xff] }
 0xf39   :  { %v2500_v44 = vmul.f32 %v2496_v4, %v2485_v1  ;;  %v2499_v15 = vmul.f32 %v2492_v9, %v2484_v5  ;;  %v409_v5 = vld [vmem:[%s7626_s12 + $0x178] sm:$0xff] }
 0xf3a   :  { %v5683_v10 = vpop.eup %5682 }
 0xf3b   :  { %v2486_v13 = vmul.f32 %v5683_v10, %v6689_v47  ;;  %v2487_v14 = vmul.f32 %v5683_v10, %v6692_v31  ;;  %v2515_v52 = vadd.f32 %v2511_v11, %v2500_v44  ;;  %v2514_v23 = vadd.f32 %v2507_v12, %v2499_v15  ;;  %v373_v47 = vld [vmem:[%s7626_s12 + $0x58] sm:$0xff]  ;;  %v412_v10 = vld [vmem:[%s7626_s12 + $0x190] sm:$0xff] }
 0xf3c   :  { %v377_v31 = vld [vmem:[%s7626_s12 + $0x78] sm:$0xff]  ;;  %v4808_v44 = vcombine.low %v405_v42, %v409_v5 }
 0xf3d   :  { %v2502_v55 = vmul.f32 %v2496_v4, %v2487_v14  ;;  %v2501_v18 = vmul.f32 %v2492_v9, %v2486_v13  ;;  %v4777_v30 = vcombine.high %v373_v47, %v377_v31  ;;  %v4776_v46 = vcombine.low %v373_v47, %v377_v31  ;;  %v417_v13 = vld [vmem:[%s7626_s12 + $0x1b8] sm:$0xff]  ;;  %v428_v31 = vld [vmem:[%s7626_s12 + $0x210] sm:$0xff] }
 0xf3e   :  { %v4807_v4 = vcombine.high %v404_v39, %v408_v41  ;;  %v4809_v9 = vcombine.high %v405_v42, %v409_v5  ;;  %v4806_v14 = vcombine.low %v404_v39, %v408_v41 }
 0xf3f   :  { %v2517_v19 = vadd.f32 %v2511_v11, %v2502_v55  ;;  %v2516_v26 = vadd.f32 %v2507_v12, %v2501_v18  ;;  %v416_v11 = vld [vmem:[%s7626_s12 + $0x1b0] sm:$0xff]  ;;  %v413_v12 = vld [vmem:[%s7626_s12 + $0x198] sm:$0xff] }
 0xf40   :  { %v4815_v15 = vcombine.high %v412_v10, %v416_v11  ;;  %v4817_v55 = vcombine.high %v413_v12, %v417_v13  ;;  %v420_v18 = vld [vmem:[%s7626_s12 + $0x1d0] sm:$0xff]  ;;  %v4816_v29 = vcombine.low %v413_v12, %v417_v13 }
 0xf41   :  { %v2519_v25 = vpack.c.bf16 %v2517_v19, %v2515_v52  ;;  %v6812_v33 = vpack.c.bf16 %v2516_v26, %v2514_v23  ;;  %v424_v52 = vld [vmem:[%s7626_s12 + $0x1f0] sm:$0xff]  ;;  %v421_v19 = vld [vmem:[%s7626_s12 + $0x1d8] sm:$0xff]  ;;  %v4814_v26 = vcombine.low %v412_v10, %v416_v11 }
 0xf42   :  { %v425_v23 = vld [vmem:[%s7626_s12 + $0x1f8] sm:$0xff]  ;;  %v4823_v32 = vcombine.high %v420_v18, %v424_v52 }
 0xf43   :  { %3233 = vmatprep.mubr.bf16.mxu1 %v2519_v25  ;;  %3276 = vmatprep.mubr.bf16.mxu0 %v2519_v25  ;;  %v4825_v47 = vcombine.high %v421_v19, %v425_v23  ;;  %v4824_v38 = vcombine.low %v421_v19, %v425_v23 }
 0xf44   :  { %3234 = vmatmul.mubr.bf16.vlgmr.msra.gmra.mrb[20].mxu1 %v6812_v33  ;;  %3277 = vmatmul.mubr.bf16.vlgmr.msra.gmra.mrb[64].mxu0 %v6812_v33 }
 0xf45   :  { %3288 = vmatpush1.bf16.msra.mxu1 %v4766_v50  ;;  %3331 = vmatpush1.bf16.msra.mxu0 %v4768_v20  ;;  %v4791_v50 = vcombine.high %v388_v59, %v392_v63  ;;  %v400_v20 = vld [vmem:[%s7626_s12 + $0x130] sm:$0xff] }
 0xf46   :  { %3319 = vmatprep.mubr.bf16.mxu1 %v2519_v25  ;;  %3362 = vmatprep.mubr.bf16.mxu0 %v2519_v25  ;;  %v4799_v0 = vcombine.high %v396_v2, %v400_v20  ;;  %v4798_v1 = vcombine.low %v396_v2, %v400_v20  ;;  %v432_v25 = vld [vmem:[%s7626_s12 + $0x230] sm:$0xff] }
 0xf47   :  { %3289 = vmatprep.subr.bf16.mxu1 %v4775_v37  ;;  %3332 = vmatprep.subr.bf16.mxu0 %v4777_v30  ;;  %v433_v37 = vld [vmem:[%s7626_s12 + $0x238] sm:$0xff]  ;;  %v4822_v30 = vcombine.low %v420_v18, %v424_v52  ;;  %v4831_v40 = vcombine.high %v428_v31, %v432_v25  ;;  %v4830_v59 = vcombine.low %v428_v31, %v432_v25 }
 0xf48   :  { %v4833_v43 = vcombine.high %v429_v35, %v433_v37  ;;  %v4832_v63 = vcombine.low %v429_v35, %v433_v37 }
 0xf49   :  { %3290 = vmatpush1.bf16.msra.mxu1 %v4774_v45  ;;  %3333 = vmatpush1.bf16.msra.mxu0 %v4776_v46  ;;  %v436_v45 = vld [vmem:[%s7626_s12 + $0x250] sm:$0xff] }
 0xf4a   :  { %3291 = vmatprep.subr.bf16.mxu1 %v4783_v48  ;;  %3334 = vmatprep.subr.bf16.mxu0 %v4785_v49  ;;  %v440_v46 = vld [vmem:[%s7626_s12 + $0x270] sm:$0xff]  ;;  %v437_v48 = vld [vmem:[%s7626_s12 + $0x258] sm:$0xff] }
 0xf4b   :  { %v441_v49 = vld [vmem:[%s7626_s12 + $0x278] sm:$0xff]  ;;  %v4839_v16 = vcombine.high %v436_v45, %v440_v46  ;;  %v4838_v2 = vcombine.low %v436_v45, %v440_v46 }
 0xf4c   :  { %v4841_v7 = vcombine.high %v437_v48, %v441_v49  ;;  %v4840_v20 = vcombine.low %v437_v48, %v441_v49 }
 0xf4d   :  { %3292 = vmatpush1.bf16.msra.mxu1 %v4782_v17  ;;  %3335 = vmatpush1.bf16.msra.mxu0 %v4784_v51  ;;  %v444_v17 = vld [vmem:[%s7626_s12 + $0x290] sm:$0xff] }
 0xf4e   :  { %3293 = vmatprep.subr.bf16.mxu1 %v4791_v50  ;;  %3336 = vmatprep.subr.bf16.mxu0 %v4793_v58  ;;  %v448_v51 = vld [vmem:[%s7626_s12 + $0x2b0] sm:$0xff]  ;;  %v445_v50 = vld [vmem:[%s7626_s12 + $0x298] sm:$0xff] }
 0xf4f   :  { %v449_v58 = vld [vmem:[%s7626_s12 + $0x2b8] sm:$0xff]  ;;  %v4847_v53 = vcombine.high %v444_v17, %v448_v51  ;;  %v4846_v39 = vcombine.low %v444_v17, %v448_v51 }
 0xf50   :  { %v4849_v54 = vcombine.high %v445_v50, %v449_v58  ;;  %v4848_v41 = vcombine.low %v445_v50, %v449_v58  ;;  %v5441_v17 = vld [vmem:[%s7627_s14 + $0x14] ss:$8 sps:$4 sm:$0xff]   ;;  %v5439_v51 = vld [vmem:[%s7627_s14 + $0x10] ss:$8 sps:$4 sm:$0xff]   ;;  %v5444_v50 = vld [vmem:[%s7627_s14 + $0x24] ss:$8 sps:$4 sm:$0xff]  }
 0xf51   :  { %3294 = vmatpush1.bf16.msra.mxu1 %v4790_v57  ;;  %3337 = vmatpush1.bf16.msra.mxu0 %v4792_v60  ;;  %v452_v57 = vld [vmem:[%s7626_s12 + $0x2d0] sm:$0xff]  ;;  %v5442_v58 = vld [vmem:[%s7627_s14 + $0x20] ss:$8 sps:$4 sm:$0xff]  }
 0xf52   :  { %3295 = vmatprep.subr.bf16.mxu1 %v4799_v0  ;;  %3338 = vmatprep.subr.bf16.mxu0 %v4801_v34  ;;  %v456_v60 = vld [vmem:[%s7626_s12 + $0x2f0] sm:$0xff]  ;;  %v453_v0 = vld [vmem:[%s7626_s12 + $0x2d8] sm:$0xff] }
 0xf53   :  { %v457_v34 = vld [vmem:[%s7626_s12 + $0x2f8] sm:$0xff]  ;;  %v4855_v42 = vcombine.high %v452_v57, %v456_v60  ;;  %v4854_v10 = vcombine.low %v452_v57, %v456_v60  ;;  %v5456_v60 = vld [vmem:[%s7627_s14 + $0x64] ss:$8 sps:$4 sm:$0xff]  }
 0xf54   :  { %v4857_v5 = vcombine.high %v453_v0, %v457_v34  ;;  %v4856_v11 = vcombine.low %v453_v0, %v457_v34  ;;  %v5451_v57 = vld [vmem:[%s7627_s14 + $0x50] ss:$8 sps:$4 sm:$0xff]   ;;  %v5454_v0 = vld [vmem:[%s7627_s14 + $0x60] ss:$8 sps:$4 sm:$0xff]   ;;  %v5459_v34 = vld [vmem:[%s7627_s14 + $0x74] ss:$8 sps:$4 sm:$0xff]  }
 0xf55   :  { %3296 = vmatpush1.bf16.msra.mxu1 %v4798_v1  ;;  %3339 = vmatpush1.bf16.msra.mxu0 %v4800_v3  ;;  %v460_v1 = vld [vmem:[%s7626_s12 + $0x310] sm:$0xff] }
 0xf56   :  { %3297 = vmatprep.subr.bf16.mxu1 %v4807_v4  ;;  %3340 = vmatprep.subr.bf16.mxu0 %v4809_v9  ;;  %v464_v3 = vld [vmem:[%s7626_s12 + $0x330] sm:$0xff]  ;;  %v461_v4 = vld [vmem:[%s7626_s12 + $0x318] sm:$0xff] }
 0xf57   :  { %v465_v9 = vld [vmem:[%s7626_s12 + $0x338] sm:$0xff]  ;;  %v4863_v12 = vcombine.high %v460_v1, %v464_v3  ;;  %v4862_v18 = vcombine.low %v460_v1, %v464_v3  ;;  %v5468_v3 = vld [vmem:[%s7627_s14 + $0xa4] ss:$8 sps:$4 sm:$0xff]  }
 0xf58   :  { %v4865_v13 = vcombine.high %v461_v4, %v465_v9  ;;  %v4864_v52 = vcombine.low %v461_v4, %v465_v9  ;;  %v5463_v1 = vld [vmem:[%s7627_s14 + $0x90] ss:$8 sps:$4 sm:$0xff]   ;;  %v5466_v4 = vld [vmem:[%s7627_s14 + $0xa0] ss:$8 sps:$4 sm:$0xff]   ;;  %v5471_v9 = vld [vmem:[%s7627_s14 + $0xb4] ss:$8 sps:$4 sm:$0xff]  }
 0xf59   :  { %3298 = vmatpush1.bf16.msra.mxu1 %v4806_v14  ;;  %3341 = vmatpush1.bf16.msra.mxu0 %v4808_v44  ;;  %v468_v14 = vld [vmem:[%s7626_s12 + $0x350] sm:$0xff] }
 0xf5a   :  { %3299 = vmatprep.subr.bf16.mxu1 %v4815_v15  ;;  %3342 = vmatprep.subr.bf16.mxu0 %v4817_v55  ;;  %v472_v44 = vld [vmem:[%s7626_s12 + $0x370] sm:$0xff]  ;;  %v469_v15 = vld [vmem:[%s7626_s12 + $0x358] sm:$0xff] }
 0xf5b   :  { %v473_v55 = vld [vmem:[%s7626_s12 + $0x378] sm:$0xff]  ;;  %v4871_v19 = vcombine.high %v468_v14, %v472_v44  ;;  %v4870_v31 = vcombine.low %v468_v14, %v472_v44  ;;  %v5480_v44 = vld [vmem:[%s7627_s14 + $0xe4] ss:$8 sps:$4 sm:$0xff]  }
 0xf5c   :  { %v4873_v23 = vcombine.high %v469_v15, %v473_v55  ;;  %v4872_v25 = vcombine.low %v469_v15, %v473_v55  ;;  %v5475_v14 = vld [vmem:[%s7627_s14 + $0xd0] ss:$8 sps:$4 sm:$0xff]   ;;  %v5478_v15 = vld [vmem:[%s7627_s14 + $0xe0] ss:$8 sps:$4 sm:$0xff]   ;;  %v5483_v55 = vld [vmem:[%s7627_s14 + $0xf4] ss:$8 sps:$4 sm:$0xff]  }
 0xf5d   :  { %3300 = vmatpush1.bf16.msra.mxu1 %v4814_v26  ;;  %3343 = vmatpush1.bf16.msra.mxu0 %v4816_v29  ;;  %v476_v26 = vld [vmem:[%s7626_s12 + $0x390] sm:$0xff] }
 0xf5e   :  { %3301 = vmatprep.subr.bf16.mxu1 %v4823_v32  ;;  %3344 = vmatprep.subr.bf16.mxu0 %v4825_v47  ;;  %v480_v29 = vld [vmem:[%s7626_s12 + $0x3b0] sm:$0xff]  ;;  %v477_v32 = vld [vmem:[%s7626_s12 + $0x398] sm:$0xff] }
 0xf5f   :  { %v481_v47 = vld [vmem:[%s7626_s12 + $0x3b8] sm:$0xff]  ;;  %v4879_v35 = vcombine.high %v476_v26, %v480_v29  ;;  %v4878_v45 = vcombine.low %v476_v26, %v480_v29 }
 0xf60   :  { %v4881_v37 = vcombine.high %v477_v32, %v481_v47  ;;  %v4880_v46 = vcombine.low %v477_v32, %v481_v47 }
 0xf61   :  { %3302 = vmatpush1.bf16.msra.mxu1 %v4822_v30  ;;  %3345 = vmatpush1.bf16.msra.mxu0 %v4824_v38  ;;  %v484_v30 = vld [vmem:[%s7626_s12 + $0x3d0] sm:$0xff] }
 0xf62   :  { %3303 = vmatprep.subr.bf16.mxu1 %v4831_v40  ;;  %3346 = vmatprep.subr.bf16.mxu0 %v4833_v43  ;;  %v488_v38 = vld [vmem:[%s7626_s12 + $0x3f0] sm:$0xff]  ;;  %v485_v40 = vld [vmem:[%s7626_s12 + $0x3d8] sm:$0xff] }
 0xf63   :  { %v489_v43 = vld [vmem:[%s7626_s12 + $0x3f8] sm:$0xff]  ;;  %v4887_v48 = vcombine.high %v484_v30, %v488_v38 }
 0xf64   :  { %v4889_v49 = vcombine.high %v485_v40, %v489_v43 }
 0xf65   :  { %3304 = vmatpush1.bf16.msra.mxu1 %v4830_v59  ;;  %3347 = vmatpush1.bf16.msra.mxu0 %v4832_v63  ;;  %v4886_v59 = vcombine.low %v484_v30, %v488_v38  ;;  %v4888_v63 = vcombine.low %v485_v40, %v489_v43 }
 0xf66   :  { %3305 = vmatprep.subr.bf16.mxu1 %v4839_v16  ;;  %3348 = vmatprep.subr.bf16.mxu0 %v4841_v7  ;;  %v5438_v16 = vld [vmem:[%s7627_s14 + $0x4] ss:$8 sps:$4 sm:$0xff]   ;;  %v5436_v7 = vld [vmem:[%s7627_s14] ss:$8 sps:$4 sm:$0xff]  }
 0xf69   :  { %3306 = vmatpush1.bf16.msra.mxu1 %v4838_v2  ;;  %3349 = vmatpush1.bf16.msra.mxu0 %v4840_v20  ;;  %v5445_v2 = vld [vmem:[%s7627_s14 + $0x30] ss:$8 sps:$4 sm:$0xff]   ;;  %v5450_v20 = vld [vmem:[%s7627_s14 + $0x44] ss:$8 sps:$4 sm:$0xff]  }
 0xf6a   :  { %3307 = vmatprep.subr.bf16.mxu1 %v4847_v53  ;;  %3350 = vmatprep.subr.bf16.mxu0 %v4849_v54  ;;  %v5448_v53 = vld [vmem:[%s7627_s14 + $0x40] ss:$8 sps:$4 sm:$0xff]   ;;  %v5453_v54 = vld [vmem:[%s7627_s14 + $0x54] ss:$8 sps:$4 sm:$0xff]  }
 0xf6d   :  { %3308 = vmatpush1.bf16.msra.mxu1 %v4846_v39  ;;  %3351 = vmatpush1.bf16.msra.mxu0 %v4848_v41  ;;  %v5457_v39 = vld [vmem:[%s7627_s14 + $0x70] ss:$8 sps:$4 sm:$0xff]   ;;  %v5462_v41 = vld [vmem:[%s7627_s14 + $0x84] ss:$8 sps:$4 sm:$0xff]  }
 0xf6e   :  { %3309 = vmatprep.subr.bf16.mxu1 %v4855_v42  ;;  %3352 = vmatprep.subr.bf16.mxu0 %v4857_v5  ;;  %v5460_v42 = vld [vmem:[%s7627_s14 + $0x80] ss:$8 sps:$4 sm:$0xff]   ;;  %v5465_v5 = vld [vmem:[%s7627_s14 + $0x94] ss:$8 sps:$4 sm:$0xff]  }
 0xf71   :  { %3310 = vmatpush1.bf16.msra.mxu1 %v4854_v10  ;;  %3353 = vmatpush1.bf16.msra.mxu0 %v4856_v11  ;;  %v5469_v10 = vld [vmem:[%s7627_s14 + $0xb0] ss:$8 sps:$4 sm:$0xff]   ;;  %v5474_v11 = vld [vmem:[%s7627_s14 + $0xc4] ss:$8 sps:$4 sm:$0xff]  }
 0xf72   :  { %3311 = vmatprep.subr.bf16.mxu1 %v4863_v12  ;;  %3354 = vmatprep.subr.bf16.mxu0 %v4865_v13  ;;  %v5472_v12 = vld [vmem:[%s7627_s14 + $0xc0] ss:$8 sps:$4 sm:$0xff]   ;;  %v5477_v13 = vld [vmem:[%s7627_s14 + $0xd4] ss:$8 sps:$4 sm:$0xff]  }
 0xf75   :  { %3312 = vmatpush1.bf16.msra.mxu1 %v4862_v18  ;;  %3355 = vmatpush1.bf16.msra.mxu0 %v4864_v52  ;;  %v5481_v18 = vld [vmem:[%s7627_s14 + $0xf0] ss:$8 sps:$4 sm:$0xff]   ;;  %v5486_v52 = vld [vmem:[%s7627_s14 + $0x104] ss:$8 sps:$4 sm:$0xff]  }
 0xf76   :  { %3313 = vmatprep.subr.bf16.mxu1 %v4871_v19  ;;  %3356 = vmatprep.subr.bf16.mxu0 %v4873_v23  ;;  %v7088_v19 = vld [vmem:[%s7630_s13] sm:$0xff] }
 0xf77   :  { %v2524_v23 = vrot.slane %v7088_v19, %v5886_v22  ;;  %v2532_v26 = vrot.slane %v7088_v19, %v696_v27  ;;  %v2528_v29 = vrot.slane %v7088_v19, %v5892_v24  ;;  %v2536_v32 = vrot.slane %v7088_v19, %v700_v28 }
 0xf79   :  { %3314 = vmatpush1.bf16.msra.mxu1 %v4870_v31  ;;  %3357 = vmatpush1.bf16.msra.mxu0 %v4872_v25 }
 0xf7a   :  { %3315 = vmatprep.subr.bf16.mxu1 %v4879_v35  ;;  %3358 = vmatprep.subr.bf16.mxu0 %v4881_v37 }
 0xf7d   :  { %3316 = vmatpush1.bf16.msra.mxu1 %v4878_v45  ;;  %3359 = vmatpush1.bf16.msra.mxu0 %v4880_v46 }
 0xf7e   :  { %3317 = vmatprep.subr.bf16.mxu1 %v4887_v48  ;;  %3360 = vmatprep.subr.bf16.mxu0 %v4889_v49 }
 0xf81   :  { %3318 = vmatpush1.bf16.msra.mxu1 %v4886_v59  ;;  %3361 = vmatpush1.bf16.msra.mxu0 %v4888_v63 }
 0xf82   :  { %4176 = vmatprep.subr.bf16.mxu1 %v5438_v16 }
 0xf84   :  { %3320 = vmatmul.mubr.bf16.vlgmr.msra.gmra.mrb[24].mxu1 %v6812_v33  ;;  %3363 = vmatmul.mubr.bf16.vlgmr.msra.gmra.mrb[68].mxu0 %v6812_v33  ;;  %v5447_v33 = vld [vmem:[%s7627_s14 + $0x34] ss:$8 sps:$4 sm:$0xff]  }
 0xf85   :  { %4177 = vmatpush1.bf16.msra.mxu1 %v5436_v7 }
 0xf86   :  { %4178 = vmatprep.subr.bf16.mxu1 %v5441_v17 }
 0xf89   :  { %4179 = vmatpush1.bf16.msra.mxu1 %v5439_v51 }
 0xf8a   :  { %4180 = vmatprep.subr.bf16.mxu1 %v5444_v50 }
 0xf8d   :  { %4181 = vmatpush1.bf16.msra.mxu1 %v5442_v58 }
 0xf8e   :  { %4182 = vmatprep.subr.bf16.mxu1 %v5447_v33 }
 0xf91   :  { %4183 = vmatpush1.bf16.msra.mxu1 %v5445_v2 }
 0xf92   :  { %4184 = vmatprep.subr.bf16.mxu1 %v5450_v20 }
 0xf95   :  { %4185 = vmatpush1.bf16.msra.mxu1 %v5448_v53 }
 0xf96   :  { %4186 = vmatprep.subr.bf16.mxu1 %v5453_v54 }
 0xf99   :  { %4187 = vmatpush1.bf16.msra.mxu1 %v5451_v57 }
 0xf9a   :  { %4188 = vmatprep.subr.bf16.mxu1 %v5456_v60 }
 0xf9d   :  { %4189 = vmatpush1.bf16.msra.mxu1 %v5454_v0 }
 0xf9e   :  { %4190 = vmatprep.subr.bf16.mxu1 %v5459_v34 }
 0xfa1   :  { %4191 = vmatpush1.bf16.msra.mxu1 %v5457_v39 }
 0xfa2   :  { %4192 = vmatprep.subr.bf16.mxu1 %v5462_v41 }
 0xfa5   :  { %4193 = vmatpush1.bf16.msra.mxu1 %v5460_v42 }
 0xfa6   :  { %4194 = vmatprep.subr.bf16.mxu1 %v5465_v5 }
 0xfa9   :  { %4195 = vmatpush1.bf16.msra.mxu1 %v5463_v1 }
 0xfaa   :  { %4196 = vmatprep.subr.bf16.mxu1 %v5468_v3 }
 0xfad   :  { %4197 = vmatpush1.bf16.msra.mxu1 %v5466_v4 }
 0xfae   :  { %4198 = vmatprep.subr.bf16.mxu1 %v5471_v9 }
 0xfb1   :  { %4199 = vmatpush1.bf16.msra.mxu1 %v5469_v10 }
 0xfb2   :  { %4200 = vmatprep.subr.bf16.mxu1 %v5474_v11 }
 0xfb5   :  { %4201 = vmatpush1.bf16.msra.mxu1 %v5472_v12 }
 0xfb6   :  { %4202 = vmatprep.subr.bf16.mxu1 %v5477_v13 }
 0xfb9   :  { %4203 = vmatpush1.bf16.msra.mxu1 %v5475_v14 }
 0xfba   :  { %4204 = vmatprep.subr.bf16.mxu1 %v5480_v44 }
 0xfbd   :  { %4205 = vmatpush1.bf16.msra.mxu1 %v5478_v15 }
 0xfbe   :  { %4206 = vmatprep.subr.bf16.mxu1 %v5483_v55 }
 0xfc1   :  { %4207 = vmatpush1.bf16.msra.mxu1 %v5481_v18 }
 0xfc2   :  { %4219 = vmatprep.subr.bf16.mxu1 %v5486_v52 }
0x1017   :  { %v3235_v47 = vpop.f32.mrb[20].mxu1  ;;  %v3278_v31 = vpop.f32.mrb[64].mxu0 }
0x1018   :  { %v7100_v25 = vadd.f32 %v3235_v47, %v2524_v23  ;;  %v7102_v35 = vadd.f32 %v3278_v31, %v2532_v26  ;;  %v3237_v37 = vpop.f32.mrb[21].mxu1  ;;  %v3280_v30 = vpop.f32.mrb[65].mxu0 }
0x1019   :  { %v7104_v38 = vadd.f32 %v3237_v37, %v2528_v29  ;;  %v7106_v40 = vadd.f32 %v3280_v30, %v2536_v32  ;;  %v3239_v27 = vpop.f32.mrb[22].mxu1  ;;  %v3282_v43 = vpop.f32.mrb[66].mxu0 }
0x101a   :  { %v3373_v45 = vmul.f32 %v7100_v25, %v7100_v25  ;;  %v3375_v28 = vmul.f32 %v7102_v35, %v7102_v35  ;;  %v7112_v46 = vadd.f32 %v3239_v27, %v2524_v23  ;;  %v7114_v48 = vadd.f32 %v3282_v43, %v2532_v26  ;;  %v3241_v49 = vpop.f32.mrb[23].mxu1  ;;  %v3284_v59 = vpop.f32.mrb[67].mxu0 }
0x101b   :  { %v3374_v63 = vmul.f32 %v7104_v38, %v7104_v38  ;;  %v3376_v16 = vmul.f32 %v7106_v40, %v7106_v40  ;;  %v7120_v7 = vadd.f32 %v3241_v49, %v2528_v29  ;;  %v7122_v17 = vadd.f32 %v3284_v59, %v2536_v32 }
0x101c   :  { %v3389_v51 = vmul.f32 %v3373_v45, %v7100_v25  ;;  %v3391_v50 = vmul.f32 %v3375_v28, %v7102_v35  ;;  %v3381_v58 = vmul.f32 %v7112_v46, %v7112_v46  ;;  %v3383_v33 = vmul.f32 %v7114_v48, %v7114_v48 }
0x101d   :  { %v3390_v2 = vmul.f32 %v3374_v63, %v7104_v38  ;;  %v3392_v20 = vmul.f32 %v3376_v16, %v7106_v40  ;;  %v3382_v53 = vmul.f32 %v7120_v7, %v7120_v7  ;;  %v3384_v54 = vmul.f32 %v7122_v17, %v7122_v17 }
0x101e   :  { %v3405_v57 = vmul.f32 0.044715, %v3389_v51  ;;  %v3407_v60 = vmul.f32 0.044715, %v3391_v50  ;;  %v3397_v0 = vmul.f32 %v3381_v58, %v7112_v46  ;;  %v3399_v34 = vmul.f32 %v3383_v33, %v7114_v48 }
0x101f   :  { %v3406_v39 = vmul.f32 0.044715, %v3390_v2  ;;  %v3408_v41 = vmul.f32 0.044715, %v3392_v20  ;;  %v3398_v42 = vmul.f32 %v3382_v53, %v7120_v7  ;;  %v3400_v5 = vmul.f32 %v3384_v54, %v7122_v17 }
0x1020   :  { %v3421_v1 = vadd.f32 %v3405_v57, %v7100_v25  ;;  %v3423_v3 = vadd.f32 %v3407_v60, %v7102_v35  ;;  %v3413_v4 = vmul.f32 0.044715, %v3397_v0  ;;  %v3415_v9 = vmul.f32 0.044715, %v3399_v34 }
0x1021   :  { %v3422_v10 = vadd.f32 %v3406_v39, %v7104_v38  ;;  %v3424_v11 = vadd.f32 %v3408_v41, %v7106_v40  ;;  %v3414_v12 = vmul.f32 0.044715, %v3398_v42  ;;  %v3416_v13 = vmul.f32 0.044715, %v3400_v5 }
0x1022   :  { %v3437_v14 = vmul.f32 0.7978846, %v3421_v1  ;;  %v3439_v44 = vmul.f32 0.7978846, %v3423_v3  ;;  %v3429_v15 = vadd.f32 %v3413_v4, %v7112_v46  ;;  %v3431_v55 = vadd.f32 %v3415_v9, %v7114_v48 }
0x1023   :  { %v3438_v18 = vmul.f32 0.7978846, %v3422_v10  ;;  %v3440_v52 = vmul.f32 0.7978846, %v3424_v11  ;;  %v3430_v23 = vadd.f32 %v3414_v12, %v7120_v7  ;;  %v3432_v26 = vadd.f32 %v3416_v13, %v7122_v17  ;;  %v5495_v13 = vld [vmem:[%s7627_s14 + $0x134] ss:$8 sps:$4 sm:$0xff]  }
0x1024   :  { %5684 = vtanh.f32 %v3437_v14  ;;  %v3445_v29 = vmul.f32 0.7978846, %v3429_v15  ;;  %v3447_v32 = vmul.f32 0.7978846, %v3431_v55  ;;  %v5493_v14 = vld [vmem:[%s7627_s14 + $0x130] ss:$8 sps:$4 sm:$0xff]  }
0x1025   :  { %5686 = vtanh.f32 %v3439_v44  ;;  %v3446_v47 = vmul.f32 0.7978846, %v3430_v23  ;;  %v3448_v31 = vmul.f32 0.7978846, %v3432_v26  ;;  %v5498_v44 = vld [vmem:[%s7627_s14 + $0x144] ss:$8 sps:$4 sm:$0xff]  }
0x1026   :  { %5688 = vtanh.f32 %v3438_v18  ;;  %v5496_v15 = vld [vmem:[%s7627_s14 + $0x140] ss:$8 sps:$4 sm:$0xff]   ;;  %v5501_v55 = vld [vmem:[%s7627_s14 + $0x154] ss:$8 sps:$4 sm:$0xff]   ;;  %v5499_v18 = vld [vmem:[%s7627_s14 + $0x150] ss:$8 sps:$4 sm:$0xff]  }
0x1027   :  { %5690 = vtanh.f32 %v3440_v52  ;;  %v5504_v52 = vld [vmem:[%s7627_s14 + $0x164] ss:$8 sps:$4 sm:$0xff]   ;;  %v2547_v23 = vsub.s32 6, %v5883_v21  ;;  %v2551_v26 = vsub.s32 7, %v5883_v21 }
0x1028   :  { %5692 = vtanh.f32 %v3445_v29  ;;  %v5502_v29 = vld [vmem:[%s7627_s14 + $0x160] ss:$8 sps:$4 sm:$0xff]   ;;  %v5510_v21 = vld [vmem:[%s7627_s14 + $0x184] ss:$8 sps:$4 sm:$0xff]  }
0x1029   :  { %5694 = vtanh.f32 %v3447_v32  ;;  %v2540_v32 = vrot.slane %v7088_v19, %v704_v8 }
0x102a   :  { %5696 = vtanh.f32 %v3446_v47  ;;  %v2548_v47 = vrot.slane %v7088_v19, %v2547_v23 }
0x102b   :  { %5698 = vtanh.f32 %v3448_v31  ;;  %v5507_v31 = vld [vmem:[%s7627_s14 + $0x174] ss:$8 sps:$4 sm:$0xff]  }
0x102e   :  { %v5685_v37 = vpop.eup %5684 }
0x102f   :  { %v5687_v30 = vpop.eup %5686  ;;  %v3469_v27 = vadd.f32 1.0, %v5685_v37  ;;  %v2544_v37 = vrot.slane %v7088_v19, %v708_v6 }
0x1030   :  { %v5689_v43 = vpop.eup %5688  ;;  %v3471_v45 = vadd.f32 1.0, %v5687_v30  ;;  %v2552_v30 = vrot.slane %v7088_v19, %v2551_v26 }
0x1031   :  { %v5691_v28 = vpop.eup %5690  ;;  %v3470_v49 = vadd.f32 1.0, %v5689_v43  ;;  %v3485_v51 = vmul.f32 0.5, %v3469_v27 }
0x1032   :  { %v5693_v59 = vpop.eup %5692  ;;  %v3472_v63 = vadd.f32 1.0, %v5691_v28  ;;  %v3487_v33 = vmul.f32 0.5, %v3471_v45  ;;  %v5505_v45 = vld [vmem:[%s7627_s14 + $0x170] ss:$8 sps:$4 sm:$0xff]  }
0x1033   :  { %v5695_v16 = vpop.eup %5694  ;;  %v3477_v50 = vadd.f32 1.0, %v5693_v59  ;;  %v3486_v57 = vmul.f32 0.5, %v3470_v49  ;;  %v3501_v39 = vmul.f32 %v3485_v51, %v7100_v25 }
0x1034   :  { %v5697_v58 = vpop.eup %5696  ;;  %v3479_v2 = vadd.f32 1.0, %v5695_v16  ;;  %v3488_v34 = vmul.f32 0.5, %v3472_v63  ;;  %v7151_v5 = vmul.f32 %v3487_v33, %v7102_v35  ;;  %v5484_v35 = vld [vmem:[%s7627_s14 + $0x100] ss:$8 sps:$4 sm:$0xff]  }
0x1035   :  { %v5699_v20 = vpop.eup %5698  ;;  %v3493_v53 = vmul.f32 0.5, %v3477_v50  ;;  %v3478_v54 = vadd.f32 1.0, %v5697_v58  ;;  %v3502_v4 = vmul.f32 %v3486_v57, %v7104_v38  ;;  %v5489_v38 = vld [vmem:[%s7627_s14 + $0x114] ss:$8 sps:$4 sm:$0xff]  }
0x1036   :  { %v3495_v60 = vmul.f32 0.5, %v3479_v2  ;;  %v3480_v0 = vadd.f32 1.0, %v5699_v20  ;;  %v3504_v11 = vmul.f32 %v3488_v34, %v7106_v40  ;;  %v5487_v40 = vld [vmem:[%s7627_s14 + $0x110] ss:$8 sps:$4 sm:$0xff]  }
0x1037   :  { %v3509_v41 = vmul.f32 %v3493_v53, %v7112_v46  ;;  %v3494_v42 = vmul.f32 0.5, %v3478_v54 }
0x1038   :  { %v7154_v1 = vmul.f32 %v3495_v60, %v7114_v48  ;;  %v3496_v3 = vmul.f32 0.5, %v3480_v0  ;;  %v5508_v0 = vld [vmem:[%s7627_s14 + $0x180] ss:$8 sps:$4 sm:$0xff]  }
0x1039   :  { %v3510_v9 = vmul.f32 %v3494_v42, %v7120_v7  ;;  %v3517_v10 = vpack.c.bf16 %v3509_v41, %v3501_v39  ;;  %v5492_v7 = vld [vmem:[%s7627_s14 + $0x124] ss:$8 sps:$4 sm:$0xff]  }
0x103a   :  { %v3512_v12 = vmul.f32 %v3496_v3, %v7122_v17  ;;  %v3519_v25 = vpack.c.bf16 %v7154_v1, %v7151_v5  ;;  %v5490_v17 = vld [vmem:[%s7627_s14 + $0x120] ss:$8 sps:$4 sm:$0xff]   ;;  %v5513_v3 = vld [vmem:[%s7627_s14 + $0x194] ss:$8 sps:$4 sm:$0xff]   ;;  %v5541_v1 = vld [vmem:[%s7627_s14 + $0x230] ss:$8 sps:$4 sm:$0xff]  }
0x103b   :  { %v3518_v46 = vpack.c.bf16 %v3510_v9, %v3502_v4  ;;  %v5543_v5 = vld [vmem:[%s7627_s14 + $0x234] ss:$8 sps:$4 sm:$0xff]  }
0x103c   :  { %v3520_v48 = vpack.c.bf16 %v3512_v12, %v3504_v11 }
0x103d   :  { %4208 = vmatprep.mubr.bf16.mxu1 %v3518_v46 }
0x103e   :  { %4209 = vmatmul.mubr.bf16.vlgmr.msra.gmra.mrb[28].mxu1 %v3517_v10 }
0x103f   :  { %4220 = vmatpush1.bf16.msra.mxu1 %v5484_v35  ;;  %4251 = vmatprep.mubr.bf16.mxu1 %v3520_v48 }
0x1040   :  { %4221 = vmatprep.subr.bf16.mxu1 %v5489_v38 }
0x1043   :  { %4222 = vmatpush1.bf16.msra.mxu1 %v5487_v40 }
0x1044   :  { %4223 = vmatprep.subr.bf16.mxu1 %v5492_v7 }
0x1047   :  { %4224 = vmatpush1.bf16.msra.mxu1 %v5490_v17 }
0x1048   :  { %4225 = vmatprep.subr.bf16.mxu1 %v5495_v13  ;;  %v5511_v13 = vld [vmem:[%s7627_s14 + $0x190] ss:$8 sps:$4 sm:$0xff]  }
0x104b   :  { %4226 = vmatpush1.bf16.msra.mxu1 %v5493_v14 }
0x104c   :  { %4227 = vmatprep.subr.bf16.mxu1 %v5498_v44 }
0x104f   :  { %4228 = vmatpush1.bf16.msra.mxu1 %v5496_v15 }
0x1050   :  { %4229 = vmatprep.subr.bf16.mxu1 %v5501_v55 }
0x1053   :  { %4230 = vmatpush1.bf16.msra.mxu1 %v5499_v18  ;;  %v5516_v18 = vld [vmem:[%s7627_s14 + $0x1a4] ss:$8 sps:$4 sm:$0xff]  }
0x1054   :  { %4231 = vmatprep.subr.bf16.mxu1 %v5504_v52 }
0x1057   :  { %4232 = vmatpush1.bf16.msra.mxu1 %v5502_v29  ;;  %v3321_v27 = vpop.f32.mrb[24].mxu1  ;;  %v3364_v43 = vpop.f32.mrb[68].mxu0 }
0x1058   :  { %v7217_v8 = vadd.f32 %v3321_v27, %v2540_v32  ;;  %v7219_v28 = vadd.f32 %v3364_v43, %v2548_v47  ;;  %4233 = vmatprep.subr.bf16.mxu1 %v5507_v31  ;;  %v3323_v49 = vpop.f32.mrb[25].mxu1  ;;  %v3366_v59 = vpop.f32.mrb[69].mxu0 }
0x1059   :  { %v7224_v6 = vadd.f32 %v3323_v49, %v2544_v37  ;;  %v7226_v19 = vadd.f32 %v3366_v59, %v2552_v30  ;;  %v3325_v63 = vpop.f32.mrb[26].mxu1  ;;  %v3368_v16 = vpop.f32.mrb[70].mxu0  ;;  %v5514_v49 = vld [vmem:[%s7627_s14 + $0x1a0] ss:$8 sps:$4 sm:$0xff]  }
0x105a   :  { %v3377_v51 = vmul.f32 %v7217_v8, %v7217_v8  ;;  %v3379_v50 = vmul.f32 %v7219_v28, %v7219_v28  ;;  %v7232_v58 = vadd.f32 %v3325_v63, %v2540_v32  ;;  %v7234_v33 = vadd.f32 %v3368_v16, %v2548_v47  ;;  %v3327_v2 = vpop.f32.mrb[27].mxu1  ;;  %v3370_v20 = vpop.f32.mrb[71].mxu0 }
0x105b   :  { %v3378_v53 = vmul.f32 %v7224_v6, %v7224_v6  ;;  %v3380_v54 = vmul.f32 %v7226_v19, %v7226_v19  ;;  %4234 = vmatpush1.bf16.msra.mxu1 %v5505_v45  ;;  %v7240_v57 = vadd.f32 %v3327_v2, %v2544_v37  ;;  %v7242_v60 = vadd.f32 %v3370_v20, %v2552_v30  ;;  %v5522_v2 = vld [vmem:[%s7627_s14 + $0x1c4] ss:$8 sps:$4 sm:$0xff]   ;;  %v5520_v20 = vld [vmem:[%s7627_s14 + $0x1c0] ss:$8 sps:$4 sm:$0xff]  }
0x105c   :  { %v3393_v34 = vmul.f32 %v3377_v51, %v7217_v8  ;;  %v3395_v39 = vmul.f32 %v3379_v50, %v7219_v28  ;;  %v3385_v41 = vmul.f32 %v7232_v58, %v7232_v58  ;;  %v3387_v42 = vmul.f32 %v7234_v33, %v7234_v33  ;;  %4235 = vmatprep.subr.bf16.mxu1 %v5510_v21  ;;  %v5519_v21 = vld [vmem:[%s7627_s14 + $0x1b4] ss:$8 sps:$4 sm:$0xff]   ;;  %v5517_v50 = vld [vmem:[%s7627_s14 + $0x1b0] ss:$8 sps:$4 sm:$0xff]  }
0x105d   :  { %v3394_v4 = vmul.f32 %v3378_v53, %v7224_v6  ;;  %v3396_v9 = vmul.f32 %v3380_v54, %v7226_v19  ;;  %v3386_v10 = vmul.f32 %v7240_v57, %v7240_v57  ;;  %v3388_v11 = vmul.f32 %v7242_v60, %v7242_v60  ;;  %v5525_v53 = vld [vmem:[%s7627_s14 + $0x1d4] ss:$8 sps:$4 sm:$0xff]  }
0x105e   :  { %v3409_v12 = vmul.f32 0.044715, %v3393_v34  ;;  %v3411_v46 = vmul.f32 0.044715, %v3395_v39  ;;  %v3401_v35 = vmul.f32 %v3385_v41, %v7232_v58  ;;  %v3403_v48 = vmul.f32 %v3387_v42, %v7234_v33  ;;  %v5523_v39 = vld [vmem:[%s7627_s14 + $0x1d0] ss:$8 sps:$4 sm:$0xff]  }
0x105f   :  { %v3410_v38 = vmul.f32 0.044715, %v3394_v4  ;;  %v3412_v40 = vmul.f32 0.044715, %v3396_v9  ;;  %v3402_v7 = vmul.f32 %v3386_v10, %v7240_v57  ;;  %v3404_v17 = vmul.f32 %v3388_v11, %v7242_v60  ;;  %4236 = vmatpush1.bf16.msra.mxu1 %v5508_v0 }
0x1060   :  { %v3425_v14 = vadd.f32 %v3409_v12, %v7217_v8  ;;  %v3427_v44 = vadd.f32 %v3411_v46, %v7219_v28  ;;  %v3417_v15 = vmul.f32 0.044715, %v3401_v35  ;;  %v3419_v55 = vmul.f32 0.044715, %v3403_v48  ;;  %4237 = vmatprep.subr.bf16.mxu1 %v5513_v3  ;;  %v5528_v3 = vld [vmem:[%s7627_s14 + $0x1e4] ss:$8 sps:$4 sm:$0xff]  }
0x1061   :  { %v3426_v52 = vadd.f32 %v3410_v38, %v7224_v6  ;;  %v3428_v23 = vadd.f32 %v3412_v40, %v7226_v19  ;;  %v3418_v26 = vmul.f32 0.044715, %v3402_v7  ;;  %v3420_v29 = vmul.f32 0.044715, %v3404_v17  ;;  %v5526_v48 = vld [vmem:[%s7627_s14 + $0x1e0] ss:$8 sps:$4 sm:$0xff]  }
0x1062   :  { %v3441_v32 = vmul.f32 0.7978846, %v3425_v14  ;;  %v3443_v47 = vmul.f32 0.7978846, %v3427_v44  ;;  %v3433_v31 = vadd.f32 %v3417_v15, %v7232_v58  ;;  %v3435_v37 = vadd.f32 %v3419_v55, %v7234_v33  ;;  %v5531_v17 = vld [vmem:[%s7627_s14 + $0x1f4] ss:$8 sps:$4 sm:$0xff]  }
0x1063   :  { %v3442_v30 = vmul.f32 0.7978846, %v3426_v52  ;;  %v3444_v27 = vmul.f32 0.7978846, %v3428_v23  ;;  %v3434_v43 = vadd.f32 %v3418_v26, %v7240_v57  ;;  %v3436_v45 = vadd.f32 %v3420_v29, %v7242_v60  ;;  %4238 = vmatpush1.bf16.msra.mxu1 %v5511_v13  ;;  %v5529_v29 = vld [vmem:[%s7627_s14 + $0x1f0] ss:$8 sps:$4 sm:$0xff]  }
0x1064   :  { %5700 = vtanh.f32 %v3441_v32  ;;  %v3449_v59 = vmul.f32 0.7978846, %v3433_v31  ;;  %4239 = vmatprep.subr.bf16.mxu1 %v5516_v18  ;;  %v3451_v63 = vmul.f32 0.7978846, %v3435_v37 }
0x1065   :  { %5702 = vtanh.f32 %v3443_v47  ;;  %v3450_v16 = vmul.f32 0.7978846, %v3434_v43  ;;  %v3452_v51 = vmul.f32 0.7978846, %v3436_v45  ;;  %v5532_v45 = vld [vmem:[%s7627_s14 + $0x200] ss:$8 sps:$4 sm:$0xff]  }
0x1066   :  { %5704 = vtanh.f32 %v3442_v30 }
0x1067   :  { %5706 = vtanh.f32 %v3444_v27  ;;  %4240 = vmatpush1.bf16.msra.mxu1 %v5514_v49  ;;  %v5540_v49 = vld [vmem:[%s7627_s14 + $0x224] ss:$8 sps:$4 sm:$0xff]  }
0x1068   :  { %5708 = vtanh.f32 %v3449_v59  ;;  %4241 = vmatprep.subr.bf16.mxu1 %v5519_v21  ;;  %v5538_v59 = vld [vmem:[%s7627_s14 + $0x220] ss:$8 sps:$4 sm:$0xff]  }
0x1069   :  { %5710 = vtanh.f32 %v3451_v63  ;;  %v5544_v21 = vld [vmem:[%s7627_s14 + $0x240] ss:$8 sps:$4 sm:$0xff]   ;;  %v5549_v63 = vld [vmem:[%s7627_s14 + $0x254] ss:$8 sps:$4 sm:$0xff]  }
0x106a   :  { %5712 = vtanh.f32 %v3450_v16  ;;  %v5547_v16 = vld [vmem:[%s7627_s14 + $0x250] ss:$8 sps:$4 sm:$0xff]  }
0x106b   :  { %5714 = vtanh.f32 %v3452_v51  ;;  %4242 = vmatpush1.bf16.msra.mxu1 %v5517_v50  ;;  %v5552_v51 = vld [vmem:[%s7627_s14 + $0x264] ss:$8 sps:$4 sm:$0xff]   ;;  %v5550_v50 = vld [vmem:[%s7627_s14 + $0x260] ss:$8 sps:$4 sm:$0xff]  }
0x106c   :  { %4243 = vmatprep.subr.bf16.mxu1 %v5522_v2  ;;  %v5555_v2 = vld [vmem:[%s7627_s14 + $0x274] ss:$8 sps:$4 sm:$0xff]  }
0x106e   :  { %v5701_v54 = vpop.eup %5700 }
0x106f   :  { %v5703_v0 = vpop.eup %5702  ;;  %v3473_v34 = vadd.f32 1.0, %v5701_v54  ;;  %4244 = vmatpush1.bf16.msra.mxu1 %v5520_v20  ;;  %v5553_v20 = vld [vmem:[%s7627_s14 + $0x270] ss:$8 sps:$4 sm:$0xff]   ;;  %v5556_v54 = vld [vmem:[%s7627_s14 + $0x280] ss:$8 sps:$4 sm:$0xff]  }
0x1070   :  { %v5705_v41 = vpop.eup %5704  ;;  %v3475_v42 = vadd.f32 1.0, %v5703_v0  ;;  %4245 = vmatprep.subr.bf16.mxu1 %v5525_v53  ;;  %v5558_v53 = vld [vmem:[%s7627_s14 + $0x284] ss:$8 sps:$4 sm:$0xff]   ;;  %v5561_v0 = vld [vmem:[%s7627_s14 + $0x294] ss:$8 sps:$4 sm:$0xff]  }
0x1071   :  { %v5707_v4 = vpop.eup %5706  ;;  %v3474_v9 = vadd.f32 1.0, %v5705_v41  ;;  %v3489_v46 = vmul.f32 0.5, %v3473_v34  ;;  %v5559_v34 = vld [vmem:[%s7627_s14 + $0x290] ss:$8 sps:$4 sm:$0xff]   ;;  %v5562_v41 = vld [vmem:[%s7627_s14 + $0x2a0] ss:$8 sps:$4 sm:$0xff]  }
0x1072   :  { %v5709_v10 = vpop.eup %5708  ;;  %v3476_v11 = vadd.f32 1.0, %v5707_v4  ;;  %v3491_v40 = vmul.f32 0.5, %v3475_v42  ;;  %v5567_v42 = vld [vmem:[%s7627_s14 + $0x2b4] ss:$8 sps:$4 sm:$0xff]   ;;  %v5570_v4 = vld [vmem:[%s7627_s14 + $0x2c4] ss:$8 sps:$4 sm:$0xff]  }
0x1073   :  { %v5711_v12 = vpop.eup %5710  ;;  %v3481_v35 = vadd.f32 1.0, %v5709_v10  ;;  %4246 = vmatpush1.bf16.msra.mxu1 %v5523_v39  ;;  %v3490_v15 = vmul.f32 0.5, %v3474_v9  ;;  %v7311_v23 = vmul.f32 %v3489_v46, %v7217_v8  ;;  %v5534_v8 = vld [vmem:[%s7627_s14 + $0x204] ss:$8 sps:$4 sm:$0xff]   ;;  %v5568_v9 = vld [vmem:[%s7627_s14 + $0x2c0] ss:$8 sps:$4 sm:$0xff]  }
0x1074   :  { %v5713_v38 = vpop.eup %5712  ;;  %v3483_v7 = vadd.f32 1.0, %v5711_v12  ;;  %4247 = vmatprep.subr.bf16.mxu1 %v5528_v3  ;;  %v3492_v52 = vmul.f32 0.5, %v3476_v11  ;;  %v7320_v47 = vmul.f32 %v3491_v40, %v7219_v28  ;;  %v5564_v39 = vld [vmem:[%s7627_s14 + $0x2a4] ss:$8 sps:$4 sm:$0xff]   ;;  %v5565_v3 = vld [vmem:[%s7627_s14 + $0x2b0] ss:$8 sps:$4 sm:$0xff]  }
0x1075   :  { %v5715_v13 = vpop.eup %5714  ;;  %v3497_v14 = vmul.f32 0.5, %v3481_v35  ;;  %v3482_v44 = vadd.f32 1.0, %v5713_v38  ;;  %v5573_v10 = vld [vmem:[%s7627_s14 + $0x2d4] ss:$8 sps:$4 sm:$0xff]   ;;  %v5571_v11 = vld [vmem:[%s7627_s14 + $0x2d0] ss:$8 sps:$4 sm:$0xff]  }
0x1076   :  { %v3499_v55 = vmul.f32 0.5, %v3483_v7  ;;  %v3484_v18 = vadd.f32 1.0, %v5715_v13  ;;  %v7333_v43 = vmul.f32 %v3492_v52, %v7226_v19  ;;  %v5576_v12 = vld [vmem:[%s7627_s14 + $0x2e4] ss:$8 sps:$4 sm:$0xff]   ;;  %v5574_v46 = vld [vmem:[%s7627_s14 + $0x2e0] ss:$8 sps:$4 sm:$0xff]  }
0x1077   :  { %v7314_v26 = vmul.f32 %v3497_v14, %v7232_v58  ;;  %4248 = vmatpush1.bf16.msra.mxu1 %v5526_v48  ;;  %v3498_v32 = vmul.f32 0.5, %v3482_v44  ;;  %v3506_v58 = vmul.f32 %v3490_v15, %v7224_v6  ;;  %v5579_v35 = vld [vmem:[%s7627_s14 + $0x2f4] ss:$8 sps:$4 sm:$0xff]   ;;  %v5577_v48 = vld [vmem:[%s7627_s14 + $0x2f0] ss:$8 sps:$4 sm:$0xff]  }
0x1078   :  { %v7323_v31 = vmul.f32 %v3499_v55, %v7234_v33  ;;  %4249 = vmatprep.subr.bf16.mxu1 %v5531_v17  ;;  %v3500_v37 = vmul.f32 0.5, %v3484_v18  ;;  %v5582_v38 = vld [vmem:[%s7627_s14 + $0x304] ss:$8 sps:$4 sm:$0xff]   ;;  %v5580_v40 = vld [vmem:[%s7627_s14 + $0x300] ss:$8 sps:$4 sm:$0xff]  }
0x1079   :  { %v3514_v30 = vmul.f32 %v3498_v32, %v7240_v57  ;;  %v3521_v27 = vpack.c.bf16 %v7314_v26, %v7311_v23  ;;  %v5537_v57 = vld [vmem:[%s7627_s14 + $0x214] ss:$8 sps:$4 sm:$0xff]   ;;  %v5583_v17 = vld [vmem:[%s7627_s14 + $0x310] ss:$8 sps:$4 sm:$0xff]   ;;  %v5588_v13 = vld [vmem:[%s7627_s14 + $0x324] ss:$8 sps:$4 sm:$0xff]  }
0x107a   :  { %v7336_v28 = vmul.f32 %v3500_v37, %v7242_v60  ;;  %v3523_v33 = vpack.c.bf16 %v7323_v31, %v7320_v47  ;;  %v5535_v60 = vld [vmem:[%s7627_s14 + $0x210] ss:$8 sps:$4 sm:$0xff]   ;;  %v5585_v7 = vld [vmem:[%s7627_s14 + $0x314] ss:$8 sps:$4 sm:$0xff]   ;;  %v5586_v14 = vld [vmem:[%s7627_s14 + $0x320] ss:$8 sps:$4 sm:$0xff]  }
0x107b   :  { %4250 = vmatpush1.bf16.msra.mxu1 %v5529_v29  ;;  %v3522_v6 = vpack.c.bf16 %v3514_v30, %v3506_v58  ;;  %v5591_v44 = vld [vmem:[%s7627_s14 + $0x334] ss:$8 sps:$4 sm:$0xff]   ;;  %v5589_v15 = vld [vmem:[%s7627_s14 + $0x330] ss:$8 sps:$4 sm:$0xff]   ;;  %v5594_v55 = vld [vmem:[%s7627_s14 + $0x344] ss:$8 sps:$4 sm:$0xff]  }
0x107c   :  { %4262 = vmatprep.subr.bf16.mxu1 %v5534_v8  ;;  %v3524_v19 = vpack.c.bf16 %v7336_v28, %v7333_v43  ;;  %v5592_v18 = vld [vmem:[%s7627_s14 + $0x340] ss:$8 sps:$4 sm:$0xff]   ;;  %v5597_v52 = vld [vmem:[%s7627_s14 + $0x354] ss:$8 sps:$4 sm:$0xff]   ;;  %v5595_v23 = vld [vmem:[%s7627_s14 + $0x350] ss:$8 sps:$4 sm:$0xff]  }
0x107d   :  { %v5600_v26 = vld [vmem:[%s7627_s14 + $0x364] ss:$8 sps:$4 sm:$0xff]   ;;  %v5598_v29 = vld [vmem:[%s7627_s14 + $0x360] ss:$8 sps:$4 sm:$0xff]   ;;  %v5603_v32 = vld [vmem:[%s7627_s14 + $0x374] ss:$8 sps:$4 sm:$0xff]  }
0x107e   :  { %4252 = vmatmul.mubr.bf16.vlgmr.msra.gmra.mrb[28].mxu1 %v3519_v25  ;;  %v5546_v25 = vld [vmem:[%s7627_s14 + $0x244] ss:$8 sps:$4 sm:$0xff]   ;;  %v5601_v8 = vld [vmem:[%s7627_s14 + $0x370] ss:$8 sps:$4 sm:$0xff]   ;;  %v5604_v58 = vld [vmem:[%s7627_s14 + $0x380] ss:$8 sps:$4 sm:$0xff]  }
0x107f   :  { %4263 = vmatpush1.bf16.msra.mxu1 %v5532_v45  ;;  %4294 = vmatprep.mubr.bf16.mxu1 %v3522_v6  ;;  %v5606_v37 = vld [vmem:[%s7627_s14 + $0x384] ss:$8 sps:$4 sm:$0xff]   ;;  %v5609_v30 = vld [vmem:[%s7627_s14 + $0x394] ss:$8 sps:$4 sm:$0xff]   ;;  %v5610_v28 = vld [vmem:[%s7627_s14 + $0x3a0] ss:$8 sps:$4 sm:$0xff]  }
0x1080   :  { %4264 = vmatprep.subr.bf16.mxu1 %v5537_v57  ;;  %v5612_v43 = vld [vmem:[%s7627_s14 + $0x3a4] ss:$8 sps:$4 sm:$0xff]   ;;  %v5615_v45 = vld [vmem:[%s7627_s14 + $0x3b4] ss:$8 sps:$4 sm:$0xff]   ;;  %v5613_v6 = vld [vmem:[%s7627_s14 + $0x3b0] ss:$8 sps:$4 sm:$0xff]  }
0x1081   :  { %v5618_v57 = vld [vmem:[%s7627_s14 + $0x3c4] ss:$8 sps:$4 sm:$0xff]  }
0x1083   :  { %4265 = vmatpush1.bf16.msra.mxu1 %v5535_v60  ;;  %v5621_v60 = vld [vmem:[%s7627_s14 + $0x3d4] ss:$8 sps:$4 sm:$0xff]  }
0x1084   :  { %4266 = vmatprep.subr.bf16.mxu1 %v5540_v49  ;;  %v5619_v49 = vld [vmem:[%s7627_s14 + $0x3d0] ss:$8 sps:$4 sm:$0xff]  }
0x1087   :  { %4267 = vmatpush1.bf16.msra.mxu1 %v5538_v59  ;;  %v5624_v59 = vld [vmem:[%s7627_s14 + $0x3e4] ss:$8 sps:$4 sm:$0xff]  }
0x1088   :  { %4268 = vmatprep.subr.bf16.mxu1 %v5543_v5  ;;  %v5622_v5 = vld [vmem:[%s7627_s14 + $0x3e0] ss:$8 sps:$4 sm:$0xff]  }
0x108b   :  { %4269 = vmatpush1.bf16.msra.mxu1 %v5541_v1  ;;  %v5627_v1 = vld [vmem:[%s7627_s14 + $0x3f4] ss:$8 sps:$4 sm:$0xff]  }
0x108c   :  { %4270 = vmatprep.subr.bf16.mxu1 %v5546_v25  ;;  %v5625_v25 = vld [vmem:[%s7627_s14 + $0x3f0] ss:$8 sps:$4 sm:$0xff]  }
0x108f   :  { %4271 = vmatpush1.bf16.msra.mxu1 %v5544_v21  ;;  %v619_v21 = vld [vmem:[%s7631_s15] sm:$0x3] }
0x1090   :  { %4272 = vmatprep.subr.bf16.mxu1 %v5549_v63  ;;  %v3529_v63 = vrot.slane %v619_v21, %v5886_v22 }
0x1093   :  { %4273 = vmatpush1.bf16.msra.mxu1 %v5547_v16  ;;  %v3533_v16 = vrot.slane %v619_v21, %v5892_v24 }
0x1094   :  { %4274 = vmatprep.subr.bf16.mxu1 %v5552_v51 }
0x1097   :  { %4275 = vmatpush1.bf16.msra.mxu1 %v5550_v50 }
0x1098   :  { %4276 = vmatprep.subr.bf16.mxu1 %v5555_v2 }
0x109b   :  { %4277 = vmatpush1.bf16.msra.mxu1 %v5553_v20 }
0x109c   :  { %4278 = vmatprep.subr.bf16.mxu1 %v5558_v53 }
0x109f   :  { %4279 = vmatpush1.bf16.msra.mxu1 %v5556_v54 }
0x10a0   :  { %4280 = vmatprep.subr.bf16.mxu1 %v5561_v0 }
0x10a3   :  { %4281 = vmatpush1.bf16.msra.mxu1 %v5559_v34 }
0x10a4   :  { %4282 = vmatprep.subr.bf16.mxu1 %v5564_v39 }
0x10a7   :  { %4283 = vmatpush1.bf16.msra.mxu1 %v5562_v41 }
0x10a8   :  { %4284 = vmatprep.subr.bf16.mxu1 %v5567_v42 }
0x10ab   :  { %4285 = vmatpush1.bf16.msra.mxu1 %v5565_v3  ;;  %v5628_v3 = vld [vmem:[%s7632_s18 + $0x40] sm:$0xff]  }
0x10ac   :  { %4286 = vmatprep.subr.bf16.mxu1 %v5570_v4  ;;  %5072 = vmatprep.subr.bf16.mxu0 %v5628_v3 }
0x10af   :  { %4287 = vmatpush1.bf16.msra.mxu1 %v5568_v9 }
0x10b0   :  { %4288 = vmatprep.subr.bf16.mxu1 %v5573_v10 }
0x10b3   :  { %4289 = vmatpush1.bf16.msra.mxu1 %v5571_v11 }
0x10b4   :  { %4290 = vmatprep.subr.bf16.mxu1 %v5576_v12 }
0x10b7   :  { %4291 = vmatpush1.bf16.msra.mxu1 %v5574_v46 }
0x10b8   :  { %4292 = vmatprep.subr.bf16.mxu1 %v5579_v35 }
0x10bb   :  { %4293 = vmatpush1.bf16.msra.mxu1 %v5577_v48 }
0x10bc   :  { %4305 = vmatprep.subr.bf16.mxu1 %v5582_v38 }
0x10be   :  { %4295 = vmatmul.mubr.bf16.vlgmr.msra.gmra.mrb[28].mxu1 %v3521_v27  ;;  %v5607_v27 = vld [vmem:[%s7627_s14 + $0x390] ss:$8 sps:$4 sm:$0xff]  }
0x10bf   :  { %4306 = vmatpush1.bf16.msra.mxu1 %v5580_v40  ;;  %4337 = vmatprep.mubr.bf16.mxu1 %v3524_v19  ;;  %v5616_v19 = vld [vmem:[%s7627_s14 + $0x3c0] ss:$8 sps:$4 sm:$0xff]  }
0x10c0   :  { %4307 = vmatprep.subr.bf16.mxu1 %v5585_v7 }
0x10c3   :  { %4308 = vmatpush1.bf16.msra.mxu1 %v5583_v17 }
0x10c4   :  { %4309 = vmatprep.subr.bf16.mxu1 %v5588_v13 }
0x10c7   :  { %4310 = vmatpush1.bf16.msra.mxu1 %v5586_v14  ;;  %v5632_v14 = vld [vmem:[%s7632_s18 + $0x50] sm:$0xff]  }
0x10c8   :  { %4311 = vmatprep.subr.bf16.mxu1 %v5591_v44  ;;  %v5633_v44 = vld [vmem:[%s7632_s18 + $0x10] sm:$0xff]  }
0x10cb   :  { %4312 = vmatpush1.bf16.msra.mxu1 %v5589_v15  ;;  %v5634_v15 = vld [vmem:[%s7632_s18 + $0x58] sm:$0xff]  }
0x10cc   :  { %4313 = vmatprep.subr.bf16.mxu1 %v5594_v55  ;;  %v5635_v55 = vld [vmem:[%s7632_s18 + $0x18] sm:$0xff]  }
0x10cf   :  { %4314 = vmatpush1.bf16.msra.mxu1 %v5592_v18  ;;  %v5636_v18 = vld [vmem:[%s7632_s18 + $0x60] sm:$0xff]  }
0x10d0   :  { %4315 = vmatprep.subr.bf16.mxu1 %v5597_v52  ;;  %v5637_v52 = vld [vmem:[%s7632_s18 + $0x20] sm:$0xff]  }
0x10d3   :  { %4316 = vmatpush1.bf16.msra.mxu1 %v5595_v23  ;;  %v5638_v23 = vld [vmem:[%s7632_s18 + $0x68] sm:$0xff]  }
0x10d4   :  { %4317 = vmatprep.subr.bf16.mxu1 %v5600_v26  ;;  %v5639_v26 = vld [vmem:[%s7632_s18 + $0x28] sm:$0xff]  }
0x10d7   :  { %4318 = vmatpush1.bf16.msra.mxu1 %v5598_v29  ;;  %v5640_v29 = vld [vmem:[%s7632_s18 + $0x70] sm:$0xff]  }
0x10d8   :  { %4319 = vmatprep.subr.bf16.mxu1 %v5603_v32  ;;  %v5641_v32 = vld [vmem:[%s7632_s18 + $0x30] sm:$0xff]  }
0x10db   :  { %4320 = vmatpush1.bf16.msra.mxu1 %v5601_v8  ;;  %v5642_v8 = vld [vmem:[%s7632_s18 + $0x78] sm:$0xff]  }
0x10dc   :  { %4321 = vmatprep.subr.bf16.mxu1 %v5606_v37  ;;  %v5643_v37 = vld [vmem:[%s7632_s18 + $0x38] sm:$0xff]  }
0x10df   :  { %4322 = vmatpush1.bf16.msra.mxu1 %v5604_v58 }
0x10e0   :  { %4323 = vmatprep.subr.bf16.mxu1 %v5609_v30 }
0x10e3   :  { %4324 = vmatpush1.bf16.msra.mxu1 %v5607_v27 }
0x10e4   :  { %4325 = vmatprep.subr.bf16.mxu1 %v5612_v43 }
0x10e7   :  { %4326 = vmatpush1.bf16.msra.mxu1 %v5610_v28 }
0x10e8   :  { %4327 = vmatprep.subr.bf16.mxu1 %v5615_v45 }
0x10eb   :  { %4328 = vmatpush1.bf16.msra.mxu1 %v5613_v6  ;;  %v4352_v6 = vld [vmem:[%s7633_s16] sm:$0x3] }
0x10ec   :  { %4329 = vmatprep.subr.bf16.mxu1 %v5618_v57  ;;  %v4353_v57 = vld [vmem:[%s7634_s17] sm:$0x3] }
0x10ed   :  { %v4409_v21 = vrot.slane %v4353_v57, %v5892_v24 }
0x10ef   :  { %4330 = vmatpush1.bf16.msra.mxu1 %v5616_v19  ;;  %v4390_v19 = vrot.slane %v4352_v6, %v5886_v22 }
0x10f0   :  { %4331 = vmatprep.subr.bf16.mxu1 %v5621_v60  ;;  %v4394_v60 = vrot.slane %v4352_v6, %v5892_v24  ;;  %v5018_v24 = vld [vmem:[%s7635_s19] ss:$0 sm:$0xff] }
0x10f3   :  { %4332 = vmatpush1.bf16.msra.mxu1 %v5619_v49 }
0x10f4   :  { %4333 = vmatprep.subr.bf16.mxu1 %v5624_v59 }
0x10f7   :  { %4334 = vmatpush1.bf16.msra.mxu1 %v5622_v5 }
0x10f8   :  { %4335 = vmatprep.subr.bf16.mxu1 %v5627_v1 }
0x10fb   :  { %4336 = vmatpush1.bf16.msra.mxu1 %v5625_v25  ;;  %v4405_v25 = vrot.slane %v4353_v57, %v5886_v22 }
0x10fe   :  { %4338 = vmatmul.mubr.bf16.vlgmr.msra.gmra.mrb[28].mxu1 %v3523_v33 }
0x11d1   :  { %v4339_v51 = vpop.f32.mrb[28].mxu1 }
0x11d2   :  { %v5190_v50 = vadd.f32 %v4339_v51, %v3529_v63  ;;  %v4341_v2 = vpop.f32.mrb[29].mxu1 }
0x11d3   :  { %v5191_v20 = vadd.f32 %v4341_v2, %v3533_v16  ;;  %v4343_v53 = vpop.f32.mrb[30].mxu1 }
0x11d4   :  { %v4348_v54 = vadd.f32 %v5190_v50, %v6547_v62  ;;  %v5192_v0 = vadd.f32 %v4343_v53, %v3529_v63  ;;  %v4345_v34 = vpop.f32.mrb[31].mxu1  ;;  %v5629_v62 = vld [vmem:[%s7632_s18] sm:$0xff]  }
0x11d5   :  { %v4349_v47 = vadd.f32 %v5191_v20, %v6550_v56  ;;  %v5193_v31 = vadd.f32 %v4345_v34, %v3533_v16  ;;  %v5630_v56 = vld [vmem:[%s7632_s18 + $0x48] sm:$0xff]   ;;  %5073 = vmatpush3.bf16.msra.mxu0 %v5629_v62 }
0x11d6   :  { %v4350_v33 = vadd.f32 %v5192_v0, %v6553_v36  ;;  %v5631_v36 = vld [vmem:[%s7632_s18 + $0x8] sm:$0xff]   ;;  %5074 = vmatprep.subr.bf16.mxu0 %v5630_v56 }
0x11d7   :  { %v4351_v39 = vadd.f32 %v5193_v31, %v6556_v61  ;;  %v4354_v41 = vadd.f32 %v4349_v47, %v4348_v54 }
0x11d9   :  { %4355 = vadd.xlane.f32.xlu0 %v4354_v41  ;;  %v4357_v42 = vadd.f32 %v4351_v39, %v4350_v33  ;;  %5075 = vmatpush3.bf16.msra.mxu0 %v5631_v36 }
0x11da   :  { %5076 = vmatprep.subr.bf16.mxu0 %v5632_v14 }
0x11db   :  { %4358 = vadd.xlane.f32.xlu1 %v4357_v42 }
0x11dd   :  { %5077 = vmatpush3.bf16.msra.mxu0 %v5633_v44 }
0x11de   :  { %5078 = vmatprep.subr.bf16.mxu0 %v5634_v15 }
0x11e1   :  { %5079 = vmatpush3.bf16.msra.mxu0 %v5635_v55 }
0x11e2   :  { %5080 = vmatprep.subr.bf16.mxu0 %v5636_v18 }
0x11e5   :  { %5081 = vmatpush3.bf16.msra.mxu0 %v5637_v52 }
0x11e6   :  { %5082 = vmatprep.subr.bf16.mxu0 %v5638_v23 }
0x11e9   :  { %5083 = vmatpush3.bf16.msra.mxu0 %v5639_v26 }
0x11ea   :  { %5084 = vmatprep.subr.bf16.mxu0 %v5640_v29 }
0x11ed   :  { %5085 = vmatpush3.bf16.msra.mxu0 %v5641_v32 }
0x11ee   :  { %5086 = vmatprep.subr.bf16.mxu0 %v5642_v8 }
0x11f1   :  { %5087 = vmatpush3.bf16.msra.mxu0 %v5643_v37 }
0x1266   :  { %v4356_v61 = vpop.xlane.xlu0 %4355 }
0x1267   :  { %v4360_v4 = vmul.f32 0.00390625, %v4356_v61 }
0x1268   :  { %v4359_v9 = vpop.xlane.xlu1 %4358 }
0x1269   :  { %v4362_v10 = vsub.f32 %v4348_v54, %v4360_v4  ;;  %v4363_v11 = vsub.f32 %v4349_v47, %v4360_v4  ;;  %v4361_v12 = vmul.f32 0.00390625, %v4359_v9 }
0x126b   :  { %v4364_v46 = vsub.f32 %v4350_v33, %v4361_v12  ;;  %v4365_v35 = vsub.f32 %v4351_v39, %v4361_v12  ;;  %v4366_v48 = vmul.f32 %v4362_v10, %v4362_v10  ;;  %v4367_v38 = vmul.f32 %v4363_v11, %v4363_v11 }
0x126d   :  { %v4370_v40 = vadd.f32 %v4367_v38, %v4366_v48  ;;  %v4368_v7 = vmul.f32 %v4364_v46, %v4364_v46  ;;  %v4369_v17 = vmul.f32 %v4365_v35, %v4365_v35 }
0x126f   :  { %4371 = vadd.xlane.f32.xlu0 %v4370_v40  ;;  %v4373_v13 = vadd.f32 %v4369_v17, %v4368_v7 }
0x1271   :  { %4374 = vadd.xlane.f32.xlu1 %v4373_v13 }
0x12fc   :  { %v4372_v58 = vpop.xlane.xlu0 %4371 }
0x12fd   :  { %v4376_v30 = vmul.f32 0.00390625, %v4372_v58 }
0x12fe   :  { %v4375_v27 = vpop.xlane.xlu1 %4374 }
0x12ff   :  { %v4378_v43 = vadd.f32 1e-05, %v4376_v30  ;;  %v4377_v28 = vmul.f32 0.00390625, %v4375_v27 }
0x1301   :  { %5716 = vrsqrt.f32 %v4378_v43  ;;  %v4379_v45 = vadd.f32 1e-05, %v4377_v28 }
0x1303   :  { %5718 = vrsqrt.f32 %v4379_v45 }
0x130b   :  { %v5717_v49 = vpop.eup %5716 }
0x130c   :  { %v4382_v59 = vmul.f32 %v5717_v49, %v4362_v10  ;;  %v4383_v5 = vmul.f32 %v5717_v49, %v4363_v11 }
0x130d   :  { %v5719_v1 = vpop.eup %5718 }
0x130e   :  { %v4384_v63 = vmul.f32 %v5719_v1, %v4364_v46  ;;  %v4385_v16 = vmul.f32 %v5719_v1, %v4365_v35  ;;  %v4398_v51 = vmul.f32 %v4394_v60, %v4383_v5  ;;  %v4397_v50 = vmul.f32 %v4390_v19, %v4382_v59 }
0x1310   :  { %v4400_v2 = vmul.f32 %v4394_v60, %v4385_v16  ;;  %v4399_v20 = vmul.f32 %v4390_v19, %v4384_v63  ;;  %v4413_v53 = vadd.f32 %v4409_v21, %v4398_v51  ;;  %v4412_v0 = vadd.f32 %v4405_v25, %v4397_v50 }
0x1312   :  { %v4415_v54 = vadd.f32 %v4409_v21, %v4400_v2  ;;  %v4414_v34 = vadd.f32 %v4405_v25, %v4399_v20 }
0x1314   :  { %v4417_v47 = vpack.c.bf16 %v4415_v54, %v4413_v53  ;;  %v4416_v31 = vpack.c.bf16 %v4414_v34, %v4412_v0 }
0x1316   :  { %4585 = vmatprep.mubr.bf16.mxu0 %v4417_v47 }
0x1317   :  { %4586 = vmatmul.mubr.bf16.vlgmr.msra.gmra.mrb[72].mxu0 %v4416_v31 }
0x13ea   :  { %v5088_v33 = vpop.f32.mrb[72].mxu0 }
0x13eb   :  { %v5089_v39 = vpop.f32.mrb[73].mxu0 }
0x13ec   :  { %v5090_v41 = vadd.f32 %v5089_v39, %v5088_v33  ;;  %v5091_v22 = vpop.f32.mrb[74].mxu0 }
0x13ed   :  { %v5092_v42 = vpop.f32.mrb[75].mxu0 }
0x13ee   :  { %v5093_v3 = vadd.f32 %v5092_v42, %v5091_v22  ;;  %v4588_v62 = vadd.f32 %v5090_v41, %v5018_v24 }
0x13f0   :  { %v4591_v56 = vadd.f32 %v5093_v3, %v5018_v24 }
0x13f2   :  { %v5038_v36 = vpack.c.bf16 %v4591_v56, %v4588_v62 }
0x13f4   :  { %5039 = vst [vmem:[%s7636_s20] sm:$0xff] %v5038_v36  }

</bundles_post_ra>
